<compile_context>
chip_gen: v6e
topology: v6e:2x2x1
jax: 0.10.0
libtpu: 0.0.40
codegen_flags: <defaults>
</compile_context>

<pallas_src>
import functools
import math

import jax
import jax.numpy as jnp
import numpy as np
from jax.experimental import pallas as pl
from jax.experimental.pallas import tpu as pltpu

EPS = 1e-5  # BatchNorm eps


# ------------------------------ Pallas kernel ---------------------------------

def _basic_block_kernel(xpp_ref, w1_ref, b1_ref, w2_ref, b2_ref, *rest,
                        stride, Ho, Wo, has_downsample):
    """Fused BasicBlock: relu(bn2(conv2(relu(bn1(conv1(x))))) + residual).

    xpp_ref : (s*s, Hs, Ws, Cin) f32   polyphase-stacked, zero-padded input
    w1_ref  : (9, Cin, P)  bf16        conv1 weights, BN1 scale folded in
    b1_ref  : (1, P)       f32         BN1 bias
    w2_ref  : (9, P, P)    bf16        conv2 weights, BN2 scale folded in
    b2_ref  : (1, P)       f32         BN2 bias
    [wd_ref : (Cin, P) bf16, bd_ref : (1, P) f32]  optional 1x1 downsample
    out_ref : (Ho*Wo, P)   f32
    mid_ref : (Ho+2, Wo+2, P) bf16 VMEM scratch (intermediate activation)
    """
    if has_downsample:
        wd_ref, bd_ref, out_ref, mid_ref = rest
    else:
        out_ref, mid_ref = rest

    s = stride
    M = Ho * Wo
    cin = xpp_ref.shape[-1]
    planes = w1_ref.shape[-1]

    def x_tap(kh, kw):
        # Tap (kh, kw) of the stride-s conv, read from the polyphase stack:
        # padded rows kh + s*i live in plane (kh % s) at offset kh // s
        # (same for columns) -> a unit-stride static slice.
        plane = (kh % s) * s + (kw % s)
        h0, w0 = kh // s, kw // s
        return xpp_ref[plane, h0:h0 + Ho, w0:w0 + Wo, :]

    # ---- conv1 (3x3, stride s) + bn1 + relu ----------------------------------
    acc = jnp.zeros((M, planes), jnp.float32)
    for kh in range(3):
        for kw in range(3):
            lhs = x_tap(kh, kw).reshape(M, cin).astype(jnp.bfloat16)
            acc = acc + jnp.dot(lhs, w1_ref[kh * 3 + kw],
                                preferred_element_type=jnp.float32)
    mid = jnp.maximum(acc + b1_ref[...], 0.0)

    # Stage the intermediate activation (with a zero halo for conv2's padding)
    # in VMEM scratch -- it never goes back to HBM.
    mid_ref[...] = jnp.zeros_like(mid_ref)
    mid_ref[1:Ho + 1, 1:Wo + 1, :] = (
        mid.reshape(Ho, Wo, planes).astype(mid_ref.dtype))

    # ---- residual branch ------------------------------------------------------
    # Unpadded input subsampled by s: padded row 1 + s*i -> plane (1 % s),
    # offset 1 // s (same for columns).
    p_res = (1 % s) * s + (1 % s)
    r0 = 1 // s
    x_res = xpp_ref[p_res, r0:r0 + Ho, r0:r0 + Wo, :].reshape(M, cin)
    if has_downsample:
        res = jnp.dot(x_res.astype(jnp.bfloat16), wd_ref[...],
                      preferred_element_type=jnp.float32) + bd_ref[...]
    else:
        res = x_res.astype(jnp.float32)   # identity (cin == planes, stride == 1)

    # ---- conv2 (3x3, stride 1) + bn2 + residual + relu ------------------------
    acc = jnp.zeros((M, planes), jnp.float32)
    for kh in range(3):
        for kw in range(3):
            lhs = mid_ref[kh:kh + Ho, kw:kw + Wo, :].reshape(M, planes)
            acc = acc + jnp.dot(lhs, w2_ref[kh * 3 + kw],
                                preferred_element_type=jnp.float32)
    out = jnp.maximum(acc + b2_ref[...] + res, 0.0)
    out_ref[...] = out.astype(out_ref.dtype)


# ------------------------------- JAX wrapper -----------------------------------

def basic_block_forward(x_nchw, params):
    """BasicBlock forward.  x: (B, Cin, H, W) f32 NCHW -> (B, planes, Ho, Wo)."""
    s = params['stride']
    w1, b1 = params['w1'], params['b1']
    w2, b2 = params['w2'], params['b2']
    has_ds = 'wd' in params

    B, Cin, H, W = x_nchw.shape
    P = w1.shape[-1]
    Ho = (H + 2 - 3) // s + 1
    Wo = (W + 2 - 3) // s + 1
    M = Ho * Wo
    if not has_ds:
        assert s == 1 and Cin == P, "identity residual needs matching shapes"

    # NHWC + zero padding for conv1 (a ~1.3x relayout, not a 9x im2col blowup).
    x = jnp.transpose(x_nchw, (0, 2, 3, 1)).astype(jnp.float32)
    xp = jnp.pad(x, ((0, 0), (1, 1), (1, 1), (0, 0)))
    if s == 1:
        xpp = xp[:, None]                                   # (B, 1, Hp, Wp, Cin)
    else:
        Hp, Wp = H + 2, W + 2
        Hs, Ws = -(-Hp // s), -(-Wp // s)
        phases = []
        for ph in range(s):
            for pw in range(s):
                v = xp[:, ph::s, pw::s, :]
                v = jnp.pad(v, ((0, 0), (0, Hs - v.shape[1]),
                                (0, Ws - v.shape[2]), (0, 0)))
                phases.append(v)
        xpp = jnp.stack(phases, axis=1)                     # (B, s*s, Hs, Ws, Cin)
    nph, Hs, Ws = xpp.shape[1], xpp.shape[2], xpp.shape[3]

    kernel = functools.partial(_basic_block_kernel, stride=s, Ho=Ho, Wo=Wo,
                               has_downsample=has_ds)

    in_specs = [
        # per-image polyphase activation tile (streams over the batch grid)
        pl.BlockSpec((None, nph, Hs, Ws, Cin), lambda b: (b, 0, 0, 0, 0)),
        # weights / biases: constant index_maps -> resident in VMEM, DMA'd once
        pl.BlockSpec((9, Cin, P), lambda b: (0, 0, 0)),
        pl.BlockSpec((1, P), lambda b: (0, 0)),
        pl.BlockSpec((9, P, P), lambda b: (0, 0, 0)),
        pl.BlockSpec((1, P), lambda b: (0, 0)),
    ]
    args = [xpp, w1, b1, w2, b2]
    if has_ds:
        in_specs += [pl.BlockSpec((Cin, P), lambda b: (0, 0)),
                     pl.BlockSpec((1, P), lambda b: (0, 0))]
        args += [params['wd'], params['bd']]

    out = pl.pallas_call(
        kernel,
        out_shape=jax.ShapeDtypeStruct((B, M, P), jnp.float32),
        grid=(B,),
        in_specs=in_specs,
        out_specs=pl.BlockSpec((None, M, P), lambda b: (b, 0, 0)),
        scratch_shapes=[pltpu.VMEM((Ho + 2, Wo + 2, P), jnp.bfloat16)],
        compiler_params=pltpu.CompilerParams(
            dimension_semantics=("parallel",)),
    )(*args)

    out = out.reshape(B, Ho, Wo, P)
    return jnp.transpose(out, (0, 3, 1, 2))                 # back to NCHW


# ---------------------------- parameter construction ---------------------------

def _conv_init(key, k, cin, cout):
    # kaiming_normal_(mode='fan_out', nonlinearity='relu'), HWIO layout.
    fan_out = cout * k * k
    std = math.sqrt(2.0 / fan_out)
    return jax.random.normal(key, (k, k, cin, cout), jnp.float32) * std


def _bn_fold(c):
    # Eval-mode BatchNorm at init stats (gamma=1, beta=0, mean=0, var=1).
    gamma = jnp.ones((c,), jnp.float32)
    beta = jnp.zeros((c,), jnp.float32)
    mean = jnp.zeros((c,), jnp.float32)
    var = jnp.ones((c,), jnp.float32)
    scale = gamma / jnp.sqrt(var + EPS)
    bias = beta - mean * scale
    return scale, bias


def init_basic_block(key, inplanes, planes, stride=1):
    k1, k2, k3 = jax.random.split(key, 3)
    w1 = _conv_init(k1, 3, inplanes, planes)
    w2 = _conv_init(k2, 3, planes, planes)
    s1, b1 = _bn_fold(planes)
    s2, b2 = _bn_fold(planes)
    params = {
        'stride': stride,
        # fold the BN scale into the conv weights, cast weights to bf16
        'w1': (w1 * s1).reshape(9, inplanes, planes).astype(jnp.bfloat16),
        'b1': b1.reshape(1, planes),
        'w2': (w2 * s2).reshape(9, planes, planes).astype(jnp.bfloat16),
        'b2': b2.reshape(1, planes),
        # f32 copies for the pure-JAX reference check
        'w1_f32': w1, 'w2_f32': w2, 's1': s1, 's2': s2,
    }
    if stride != 1 or inplanes != planes:     # BasicBlock.expansion == 1
        wd = _conv_init(k3, 1, inplanes, planes)
        sd, bd = _bn_fold(planes)
        params['wd'] = (wd.reshape(inplanes, planes) * sd).astype(jnp.bfloat16)
        params['bd'] = bd.reshape(1, planes)
        params['wd_f32'] = wd
        params['sd'] = sd
    return params


# ------------------------------ pure-JAX reference ------------------------------

def _reference_forward(x_nchw, params):
    x = jnp.transpose(x_nchw, (0, 2, 3, 1)).astype(jnp.float32)
    s = params['stride']

    def conv(v, w, stride, pad):
        return jax.lax.conv_general_dilated(
            v, w, (stride, stride), [(pad, pad), (pad, pad)],
            dimension_numbers=('NHWC', 'HWIO', 'NHWC'))

    out = conv(x, params['w1_f32'] * params['s1'], s, 1) + params['b1']
    out = jnp.maximum(out, 0.0)
    out = conv(out, params['w2_f32'] * params['s2'], 1, 1) + params['b2']
    if 'wd_f32' in params:
        res = conv(x, params['wd_f32'] * params['sd'], s, 0) + params['bd']
    else:
        res = x
    out = jnp.maximum(out + res, 0.0)
    return jnp.transpose(out, (0, 3, 1, 2))


# ------------------------------------ main --------------------------------------

if __name__ == "__main__":
    key = jax.random.PRNGKey(0)
    kx, kb1, kb2 = jax.random.split(key, 3)

    # PyTorch-convention NCHW input.
    x = jax.random.normal(kx, (2, 64, 16, 16), jnp.float32)

    # BasicBlock(64, 64, stride=1): identity residual path.
    blk1 = init_basic_block(kb1, 64, 64, stride=1)
    y1 = basic_block_forward(x, blk1)

    # BasicBlock(64, 128, stride=2, downsample=1x1 conv + BN): downsample path.
    blk2 = init_basic_block(kb2, 64, 128, stride=2)
    y2 = basic_block_forward(x, blk2)

    y1, y2 = jax.block_until_ready((y1, y2))
    assert y1.shape == (2, 64, 16, 16), y1.shape
    assert y2.shape == (2, 128, 8, 8), y2.shape
    assert bool(jnp.all(jnp.isfinite(y1))) and bool(jnp.all(jnp.isfinite(y2)))

    # Numerical check against a pure-JAX f32 reference (kernel uses bf16 MXU
    # operands, so tolerances are loose but far below any real-bug magnitude).
    r1 = _reference_forward(x, blk1)
    r2 = _reference_forward(x, blk2)
    np.testing.assert_allclose(np.asarray(y1), np.asarray(r1), rtol=1e-1, atol=1e-1)
    np.testing.assert_allclose(np.asarray(y2), np.asarray(r2), rtol=1e-1, atol=1e-1)

    print("KERNEL_OK")
</pallas_src>

<mosaic_0001>
module attributes {stable_mosaic.version = 11 : i64} {
  func.func @_basic_block_kernel(%arg0: i32, %arg1: memref<1x1x18x18x64xf32, #tpu.memory_space<vmem>>, %arg2: memref<9x64x64xbf16, #tpu.memory_space<vmem>>, %arg3: memref<1x64xf32, #tpu.memory_space<vmem>>, %arg4: memref<9x64x64xbf16, #tpu.memory_space<vmem>>, %arg5: memref<1x64xf32, #tpu.memory_space<vmem>>, %arg6: memref<1x256x64xf32, #tpu.memory_space<vmem>>, %arg7: memref<18x18x64xbf16, #tpu.memory_space<vmem>>) attributes {dimension_semantics = [#tpu.dimension_semantics<parallel>], iteration_bounds = array<i64: 2>, scalar_prefetch = 0 : i64, scratch_operands = 1 : i64, tpu.core_type = #tpu.core_type<tc>, window_params = [{transform_indices = @transform_0, window_bounds = array<i64: 1, 1, 18, 18, 64>}, {pipeline_mode = #tpu.pipeline_mode<synchronous>, transform_indices = @transform_1, window_bounds = array<i64: 9, 64, 64>}, {pipeline_mode = #tpu.pipeline_mode<synchronous>, transform_indices = @transform_2, window_bounds = array<i64: 1, 64>}, {pipeline_mode = #tpu.pipeline_mode<synchronous>, transform_indices = @transform_3, window_bounds = array<i64: 9, 64, 64>}, {pipeline_mode = #tpu.pipeline_mode<synchronous>, transform_indices = @transform_4, window_bounds = array<i64: 1, 64>}, {transform_indices = @transform_5, window_bounds = array<i64: 1, 256, 64>}]} {
    %cst = arith.constant 0.000000e+00 : f32
    %0 = vector.broadcast %cst : f32 to vector<256x64xf32>
    %c0 = arith.constant 0 : index
    %c0_0 = arith.constant 0 : index
    %c0_1 = arith.constant 0 : index
    %c0_2 = arith.constant 0 : index
    %c0_3 = arith.constant 0 : index
    %1 = vector.load %arg1[%c0, %c0_0, %c0_1, %c0_2, %c0_3] : memref<1x1x18x18x64xf32, #tpu.memory_space<vmem>>, vector<1x1x16x16x64xf32>
    %2 = vector.shape_cast %1 : vector<1x1x16x16x64xf32> to vector<16x16x64xf32>
    %3 = vector.shape_cast %2 : vector<16x16x64xf32> to vector<256x64xf32>
    %4 = arith.truncf %3 : vector<256x64xf32> to vector<256x64xbf16>
    %c0_4 = arith.constant 0 : index
    %c0_5 = arith.constant 0 : index
    %c0_6 = arith.constant 0 : index
    %5 = vector.load %arg2[%c0_4, %c0_5, %c0_6] : memref<9x64x64xbf16, #tpu.memory_space<vmem>>, vector<1x64x64xbf16>
    %6 = vector.shape_cast %5 : vector<1x64x64xbf16> to vector<64x64xbf16>
    %cst_7 = arith.constant dense<0.000000e+00> : vector<256x64xf32>
    %7 = tpu.matmul %4, %6, %cst_7 {dimension_numbers = #tpu.dot_dimension_numbers<[1], [0], [0], [1], [0, 0, 1, 1], [], []>} : vector<256x64xbf16>, vector<64x64xbf16>, vector<256x64xf32> -> vector<256x64xf32>
    %8 = arith.addf %0, %7 : vector<256x64xf32>
    %c0_8 = arith.constant 0 : index
    %c0_9 = arith.constant 0 : index
    %c0_10 = arith.constant 0 : index
    %c1 = arith.constant 1 : index
    %c0_11 = arith.constant 0 : index
    %9 = vector.load %arg1[%c0_8, %c0_9, %c0_10, %c1, %c0_11] : memref<1x1x18x18x64xf32, #tpu.memory_space<vmem>>, vector<1x1x16x16x64xf32>
    %10 = vector.shape_cast %9 : vector<1x1x16x16x64xf32> to vector<16x16x64xf32>
    %11 = vector.shape_cast %10 : vector<16x16x64xf32> to vector<256x64xf32>
    %12 = arith.truncf %11 : vector<256x64xf32> to vector<256x64xbf16>
    %c1_12 = arith.constant 1 : index
    %c0_13 = arith.constant 0 : index
    %c0_14 = arith.constant 0 : index
    %13 = vector.load %arg2[%c1_12, %c0_13, %c0_14] : memref<9x64x64xbf16, #tpu.memory_space<vmem>>, vector<1x64x64xbf16>
    %14 = vector.shape_cast %13 : vector<1x64x64xbf16> to vector<64x64xbf16>
    %cst_15 = arith.constant dense<0.000000e+00> : vector<256x64xf32>
    %15 = tpu.matmul %12, %14, %cst_15 {dimension_numbers = #tpu.dot_dimension_numbers<[1], [0], [0], [1], [0, 0, 1, 1], [], []>} : vector<256x64xbf16>, vector<64x64xbf16>, vector<256x64xf32> -> vector<256x64xf32>
    %16 = arith.addf %8, %15 : vector<256x64xf32>
    %c0_16 = arith.constant 0 : index
    %c0_17 = arith.constant 0 : index
    %c0_18 = arith.constant 0 : index
    %c2 = arith.constant 2 : index
    %c0_19 = arith.constant 0 : index
    %17 = vector.load %arg1[%c0_16, %c0_17, %c0_18, %c2, %c0_19] : memref<1x1x18x18x64xf32, #tpu.memory_space<vmem>>, vector<1x1x16x16x64xf32>
    %18 = vector.shape_cast %17 : vector<1x1x16x16x64xf32> to vector<16x16x64xf32>
    %19 = vector.shape_cast %18 : vector<16x16x64xf32> to vector<256x64xf32>
    %20 = arith.truncf %19 : vector<256x64xf32> to vector<256x64xbf16>
    %c2_20 = arith.constant 2 : index
    %c0_21 = arith.constant 0 : index
    %c0_22 = arith.constant 0 : index
    %21 = vector.load %arg2[%c2_20, %c0_21, %c0_22] : memref<9x64x64xbf16, #tpu.memory_space<vmem>>, vector<1x64x64xbf16>
    %22 = vector.shape_cast %21 : vector<1x64x64xbf16> to vector<64x64xbf16>
    %cst_23 = arith.constant dense<0.000000e+00> : vector<256x64xf32>
    %23 = tpu.matmul %20, %22, %cst_23 {dimension_numbers = #tpu.dot_dimension_numbers<[1], [0], [0], [1], [0, 0, 1, 1], [], []>} : vector<256x64xbf16>, vector<64x64xbf16>, vector<256x64xf32> -> vector<256x64xf32>
    %24 = arith.addf %16, %23 : vector<256x64xf32>
    %c0_24 = arith.constant 0 : index
    %c0_25 = arith.constant 0 : index
    %c1_26 = arith.constant 1 : index
    %c0_27 = arith.constant 0 : index
    %c0_28 = arith.constant 0 : index
    %25 = vector.load %arg1[%c0_24, %c0_25, %c1_26, %c0_27, %c0_28] : memref<1x1x18x18x64xf32, #tpu.memory_space<vmem>>, vector<1x1x16x16x64xf32>
    %26 = vector.shape_cast %25 : vector<1x1x16x16x64xf32> to vector<16x16x64xf32>
    %27 = vector.shape_cast %26 : vector<16x16x64xf32> to vector<256x64xf32>
    %28 = arith.truncf %27 : vector<256x64xf32> to vector<256x64xbf16>
    %c3 = arith.constant 3 : index
    %c0_29 = arith.constant 0 : index
    %c0_30 = arith.constant 0 : index
    %29 = vector.load %arg2[%c3, %c0_29, %c0_30] : memref<9x64x64xbf16, #tpu.memory_space<vmem>>, vector<1x64x64xbf16>
    %30 = vector.shape_cast %29 : vector<1x64x64xbf16> to vector<64x64xbf16>
    %cst_31 = arith.constant dense<0.000000e+00> : vector<256x64xf32>
    %31 = tpu.matmul %28, %30, %cst_31 {dimension_numbers = #tpu.dot_dimension_numbers<[1], [0], [0], [1], [0, 0, 1, 1], [], []>} : vector<256x64xbf16>, vector<64x64xbf16>, vector<256x64xf32> -> vector<256x64xf32>
    %32 = arith.addf %24, %31 : vector<256x64xf32>
    %c0_32 = arith.constant 0 : index
    %c0_33 = arith.constant 0 : index
    %c1_34 = arith.constant 1 : index
    %c1_35 = arith.constant 1 : index
    %c0_36 = arith.constant 0 : index
    %33 = vector.load %arg1[%c0_32, %c0_33, %c1_34, %c1_35, %c0_36] : memref<1x1x18x18x64xf32, #tpu.memory_space<vmem>>, vector<1x1x16x16x64xf32>
    %34 = vector.shape_cast %33 : vector<1x1x16x16x64xf32> to vector<16x16x64xf32>
    %35 = vector.shape_cast %34 : vector<16x16x64xf32> to vector<256x64xf32>
    %36 = arith.truncf %35 : vector<256x64xf32> to vector<256x64xbf16>
    %c4 = arith.constant 4 : index
    %c0_37 = arith.constant 0 : index
    %c0_38 = arith.constant 0 : index
    %37 = vector.load %arg2[%c4, %c0_37, %c0_38] : memref<9x64x64xbf16, #tpu.memory_space<vmem>>, vector<1x64x64xbf16>
    %38 = vector.shape_cast %37 : vector<1x64x64xbf16> to vector<64x64xbf16>
    %cst_39 = arith.constant dense<0.000000e+00> : vector<256x64xf32>
    %39 = tpu.matmul %36, %38, %cst_39 {dimension_numbers = #tpu.dot_dimension_numbers<[1], [0], [0], [1], [0, 0, 1, 1], [], []>} : vector<256x64xbf16>, vector<64x64xbf16>, vector<256x64xf32> -> vector<256x64xf32>
    %40 = arith.addf %32, %39 : vector<256x64xf32>
    %c0_40 = arith.constant 0 : index
    %c0_41 = arith.constant 0 : index
    %c1_42 = arith.constant 1 : index
    %c2_43 = arith.constant 2 : index
    %c0_44 = arith.constant 0 : index
    %41 = vector.load %arg1[%c0_40, %c0_41, %c1_42, %c2_43, %c0_44] : memref<1x1x18x18x64xf32, #tpu.memory_space<vmem>>, vector<1x1x16x16x64xf32>
    %42 = vector.shape_cast %41 : vector<1x1x16x16x64xf32> to vector<16x16x64xf32>
    %43 = vector.shape_cast %42 : vector<16x16x64xf32> to vector<256x64xf32>
    %44 = arith.truncf %43 : vector<256x64xf32> to vector<256x64xbf16>
    %c5 = arith.constant 5 : index
    %c0_45 = arith.constant 0 : index
    %c0_46 = arith.constant 0 : index
    %45 = vector.load %arg2[%c5, %c0_45, %c0_46] : memref<9x64x64xbf16, #tpu.memory_space<vmem>>, vector<1x64x64xbf16>
    %46 = vector.shape_cast %45 : vector<1x64x64xbf16> to vector<64x64xbf16>
    %cst_47 = arith.constant dense<0.000000e+00> : vector<256x64xf32>
    %47 = tpu.matmul %44, %46, %cst_47 {dimension_numbers = #tpu.dot_dimension_numbers<[1], [0], [0], [1], [0, 0, 1, 1], [], []>} : vector<256x64xbf16>, vector<64x64xbf16>, vector<256x64xf32> -> vector<256x64xf32>
    %48 = arith.addf %40, %47 : vector<256x64xf32>
    %c0_48 = arith.constant 0 : index
    %c0_49 = arith.constant 0 : index
    %c2_50 = arith.constant 2 : index
    %c0_51 = arith.constant 0 : index
    %c0_52 = arith.constant 0 : index
    %49 = vector.load %arg1[%c0_48, %c0_49, %c2_50, %c0_51, %c0_52] : memref<1x1x18x18x64xf32, #tpu.memory_space<vmem>>, vector<1x1x16x16x64xf32>
    %50 = vector.shape_cast %49 : vector<1x1x16x16x64xf32> to vector<16x16x64xf32>
    %51 = vector.shape_cast %50 : vector<16x16x64xf32> to vector<256x64xf32>
    %52 = arith.truncf %51 : vector<256x64xf32> to vector<256x64xbf16>
    %c6 = arith.constant 6 : index
    %c0_53 = arith.constant 0 : index
    %c0_54 = arith.constant 0 : index
    %53 = vector.load %arg2[%c6, %c0_53, %c0_54] : memref<9x64x64xbf16, #tpu.memory_space<vmem>>, vector<1x64x64xbf16>
    %54 = vector.shape_cast %53 : vector<1x64x64xbf16> to vector<64x64xbf16>
    %cst_55 = arith.constant dense<0.000000e+00> : vector<256x64xf32>
    %55 = tpu.matmul %52, %54, %cst_55 {dimension_numbers = #tpu.dot_dimension_numbers<[1], [0], [0], [1], [0, 0, 1, 1], [], []>} : vector<256x64xbf16>, vector<64x64xbf16>, vector<256x64xf32> -> vector<256x64xf32>
    %56 = arith.addf %48, %55 : vector<256x64xf32>
    %c0_56 = arith.constant 0 : index
    %c0_57 = arith.constant 0 : index
    %c2_58 = arith.constant 2 : index
    %c1_59 = arith.constant 1 : index
    %c0_60 = arith.constant 0 : index
    %57 = vector.load %arg1[%c0_56, %c0_57, %c2_58, %c1_59, %c0_60] : memref<1x1x18x18x64xf32, #tpu.memory_space<vmem>>, vector<1x1x16x16x64xf32>
    %58 = vector.shape_cast %57 : vector<1x1x16x16x64xf32> to vector<16x16x64xf32>
    %59 = vector.shape_cast %58 : vector<16x16x64xf32> to vector<256x64xf32>
    %60 = arith.truncf %59 : vector<256x64xf32> to vector<256x64xbf16>
    %c7 = arith.constant 7 : index
    %c0_61 = arith.constant 0 : index
    %c0_62 = arith.constant 0 : index
    %61 = vector.load %arg2[%c7, %c0_61, %c0_62] : memref<9x64x64xbf16, #tpu.memory_space<vmem>>, vector<1x64x64xbf16>
    %62 = vector.shape_cast %61 : vector<1x64x64xbf16> to vector<64x64xbf16>
    %cst_63 = arith.constant dense<0.000000e+00> : vector<256x64xf32>
    %63 = tpu.matmul %60, %62, %cst_63 {dimension_numbers = #tpu.dot_dimension_numbers<[1], [0], [0], [1], [0, 0, 1, 1], [], []>} : vector<256x64xbf16>, vector<64x64xbf16>, vector<256x64xf32> -> vector<256x64xf32>
    %64 = arith.addf %56, %63 : vector<256x64xf32>
    %c0_64 = arith.constant 0 : index
    %c0_65 = arith.constant 0 : index
    %c2_66 = arith.constant 2 : index
    %c2_67 = arith.constant 2 : index
    %c0_68 = arith.constant 0 : index
    %65 = vector.load %arg1[%c0_64, %c0_65, %c2_66, %c2_67, %c0_68] : memref<1x1x18x18x64xf32, #tpu.memory_space<vmem>>, vector<1x1x16x16x64xf32>
    %66 = vector.shape_cast %65 : vector<1x1x16x16x64xf32> to vector<16x16x64xf32>
    %67 = vector.shape_cast %66 : vector<16x16x64xf32> to vector<256x64xf32>
    %68 = arith.truncf %67 : vector<256x64xf32> to vector<256x64xbf16>
    %c8 = arith.constant 8 : index
    %c0_69 = arith.constant 0 : index
    %c0_70 = arith.constant 0 : index
    %69 = vector.load %arg2[%c8, %c0_69, %c0_70] : memref<9x64x64xbf16, #tpu.memory_space<vmem>>, vector<1x64x64xbf16>
    %70 = vector.shape_cast %69 : vector<1x64x64xbf16> to vector<64x64xbf16>
    %cst_71 = arith.constant dense<0.000000e+00> : vector<256x64xf32>
    %71 = tpu.matmul %68, %70, %cst_71 {dimension_numbers = #tpu.dot_dimension_numbers<[1], [0], [0], [1], [0, 0, 1, 1], [], []>} : vector<256x64xbf16>, vector<64x64xbf16>, vector<256x64xf32> -> vector<256x64xf32>
    %72 = arith.addf %64, %71 : vector<256x64xf32>
    %c0_72 = arith.constant 0 : index
    %c0_73 = arith.constant 0 : index
    %73 = vector.load %arg3[%c0_72, %c0_73] : memref<1x64xf32, #tpu.memory_space<vmem>>, vector<1x64xf32>
    %74 = vector.broadcast %73 : vector<1x64xf32> to vector<256x64xf32>
    %75 = arith.addf %72, %74 : vector<256x64xf32>
    %cst_74 = arith.constant 0.000000e+00 : f32
    %76 = vector.broadcast %cst_74 : f32 to vector<256x64xf32>
    %77 = arith.maximumf %75, %76 : vector<256x64xf32>
    %cst_75 = arith.constant 0.000000e+00 : bf16
    %78 = vector.broadcast %cst_75 : bf16 to vector<18x18x64xbf16>
    %c0_76 = arith.constant 0 : index
    %c0_77 = arith.constant 0 : index
    %c0_78 = arith.constant 0 : index
    %79 = vector.load %arg7[%c0_76, %c0_77, %c0_78] : memref<18x18x64xbf16, #tpu.memory_space<vmem>>, vector<18x18x64xbf16>
    tpu.vector_store %arg7[%c0_76, %c0_77, %c0_78], %78 {strides = array<i32>} : memref<18x18x64xbf16, #tpu.memory_space<vmem>>, vector<18x18x64xbf16>,
    %80 = vector.shape_cast %77 : vector<256x64xf32> to vector<16x16x64xf32>
    %81 = arith.truncf %80 : vector<16x16x64xf32> to vector<16x16x64xbf16>
    %c1_79 = arith.constant 1 : index
    %c1_80 = arith.constant 1 : index
    %c0_81 = arith.constant 0 : index
    %82 = vector.load %arg7[%c1_79, %c1_80, %c0_81] : memref<18x18x64xbf16, #tpu.memory_space<vmem>>, vector<16x16x64xbf16>
    tpu.vector_store %arg7[%c1_79, %c1_80, %c0_81], %81 {strides = array<i32>} : memref<18x18x64xbf16, #tpu.memory_space<vmem>>, vector<16x16x64xbf16>,
    %c0_82 = arith.constant 0 : index
    %c0_83 = arith.constant 0 : index
    %c1_84 = arith.constant 1 : index
    %c1_85 = arith.constant 1 : index
    %c0_86 = arith.constant 0 : index
    %83 = vector.load %arg1[%c0_82, %c0_83, %c1_84, %c1_85, %c0_86] : memref<1x1x18x18x64xf32, #tpu.memory_space<vmem>>, vector<1x1x16x16x64xf32>
    %84 = vector.shape_cast %83 : vector<1x1x16x16x64xf32> to vector<16x16x64xf32>
    %85 = vector.shape_cast %84 : vector<16x16x64xf32> to vector<256x64xf32>
    %cst_87 = arith.constant 0.000000e+00 : f32
    %86 = vector.broadcast %cst_87 : f32 to vector<256x64xf32>
    %c0_88 = arith.constant 0 : index
    %c0_89 = arith.constant 0 : index
    %c0_90 = arith.constant 0 : index
    %87 = vector.load %arg7[%c0_88, %c0_89, %c0_90] : memref<18x18x64xbf16, #tpu.memory_space<vmem>>, vector<16x16x64xbf16>
    %88 = vector.shape_cast %87 : vector<16x16x64xbf16> to vector<256x64xbf16>
    %c0_91 = arith.constant 0 : index
    %c0_92 = arith.constant 0 : index
    %c0_93 = arith.constant 0 : index
    %89 = vector.load %arg4[%c0_91, %c0_92, %c0_93] : memref<9x64x64xbf16, #tpu.memory_space<vmem>>, vector<1x64x64xbf16>
    %90 = vector.shape_cast %89 : vector<1x64x64xbf16> to vector<64x64xbf16>
    %cst_94 = arith.constant dense<0.000000e+00> : vector<256x64xf32>
    %91 = tpu.matmul %88, %90, %cst_94 {dimension_numbers = #tpu.dot_dimension_numbers<[1], [0], [0], [1], [0, 0, 1, 1], [], []>} : vector<256x64xbf16>, vector<64x64xbf16>, vector<256x64xf32> -> vector<256x64xf32>
    %92 = arith.addf %86, %91 : vector<256x64xf32>
    %c0_95 = arith.constant 0 : index
    %c1_96 = arith.constant 1 : index
    %c0_97 = arith.constant 0 : index
    %93 = vector.load %arg7[%c0_95, %c1_96, %c0_97] : memref<18x18x64xbf16, #tpu.memory_space<vmem>>, vector<16x16x64xbf16>
    %94 = vector.shape_cast %93 : vector<16x16x64xbf16> to vector<256x64xbf16>
    %c1_98 = arith.constant 1 : index
    %c0_99 = arith.constant 0 : index
    %c0_100 = arith.constant 0 : index
    %95 = vector.load %arg4[%c1_98, %c0_99, %c0_100] : memref<9x64x64xbf16, #tpu.memory_space<vmem>>, vector<1x64x64xbf16>
    %96 = vector.shape_cast %95 : vector<1x64x64xbf16> to vector<64x64xbf16>
    %cst_101 = arith.constant dense<0.000000e+00> : vector<256x64xf32>
    %97 = tpu.matmul %94, %96, %cst_101 {dimension_numbers = #tpu.dot_dimension_numbers<[1], [0], [0], [1], [0, 0, 1, 1], [], []>} : vector<256x64xbf16>, vector<64x64xbf16>, vector<256x64xf32> -> vector<256x64xf32>
    %98 = arith.addf %92, %97 : vector<256x64xf32>
    %c0_102 = arith.constant 0 : index
    %c2_103 = arith.constant 2 : index
    %c0_104 = arith.constant 0 : index
    %99 = vector.load %arg7[%c0_102, %c2_103, %c0_104] : memref<18x18x64xbf16, #tpu.memory_space<vmem>>, vector<16x16x64xbf16>
    %100 = vector.shape_cast %99 : vector<16x16x64xbf16> to vector<256x64xbf16>
    %c2_105 = arith.constant 2 : index
    %c0_106 = arith.constant 0 : index
    %c0_107 = arith.constant 0 : index
    %101 = vector.load %arg4[%c2_105, %c0_106, %c0_107] : memref<9x64x64xbf16, #tpu.memory_space<vmem>>, vector<1x64x64xbf16>
    %102 = vector.shape_cast %101 : vector<1x64x64xbf16> to vector<64x64xbf16>
    %cst_108 = arith.constant dense<0.000000e+00> : vector<256x64xf32>
    %103 = tpu.matmul %100, %102, %cst_108 {dimension_numbers = #tpu.dot_dimension_numbers<[1], [0], [0], [1], [0, 0, 1, 1], [], []>} : vector<256x64xbf16>, vector<64x64xbf16>, vector<256x64xf32> -> vector<256x64xf32>
    %104 = arith.addf %98, %103 : vector<256x64xf32>
    %c1_109 = arith.constant 1 : index
    %c0_110 = arith.constant 0 : index
    %c0_111 = arith.constant 0 : index
    %105 = vector.load %arg7[%c1_109, %c0_110, %c0_111] : memref<18x18x64xbf16, #tpu.memory_space<vmem>>, vector<16x16x64xbf16>
    %106 = vector.shape_cast %105 : vector<16x16x64xbf16> to vector<256x64xbf16>
    %c3_112 = arith.constant 3 : index
    %c0_113 = arith.constant 0 : index
    %c0_114 = arith.constant 0 : index
    %107 = vector.load %arg4[%c3_112, %c0_113, %c0_114] : memref<9x64x64xbf16, #tpu.memory_space<vmem>>, vector<1x64x64xbf16>
    %108 = vector.shape_cast %107 : vector<1x64x64xbf16> to vector<64x64xbf16>
    %cst_115 = arith.constant dense<0.000000e+00> : vector<256x64xf32>
    %109 = tpu.matmul %106, %108, %cst_115 {dimension_numbers = #tpu.dot_dimension_numbers<[1], [0], [0], [1], [0, 0, 1, 1], [], []>} : vector<256x64xbf16>, vector<64x64xbf16>, vector<256x64xf32> -> vector<256x64xf32>
    %110 = arith.addf %104, %109 : vector<256x64xf32>
    %c1_116 = arith.constant 1 : index
    %c1_117 = arith.constant 1 : index
    %c0_118 = arith.constant 0 : index
    %111 = vector.load %arg7[%c1_116, %c1_117, %c0_118] : memref<18x18x64xbf16, #tpu.memory_space<vmem>>, vector<16x16x64xbf16>
    %112 = vector.shape_cast %111 : vector<16x16x64xbf16> to vector<256x64xbf16>
    %c4_119 = arith.constant 4 : index
    %c0_120 = arith.constant 0 : index
    %c0_121 = arith.constant 0 : index
    %113 = vector.load %arg4[%c4_119, %c0_120, %c0_121] : memref<9x64x64xbf16, #tpu.memory_space<vmem>>, vector<1x64x64xbf16>
    %114 = vector.shape_cast %113 : vector<1x64x64xbf16> to vector<64x64xbf16>
    %cst_122 = arith.constant dense<0.000000e+00> : vector<256x64xf32>
    %115 = tpu.matmul %112, %114, %cst_122 {dimension_numbers = #tpu.dot_dimension_numbers<[1], [0], [0], [1], [0, 0, 1, 1], [], []>} : vector<256x64xbf16>, vector<64x64xbf16>, vector<256x64xf32> -> vector<256x64xf32>
    %116 = arith.addf %110, %115 : vector<256x64xf32>
    %c1_123 = arith.constant 1 : index
    %c2_124 = arith.constant 2 : index
    %c0_125 = arith.constant 0 : index
    %117 = vector.load %arg7[%c1_123, %c2_124, %c0_125] : memref<18x18x64xbf16, #tpu.memory_space<vmem>>, vector<16x16x64xbf16>
    %118 = vector.shape_cast %117 : vector<16x16x64xbf16> to vector<256x64xbf16>
    %c5_126 = arith.constant 5 : index
    %c0_127 = arith.constant 0 : index
    %c0_128 = arith.constant 0 : index
    %119 = vector.load %arg4[%c5_126, %c0_127, %c0_128] : memref<9x64x64xbf16, #tpu.memory_space<vmem>>, vector<1x64x64xbf16>
    %120 = vector.shape_cast %119 : vector<1x64x64xbf16> to vector<64x64xbf16>
    %cst_129 = arith.constant dense<0.000000e+00> : vector<256x64xf32>
    %121 = tpu.matmul %118, %120, %cst_129 {dimension_numbers = #tpu.dot_dimension_numbers<[1], [0], [0], [1], [0, 0, 1, 1], [], []>} : vector<256x64xbf16>, vector<64x64xbf16>, vector<256x64xf32> -> vector<256x64xf32>
    %122 = arith.addf %116, %121 : vector<256x64xf32>
    %c2_130 = arith.constant 2 : index
    %c0_131 = arith.constant 0 : index
    %c0_132 = arith.constant 0 : index
    %123 = vector.load %arg7[%c2_130, %c0_131, %c0_132] : memref<18x18x64xbf16, #tpu.memory_space<vmem>>, vector<16x16x64xbf16>
    %124 = vector.shape_cast %123 : vector<16x16x64xbf16> to vector<256x64xbf16>
    %c6_133 = arith.constant 6 : index
    %c0_134 = arith.constant 0 : index
    %c0_135 = arith.constant 0 : index
    %125 = vector.load %arg4[%c6_133, %c0_134, %c0_135] : memref<9x64x64xbf16, #tpu.memory_space<vmem>>, vector<1x64x64xbf16>
    %126 = vector.shape_cast %125 : vector<1x64x64xbf16> to vector<64x64xbf16>
    %cst_136 = arith.constant dense<0.000000e+00> : vector<256x64xf32>
    %127 = tpu.matmul %124, %126, %cst_136 {dimension_numbers = #tpu.dot_dimension_numbers<[1], [0], [0], [1], [0, 0, 1, 1], [], []>} : vector<256x64xbf16>, vector<64x64xbf16>, vector<256x64xf32> -> vector<256x64xf32>
    %128 = arith.addf %122, %127 : vector<256x64xf32>
    %c2_137 = arith.constant 2 : index
    %c1_138 = arith.constant 1 : index
    %c0_139 = arith.constant 0 : index
    %129 = vector.load %arg7[%c2_137, %c1_138, %c0_139] : memref<18x18x64xbf16, #tpu.memory_space<vmem>>, vector<16x16x64xbf16>
    %130 = vector.shape_cast %129 : vector<16x16x64xbf16> to vector<256x64xbf16>
    %c7_140 = arith.constant 7 : index
    %c0_141 = arith.constant 0 : index
    %c0_142 = arith.constant 0 : index
    %131 = vector.load %arg4[%c7_140, %c0_141, %c0_142] : memref<9x64x64xbf16, #tpu.memory_space<vmem>>, vector<1x64x64xbf16>
    %132 = vector.shape_cast %131 : vector<1x64x64xbf16> to vector<64x64xbf16>
    %cst_143 = arith.constant dense<0.000000e+00> : vector<256x64xf32>
    %133 = tpu.matmul %130, %132, %cst_143 {dimension_numbers = #tpu.dot_dimension_numbers<[1], [0], [0], [1], [0, 0, 1, 1], [], []>} : vector<256x64xbf16>, vector<64x64xbf16>, vector<256x64xf32> -> vector<256x64xf32>
    %134 = arith.addf %128, %133 : vector<256x64xf32>
    %c2_144 = arith.constant 2 : index
    %c2_145 = arith.constant 2 : index
    %c0_146 = arith.constant 0 : index
    %135 = vector.load %arg7[%c2_144, %c2_145, %c0_146] : memref<18x18x64xbf16, #tpu.memory_space<vmem>>, vector<16x16x64xbf16>
    %136 = vector.shape_cast %135 : vector<16x16x64xbf16> to vector<256x64xbf16>
    %c8_147 = arith.constant 8 : index
    %c0_148 = arith.constant 0 : index
    %c0_149 = arith.constant 0 : index
    %137 = vector.load %arg4[%c8_147, %c0_148, %c0_149] : memref<9x64x64xbf16, #tpu.memory_space<vmem>>, vector<1x64x64xbf16>
    %138 = vector.shape_cast %137 : vector<1x64x64xbf16> to vector<64x64xbf16>
    %cst_150 = arith.constant dense<0.000000e+00> : vector<256x64xf32>
    %139 = tpu.matmul %136, %138, %cst_150 {dimension_numbers = #tpu.dot_dimension_numbers<[1], [0], [0], [1], [0, 0, 1, 1], [], []>} : vector<256x64xbf16>, vector<64x64xbf16>, vector<256x64xf32> -> vector<256x64xf32>
    %140 = arith.addf %134, %139 : vector<256x64xf32>
    %c0_151 = arith.constant 0 : index
    %c0_152 = arith.constant 0 : index
    %141 = vector.load %arg5[%c0_151, %c0_152] : memref<1x64xf32, #tpu.memory_space<vmem>>, vector<1x64xf32>
    %142 = vector.broadcast %141 : vector<1x64xf32> to vector<256x64xf32>
    %143 = arith.addf %140, %142 : vector<256x64xf32>
    %144 = arith.addf %143, %85 : vector<256x64xf32>
    %cst_153 = arith.constant 0.000000e+00 : f32
    %145 = vector.broadcast %cst_153 : f32 to vector<256x64xf32>
    %146 = arith.maximumf %144, %145 : vector<256x64xf32>
    %c0_154 = arith.constant 0 : index
    %c0_155 = arith.constant 0 : index
    %c0_156 = arith.constant 0 : index
    %147 = vector.load %arg6[%c0_154, %c0_155, %c0_156] : memref<1x256x64xf32, #tpu.memory_space<vmem>>, vector<1x256x64xf32>
    %148 = vector.shape_cast %147 : vector<1x256x64xf32> to vector<256x64xf32>
    %149 = vector.shape_cast %146 : vector<256x64xf32> to vector<1x256x64xf32>
    tpu.vector_store %arg6[%c0_154, %c0_155, %c0_156], %149 {strides = array<i32>} : memref<1x256x64xf32, #tpu.memory_space<vmem>>, vector<1x256x64xf32>,
    return
  }
  func.func @transform_0(%arg0: i32) -> (i32, i32, i32, i32, i32) {
    %c0_i32 = arith.constant 0 : i32
    %c0_i32_0 = arith.constant 0 : i32
    %c0_i32_1 = arith.constant 0 : i32
    %c0_i32_2 = arith.constant 0 : i32
    %c0_i32_3 = arith.constant 0 : i32
    return %arg0, %c0_i32, %c0_i32_0, %c0_i32_1, %c0_i32_2 : i32, i32, i32, i32, i32
  }
  func.func @transform_1(%arg0: i32) -> (i32, i32, i32) {
    %c0_i32 = arith.constant 0 : i32
    %c0_i32_0 = arith.constant 0 : i32
    %c0_i32_1 = arith.constant 0 : i32
    %c0_i32_2 = arith.constant 0 : i32
    return %c0_i32, %c0_i32_0, %c0_i32_1 : i32, i32, i32
  }
  func.func @transform_2(%arg0: i32) -> (i32, i32) {
    %c0_i32 = arith.constant 0 : i32
    %c0_i32_0 = arith.constant 0 : i32
    %c0_i32_1 = arith.constant 0 : i32
    return %c0_i32, %c0_i32_0 : i32, i32
  }
  func.func @transform_3(%arg0: i32) -> (i32, i32, i32) {
    %c0_i32 = arith.constant 0 : i32
    %c0_i32_0 = arith.constant 0 : i32
    %c0_i32_1 = arith.constant 0 : i32
    %c0_i32_2 = arith.constant 0 : i32
    return %c0_i32, %c0_i32_0, %c0_i32_1 : i32, i32, i32
  }
  func.func @transform_4(%arg0: i32) -> (i32, i32) {
    %c0_i32 = arith.constant 0 : i32
    %c0_i32_0 = arith.constant 0 : i32
    %c0_i32_1 = arith.constant 0 : i32
    return %c0_i32, %c0_i32_0 : i32, i32
  }
  func.func @transform_5(%arg0: i32) -> (i32, i32, i32) {
    %c0_i32 = arith.constant 0 : i32
    %c0_i32_0 = arith.constant 0 : i32
    %c0_i32_1 = arith.constant 0 : i32
    return %arg0, %c0_i32, %c0_i32_0 : i32, i32, i32
  }
}

</mosaic_0001>

<bundles_post_ra>
// kernel: tpu_custom_call.1
= control target key start
LH: loop header
LB: loop body
LE: loop exit
PB: predicated region body
PF: predicated region fallthrough
CT: control target
= control target key end

     0   :  { %s10998_s18 = smov 0   ;;  %s15029_s0 = inlined_call_operand.vmem [shape: f32[2,1,18,18,64], index: 0, kind: input, shape index: {}]   ;;  %s15030_s1 = inlined_call_operand.vmem [shape: bf16[9,64,64], index: 1, kind: input, shape index: {}]   ;;  %s15031_s2 = inlined_call_operand.vmem [shape: f32[1,64], index: 2, kind: input, shape index: {}]   ;;  %s15032_s3 = inlined_call_operand.vmem [shape: bf16[9,64,64], index: 3, kind: input, shape index: {}]   ;;  %s15033_s4 = inlined_call_operand.vmem [shape: f32[1,64], index: 4, kind: input, shape index: {}]   ;;  %s15034_s5 = inlined_call_operand.vmem [shape: f32[2,256,64], index: 5, kind: output, shape index: {}]  }
   0x1 LB: > { %s8756_s19 = sadd.s32 4294967295, %s10965_s18   ;;  %p8760_p0 = scmp.ge.s32.totalorder %s10965_s18, 1  ;;  %s10965_s18 = sphi %s10998_s18, %s15_s18  }
   0x2   : > { %p187_p1 = scmp.lt.s32.totalorder %s10965_s18, 3 }
   0x4   : > { %p188_p2 = pnand %p8760_p0, %p187_p1 }
   0x6   : > { %191 = sbr.rel (%p188_p2) target bundleno = 1117 (0x45d), region = 40 }
   0xb   : > { %v10827_v0 = vld [vmem:[%s15030_s1 + $0x38] sm:$0xff]   ;;  %p215_p3 = scmp.lt.s32.totalorder %s8756_s19, 1  ;;  %v10829_v2 = vld [vmem:[%s15030_s1 + $0x30] sm:$0xff]   ;;  %v10831_v4 = vld [vmem:[%s15030_s1 + $0x28] sm:$0xff]   ;;  %vm363_vm0 = vcmask 523264   ;;  %vm3133_vm1 = vcmask 519168  }
   0xc   : > { %v10828_v1 = vld [vmem:[%s15030_s1 + $0x18] sm:$0xff]   ;;  %10097 = vmatprep.subr.bf16.mxu0 %v10827_v0  ;;  %v10830_v3 = vld [vmem:[%s15030_s1 + $0x10] sm:$0xff]   ;;  %v10832_v5 = vld [vmem:[%s15030_s1 + $0x8] sm:$0xff]   ;;  %vm3136_vm2 = vcmask 516096   ;;  %vm3814_vm3 = vsmask.f32 3328 }
   0xd   : > { %s15348_s19 = smov (!%p215_p3, %s8756_s19), 1  ;;  %10137 = vmatprep.subr.bf16.mxu1 %v10828_v1  ;;  %10098 = vmatpush3.bf16.msra.mxu0 %v10827_v0  ;;  %v10833_v6 = vld [vmem:[%s15030_s1 + $0x20] sm:$0xff]   ;;  %v10835_v18 = vld [vmem:[%s15030_s1 + $0x58] sm:$0xff]   ;;  %v10836_v27 = vld [vmem:[%s15030_s1 + $0x50] sm:$0xff]   ;;  %vm3815_vm4 = vsmask.f32 7440 }
   0xe   : > { %10138 = vmatpush3.bf16.msra.mxu1 %v10828_v1  ;;  %10099 = vmatprep.subr.bf16.mxu0 %v10829_v2  ;;  %s10817_s30 = smul.u32 432, %s15348_s19  ;;  %v10834_v10 = vld [vmem:[%s15030_s1] sm:$0xff]   ;;  %v10837_v40 = vld [vmem:[%s15030_s1 + $0x48] sm:$0xff]   ;;  %v10839_v53 = vld [vmem:[%s15030_s1 + $0x78] sm:$0xff]   ;;  %vm3610_vm6 = vsmask.f32 7938 }
   0xf   : > { %10139 = vmatprep.subr.bf16.mxu1 %v10830_v3  ;;  %v10838_v50 = vld [vmem:[%s15030_s1 + $0x40] sm:$0xff]   ;;  %v10840_v55 = vld [vmem:[%s15030_s1 + $0x70] sm:$0xff]   ;;  %v10841_v62 = vld [vmem:[%s15030_s1 + $0x68] sm:$0xff]   ;;  %vm3285_vm7 = vsmask.f32 256  ;;  %vm4852_vm12 = vcmask 1042432  }
  0x10   : > { %s11030_s10 = scalar_lea.vmem %s15029_s0, %s10817_s30  ;;  %vm12072_vm5 = vmor %vm3814_vm3, %vm3815_vm4  ;;  %vm3286_vm8 = vsmask.f32 4368  ;;  %vm4853_vm13 = vcmask 1046532   ;;  %s9704_s23 = sshll.u32 %s15348_s19, 8 }
  0x11   : > { %10100 = vmatpush3.bf16.msra.mxu0 %v10829_v2  ;;  %v282_v7 = vld [vmem:[%s11030_s10 + $0x1] sm:$0xff]  ;;  %v283_v8 = vld [vmem:[%s11030_s10 + $0x9] sm:$0xff]  ;;  %v284_v14 = vld [vmem:[%s11030_s10 + $0x19] sm:$0xff]  ;;  %s14786_s25 = scalar_lea.vmem %s15034_s5, %s9704_s23 }
  0x12   : > { %10140 = vmatpush3.bf16.msra.mxu1 %v10830_v3  ;;  %10101 = vmatprep.subr.bf16.mxu0 %v10831_v4  ;;  %v226_v9 = vld [vmem:[%s11030_s10] sm:$0xff]  ;;  %v314_v11 = vpack.c.bf16 %v283_v8, %v282_v7  ;;  %v227_v12 = vld [vmem:[%s11030_s10 + $0x8] sm:$0xff]  ;;  %v228_v16 = vld [vmem:[%s11030_s10 + $0x18] sm:$0xff] }
  0x13   : > { %10141 = vmatprep.subr.bf16.mxu1 %v10832_v5  ;;  %v258_v13 = vpack.c.bf16 %v227_v12, %v226_v9  ;;  %v285_v15 = vld [vmem:[%s11030_s10 + $0x21] sm:$0xff]  ;;  %v286_v19 = vld [vmem:[%s11030_s10 + $0x31] sm:$0xff]  ;;  %v287_v20 = vld [vmem:[%s11030_s10 + $0x39] sm:$0xff] }
  0x14   : > { %10105 = vmatprep.mubr.msk.bf16.mxu0 %vm363_vm0, %v314_v11  ;;  %v229_v17 = vld [vmem:[%s11030_s10 + $0x20] sm:$0xff]  ;;  %v230_v21 = vld [vmem:[%s11030_s10 + $0x30] sm:$0xff]  ;;  %v231_v22 = vld [vmem:[%s11030_s10 + $0x38] sm:$0xff]  ;;  %v11055_v23 = vpack.c.bf16 %v285_v15, %v284_v14  ;;  %v11059_v25 = vpack.c.bf16 %v287_v20, %v286_v19 }
  0x15   : > { %10102 = vmatpush3.bf16.msra.mxu0 %v10831_v4  ;;  %10145 = vmatprep.mubr.msk.bf16.mxu1 %vm363_vm0, %v258_v13  ;;  %v11057_v24 = vpack.c.bf16 %v229_v17, %v228_v16  ;;  %v11061_v26 = vpack.c.bf16 %v231_v22, %v230_v21  ;;  %v288_v28 = vld [vmem:[%s11030_s10 + $0x49] sm:$0xff]  ;;  %v289_v29 = vld [vmem:[%s11030_s10 + $0x51] sm:$0xff]  ;;  %v290_v32 = vld [vmem:[%s11030_s10 + $0x61] sm:$0xff] }
  0x16   : > { %10142 = vmatpush3.bf16.msra.mxu1 %v10832_v5  ;;  %10103 = vmatprep.subr.bf16.mxu0 %v10833_v6  ;;  %v232_v30 = vld [vmem:[%s11030_s10 + $0x48] sm:$0xff]  ;;  %v233_v31 = vld [vmem:[%s11030_s10 + $0x50] sm:$0xff]  ;;  %v234_v34 = vld [vmem:[%s11030_s10 + $0x60] sm:$0xff]  ;;  %v11082_v36 = vpack.c.bf16 %v289_v29, %v288_v28 }
  0x17   : > { %10143 = vmatprep.subr.bf16.mxu1 %v10834_v10  ;;  %v291_v33 = vld [vmem:[%s11030_s10 + $0x69] sm:$0xff]  ;;  %v11084_v37 = vpack.c.bf16 %v233_v31, %v232_v30  ;;  %v292_v41 = vld [vmem:[%s11030_s10 + $0x79] sm:$0xff]  ;;  %v293_v42 = vld [vmem:[%s11030_s10 + $0x81] sm:$0xff] }
  0x18   : > { %v235_v35 = vld [vmem:[%s11030_s10 + $0x68] sm:$0xff]  ;;  %v11086_v38 = vpack.c.bf16 %v291_v33, %v290_v32  ;;  %v236_v43 = vld [vmem:[%s11030_s10 + $0x78] sm:$0xff]  ;;  %v237_v44 = vld [vmem:[%s11030_s10 + $0x80] sm:$0xff]  ;;  %v11109_v49 = vpack.c.bf16 %v293_v42, %v292_v41 }
  0x19   : > { %10104 = vmatpush3.bf16.msra.mxu0 %v10833_v6  ;;  %v11088_v39 = vpack.c.bf16 %v235_v35, %v234_v34  ;;  %v294_v45 = vld [vmem:[%s11030_s10 + $0x91] sm:$0xff]  ;;  %v295_v46 = vld [vmem:[%s11030_s10 + $0x99] sm:$0xff]  ;;  %v11114_v51 = vpack.c.bf16 %v237_v44, %v236_v43  ;;  %v296_v56 = vld [vmem:[%s11030_s10 + $0xa9] sm:$0xff] }
  0x1a   : > { %10144 = vmatpush3.bf16.msra.mxu1 %v10834_v10  ;;  %10177 = vmatprep.subr.bf16.mxu0 %v10835_v18  ;;  %v238_v47 = vld [vmem:[%s11030_s10 + $0x90] sm:$0xff]  ;;  %v239_v48 = vld [vmem:[%s11030_s10 + $0x98] sm:$0xff]  ;;  %v11116_v52 = vpack.c.bf16 %v295_v46, %v294_v45  ;;  %v240_v58 = vld [vmem:[%s11030_s10 + $0xa8] sm:$0xff] }
  0x1b   : > { %v11121_v54 = vpack.c.bf16 %v239_v48, %v238_v47  ;;  %v297_v57 = vld [vmem:[%s11030_s10 + $0xb1] sm:$0xff]  ;;  %10217 = vmatprep.subr.bf16.mxu1 %v10839_v53  ;;  %v298_v60 = vld [vmem:[%s11030_s10 + $0xc1] sm:$0xff]  ;;  %v299_v61 = vld [vmem:[%s11030_s10 + $0xc9] sm:$0xff] }
  0x1c   : > { %10106 = vmatmul.mubr.msk.bf16.vlgmr.msra.gmra.mxu0 %vm363_vm0, %v11055_v23  ;;  %v241_v59 = vld [vmem:[%s11030_s10 + $0xb0] sm:$0xff]  ;;  %v242_v63 = vld [vmem:[%s11030_s10 + $0xc0] sm:$0xff]  ;;  %v243_v0 = vld [vmem:[%s11030_s10 + $0xc8] sm:$0xff]  ;;  %v11145_v1 = vpack.c.bf16 %v297_v57, %v296_v56  ;;  %v11149_v3 = vpack.c.bf16 %v299_v61, %v298_v60 }
  0x1d   : > { %10146 = vmatmul.mubr.msk.bf16.vlgmr.msra.gmra.mxu1 %vm363_vm0, %v11057_v24  ;;  %10178 = vmatpush3.bf16.msra.mxu0 %v10835_v18  ;;  %v11147_v2 = vpack.c.bf16 %v241_v59, %v240_v58  ;;  %v11154_v4 = vld [vmem:[%s15030_s1 + $0x98] sm:$0xff]   ;;  %v11156_v5 = vpack.c.bf16 %v243_v0, %v242_v63  ;;  %v10842_v6 = vld [vmem:[%s15030_s1 + $0x60] sm:$0xff]   ;;  %v246_v13 = vld [vmem:[%s11030_s10 + $0xf0] sm:$0xff] }
  0x1e   : > { %10109 = vmatprep.mubr.msk.bf16.mxu0 %vm363_vm0, %v11059_v25  ;;  %10149 = vmatprep.mubr.msk.bf16.mxu1 %vm363_vm0, %v11061_v26  ;;  %v300_v7 = vld [vmem:[%s11030_s10 + $0xd9] sm:$0xff]  ;;  %v301_v8 = vld [vmem:[%s11030_s10 + $0xe1] sm:$0xff]  ;;  %v302_v11 = vld [vmem:[%s11030_s10 + $0xf1] sm:$0xff] }
  0x1f   : > { %10179 = vmatprep.subr.bf16.mxu0 %v10836_v27  ;;  %10218 = vmatpush3.bf16.msra.mxu1 %v10839_v53  ;;  %v244_v9 = vld [vmem:[%s11030_s10 + $0xd8] sm:$0xff]  ;;  %v245_v10 = vld [vmem:[%s11030_s10 + $0xe0] sm:$0xff]  ;;  %v11178_v15 = vpack.c.bf16 %v301_v8, %v300_v7  ;;  %v304_v19 = vld [vmem:[%s11030_s10 + $0x109] sm:$0xff] }
  0x20   : > { %10219 = vmatprep.subr.bf16.mxu1 %v10840_v55  ;;  %v303_v12 = vld [vmem:[%s11030_s10 + $0xf9] sm:$0xff]  ;;  %v11180_v16 = vpack.c.bf16 %v245_v10, %v244_v9  ;;  %v305_v20 = vld [vmem:[%s11030_s10 + $0x111] sm:$0xff]  ;;  %v248_v21 = vld [vmem:[%s11030_s10 + $0x108] sm:$0xff] }
  0x21   : > { %10180 = vmatpush3.bf16.msra.mxu0 %v10836_v27  ;;  %v247_v14 = vld [vmem:[%s11030_s10 + $0xf8] sm:$0xff]  ;;  %v11182_v17 = vpack.c.bf16 %v303_v12, %v302_v11  ;;  %v249_v22 = vld [vmem:[%s11030_s10 + $0x110] sm:$0xff]  ;;  %v306_v28 = vld [vmem:[%s11030_s10 + $0x121] sm:$0xff]  ;;  %v11208_v32 = vpack.c.bf16 %v305_v20, %v304_v19 }
  0x22   : > { %10181 = vmatprep.subr.bf16.mxu0 %v10837_v40  ;;  %v11184_v18 = vpack.c.bf16 %v247_v14, %v246_v13  ;;  %v11199_v27 = vld [vmem:[%s15030_s1 + $0xb8] sm:$0xff]   ;;  %v307_v29 = vld [vmem:[%s11030_s10 + $0x129] sm:$0xff]  ;;  %v250_v30 = vld [vmem:[%s11030_s10 + $0x120] sm:$0xff]  ;;  %v11210_v33 = vpack.c.bf16 %v249_v22, %v248_v21 }
  0x23   : > { %10220 = vmatpush3.bf16.msra.mxu1 %v10840_v55  ;;  %v251_v31 = vld [vmem:[%s11030_s10 + $0x128] sm:$0xff]  ;;  %v11212_v34 = vpack.c.bf16 %v307_v29, %v306_v28  ;;  %v252_v42 = vld [vmem:[%s11030_s10 + $0x138] sm:$0xff]  ;;  %v253_v43 = vld [vmem:[%s11030_s10 + $0x140] sm:$0xff] }
  0x24   : > { %10110 = vmatmul.mubr.msk.bf16.gmra.mxu0 %vm363_vm0, %v11082_v36  ;;  %10221 = vmatprep.subr.bf16.mxu1 %v10841_v62  ;;  %v11214_v35 = vpack.c.bf16 %v251_v31, %v250_v30  ;;  %v309_v41 = vld [vmem:[%s11030_s10 + $0x141] sm:$0xff]  ;;  %v310_v44 = vld [vmem:[%s11030_s10 + $0x151] sm:$0xff]  ;;  %v311_v45 = vld [vmem:[%s11030_s10 + $0x159] sm:$0xff] }
  0x25   : > { %10150 = vmatmul.mubr.msk.bf16.gmra.mxu1 %vm363_vm0, %v11084_v37  ;;  %10113 = vmatprep.mubr.msk.bf16.mxu0 %vm363_vm0, %v11086_v38  ;;  %v254_v46 = vld [vmem:[%s11030_s10 + $0x150] sm:$0xff]  ;;  %v255_v47 = vld [vmem:[%s11030_s10 + $0x158] sm:$0xff]  ;;  %v11236_v53 = vpack.c.bf16 %v311_v45, %v310_v44  ;;  %v256_v58 = vld [vmem:[%s11030_s10 + $0x168] sm:$0xff] }
  0x26   : > { %10153 = vmatprep.mubr.msk.bf16.mxu1 %vm363_vm0, %v11088_v39  ;;  %10182 = vmatpush3.bf16.msra.mxu0 %v10837_v40  ;;  %v308_v40 = vld [vmem:[%s11030_s10 + $0x139] sm:$0xff]  ;;  %v11238_v55 = vpack.c.bf16 %v255_v47, %v254_v46  ;;  %v312_v56 = vld [vmem:[%s11030_s10 + $0x169] sm:$0xff]  ;;  %v313_v57 = vld [vmem:[%s11030_s10 + $0x171] sm:$0xff] }
  0x27   : > { %10183 = vmatprep.subr.bf16.mxu0 %v10838_v50  ;;  %10222 = vmatpush3.bf16.msra.mxu1 %v10841_v62  ;;  %v11232_v48 = vpack.c.bf16 %v309_v41, %v308_v40  ;;  %v257_v59 = vld [vmem:[%s11030_s10 + $0x170] sm:$0xff]  ;;  %v806_v60 = vld [vmem:[%s11030_s10 + $0x2] sm:$0xff]  ;;  %v11254_v62 = vpack.c.bf16 %v313_v57, %v312_v56  ;;  %v811_v9 = vld [vmem:[%s11030_s10 + $0x3a] sm:$0xff] }
  0x28   : > { %10223 = vmatprep.subr.bf16.mxu1 %v10842_v6  ;;  %v807_v61 = vld [vmem:[%s11030_s10 + $0xa] sm:$0xff]  ;;  %v11256_v63 = vpack.c.bf16 %v257_v59, %v256_v58  ;;  %v809_v7 = vld [vmem:[%s11030_s10 + $0x22] sm:$0xff]  ;;  %v810_v8 = vld [vmem:[%s11030_s10 + $0x32] sm:$0xff] }
  0x29   : > { %v838_v0 = vpack.c.bf16 %v807_v61, %v806_v60  ;;  %v10844_v11 = vld [vmem:[%s15030_s1 + $0x90] sm:$0xff]   ;;  %v11274_v12 = vpack.c.bf16 %v811_v9, %v810_v8  ;;  %v814_v20 = vld [vmem:[%s11030_s10 + $0x62] sm:$0xff]  ;;  %v816_v31 = vld [vmem:[%s11030_s10 + $0x7a] sm:$0xff] }
  0x2a   : > { %10184 = vmatpush3.bf16.msra.mxu0 %v10838_v50  ;;  %v11234_v50 = vpack.c.bf16 %v253_v43, %v252_v42  ;;  %v10848_v13 = vld [vmem:[%s15030_s1 + $0xb0] sm:$0xff]   ;;  %v10849_v22 = vld [vmem:[%s15030_s1 + $0xa8] sm:$0xff]   ;;  %v10846_v29 = vld [vmem:[%s15030_s1 + $0x80] sm:$0xff]  }
  0x2b   : > { %10257 = vmatprep.subr.bf16.mxu0 %v11154_v4  ;;  %10224 = vmatpush3.bf16.msra.mxu1 %v10842_v6  ;;  %v808_v6 = vld [vmem:[%s11030_s10 + $0x1a] sm:$0xff]  ;;  %v812_v14 = vld [vmem:[%s11030_s10 + $0x4a] sm:$0xff]  ;;  %v813_v19 = vld [vmem:[%s11030_s10 + $0x52] sm:$0xff] }
  0x2c   : > { %10114 = vmatmul.mubr.msk.bf16.gmra.mxu0 %vm363_vm0, %v11109_v49  ;;  %10297 = vmatprep.subr.bf16.mxu1 %v11199_v27  ;;  %v11269_v10 = vpack.c.bf16 %v809_v7, %v808_v6  ;;  %v815_v21 = vld [vmem:[%s11030_s10 + $0x6a] sm:$0xff]  ;;  %v11299_v28 = vpack.c.bf16 %v813_v19, %v812_v14  ;;  %v10850_v30 = vld [vmem:[%s15030_s1 + $0xa0] sm:$0xff]   ;;  %v11324_v42 = vld [vmem:[%s15030_s1 + $0xd8] sm:$0xff]  }
  0x2d   : > { %10154 = vmatmul.mubr.msk.bf16.gmra.mxu1 %vm363_vm0, %v11114_v51  ;;  %10117 = vmatprep.mubr.msk.bf16.mxu0 %vm363_vm0, %v11116_v52  ;;  %v817_v40 = vld [vmem:[%s11030_s10 + $0x82] sm:$0xff]  ;;  %v819_v41 = vld [vmem:[%s11030_s10 + $0x9a] sm:$0xff]  ;;  %v820_v46 = vld [vmem:[%s11030_s10 + $0xaa] sm:$0xff] }
  0x2e   : > { %10157 = vmatprep.mubr.msk.bf16.mxu1 %vm363_vm0, %v11121_v54  ;;  %v11326_v43 = vpack.c.bf16 %v817_v40, %v816_v31  ;;  %v11331_v44 = vld [vmem:[%s15030_s1 + $0xf8] sm:$0xff]   ;;  %v822_v56 = vld [vmem:[%s11030_s10 + $0xc2] sm:$0xff]  ;;  %v823_v57 = vld [vmem:[%s11030_s10 + $0xca] sm:$0xff] }
  0x2f   : > { %v821_v47 = vld [vmem:[%s11030_s10 + $0xb2] sm:$0xff]  ;;  %v11351_v59 = vpack.c.bf16 %v823_v57, %v822_v56  ;;  %v824_v60 = vld [vmem:[%s11030_s10 + $0xda] sm:$0xff]  ;;  %v825_v61 = vld [vmem:[%s11030_s10 + $0xe2] sm:$0xff] }
  0x30   : > { %v11349_v58 = vpack.c.bf16 %v821_v47, %v820_v46  ;;  %v827_v6 = vld [vmem:[%s11030_s10 + $0xfa] sm:$0xff]  ;;  %v11365_v7 = vpack.c.bf16 %v825_v61, %v824_v60  ;;  %v830_v9 = vld [vmem:[%s11030_s10 + $0x122] sm:$0xff]  ;;  %v834_v19 = vld [vmem:[%s11030_s10 + $0x152] sm:$0xff] }
  0x31   : > { %v10859_v40 = vld [vmem:[%s15030_s1 + $0x118] sm:$0xff]   ;;  %v9090_v57 = vld [vmem:[%s11030_s10 + $0xa9] sm:$0xff]  ;;  %v9032_v61 = vld [vmem:[%s11030_s10 + $0xc0] sm:$0xff] }
  0x32   : > { %v9091_v60 = vld [vmem:[%s11030_s10 + $0xb1] sm:$0xff]  ;;  %vm12395_vm9 = vmand %vm3133_vm1, %vm3610_vm6 }
  0x33   : > { %vm12406_vm10 = vmor %vm3285_vm7, %vm3286_vm8 }
  0x34   : > { %10118 = vmatmul.mubr.msk.bf16.gmra.mxu0 %vm363_vm0, %v11145_v1  ;;  %vm12412_vm11 = vmand %vm3136_vm2, %vm3285_vm7 }
  0x35   : > { %10158 = vmatmul.mubr.msk.bf16.gmra.mxu1 %vm363_vm0, %v11147_v2  ;;  %10121 = vmatprep.mubr.msk.bf16.mxu0 %vm363_vm0, %v11149_v3  ;;  %vm12932_vm14 = vmor %vm4852_vm12, %vm4853_vm13 }
  0x36   : > { %10161 = vmatprep.mubr.msk.bf16.mxu1 %vm363_vm0, %v11156_v5 }
  0x3c   : > { %10122 = vmatmul.mubr.msk.bf16.gmra.mxu0 %vm363_vm0, %v11178_v15 }
  0x3d   : > { %10162 = vmatmul.mubr.msk.bf16.gmra.mxu1 %vm363_vm0, %v11180_v16  ;;  %10125 = vmatprep.mubr.msk.bf16.mxu0 %vm363_vm0, %v11182_v17 }
  0x3e   : > { %10165 = vmatprep.mubr.msk.bf16.mxu1 %vm363_vm0, %v11184_v18 }
  0x44   : > { %10126 = vmatmul.mubr.msk.bf16.gmra.mxu0 %vm363_vm0, %v11208_v32 }
  0x45   : > { %10166 = vmatmul.mubr.msk.bf16.gmra.mxu1 %vm363_vm0, %v11210_v33  ;;  %10129 = vmatprep.mubr.msk.bf16.mxu0 %vm363_vm0, %v11212_v34 }
  0x46   : > { %10169 = vmatprep.mubr.msk.bf16.mxu1 %vm363_vm0, %v11214_v35 }
  0x4c   : > { %10130 = vmatmul.mubr.msk.bf16.gmra.mxu0 %vm363_vm0, %v11232_v48 }
  0x4d   : > { %10170 = vmatmul.mubr.msk.bf16.gmra.mxu1 %vm363_vm0, %v11234_v50  ;;  %10133 = vmatprep.mubr.msk.bf16.mxu0 %vm363_vm0, %v11236_v53 }
  0x4e   : > { %10173 = vmatprep.mubr.msk.bf16.mxu1 %vm363_vm0, %v11238_v55 }
  0x54   : > { %10134 = vmatmul.mubr.msk.bf16.gmra.mxu0 %vm363_vm0, %v11254_v62 }
  0x55   : > { %10174 = vmatmul.mubr.msk.bf16.gmra.mxu1 %vm363_vm0, %v11256_v63  ;;  %10185 = vmatprep.mubr.msk.bf16.mxu0 %vm363_vm0, %v838_v0  ;;  %v826_v0 = vld [vmem:[%s11030_s10 + $0xf2] sm:$0xff] }
  0x56   : > { %10225 = vmatprep.mubr.msk.bf16.mxu1 %vm363_vm0, %v11057_v24  ;;  %v10845_v24 = vld [vmem:[%s15030_s1 + $0x88] sm:$0xff]   ;;  %v11367_v8 = vpack.c.bf16 %v827_v6, %v826_v0 }
  0x57   : > { %v9033_v0 = vld [vmem:[%s11030_s10 + $0xc8] sm:$0xff] }
  0x5c   : > { %10186 = vmatmul.mubr.msk.bf16.vlgmr.msra.gmra.mxu0 %vm363_vm0, %v11269_v10 }
  0x5d   : > { %10258 = vmatpush3.bf16.msra.mxu0 %v11154_v4  ;;  %10226 = vmatmul.mubr.msk.bf16.vlgmr.msra.gmra.mxu1 %vm363_vm0, %v11061_v26  ;;  %v11301_v4 = vpack.c.bf16 %v815_v21, %v814_v20  ;;  %v835_v20 = vld [vmem:[%s11030_s10 + $0x15a] sm:$0xff] }
  0x5e   : > { %10189 = vmatprep.mubr.msk.bf16.mxu0 %vm363_vm0, %v11274_v12  ;;  %10229 = vmatprep.mubr.msk.bf16.mxu1 %vm363_vm0, %v11084_v37 }
  0x5f   : > { %10259 = vmatprep.subr.bf16.mxu0 %v10844_v11  ;;  %10298 = vmatpush3.bf16.msra.mxu1 %v11199_v27  ;;  %v818_v27 = vld [vmem:[%s11030_s10 + $0x92] sm:$0xff] }
  0x60   : > { %10299 = vmatprep.subr.bf16.mxu1 %v10848_v13  ;;  %v11333_v45 = vpack.c.bf16 %v819_v41, %v818_v27  ;;  %v9089_v27 = vld [vmem:[%s11030_s10 + $0x99] sm:$0xff] }
  0x61   : > { %10260 = vmatpush3.bf16.msra.mxu0 %v10844_v11  ;;  %v831_v11 = vld [vmem:[%s11030_s10 + $0x12a] sm:$0xff] }
  0x62   : > { %10261 = vmatprep.subr.bf16.mxu0 %v10845_v24  ;;  %v11383_v14 = vpack.c.bf16 %v831_v11, %v830_v9 }
  0x63   : > { %10300 = vmatpush3.bf16.msra.mxu1 %v10848_v13 }
  0x64   : > { %10190 = vmatmul.mubr.msk.bf16.gmra.mxu0 %vm363_vm0, %v11299_v28  ;;  %10301 = vmatprep.subr.bf16.mxu1 %v10849_v22 }
  0x65   : > { %10230 = vmatmul.mubr.msk.bf16.gmra.mxu1 %vm363_vm0, %v11088_v39  ;;  %10193 = vmatprep.mubr.msk.bf16.mxu0 %vm363_vm0, %v11301_v4 }
  0x66   : > { %10233 = vmatprep.mubr.msk.bf16.mxu1 %vm363_vm0, %v11114_v51  ;;  %10262 = vmatpush3.bf16.msra.mxu0 %v10845_v24  ;;  %v852_v24 = vpack.c.bf16 %v835_v20, %v834_v19  ;;  %v9034_v20 = vld [vmem:[%s11030_s10 + $0xd8] sm:$0xff] }
  0x67   : > { %10263 = vmatprep.subr.bf16.mxu0 %v10846_v29  ;;  %10302 = vmatpush3.bf16.msra.mxu1 %v10849_v22  ;;  %v837_v22 = vld [vmem:[%s11030_s10 + $0x172] sm:$0xff] }
  0x68   : > { %10303 = vmatprep.subr.bf16.mxu1 %v10850_v30 }
  0x6a   : > { %10264 = vmatpush3.bf16.msra.mxu0 %v10846_v29  ;;  %v8870_v29 = vld [vmem:[%s11030_s10 + $0x180] sm:$0xff] }
  0x6b   : > { %10304 = vmatpush3.bf16.msra.mxu1 %v10850_v30  ;;  %10337 = vmatprep.subr.bf16.mxu0 %v11324_v42  ;;  %v8871_v30 = vld [vmem:[%s11030_s10 + $0x188] sm:$0xff] }
  0x6c   : > { %10194 = vmatmul.mubr.msk.bf16.gmra.mxu0 %vm363_vm0, %v11326_v43  ;;  %10377 = vmatprep.subr.bf16.mxu1 %v11331_v44 }
  0x6d   : > { %10234 = vmatmul.mubr.msk.bf16.gmra.mxu1 %vm363_vm0, %v11121_v54  ;;  %10197 = vmatprep.mubr.msk.bf16.mxu0 %vm363_vm0, %v11333_v45 }
  0x6e   : > { %10237 = vmatprep.mubr.msk.bf16.mxu1 %vm363_vm0, %v11147_v2 }
  0x74   : > { %10198 = vmatmul.mubr.msk.bf16.gmra.mxu0 %vm363_vm0, %v11349_v58 }
  0x75   : > { %10238 = vmatmul.mubr.msk.bf16.gmra.mxu1 %vm363_vm0, %v11156_v5  ;;  %10201 = vmatprep.mubr.msk.bf16.mxu0 %vm363_vm0, %v11351_v59  ;;  %v828_v5 = vld [vmem:[%s11030_s10 + $0x10a] sm:$0xff] }
  0x76   : > { %10241 = vmatprep.mubr.msk.bf16.mxu1 %vm363_vm0, %v11180_v16  ;;  %v829_v16 = vld [vmem:[%s11030_s10 + $0x112] sm:$0xff] }
  0x77   : > { %v11381_v13 = vpack.c.bf16 %v829_v16, %v828_v5  ;;  %v2455_v5 = vpack.c.bf16 %v9091_v60, %v9090_v57  ;;  %v2134_v16 = vpack.c.bf16 %v9033_v0, %v9032_v61 }
  0x7c   : > { %10202 = vmatmul.mubr.msk.bf16.gmra.mxu0 %vm363_vm0, %v11365_v7 }
  0x7d   : > { %10242 = vmatmul.mubr.msk.bf16.gmra.mxu1 %vm363_vm0, %v11184_v18  ;;  %10205 = vmatprep.mubr.msk.bf16.mxu0 %vm363_vm0, %v11367_v8  ;;  %v832_v18 = vld [vmem:[%s11030_s10 + $0x13a] sm:$0xff] }
  0x7e   : > { %10245 = vmatprep.mubr.msk.bf16.mxu1 %vm363_vm0, %v11210_v33  ;;  %v833_v33 = vld [vmem:[%s11030_s10 + $0x142] sm:$0xff] }
  0x7f   : > { %v851_v21 = vpack.c.bf16 %v833_v33, %v832_v18 }
  0x84   : > { %10206 = vmatmul.mubr.msk.bf16.gmra.mxu0 %vm363_vm0, %v11381_v13 }
  0x85   : > { %10246 = vmatmul.mubr.msk.bf16.gmra.mxu1 %vm363_vm0, %v11214_v35  ;;  %10209 = vmatprep.mubr.msk.bf16.mxu0 %vm363_vm0, %v11383_v14  ;;  %v836_v35 = vld [vmem:[%s11030_s10 + $0x16a] sm:$0xff] }
  0x86   : > { %10249 = vmatprep.mubr.msk.bf16.mxu1 %vm363_vm0, %v11234_v50  ;;  %v853_v31 = vpack.c.bf16 %v837_v22, %v836_v35  ;;  %v11407_v50 = vpack.c.bf16 %v8871_v30, %v8870_v29  ;;  %v9095_v29 = vld [vmem:[%s11030_s10 + $0xe1] sm:$0xff]  ;;  %v9036_v30 = vld [vmem:[%s11030_s10 + $0xf0] sm:$0xff] }
  0x8c   : > { %10210 = vmatmul.mubr.msk.bf16.gmra.mxu0 %vm363_vm0, %v851_v21 }
  0x8d   : > { %10250 = vmatmul.mubr.msk.bf16.gmra.mxu1 %vm363_vm0, %v11238_v55  ;;  %10213 = vmatprep.mubr.msk.bf16.mxu0 %vm363_vm0, %v852_v24  ;;  %v10852_v55 = vld [vmem:[%s15030_s1 + $0xd0] sm:$0xff]  }
  0x8e   : > { %10253 = vmatprep.mubr.msk.bf16.mxu1 %vm363_vm0, %v11256_v63  ;;  %v10856_v63 = vld [vmem:[%s15030_s1 + $0xf0] sm:$0xff]  }
  0x94   : > { %10214 = vmatmul.mubr.msk.bf16.gmra.mxu0 %vm363_vm0, %v853_v31 }
  0x95   : > { %10254 = vmatmul.mubr.msk.bf16.gmra.mxu1 %vm363_vm0, %v11407_v50  ;;  %10265 = vmatprep.mubr.msk.bf16.mxu0 %vm363_vm0, %v11055_v23  ;;  %v10853_v23 = vld [vmem:[%s15030_s1 + $0xc8] sm:$0xff]  }
  0x96   : > { %10305 = vmatprep.mubr.msk.bf16.mxu1 %vm363_vm0, %v11269_v10  ;;  %v10857_v10 = vld [vmem:[%s15030_s1 + $0xe8] sm:$0xff]  }
  0x9c   : > { %10266 = vmatmul.mubr.msk.bf16.vlgmr.msra.gmra.mxu0 %vm363_vm0, %v11059_v25 }
  0x9d   : > { %10338 = vmatpush3.bf16.msra.mxu0 %v11324_v42  ;;  %10306 = vmatmul.mubr.msk.bf16.vlgmr.msra.gmra.mxu1 %vm363_vm0, %v11274_v12  ;;  %v10854_v12 = vld [vmem:[%s15030_s1 + $0xc0] sm:$0xff]  }
  0x9e   : > { %10269 = vmatprep.mubr.msk.bf16.mxu0 %vm363_vm0, %v11082_v36  ;;  %10309 = vmatprep.mubr.msk.bf16.mxu1 %vm363_vm0, %v11299_v28  ;;  %v10858_v28 = vld [vmem:[%s15030_s1 + $0xe0] sm:$0xff]  }
  0x9f   : > { %10339 = vmatprep.subr.bf16.mxu0 %v10852_v55  ;;  %10378 = vmatpush3.bf16.msra.mxu1 %v11331_v44 }
  0xa0   : > { %10379 = vmatprep.subr.bf16.mxu1 %v10856_v63 }
  0xa1   : > { %10340 = vmatpush3.bf16.msra.mxu0 %v10852_v55 }
  0xa2   : > { %10341 = vmatprep.subr.bf16.mxu0 %v10853_v23 }
  0xa3   : > { %10380 = vmatpush3.bf16.msra.mxu1 %v10856_v63  ;;  %v9096_v63 = vld [vmem:[%s11030_s10 + $0xf1] sm:$0xff] }
  0xa4   : > { %10270 = vmatmul.mubr.msk.bf16.gmra.mxu0 %vm363_vm0, %v11086_v38  ;;  %10381 = vmatprep.subr.bf16.mxu1 %v10857_v10 }
  0xa5   : > { %10310 = vmatmul.mubr.msk.bf16.gmra.mxu1 %vm363_vm0, %v11301_v4  ;;  %10273 = vmatprep.mubr.msk.bf16.mxu0 %vm363_vm0, %v11109_v49 }
  0xa6   : > { %10313 = vmatprep.mubr.msk.bf16.mxu1 %vm363_vm0, %v11326_v43  ;;  %10342 = vmatpush3.bf16.msra.mxu0 %v10853_v23  ;;  %v9097_v23 = vld [vmem:[%s11030_s10 + $0xf9] sm:$0xff] }
  0xa7   : > { %10343 = vmatprep.subr.bf16.mxu0 %v10854_v12  ;;  %10382 = vmatpush3.bf16.msra.mxu1 %v10857_v10 }
  0xa8   : > { %10383 = vmatprep.subr.bf16.mxu1 %v10858_v28 }
  0xaa   : > { %10344 = vmatpush3.bf16.msra.mxu0 %v10854_v12 }
  0xab   : > { %10384 = vmatpush3.bf16.msra.mxu1 %v10858_v28  ;;  %10417 = vmatprep.subr.bf16.mxu0 %v10859_v40 }
  0xac   : > { %10274 = vmatmul.mubr.msk.bf16.gmra.mxu0 %vm363_vm0, %v11116_v52  ;;  %v8930_v52 = vld [vmem:[%s11030_s10 + $0x181] sm:$0xff] }
  0xad   : > { %10314 = vmatmul.mubr.msk.bf16.gmra.mxu1 %vm363_vm0, %v11333_v45  ;;  %10277 = vmatprep.mubr.msk.bf16.mxu0 %vm363_vm0, %v11145_v1  ;;  %v8931_v1 = vld [vmem:[%s11030_s10 + $0x189] sm:$0xff]  ;;  %v10862_v45 = vld [vmem:[%s15030_s1 + $0x100] sm:$0xff]  }
  0xae   : > { %10317 = vmatprep.mubr.msk.bf16.mxu1 %vm363_vm0, %v11349_v58 }
  0xb4   : > { %10278 = vmatmul.mubr.msk.bf16.gmra.mxu0 %vm363_vm0, %v11149_v3  ;;  %v8990_v3 = vld [vmem:[%s11030_s10 + $0x182] sm:$0xff] }
  0xb5   : > { %10318 = vmatmul.mubr.msk.bf16.gmra.mxu1 %vm363_vm0, %v11351_v59  ;;  %10281 = vmatprep.mubr.msk.bf16.mxu0 %vm363_vm0, %v11178_v15  ;;  %v8991_v15 = vld [vmem:[%s11030_s10 + $0x18a] sm:$0xff] }
  0xb6   : > { %10321 = vmatprep.mubr.msk.bf16.mxu1 %vm363_vm0, %v11365_v7  ;;  %v9092_v7 = vld [vmem:[%s11030_s10 + $0xc1] sm:$0xff] }
  0xbc   : > { %10282 = vmatmul.mubr.msk.bf16.gmra.mxu0 %vm363_vm0, %v11182_v17  ;;  %v11496_v17 = vpack.c.bf16 %v8931_v1, %v8930_v52 }
  0xbd   : > { %10322 = vmatmul.mubr.msk.bf16.gmra.mxu1 %vm363_vm0, %v11367_v8  ;;  %10285 = vmatprep.mubr.msk.bf16.mxu0 %vm363_vm0, %v11208_v32  ;;  %v11498_v32 = vpack.c.bf16 %v8991_v15, %v8990_v3  ;;  %v2458_v15 = vpack.c.bf16 %v9097_v23, %v9096_v63 }
  0xbe   : > { %10325 = vmatprep.mubr.msk.bf16.mxu1 %vm363_vm0, %v11381_v13 }
  0xc4   : > { %10286 = vmatmul.mubr.msk.bf16.gmra.mxu0 %vm363_vm0, %v11212_v34  ;;  %v10860_v34 = vld [vmem:[%s15030_s1 + $0x110] sm:$0xff]  }
  0xc5   : > { %10326 = vmatmul.mubr.msk.bf16.gmra.mxu1 %vm363_vm0, %v11383_v14  ;;  %10289 = vmatprep.mubr.msk.bf16.mxu0 %vm363_vm0, %v11232_v48 }
  0xc6   : > { %10329 = vmatprep.mubr.msk.bf16.mxu1 %vm363_vm0, %v851_v21  ;;  %v9035_v21 = vld [vmem:[%s11030_s10 + $0xe0] sm:$0xff] }
  0xc7   : > { %v2135_v12 = vpack.c.bf16 %v9035_v21, %v9034_v20  ;;  %v9103_v20 = vld [vmem:[%s11030_s10 + $0x141] sm:$0xff]  ;;  %v9044_v21 = vld [vmem:[%s11030_s10 + $0x150] sm:$0xff] }
  0xcc   : > { %10290 = vmatmul.mubr.msk.bf16.gmra.mxu0 %vm363_vm0, %v11236_v53 }
  0xcd   : > { %10330 = vmatmul.mubr.msk.bf16.gmra.mxu1 %vm363_vm0, %v852_v24  ;;  %10293 = vmatprep.mubr.msk.bf16.mxu0 %vm363_vm0, %v11254_v62  ;;  %v9094_v24 = vld [vmem:[%s11030_s10 + $0xd9] sm:$0xff] }
  0xce   : > { %10333 = vmatprep.mubr.msk.bf16.mxu1 %vm363_vm0, %v853_v31  ;;  %v9037_v31 = vld [vmem:[%s11030_s10 + $0xf8] sm:$0xff] }
  0xcf   : > { %v2136_v52 = vpack.c.bf16 %v9037_v31, %v9036_v30  ;;  %v9105_v30 = vld [vmem:[%s11030_s10 + $0x159] sm:$0xff] }
  0xd4   : > { %10294 = vmatmul.mubr.msk.bf16.gmra.mxu0 %vm363_vm0, %v11496_v17 }
  0xd5   : > { %10334 = vmatmul.mubr.msk.bf16.gmra.mxu1 %vm363_vm0, %v11498_v32  ;;  %10345 = vmatprep.mubr.msk.bf16.mxu0 %vm363_vm0, %v11061_v26 }
  0xd6   : > { %10385 = vmatprep.mubr.msk.bf16.mxu1 %vm363_vm0, %v11059_v25  ;;  %v10861_v25 = vld [vmem:[%s15030_s1 + $0x108] sm:$0xff]  }
  0xdc   : > { %v10107_v48 = vpop.f32.mrf.mxu0  ;;  %10346 = vmatmul.mubr.msk.bf16.vlgmr.msra.gmra.mxu0 %vm363_vm0, %v11084_v37  ;;  %v9088_v37 = vld [vmem:[%s11030_s10 + $0x91] sm:$0xff] }
  0xdd   : > { %v10147_v53 = vpop.f32.mrf.mxu1  ;;  %10418 = vmatpush3.bf16.msra.mxu0 %v10859_v40  ;;  %10386 = vmatmul.mubr.msk.bf16.vlgmr.msra.gmra.mxu1 %vm363_vm0, %v11082_v36  ;;  %v2457_v40 = vpack.c.bf16 %v9095_v29, %v9094_v24  ;;  %v9045_v24 = vld [vmem:[%s11030_s10 + $0x158] sm:$0xff] }
  0xde   : > { %v11515_v62 = vadd.f32 %v10147_v53, %v10107_v48  ;;  %v446_v26 = vpop.f32.mrf.mxu0  ;;  %10349 = vmatprep.mubr.msk.bf16.mxu0 %vm363_vm0, %v11088_v39  ;;  %10389 = vmatprep.mubr.msk.bf16.mxu1 %vm363_vm0, %v11086_v38  ;;  %v2454_v38 = vpack.c.bf16 %v9089_v27, %v9088_v37  ;;  %v9098_v37 = vld [vmem:[%s11030_s10 + $0x109] sm:$0xff]  ;;  %v9104_v29 = vld [vmem:[%s11030_s10 + $0x151] sm:$0xff] }
  0xdf   : > { %v679_v4 = vpop.f32.mrf.mxu1  ;;  %10419 = vmatprep.subr.bf16.mxu0 %v10860_v34 }
  0xe0   : > { %v11526_v41 = vadd.f32 %v679_v4, %v446_v26  ;;  %v10108_v36 = vpop.f32.mrf.mxu0  ;;  %v9039_v4 = vld [vmem:[%s11030_s10 + $0x110] sm:$0xff] }
  0xe1   : > { %v10148_v42 = vpop.f32.mrf.mxu1  ;;  %10420 = vmatpush3.bf16.msra.mxu0 %v10860_v34 }
  0xe2   : > { %v11528_v43 = vadd.f32 %v10148_v42, %v10108_v36  ;;  %v449_v39 = vpop.f32.mrf.mxu0  ;;  %10421 = vmatprep.subr.bf16.mxu0 %v10861_v25  ;;  %v9099_v42 = vld [vmem:[%s11030_s10 + $0x111] sm:$0xff] }
  0xe3   : > { %v682_v44 = vpop.f32.mrf.mxu1  ;;  %v2459_v61 = vpack.c.bf16 %v9099_v42, %v9098_v37  ;;  %v9106_v37 = vld [vmem:[%s11030_s10 + $0x169] sm:$0xff] }
  0xe4   : > { %v11533_v46 = vadd.f32 %v682_v44, %v449_v39  ;;  %v10111_v47 = vpop.f32.mrf.mxu0  ;;  %10350 = vmatmul.mubr.msk.bf16.gmra.mxu0 %vm363_vm0, %v11114_v51  ;;  %v9093_v51 = vld [vmem:[%s11030_s10 + $0xc9] sm:$0xff]  ;;  %v9040_v39 = vld [vmem:[%s11030_s10 + $0x120] sm:$0xff] }
  0xe5   : > { %v10151_v56 = vpop.f32.mrf.mxu1  ;;  %10390 = vmatmul.mubr.msk.bf16.gmra.mxu1 %vm363_vm0, %v11109_v49  ;;  %10353 = vmatprep.mubr.msk.bf16.mxu0 %vm363_vm0, %v11121_v54  ;;  %v2456_v13 = vpack.c.bf16 %v9093_v51, %v9092_v7 }
  0xe6   : > { %v11542_v58 = vadd.f32 %v10151_v56, %v10111_v47  ;;  %v462_v59 = vpop.f32.mrf.mxu0  ;;  %10393 = vmatprep.mubr.msk.bf16.mxu1 %vm363_vm0, %v2454_v38  ;;  %10422 = vmatpush3.bf16.msra.mxu0 %v10861_v25  ;;  %v9038_v25 = vld [vmem:[%s11030_s10 + $0x108] sm:$0xff] }
  0xe7   : > { %v695_v6 = vpop.f32.mrf.mxu1  ;;  %10423 = vmatprep.subr.bf16.mxu0 %v10862_v45  ;;  %v9041_v38 = vld [vmem:[%s11030_s10 + $0x128] sm:$0xff] }
  0xe8   : > { %v11550_v8 = vadd.f32 %v695_v6, %v462_v59  ;;  %v10112_v49 = vpop.f32.mrf.mxu0  ;;  %v9101_v47 = vld [vmem:[%s11030_s10 + $0x129] sm:$0xff]  ;;  %v2137_v59 = vpack.c.bf16 %v9039_v4, %v9038_v25  ;;  %v2138_v0 = vpack.c.bf16 %v9041_v38, %v9040_v39 }
  0xe9   : > { %v10152_v54 = vpop.f32.mrf.mxu1 }
  0xea   : > { %v11552_v9 = vadd.f32 %v10152_v54, %v10112_v49  ;;  %v465_v11 = vpop.f32.mrf.mxu0  ;;  %10424 = vmatpush3.bf16.msra.mxu0 %v10862_v45  ;;  %v9100_v45 = vld [vmem:[%s11030_s10 + $0x121] sm:$0xff] }
  0xeb   : > { %v698_v14 = vpop.f32.mrf.mxu1  ;;  %v2460_v51 = vpack.c.bf16 %v9101_v47, %v9100_v45 }
  0xec   : > { %v11554_v18 = vadd.f32 %v698_v14, %v465_v11  ;;  %v10115_v33 = vpop.f32.mrf.mxu0  ;;  %10354 = vmatmul.mubr.msk.bf16.gmra.mxu0 %vm363_vm0, %v11147_v2  ;;  %v9042_v11 = vld [vmem:[%s11030_s10 + $0x138] sm:$0xff] }
  0xed   : > { %v10155_v19 = vpop.f32.mrf.mxu1  ;;  %10394 = vmatmul.mubr.msk.bf16.gmra.mxu1 %vm363_vm0, %v2455_v5  ;;  %10357 = vmatprep.mubr.msk.bf16.mxu0 %vm363_vm0, %v2134_v16  ;;  %v9102_v14 = vld [vmem:[%s11030_s10 + $0x139] sm:$0xff] }
  0xee   : > { %v11563_v35 = vadd.f32 %v10155_v19, %v10115_v33  ;;  %v478_v22 = vpop.f32.mrf.mxu0  ;;  %10397 = vmatprep.mubr.msk.bf16.mxu1 %vm363_vm0, %v2456_v13  ;;  %v9043_v13 = vld [vmem:[%s11030_s10 + $0x140] sm:$0xff] }
  0xef   : > { %v711_v55 = vpop.f32.mrf.mxu1  ;;  %v2139_v63 = vpack.c.bf16 %v9043_v13, %v9042_v11  ;;  %v9111_v11 = vld [vmem:[%s11030_s10 + $0x1a1] sm:$0xff]  ;;  %v9140_v13 = vld [vmem:[%s11030_s10 + $0x32] sm:$0xff] }
  0xf0   : > { %v11571_v2 = vadd.f32 %v711_v55, %v478_v22  ;;  %v10116_v10 = vpop.f32.mrf.mxu0 }
  0xf1   : > { %v10156_v28 = vpop.f32.mrf.mxu1 }
  0xf2   : > { %v11573_v1 = vadd.f32 %v10156_v28, %v10116_v10  ;;  %v481_v3 = vpop.f32.mrf.mxu0  ;;  %v2461_v10 = vpack.c.bf16 %v9103_v20, %v9102_v14  ;;  %v9141_v14 = vld [vmem:[%s11030_s10 + $0x3a] sm:$0xff] }
  0xf3   : > { %v714_v34 = vpop.f32.mrf.mxu1 }
  0xf4   : > { %v11575_v48 = vadd.f32 %v714_v34, %v481_v3  ;;  %v10119_v53 = vpop.f32.mrf.mxu0  ;;  %10358 = vmatmul.mubr.msk.bf16.gmra.mxu0 %vm363_vm0, %v2135_v12  ;;  %v2140_v12 = vpack.c.bf16 %v9045_v24, %v9044_v21 }
  0xf5   : > { %v10159_v26 = vpop.f32.mrf.mxu1  ;;  %10398 = vmatmul.mubr.msk.bf16.gmra.mxu1 %vm363_vm0, %v2457_v40  ;;  %10361 = vmatprep.mubr.msk.bf16.mxu0 %vm363_vm0, %v2136_v52  ;;  %v2462_v52 = vpack.c.bf16 %v9105_v30, %v9104_v29  ;;  %v2772_v29 = vpack.c.bf16 %v9141_v14, %v9140_v13  ;;  %v9149_v13 = vld [vmem:[%s11030_s10 + $0x9a] sm:$0xff] }
  0xf6   : > { %v11583_v27 = vadd.f32 %v10159_v26, %v10119_v53  ;;  %v494_v36 = vpop.f32.mrf.mxu0  ;;  %10401 = vmatprep.mubr.msk.bf16.mxu1 %vm363_vm0, %v2458_v15  ;;  %v9046_v53 = vld [vmem:[%s11030_s10 + $0x168] sm:$0xff]  ;;  %v9047_v26 = vld [vmem:[%s11030_s10 + $0x170] sm:$0xff] }
  0xf7   : > { %v727_v44 = vpop.f32.mrf.mxu1 }
  0xf8   : > { %v11591_v56 = vadd.f32 %v727_v44, %v494_v36  ;;  %v10120_v57 = vpop.f32.mrf.mxu0  ;;  %v9107_v36 = vld [vmem:[%s11030_s10 + $0x171] sm:$0xff]  ;;  %v2141_v44 = vpack.c.bf16 %v9047_v26, %v9046_v53 }
  0xf9   : > { %v10160_v60 = vpop.f32.mrf.mxu1  ;;  %v2463_v47 = vpack.c.bf16 %v9107_v36, %v9106_v37  ;;  %v9145_v53 = vld [vmem:[%s11030_s10 + $0x6a] sm:$0xff] }
  0xfa   : > { %v11593_v6 = vadd.f32 %v10160_v60, %v10120_v57  ;;  %v497_v7 = vpop.f32.mrf.mxu0 }
  0xfb   : > { %v730_v49 = vpop.f32.mrf.mxu1 }
  0xfc   : > { %v11595_v54 = vadd.f32 %v730_v49, %v497_v7  ;;  %v10123_v5 = vpop.f32.mrf.mxu0  ;;  %10362 = vmatmul.mubr.msk.bf16.gmra.mxu0 %vm363_vm0, %v2137_v59  ;;  %v9050_v7 = vld [vmem:[%s11030_s10 + $0x198] sm:$0xff] }
  0xfd   : > { %v10163_v16 = vpop.f32.mrf.mxu1  ;;  %10402 = vmatmul.mubr.msk.bf16.gmra.mxu1 %vm363_vm0, %v2459_v61  ;;  %10365 = vmatprep.mubr.msk.bf16.mxu0 %vm363_vm0, %v2138_v0  ;;  %v9110_v49 = vld [vmem:[%s11030_s10 + $0x199] sm:$0xff] }
  0xfe   : > { %v11603_v33 = vadd.f32 %v10163_v16, %v10123_v5  ;;  %v510_v19 = vpop.f32.mrf.mxu0  ;;  %10405 = vmatprep.mubr.msk.bf16.mxu1 %vm363_vm0, %v2460_v51  ;;  %v9051_v51 = vld [vmem:[%s11030_s10 + $0x1a0] sm:$0xff] }
  0xff   : > { %v743_v22 = vpop.f32.mrf.mxu1  ;;  %v2143_v24 = vpack.c.bf16 %v9051_v51, %v9050_v7  ;;  %v9146_v51 = vld [vmem:[%s11030_s10 + $0x7a] sm:$0xff] }
 0x100   : > { %v11611_v31 = vadd.f32 %v743_v22, %v510_v19  ;;  %v10124_v55 = vpop.f32.mrf.mxu0  ;;  %v2465_v22 = vpack.c.bf16 %v9111_v11, %v9110_v49  ;;  %v9147_v49 = vld [vmem:[%s11030_s10 + $0x82] sm:$0xff]  ;;  %v9148_v11 = vld [vmem:[%s11030_s10 + $0x92] sm:$0xff] }
 0x101   : > { %v10164_v23 = vpop.f32.mrf.mxu1 }
 0x102   : > { %v11613_v28 = vadd.f32 %v10164_v23, %v10124_v55  ;;  %v11615_v40 = vpop.f32.mrf.mxu0 }
 0x103   : > { %v11617_v3 = vpop.f32.mrf.mxu1 }
 0x104   : > { %v10127_v15 = vpop.f32.mrf.mxu0  ;;  %10366 = vmatmul.mubr.msk.bf16.gmra.mxu0 %vm363_vm0, %v2139_v63 }
 0x105   : > { %v10167_v34 = vpop.f32.mrf.mxu1  ;;  %10406 = vmatmul.mubr.msk.bf16.gmra.mxu1 %vm363_vm0, %v2461_v10  ;;  %10369 = vmatprep.mubr.msk.bf16.mxu0 %vm363_vm0, %v2140_v12  ;;  %v9142_v10 = vld [vmem:[%s11030_s10 + $0x4a] sm:$0xff]  ;;  %v9143_v12 = vld [vmem:[%s11030_s10 + $0x52] sm:$0xff] }
 0x106   : > { %v11624_v25 = vadd.f32 %v10167_v34, %v10127_v15  ;;  %v526_v4 = vpop.f32.mrf.mxu0  ;;  %10409 = vmatprep.mubr.msk.bf16.mxu1 %vm363_vm0, %v2462_v52  ;;  %v9144_v34 = vld [vmem:[%s11030_s10 + $0x62] sm:$0xff]  ;;  %v2773_v36 = vpack.c.bf16 %v9143_v12, %v9142_v10 }
 0x107   : > { %v759_v42 = vpop.f32.mrf.mxu1 }
 0x108   : > { %v11629_v39 = vadd.f32 %v759_v42, %v526_v4  ;;  %v10128_v38 = vpop.f32.mrf.mxu0 }
 0x109   : > { %v10168_v45 = vpop.f32.mrf.mxu1 }
 0x10a   : > { %v11631_v57 = vadd.f32 %v10168_v45, %v10128_v38  ;;  %v11633_v59 = vpop.f32.mrf.mxu0  ;;  %v2774_v38 = vpack.c.bf16 %v9145_v53, %v9144_v34  ;;  %v9150_v53 = vld [vmem:[%s11030_s10 + $0xaa] sm:$0xff] }
 0x10b   : > { %v11635_v60 = vpop.f32.mrf.mxu1 }
 0x10c   : > { %v10131_v61 = vpop.f32.mrf.mxu0  ;;  %10370 = vmatmul.mubr.msk.bf16.gmra.mxu0 %vm363_vm0, %v2141_v44 }
 0x10d   : > { %v10171_v0 = vpop.f32.mrf.mxu1  ;;  %10410 = vmatmul.mubr.msk.bf16.gmra.mxu1 %vm363_vm0, %v2463_v47  ;;  %10373 = vmatprep.mubr.msk.bf16.mxu0 %vm363_vm0, %v11407_v50 }
 0x10e   : > { %v11644_v5 = vadd.f32 %v10171_v0, %v10131_v61  ;;  %v542_v16 = vpop.f32.mrf.mxu0  ;;  %10413 = vmatprep.mubr.msk.bf16.mxu1 %vm363_vm0, %v11496_v17 }
 0x10f   : > { %v775_v19 = vpop.f32.mrf.mxu1 }
 0x110   : > { %v11651_v20 = vadd.f32 %v775_v19, %v542_v16  ;;  %v10132_v21 = vpop.f32.mrf.mxu0 }
 0x111   : > { %v10172_v50 = vpop.f32.mrf.mxu1 }
 0x112   : > { %v11653_v30 = vadd.f32 %v10172_v50, %v10132_v21  ;;  %v11655_v55 = vpop.f32.mrf.mxu0  ;;  %v2775_v50 = vpack.c.bf16 %v9147_v49, %v9146_v51 }
 0x113   : > { %v11657_v17 = vpop.f32.mrf.mxu1 }
 0x114   : > { %v10135_v63 = vpop.f32.mrf.mxu0  ;;  %10374 = vmatmul.mubr.msk.bf16.gmra.mxu0 %vm363_vm0, %v2143_v24 }
 0x115   : > { %v10175_v23 = vpop.f32.mrf.mxu1  ;;  %10414 = vmatmul.mubr.msk.bf16.gmra.mxu1 %vm363_vm0, %v2465_v22  ;;  %10425 = vmatprep.mubr.msk.bf16.mxu0 %vm363_vm0, %v2772_v29 }
 0x116   : > { %v11664_v52 = vadd.f32 %v10175_v23, %v10135_v63  ;;  %v558_v15 = vpop.f32.mrf.mxu0  ;;  %v2776_v63 = vpack.c.bf16 %v9149_v13, %v9148_v11 }
 0x117   : > { %v791_v26 = vpop.f32.mrf.mxu1 }
 0x118   : > { %v11668_v4 = vadd.f32 %v791_v26, %v558_v15  ;;  %v10136_v37 = vpop.f32.mrf.mxu0  ;;  %v9151_v26 = vld [vmem:[%s11030_s10 + $0xb2] sm:$0xff] }
 0x119   : > { %v10176_v42 = vpop.f32.mrf.mxu1 }
 0x11a   : > { %v11670_v44 = vadd.f32 %v10176_v42, %v10136_v37  ;;  %v11672_v45 = vpop.f32.mrf.mxu0  ;;  %v9153_v42 = vld [vmem:[%s11030_s10 + $0xca] sm:$0xff] }
 0x11b   : > { %v11674_v47 = vpop.f32.mrf.mxu1 }
 0x11c   : > { %v10187_v61 = vpop.f32.mrf.mxu0  ;;  %10426 = vmatmul.mubr.msk.bf16.vlgmr.msra.gmra.mxu0 %vm363_vm0, %v2773_v36  ;;  %v9152_v36 = vld [vmem:[%s11030_s10 + $0xc2] sm:$0xff] }
 0x11d   : > { %v1098_v0 = vadd.f32 %v10187_v61, %v11515_v62  ;;  %v10227_v7 = vpop.f32.mrf.mxu1  ;;  %10429 = vmatprep.mubr.msk.bf16.mxu0 %vm363_vm0, %v2774_v38 }
 0x11e   : > { %v969_v16 = vpop.f32.mrf.mxu0 }
 0x11f   : > { %v1096_v14 = vadd.f32 %v969_v16, %v11526_v41  ;;  %v11684_v19 = vadd.f32 %v10227_v7, %v1098_v0  ;;  %v1292_v21 = vpop.f32.mrf.mxu1  ;;  %v2777_v7 = vpack.c.bf16 %v9151_v26, %v9150_v53  ;;  %v2778_v16 = vpack.c.bf16 %v9153_v42, %v9152_v36 }
 0x120   : > { %v10188_v24 = vpop.f32.mrf.mxu0 }
 0x121   : > { %v1099_v22 = vadd.f32 %v10188_v24, %v11528_v43  ;;  %v11687_v62 = vadd.f32 %v1292_v21, %v1096_v14  ;;  %v10228_v29 = vpop.f32.mrf.mxu1 }
 0x122   : > { %v972_v23 = vpop.f32.mrf.mxu0 }
 0x123   : > { %v11690_v10 = vadd.f32 %v972_v23, %v11533_v46  ;;  %v11692_v41 = vadd.f32 %v10228_v29, %v1099_v22  ;;  %v11694_v12 = vpop.f32.mrf.mxu1  ;;  %v9155_v22 = vld [vmem:[%s11030_s10 + $0xe2] sm:$0xff]  ;;  %v9157_v23 = vld [vmem:[%s11030_s10 + $0xfa] sm:$0xff] }
 0x124   : > { %v10191_v15 = vpop.f32.mrf.mxu0  ;;  %10430 = vmatmul.mubr.msk.bf16.gmra.mxu0 %vm363_vm0, %v2775_v50  ;;  %v9154_v50 = vld [vmem:[%s11030_s10 + $0xda] sm:$0xff] }
 0x125   : > { %v1102_v34 = vadd.f32 %v10191_v15, %v11542_v58  ;;  %v10231_v43 = vpop.f32.mrf.mxu1  ;;  %10433 = vmatprep.mubr.msk.bf16.mxu0 %vm363_vm0, %v2776_v63  ;;  %v9156_v63 = vld [vmem:[%s11030_s10 + $0xf2] sm:$0xff]  ;;  %v2779_v53 = vpack.c.bf16 %v9155_v22, %v9154_v50 }
 0x126   : > { %v985_v37 = vpop.f32.mrf.mxu0  ;;  %v2780_v36 = vpack.c.bf16 %v9157_v23, %v9156_v63 }
 0x127   : > { %v1100_v46 = vadd.f32 %v985_v37, %v11550_v8  ;;  %v11704_v38 = vadd.f32 %v10231_v43, %v1102_v34  ;;  %v1308_v61 = vpop.f32.mrf.mxu1 }
 0x128   : > { %v10192_v0 = vpop.f32.mrf.mxu0 }
 0x129   : > { %v1103_v51 = vadd.f32 %v10192_v0, %v11552_v9  ;;  %v11707_v58 = vadd.f32 %v1308_v61, %v1100_v46  ;;  %v10232_v49 = vpop.f32.mrf.mxu1 }
 0x12a   : > { %v988_v11 = vpop.f32.mrf.mxu0 }
 0x12b   : > { %v11710_v13 = vadd.f32 %v988_v11, %v11554_v18  ;;  %v11712_v8 = vadd.f32 %v10232_v49, %v1103_v51  ;;  %v11714_v14 = vpop.f32.mrf.mxu1  ;;  %v9158_v51 = vld [vmem:[%s11030_s10 + $0x10a] sm:$0xff]  ;;  %v9159_v49 = vld [vmem:[%s11030_s10 + $0x112] sm:$0xff]  ;;  %v9160_v11 = vld [vmem:[%s11030_s10 + $0x122] sm:$0xff] }
 0x12c   : > { %v10195_v21 = vpop.f32.mrf.mxu0  ;;  %10434 = vmatmul.mubr.msk.bf16.gmra.mxu0 %vm363_vm0, %v2777_v7  ;;  %v2781_v22 = vpack.c.bf16 %v9159_v49, %v9158_v51 }
 0x12d   : > { %v1106_v24 = vadd.f32 %v10195_v21, %v11563_v35  ;;  %v10235_v9 = vpop.f32.mrf.mxu1  ;;  %10437 = vmatprep.mubr.msk.bf16.mxu0 %vm363_vm0, %v2778_v16  ;;  %v9161_v21 = vld [vmem:[%s11030_s10 + $0x12a] sm:$0xff] }
 0x12e   : > { %v1001_v29 = vpop.f32.mrf.mxu0  ;;  %v2782_v23 = vpack.c.bf16 %v9161_v21, %v9160_v11 }
 0x12f   : > { %v1104_v18 = vadd.f32 %v1001_v29, %v11571_v2  ;;  %v11724_v15 = vadd.f32 %v10235_v9, %v1106_v24  ;;  %v1324_v34 = vpop.f32.mrf.mxu1 }
 0x130   : > { %v10196_v43 = vpop.f32.mrf.mxu0 }
 0x131   : > { %v1107_v26 = vadd.f32 %v10196_v43, %v11573_v1  ;;  %v11727_v35 = vadd.f32 %v1324_v34, %v1104_v18  ;;  %v10236_v37 = vpop.f32.mrf.mxu1 }
 0x132   : > { %v1004_v42 = vpop.f32.mrf.mxu0 }
 0x133   : > { %v11730_v46 = vadd.f32 %v1004_v42, %v11575_v48  ;;  %v11732_v2 = vadd.f32 %v10236_v37, %v1107_v26  ;;  %v11734_v61 = vpop.f32.mrf.mxu1  ;;  %v9162_v37 = vld [vmem:[%s11030_s10 + $0x13a] sm:$0xff] }
 0x134   : > { %v10199_v0 = vpop.f32.mrf.mxu0  ;;  %10438 = vmatmul.mubr.msk.bf16.gmra.mxu0 %vm363_vm0, %v2779_v53 }
 0x135   : > { %v1110_v7 = vadd.f32 %v10199_v0, %v11583_v27  ;;  %v10239_v1 = vpop.f32.mrf.mxu1  ;;  %10441 = vmatprep.mubr.msk.bf16.mxu0 %vm363_vm0, %v2780_v36  ;;  %v9163_v36 = vld [vmem:[%s11030_s10 + $0x142] sm:$0xff]  ;;  %v9164_v0 = vld [vmem:[%s11030_s10 + $0x152] sm:$0xff] }
 0x136   : > { %v1017_v16 = vpop.f32.mrf.mxu0 }
 0x137   : > { %v1108_v48 = vadd.f32 %v1017_v16, %v11591_v56  ;;  %v11744_v24 = vadd.f32 %v10239_v1, %v1110_v7  ;;  %v1340_v9 = vpop.f32.mrf.mxu1  ;;  %v9165_v7 = vld [vmem:[%s11030_s10 + $0x15a] sm:$0xff]  ;;  %v2783_v16 = vpack.c.bf16 %v9163_v36, %v9162_v37 }
 0x138   : > { %v10200_v50 = vpop.f32.mrf.mxu0 }
 0x139   : > { %v1111_v29 = vadd.f32 %v10200_v50, %v11593_v6  ;;  %v11747_v27 = vadd.f32 %v1340_v9, %v1108_v48  ;;  %v10240_v63 = vpop.f32.mrf.mxu1  ;;  %v2784_v48 = vpack.c.bf16 %v9165_v7, %v9164_v0 }
 0x13a   : > { %v1020_v18 = vpop.f32.mrf.mxu0 }
 0x13b   : > { %v11750_v34 = vadd.f32 %v1020_v18, %v11595_v54  ;;  %v11752_v56 = vadd.f32 %v10240_v63, %v1111_v29  ;;  %v11754_v43 = vpop.f32.mrf.mxu1  ;;  %v10863_v18 = vld [vmem:[%s15032_s3 + $0x38] sm:$0xff]  }
 0x13c   : > { %v10203_v53 = vpop.f32.mrf.mxu0  ;;  %10442 = vmatmul.mubr.msk.bf16.gmra.mxu0 %vm363_vm0, %v2781_v22  ;;  %10457 = vmatprep.subr.bf16.mxu1 %v10863_v18 }
 0x13d   : > { %v1114_v26 = vadd.f32 %v10203_v53, %v11603_v33  ;;  %v10243_v6 = vpop.f32.mrf.mxu1  ;;  %10445 = vmatprep.mubr.msk.bf16.mxu0 %vm363_vm0, %v2782_v23  ;;  %v9166_v23 = vld [vmem:[%s11030_s10 + $0x16a] sm:$0xff]  ;;  %10458 = vmatpush3.bf16.msra.mxu1 %v10863_v18 }
 0x13e   : > { %v1033_v42 = vpop.f32.mrf.mxu0 }
 0x13f   : > { %v1112_v54 = vadd.f32 %v1033_v42, %v11611_v31  ;;  %v11764_v1 = vadd.f32 %v10243_v6, %v1114_v26  ;;  %v1356_v51 = vpop.f32.mrf.mxu1 }
 0x140   : > { %v10204_v49 = vpop.f32.mrf.mxu0 }
 0x141   : > { %v1115_v11 = vadd.f32 %v10204_v49, %v11613_v28  ;;  %v11767_v33 = vadd.f32 %v1356_v51, %v1112_v54  ;;  %v10244_v21 = vpop.f32.mrf.mxu1  ;;  %v9167_v28 = vld [vmem:[%s11030_s10 + $0x172] sm:$0xff] }
 0x142   : > { %v11769_v9 = vpop.f32.mrf.mxu0 }
 0x143   : > { %v11771_v50 = vadd.f32 %v10244_v21, %v1115_v11  ;;  %v11773_v22 = vpop.f32.mrf.mxu1  ;;  %v9170_v21 = vld [vmem:[%s11030_s10 + $0x19a] sm:$0xff] }
 0x144   : > { %v10207_v31 = vpop.f32.mrf.mxu0  ;;  %10446 = vmatmul.mubr.msk.bf16.gmra.mxu0 %vm363_vm0, %v2783_v16 }
 0x145   : > { %v1118_v29 = vadd.f32 %v10207_v31, %v11624_v25  ;;  %v10247_v63 = vpop.f32.mrf.mxu1  ;;  %10449 = vmatprep.mubr.msk.bf16.mxu0 %vm363_vm0, %v2784_v48  ;;  %v2785_v25 = vpack.c.bf16 %v9167_v28, %v9166_v23 }
 0x146   : > { %v1049_v53 = vpop.f32.mrf.mxu0 }
 0x147   : > { %v1116_v26 = vadd.f32 %v1049_v53, %v11629_v39  ;;  %v11784_v6 = vadd.f32 %v10247_v63, %v1118_v29  ;;  %v1372_v37 = vpop.f32.mrf.mxu1 }
 0x148   : > { %v10208_v36 = vpop.f32.mrf.mxu0 }
 0x149   : > { %v1119_v42 = vadd.f32 %v10208_v36, %v11631_v57  ;;  %v11787_v0 = vadd.f32 %v1372_v37, %v1116_v26  ;;  %v10248_v7 = vpop.f32.mrf.mxu1  ;;  %v9171_v57 = vld [vmem:[%s11030_s10 + $0x1a2] sm:$0xff] }
 0x14a   : > { %v11789_v54 = vpop.f32.mrf.mxu0  ;;  %v2787_v28 = vpack.c.bf16 %v9171_v57, %v9170_v21 }
 0x14b   : > { %v11791_v51 = vadd.f32 %v10248_v7, %v1119_v42  ;;  %v11793_v49 = vpop.f32.mrf.mxu1  ;;  %v10864_v42 = vld [vmem:[%s15032_s3 + $0x30] sm:$0xff]  }
 0x14c   : > { %v10211_v39 = vpop.f32.mrf.mxu0  ;;  %10450 = vmatmul.mubr.msk.bf16.gmra.mxu0 %vm363_vm0, %v2785_v25  ;;  %10459 = vmatprep.subr.bf16.mxu1 %v10864_v42 }
 0x14d   : > { %v1122_v16 = vadd.f32 %v10211_v39, %v11644_v5  ;;  %v10251_v11 = vpop.f32.mrf.mxu1  ;;  %10453 = vmatprep.mubr.msk.bf16.mxu0 %vm363_vm0, %v11498_v32  ;;  %10460 = vmatpush3.bf16.msra.mxu1 %v10864_v42 }
 0x14e   : > { %v1065_v48 = vpop.f32.mrf.mxu0 }
 0x14f   : > { %v1120_v31 = vadd.f32 %v1065_v48, %v11651_v20  ;;  %v11802_v29 = vadd.f32 %v10251_v11, %v1122_v16  ;;  %v1388_v63 = vpop.f32.mrf.mxu1 }
 0x150   : > { %v10212_v23 = vpop.f32.mrf.mxu0 }
 0x151   : > { %v1123_v18 = vadd.f32 %v10212_v23, %v11653_v30  ;;  %v11805_v53 = vadd.f32 %v1388_v63, %v1120_v31  ;;  %v10252_v26 = vpop.f32.mrf.mxu1 }
 0x152   : > { %v11807_v5 = vpop.f32.mrf.mxu0 }
 0x153   : > { %v11809_v37 = vadd.f32 %v10252_v26, %v1123_v18  ;;  %v11811_v32 = vpop.f32.mrf.mxu1 }
 0x154   : > { %v10215_v36 = vpop.f32.mrf.mxu0  ;;  %10454 = vmatmul.mubr.msk.bf16.gmra.mxu0 %vm363_vm0, %v2787_v28 }
 0x155   : > { %v1126_v20 = vadd.f32 %v10215_v36, %v11664_v52  ;;  %v10255_v25 = vpop.f32.mrf.mxu1 }
 0x156   : > { %v1081_v30 = vpop.f32.mrf.mxu0 }
 0x157   : > { %v1124_v7 = vadd.f32 %v1081_v30, %v11668_v4  ;;  %v11819_v39 = vadd.f32 %v10255_v25, %v1126_v20  ;;  %v1404_v16 = vpop.f32.mrf.mxu1  ;;  %v10967_v30 = vmov 0  }
 0x158   : > { %v10216_v11 = vpop.f32.mrf.mxu0  ;;  %3141 = vst.msk [vmem:[#allocation2 + $0x18] sm:$0xf] %vm3133_vm1, %v10967_v30  ;;  %3134 = vst.msk [vmem:[#allocation2] sm:$0xf] %vm3133_vm1, %v10967_v30 }
 0x159   : > { %v1127_v21 = vadd.f32 %v10216_v11, %v11670_v44  ;;  %v11822_v57 = vadd.f32 %v1404_v16, %v1124_v7  ;;  %v10256_v48 = vpop.f32.mrf.mxu1  ;;  %3135 = vst.msk [vmem:[#allocation2 + $0x4] sm:$0xf] %vm3133_vm1, %v10967_v30  ;;  %3138 = vst.msk [vmem:[#allocation2 + $0xc] sm:$0xf] %vm3133_vm1, %v10967_v30 }
 0x15a   : > { %v11824_v52 = vpop.f32.mrf.mxu0  ;;  %3139 = vst.msk [vmem:[#allocation2 + $0x10] sm:$0xf] %vm3133_vm1, %v10967_v30  ;;  %3142 = vst.msk [vmem:[#allocation2 + $0x1c] sm:$0xf] %vm3133_vm1, %v10967_v30 }
 0x15b   : > { %v11826_v31 = vadd.f32 %v10256_v48, %v1127_v21  ;;  %v11828_v63 = vpop.f32.mrf.mxu1  ;;  %3144 = vst.msk [vmem:[#allocation2 + $0x24] sm:$0xf] %vm3133_vm1, %v10967_v30  ;;  %3145 = vst.msk [vmem:[#allocation2 + $0x28] sm:$0xf] %vm3133_vm1, %v10967_v30 }
 0x15c   : > { %15045 = vst [vmem:[#allocation3_spill] sm:$0xff] %v11828_v63  ;;  %v10267_v23 = vpop.f32.mrf.mxu0  ;;  %3147 = vst.msk [vmem:[#allocation2 + $0x30] sm:$0xf] %vm3133_vm1, %v10967_v30 }
 0x15d   : > { %v11831_v4 = vadd.f32 %v10267_v23, %v11684_v19  ;;  %v11833_v28 = vpop.f32.mrf.mxu1  ;;  %3148 = vst.msk [vmem:[#allocation2 + $0x34] sm:$0xf] %vm3133_vm1, %v10967_v30  ;;  %3150 = vst.msk [vmem:[#allocation2 + $0x3c] sm:$0xf] %vm3133_vm1, %v10967_v30 }
 0x15e   : > { %15047 = vst [vmem:[#allocation5_spill] sm:$0xff] %v11833_v28  ;;  %v1614_v18 = vpop.f32.mrf.mxu0  ;;  %3151 = vst.msk [vmem:[#allocation2 + $0x40] sm:$0xf] %vm3133_vm1, %v10967_v30 }
 0x15f   : > { %15046 = vst [vmem:[#allocation4_spill] sm:$0xff] %v11831_v4  ;;  %v11836_v26 = vadd.f32 %v1614_v18, %v11687_v62  ;;  %v11838_v44 = vpop.f32.mrf.mxu1  ;;  %3153 = vst.msk [vmem:[#allocation2 + $0x48] sm:$0xf] %vm3133_vm1, %v10967_v30 }
 0x160   : > { %15049 = vst [vmem:[#allocation7_spill] sm:$0xff] %v11838_v44  ;;  %v10268_v36 = vpop.f32.mrf.mxu0  ;;  %3154 = vst.msk [vmem:[#allocation2 + $0x4c] sm:$0xf] %vm3133_vm1, %v10967_v30 }
 0x161   : > { %15048 = vst [vmem:[#allocation6_spill] sm:$0xff] %v11836_v26  ;;  %v11841_v20 = vadd.f32 %v10268_v36, %v11692_v41  ;;  %v11843_v25 = vpop.f32.mrf.mxu1  ;;  %3156 = vst.msk [vmem:[#allocation2 + $0x54] sm:$0xf] %vm3133_vm1, %v10967_v30 }
 0x162   : > { %15051 = vst [vmem:[#allocation9_spill] sm:$0xff] %v11843_v25  ;;  %v11845_v42 = vpop.f32.mrf.mxu0  ;;  %3157 = vst.msk [vmem:[#allocation2 + $0x58] sm:$0xf] %vm3133_vm1, %v10967_v30 }
 0x163   : > { %15050 = vst [vmem:[#allocation8_spill] sm:$0xff] %v11841_v20  ;;  %3159 = vst.msk [vmem:[#allocation2 + $0x60] sm:$0xf] %vm3133_vm1, %v10967_v30  ;;  %v11919_v19 = vpop.f32.mrf.mxu1 }
 0x164   : > { %3160 = vst.msk [vmem:[#allocation2 + $0x64] sm:$0xf] %vm3133_vm1, %v10967_v30  ;;  %3162 = vst.msk [vmem:[#allocation2 + $0x6c] sm:$0xf] %vm3133_vm1, %v10967_v30  ;;  %v10271_v62 = vpop.f32.mrf.mxu0 }
 0x165   : > { %3163 = vst.msk [vmem:[#allocation2 + $0x70] sm:$0xf] %vm3133_vm1, %v10967_v30  ;;  %3165 = vst.msk [vmem:[#allocation2 + $0x78] sm:$0xf] %vm3133_vm1, %v10967_v30  ;;  %v11922_v41 = vadd.f32 %v10271_v62, %v11704_v38  ;;  %v11924_v7 = vpop.f32.mrf.mxu1 }
 0x166   : > { %3166 = vst.msk [vmem:[#allocation2 + $0x7c] sm:$0xf] %vm3133_vm1, %v10967_v30  ;;  %3168 = vst.msk [vmem:[#allocation2 + $0x84] sm:$0xf] %vm3133_vm1, %v10967_v30  ;;  %v1630_v16 = vpop.f32.mrf.mxu0 }
 0x167   : > { %3169 = vst.msk [vmem:[#allocation2 + $0x88] sm:$0xf] %vm3133_vm1, %v10967_v30  ;;  %3171 = vst.msk [vmem:[#allocation2 + $0x90] sm:$0xf] %vm3133_vm1, %v10967_v30  ;;  %v11927_v11 = vadd.f32 %v1630_v16, %v11707_v58  ;;  %v11929_v21 = vpop.f32.mrf.mxu1 }
 0x168   : > { %3172 = vst.msk [vmem:[#allocation2 + $0x94] sm:$0xf] %vm3133_vm1, %v10967_v30  ;;  %3174 = vst.msk [vmem:[#allocation2 + $0x9c] sm:$0xf] %vm3133_vm1, %v10967_v30  ;;  %v10272_v48 = vpop.f32.mrf.mxu0 }
 0x169   : > { %3175 = vst.msk [vmem:[#allocation2 + $0xa0] sm:$0xf] %vm3133_vm1, %v10967_v30  ;;  %3177 = vst.msk [vmem:[#allocation2 + $0xa8] sm:$0xf] %vm3133_vm1, %v10967_v30  ;;  %v1748_v38 = vadd.f32 %v10272_v48, %v11712_v8  ;;  %v10312_v58 = vpop.f32.mrf.mxu1  ;;  %v10866_v8 = vld [vmem:[%s15032_s3 + $0x18] sm:$0xff]  }
 0x16a   : > { %3178 = vst.msk [vmem:[#allocation2 + $0xac] sm:$0xf] %vm3133_vm1, %v10967_v30  ;;  %3180 = vst.msk [vmem:[#allocation2 + $0xb4] sm:$0xf] %vm3133_vm1, %v10967_v30  ;;  %v11968_v23 = vpop.f32.mrf.mxu0  ;;  %10497 = vmatprep.subr.bf16.mxu0 %v10866_v8 }
 0x16b   : > { %3181 = vst.msk [vmem:[#allocation2 + $0xb8] sm:$0xf] %vm3133_vm1, %v10967_v30  ;;  %3183 = vst.msk [vmem:[#allocation2 + $0xc0] sm:$0xf] %vm3133_vm1, %v10967_v30  ;;  %v11970_v18 = vadd.f32 %v10312_v58, %v1748_v38  ;;  %v11972_v36 = vpop.f32.mrf.mxu1  ;;  %10498 = vmatpush3.bf16.msra.mxu0 %v10866_v8 }
 0x16c   : > { %3184 = vst.msk [vmem:[#allocation2 + $0xc4] sm:$0xf] %vm3133_vm1, %v10967_v30  ;;  %3186 = vst.msk [vmem:[#allocation2 + $0xcc] sm:$0xf] %vm3133_vm1, %v10967_v30  ;;  %v10275_v62 = vpop.f32.mrf.mxu0 }
 0x16d   : > { %3187 = vst.msk [vmem:[#allocation2 + $0xd0] sm:$0xf] %vm3133_vm1, %v10967_v30  ;;  %15052 = vst [vmem:[#allocation10_spill] sm:$0xff] %v11919_v19  ;;  %v1751_v16 = vadd.f32 %v10275_v62, %v11724_v15 }
 0x16e   : > { %15053 = vst [vmem:[#allocation11_spill] sm:$0xff] %v11922_v41  ;;  %15054 = vst [vmem:[#allocation12_spill] sm:$0xff] %v11924_v7 }
 0x16f   : > { %15055 = vst [vmem:[#allocation13_spill] sm:$0xff] %v11927_v11  ;;  %15056 = vst [vmem:[#allocation14_spill] sm:$0xff] %v11929_v21  ;;  %v10315_v21 = vpop.f32.mrf.mxu1  ;;  %v1646_v11 = vpop.f32.mrf.mxu0 }
 0x170   : > { %3143 = vst.msk [vmem:[#allocation2 + $0x20] sm:$0x1] %vm3136_vm2, %v10967_v30  ;;  %3137 = vst.msk [vmem:[#allocation2 + $0x8] sm:$0x1] %vm3136_vm2, %v10967_v30  ;;  %v1749_v7 = vadd.f32 %v1646_v11, %v11727_v35  ;;  %v11976_v41 = vadd.f32 %v10315_v21, %v1751_v16  ;;  %v10867_v21 = vld [vmem:[%s15032_s3 + $0x10] sm:$0xff]  }
 0x171   : > { %3140 = vst.msk [vmem:[#allocation2 + $0x14] sm:$0x1] %vm3136_vm2, %v10967_v30  ;;  %3146 = vst.msk [vmem:[#allocation2 + $0x2c] sm:$0x1] %vm3136_vm2, %v10967_v30  ;;  %v1968_v19 = vpop.f32.mrf.mxu1  ;;  %10499 = vmatprep.subr.bf16.mxu0 %v10867_v21 }
 0x172   : > { %3149 = vst.msk [vmem:[#allocation2 + $0x38] sm:$0x1] %vm3136_vm2, %v10967_v30  ;;  %3152 = vst.msk [vmem:[#allocation2 + $0x44] sm:$0x1] %vm3136_vm2, %v10967_v30  ;;  %v11982_v38 = vadd.f32 %v1968_v19, %v1749_v7  ;;  %10500 = vmatpush3.bf16.msra.mxu0 %v10867_v21 }
 0x173   : > { %3155 = vst.msk [vmem:[#allocation2 + $0x50] sm:$0x1] %vm3136_vm2, %v10967_v30  ;;  %3158 = vst.msk [vmem:[#allocation2 + $0x5c] sm:$0x1] %vm3136_vm2, %v10967_v30  ;;  %v10316_v58 = vpop.f32.mrf.mxu1 }
 0x174   : > { %3161 = vst.msk [vmem:[#allocation2 + $0x68] sm:$0x1] %vm3136_vm2, %v10967_v30  ;;  %3164 = vst.msk [vmem:[#allocation2 + $0x74] sm:$0x1] %vm3136_vm2, %v10967_v30 }
 0x175   : > { %3167 = vst.msk [vmem:[#allocation2 + $0x80] sm:$0x1] %vm3136_vm2, %v10967_v30  ;;  %3170 = vst.msk [vmem:[#allocation2 + $0x8c] sm:$0x1] %vm3136_vm2, %v10967_v30  ;;  %v11988_v35 = vpop.f32.mrf.mxu1 }
 0x176   : > { %3173 = vst.msk [vmem:[#allocation2 + $0x98] sm:$0x1] %vm3136_vm2, %v10967_v30  ;;  %3176 = vst.msk [vmem:[#allocation2 + $0xa4] sm:$0x1] %vm3136_vm2, %v10967_v30 }
 0x177   : > { %3179 = vst.msk [vmem:[#allocation2 + $0xb0] sm:$0x1] %vm3136_vm2, %v10967_v30  ;;  %3182 = vst.msk [vmem:[#allocation2 + $0xbc] sm:$0x1] %vm3136_vm2, %v10967_v30  ;;  %v10319_v16 = vpop.f32.mrf.mxu1 }
 0x178   : > { %3185 = vst.msk [vmem:[#allocation2 + $0xc8] sm:$0x1] %vm3136_vm2, %v10967_v30  ;;  %3188 = vst.msk [vmem:[#allocation2 + $0xd4] sm:$0x1] %vm3136_vm2, %v10967_v30  ;;  %v10276_v30 = vpop.f32.mrf.mxu0 }
 0x179   : > { %15057 = vst [vmem:[#allocation15_spill] sm:$0xff] %v11972_v36  ;;  %v1752_v48 = vadd.f32 %v10276_v30, %v11732_v2  ;;  %15059 = vst [vmem:[#allocation17_spill] sm:$0xff] %v11988_v35  ;;  %v10865_v2 = vld [vmem:[%s15032_s3 + $0x28] sm:$0xff]   ;;  %v1984_v30 = vpop.f32.mrf.mxu1 }
 0x17a   : > { %v11984_v36 = vpop.f32.mrf.mxu0  ;;  %10461 = vmatprep.subr.bf16.mxu1 %v10865_v2 }
 0x17b   : > { %15058 = vst [vmem:[#allocation16_spill] sm:$0xff] %v11984_v36  ;;  %v11986_v15 = vadd.f32 %v10316_v58, %v1752_v48  ;;  %10462 = vmatpush3.bf16.msra.mxu1 %v10865_v2 }
 0x17c   : > { %v10279_v11 = vpop.f32.mrf.mxu0 }
 0x17d   : > { %v1755_v62 = vadd.f32 %v10279_v11, %v11744_v24  ;;  %v10320_v24 = vpop.f32.mrf.mxu1 }
 0x17e   : > { %v1662_v19 = vpop.f32.mrf.mxu0 }
 0x17f   : > { %v1753_v7 = vadd.f32 %v1662_v19, %v11747_v27  ;;  %v11998_v8 = vadd.f32 %v10319_v16, %v1755_v62  ;;  %v12007_v20 = vpop.f32.mrf.mxu1  ;;  %v10868_v27 = vld [vmem:[%s15032_s3 + $0x8] sm:$0xff]  }
 0x180   : > { %v10280_v48 = vpop.f32.mrf.mxu0  ;;  %15061 = vst [vmem:[#allocation19_spill] sm:$0xff] %v12007_v20  ;;  %10501 = vmatprep.subr.bf16.mxu0 %v10868_v27 }
 0x181   : > { %v1756_v58 = vadd.f32 %v10280_v48, %v11752_v56  ;;  %v12001_v35 = vadd.f32 %v1984_v30, %v1753_v7  ;;  %v10323_v16 = vpop.f32.mrf.mxu1  ;;  %10502 = vmatpush3.bf16.msra.mxu0 %v10868_v27  ;;  %v10870_v30 = vld [vmem:[%s15032_s3] sm:$0xff]  }
 0x182   : > { %v12003_v11 = vpop.f32.mrf.mxu0  ;;  %10503 = vmatprep.subr.bf16.mxu0 %v10870_v30  ;;  %v3758_v27 = vld [vmem:[#allocation2] sm:$0xf] }
 0x183   : > { %15060 = vst [vmem:[#allocation18_spill] sm:$0xff] %v12003_v11  ;;  %v12005_v25 = vadd.f32 %v10320_v24, %v1756_v58  ;;  %v2000_v7 = vpop.f32.mrf.mxu1 }
 0x184   : > { %v10283_v62 = vpop.f32.mrf.mxu0 }
 0x185   : > { %v1759_v21 = vadd.f32 %v10283_v62, %v11764_v1  ;;  %v10324_v20 = vpop.f32.mrf.mxu1  ;;  %10504 = vmatpush3.bf16.msra.mxu0 %v10870_v30  ;;  %v3759_v62 = vld [vmem:[#allocation2 + $0x4] sm:$0xf] }
 0x186   : > { %v1678_v2 = vpop.f32.mrf.mxu0 }
 0x187   : > { %v1757_v56 = vadd.f32 %v1678_v2, %v11767_v33  ;;  %v12014_v19 = vadd.f32 %v10323_v16, %v1759_v21  ;;  %v12026_v21 = vpop.f32.mrf.mxu1  ;;  %v9309_v2 = vcombine.low %v3758_v27, %v3759_v62 }
 0x188   : > { %v10284_v48 = vpop.f32.mrf.mxu0  ;;  %15063 = vst [vmem:[#allocation21_spill] sm:$0xff] %v12026_v21 }
 0x189   : > { %v1760_v58 = vadd.f32 %v10284_v48, %v11771_v50  ;;  %v12020_v24 = vadd.f32 %v2000_v7, %v1757_v56  ;;  %v10327_v44 = vpop.f32.mrf.mxu1  ;;  %10505 = vmatprep.mubr.msk.bf16.mxu0 %vm363_vm0, %v9309_v2 }
 0x18a   : > { %v12022_v1 = vpop.f32.mrf.mxu0 }
 0x18b   : > { %15062 = vst [vmem:[#allocation20_spill] sm:$0xff] %v12022_v1  ;;  %v12024_v33 = vadd.f32 %v10324_v20, %v1760_v58  ;;  %v2016_v7 = vpop.f32.mrf.mxu1  ;;  %v10869_v20 = vld [vmem:[%s15032_s3 + $0x20] sm:$0xff]  }
 0x18c   : > { %v10287_v16 = vpop.f32.mrf.mxu0  ;;  %10463 = vmatprep.subr.bf16.mxu1 %v10869_v20 }
 0x18d   : > { %v1763_v11 = vadd.f32 %v10287_v16, %v11784_v6  ;;  %v10328_v21 = vpop.f32.mrf.mxu1  ;;  %10464 = vmatpush3.bf16.msra.mxu1 %v10869_v20  ;;  %v3831_v20 = vshrl.u32 %v3759_v62, 16 }
 0x18e   : > { %v1694_v26 = vpop.f32.mrf.mxu0 }
 0x18f   : > { %v1761_v50 = vadd.f32 %v1694_v26, %v11787_v0  ;;  %v12031_v56 = vadd.f32 %v10327_v44, %v1763_v11  ;;  %v12043_v2 = vpop.f32.mrf.mxu1 }
 0x190   : > { %v10288_v30 = vpop.f32.mrf.mxu0  ;;  %15065 = vst [vmem:[#allocation23_spill] sm:$0xff] %v12043_v2 }
 0x191   : > { %v1764_v48 = vadd.f32 %v10288_v30, %v11791_v51  ;;  %v12037_v58 = vadd.f32 %v2016_v7, %v1761_v50  ;;  %v10331_v44 = vpop.f32.mrf.mxu1  ;;  %v3818_v7 = vshrl.u32 %v3758_v27, 16  ;;  %v3821_v30 = vshll.u32 %v3758_v27, 16 }
 0x192   : > { %v12039_v6 = vpop.f32.mrf.mxu0 }
 0x193   : > { %15064 = vst [vmem:[#allocation22_spill] sm:$0xff] %v12039_v6  ;;  %v12041_v16 = vadd.f32 %v10328_v21, %v1764_v48  ;;  %v2032_v51 = vpop.f32.mrf.mxu1 }
 0x194   : > { %v10291_v0 = vpop.f32.mrf.mxu0 }
 0x195   : > { %v1767_v26 = vadd.f32 %v10291_v0, %v11802_v29  ;;  %v10332_v48 = vpop.f32.mrf.mxu1 }
 0x196   : > { %v1710_v11 = vpop.f32.mrf.mxu0 }
 0x197   : > { %v1765_v1 = vadd.f32 %v1710_v11, %v11805_v53  ;;  %v12047_v36 = vadd.f32 %v10331_v44, %v1767_v26  ;;  %v12056_v29 = vpop.f32.mrf.mxu1  ;;  %v3820_v53 = vrot.slane %v3818_v7, 4  ;;  %v3823_v26 = vrot.slane %v3821_v30, 5 }
 0x198   : > { %v10292_v50 = vpop.f32.mrf.mxu0  ;;  %15067 = vst [vmem:[#allocation25_spill] sm:$0xff] %v12056_v29  ;;  %v3827_v44 = vshll.u32 %v3759_v62, 16 }
 0x199   : > { %v1768_v6 = vadd.f32 %v10292_v50, %v11809_v37  ;;  %v12050_v21 = vadd.f32 %v2032_v51, %v1765_v1  ;;  %v10335_v4 = vpop.f32.mrf.mxu1  ;;  %v3833_v37 = vrot.slane %v3831_v20, 4 }
 0x19a   : > { %v12052_v2 = vpop.f32.mrf.mxu0  ;;  %v3829_v63 = vrot.slane %v3827_v44, 5 }
 0x19b   : > { %15066 = vst [vmem:[#allocation24_spill] sm:$0xff] %v12052_v2  ;;  %v12054_v28 = vadd.f32 %v10332_v48, %v1768_v6  ;;  %v2048_v50 = vpop.f32.mrf.mxu1  ;;  %v3798_v2 = vld [vmem:[#allocation2 + $0x8] sm:$0x1]  ;;  %v3824_v48 = vor.u32 %v3823_v26, %v3820_v53 }
 0x19c   : > { %v10295_v0 = vpop.f32.mrf.mxu0  ;;  %v3834_v29 = vor.u32 %v3833_v37, %v3829_v63  ;;  %v3837_v7 = vshll.u32 %v3798_v2, 16 }
 0x19d   : > { %v1771_v11 = vadd.f32 %v10295_v0, %v11819_v39  ;;  %v10336_v39 = vpop.f32.mrf.mxu1  ;;  %v3825_v20 = vrot.slane %v3824_v48, 4 }
 0x19e   : > { %v1726_v27 = vpop.f32.mrf.mxu0  ;;  %v3835_v44 = vrot.slane %v3834_v29, 4 }
 0x19f   : > { %v1769_v1 = vadd.f32 %v1726_v27, %v11822_v57  ;;  %v12060_v51 = vadd.f32 %v10335_v4, %v1771_v11  ;;  %v3839_v57 = vrot.slane %v3837_v7, 5  ;;  %v12069_v11 = vpop.f32.mrf.mxu1  ;;  %v15068_v27 = vmov 0 }
 0x1a0   : > { %v10296_v6 = vpop.f32.mrf.mxu0  ;;  %v15069_v27 = vsel %vm12072_vm5, 4294967295, %v15068_v27 }
 0x1a1   : > { %v1772_v62 = vadd.f32 %v10296_v6, %v11826_v31  ;;  %v12063_v30 = vadd.f32 %v2048_v50, %v1769_v1  ;;  %15070 = vst [vmem:[#allocation26_spill] sm:$0xff] %v15069_v27  ;;  %v3830_v31 = vsel %vm12072_vm5, %v3825_v20, %v3829_v63  ;;  %v3840_v53 = vsel %vm12072_vm5, %v3835_v44, %v3839_v57  ;;  %v12082_v26 = vpop.f32.mrf.mxu1 }
 0x1a2   : > { %v12065_v0 = vpop.f32.mrf.mxu0  ;;  %v9273_v29 = vcombine.low %v3830_v31, %v3840_v53 }
 0x1a3   : > { %v12067_v4 = vadd.f32 %v10336_v39, %v1772_v62  ;;  %v12086_v1 = vpop.f32.mrf.mxu1  ;;  %v10876_v39 = vld [vmem:[%s15032_s3 + $0x58] sm:$0xff]  }
 0x1a4   : > { %v12076_v2 = vpop.f32.mrf.mxu0  ;;  %15071 = vst [vmem:[#allocation27_spill] sm:$0xff] %v12086_v1  ;;  %10465 = vmatprep.mubr.msk.bf16.mxu1 %vm363_vm0, %v9273_v29  ;;  %10537 = vmatprep.subr.bf16.mxu1 %v10876_v39 }
 0x1a5   : > { %v12091_v6 = vpop.f32.mrf.mxu1 }
 0x1a6   : > { %v12084_v37 = vpop.f32.mrf.mxu0  ;;  %15072 = vst [vmem:[#allocation28_spill] sm:$0xff] %v12091_v6 }
 0x1a7   : > { %v12095_v7 = vpop.f32.mrf.mxu1 }
 0x1a8   : > { %v12089_v50 = vpop.f32.mrf.mxu0  ;;  %15073 = vst [vmem:[#allocation29_spill] sm:$0xff] %v12095_v7 }
 0x1a9   : > { %v12099_v62 = vpop.f32.mrf.mxu1 }
 0x1aa   : > { %v12093_v48 = vpop.f32.mrf.mxu0  ;;  %15074 = vst [vmem:[#allocation30_spill] sm:$0xff] %v12099_v62 }
 0x1ab   : > { %v12106_v44 = vpop.f32.mrf.mxu1 }
 0x1ac   : > { %v12097_v63 = vpop.f32.mrf.mxu0  ;;  %15075 = vst [vmem:[#allocation31_spill] sm:$0xff] %v12106_v44 }
 0x1ad   : > { %v12111_v53 = vpop.f32.mrf.mxu1 }
 0x1ae   : > { %v12104_v20 = vpop.f32.mrf.mxu0  ;;  %15077 = vst [vmem:[#allocation33_spill] sm:$0xff] %v12111_v53 }
 0x1af   : > { %v12115_v27 = vpop.f32.mrf.mxu1 }
 0x1b0   : > { %v10352_v57 = vpop.f32.mrf.mxu0  ;;  %15078 = vst [vmem:[#allocation34_spill] sm:$0xff] %v12115_v27 }
 0x1b1   : > { %v12109_v31 = vadd.f32 %v10352_v57, %v11970_v18  ;;  %v12120_v6 = vpop.f32.mrf.mxu1 }
 0x1b2   : > { %v12113_v29 = vpop.f32.mrf.mxu0  ;;  %15079 = vst [vmem:[#allocation35_spill] sm:$0xff] %v12120_v6 }
 0x1b3   : > { %15076 = vst [vmem:[#allocation32_spill] sm:$0xff] %v12109_v31  ;;  %v12125_v39 = vpop.f32.mrf.mxu1 }
 0x1b4   : > { %v10355_v62 = vpop.f32.mrf.mxu0  ;;  %15080 = vst [vmem:[#allocation36_spill] sm:$0xff] %v12125_v39 }
 0x1b5   : > { %v12118_v7 = vadd.f32 %v10355_v62, %v11976_v41  ;;  %v12130_v53 = vpop.f32.mrf.mxu1 }
 0x1b6   : > { %v2291_v1 = vpop.f32.mrf.mxu0  ;;  %15082 = vst [vmem:[#allocation38_spill] sm:$0xff] %v12130_v53 }
 0x1b7   : > { %v12123_v44 = vadd.f32 %v2291_v1, %v11982_v38  ;;  %v12134_v27 = vpop.f32.mrf.mxu1 }
 0x1b8   : > { %v10356_v18 = vpop.f32.mrf.mxu0  ;;  %15083 = vst [vmem:[#allocation39_spill] sm:$0xff] %v12134_v27 }
 0x1b9   : > { %v12128_v57 = vadd.f32 %v10356_v18, %v11986_v15  ;;  %v12139_v6 = vpop.f32.mrf.mxu1 }
 0x1ba   : > { %v12132_v31 = vpop.f32.mrf.mxu0  ;;  %15084 = vst [vmem:[#allocation40_spill] sm:$0xff] %v12139_v6 }
 0x1bb   : > { %15081 = vst [vmem:[#allocation37_spill] sm:$0xff] %v12128_v57  ;;  %v12144_v39 = vpop.f32.mrf.mxu1 }
 0x1bc   : > { %v10359_v41 = vpop.f32.mrf.mxu0  ;;  %15085 = vst [vmem:[#allocation41_spill] sm:$0xff] %v12144_v39 }
 0x1bd   : > { %v12137_v62 = vadd.f32 %v10359_v41, %v11998_v8  ;;  %v12149_v53 = vpop.f32.mrf.mxu1 }
 0x1be   : > { %v2307_v38 = vpop.f32.mrf.mxu0  ;;  %15087 = vst [vmem:[#allocation43_spill] sm:$0xff] %v12149_v53 }
 0x1bf   : > { %v12142_v1 = vadd.f32 %v2307_v38, %v12001_v35  ;;  %v12153_v27 = vpop.f32.mrf.mxu1 }
 0x1c0   : > { %v10360_v15 = vpop.f32.mrf.mxu0  ;;  %15088 = vst [vmem:[#allocation44_spill] sm:$0xff] %v12153_v27 }
 0x1c1   : > { %v12147_v18 = vadd.f32 %v10360_v15, %v12005_v25  ;;  %v12158_v6 = vpop.f32.mrf.mxu1 }
 0x1c2   : > { %v12151_v57 = vpop.f32.mrf.mxu0  ;;  %15089 = vst [vmem:[#allocation45_spill] sm:$0xff] %v12158_v6 }
 0x1c3   : > { %15086 = vst [vmem:[#allocation42_spill] sm:$0xff] %v12147_v18  ;;  %v12163_v39 = vpop.f32.mrf.mxu1 }
 0x1c4   : > { %v10363_v8 = vpop.f32.mrf.mxu0  ;;  %15090 = vst [vmem:[#allocation46_spill] sm:$0xff] %v12163_v39 }
 0x1c5   : > { %v12156_v41 = vadd.f32 %v10363_v8, %v12014_v19  ;;  %v12168_v53 = vpop.f32.mrf.mxu1 }
 0x1c6   : > { %v2323_v35 = vpop.f32.mrf.mxu0  ;;  %15092 = vst [vmem:[#allocation48_spill] sm:$0xff] %v12168_v53 }
 0x1c7   : > { %v12161_v38 = vadd.f32 %v2323_v35, %v12020_v24  ;;  %v12172_v27 = vpop.f32.mrf.mxu1 }
 0x1c8   : > { %v10364_v25 = vpop.f32.mrf.mxu0 }
 0x1c9   : > { %v12166_v15 = vadd.f32 %v10364_v25, %v12024_v33  ;;  %v12177_v6 = vpop.f32.mrf.mxu1 }
 0x1ca   : > { %v12170_v18 = vpop.f32.mrf.mxu0  ;;  %15093 = vst [vmem:[#allocation49_spill] sm:$0xff] %v12177_v6 }
 0x1cb   : > { %15091 = vst [vmem:[#allocation47_spill] sm:$0xff] %v12166_v15  ;;  %v12182_v39 = vpop.f32.mrf.mxu1 }
 0x1cc   : > { %v10367_v19 = vpop.f32.mrf.mxu0 }
 0x1cd   : > { %v12175_v8 = vadd.f32 %v10367_v19, %v12031_v56  ;;  %v12187_v53 = vpop.f32.mrf.mxu1  ;;  %v747_v56 = vadd.f32 %v11617_v3, %v11615_v40  ;;  %v763_v19 = vadd.f32 %v11635_v60, %v11633_v59 }
 0x1ce   : > { %v2339_v24 = vpop.f32.mrf.mxu0  ;;  %15095 = vst [vmem:[#allocation51_spill] sm:$0xff] %v12187_v53 }
 0x1cf   : > { %v12180_v35 = vadd.f32 %v2339_v24, %v12037_v58  ;;  %v12195_v6 = vpop.f32.mrf.mxu1  ;;  %v779_v58 = vadd.f32 %v11657_v17, %v11655_v55  ;;  %v795_v24 = vadd.f32 %v11674_v47, %v11672_v45  ;;  %v1113_v53 = vadd.f32 %v11769_v9, %v747_v56 }
 0x1d0   : > { %v10368_v33 = vpop.f32.mrf.mxu0  ;;  %v1424_v17 = vadd.f32 %v11714_v14, %v11710_v13  ;;  %v1432_v9 = vadd.f32 %v11754_v43, %v11750_v34  ;;  %v15101_v34 = vld [vmem:[#allocation16_spill] sm:$0xff] }
 0x1d1   : > { %v12185_v25 = vadd.f32 %v10368_v33, %v12041_v16  ;;  %v1420_v33 = vadd.f32 %v11694_v12, %v11690_v10  ;;  %v12208_v3 = vpop.f32.mrf.mxu1  ;;  %v1121_v59 = vadd.f32 %v11807_v5, %v779_v58  ;;  %v1125_v60 = vadd.f32 %v11824_v52, %v795_v24  ;;  %v15106_v24 = vld [vmem:[#allocation10_spill] sm:$0xff] }
 0x1d2   : > { %v12189_v15 = vpop.f32.mrf.mxu0  ;;  %v1428_v12 = vadd.f32 %v11734_v61, %v11730_v46  ;;  %v1436_v5 = vadd.f32 %v11773_v22, %v1113_v53  ;;  %v1746_v13 = vadd.f32 %v11968_v23, %v1424_v17  ;;  %v15099_v46 = vld [vmem:[#allocation4_spill] sm:$0xff]  ;;  %v15100_v61 = vld [vmem:[#allocation5_spill] sm:$0xff]  ;;  %v15102_v22 = vld [vmem:[#allocation6_spill] sm:$0xff] }
 0x1d3   : > { %15094 = vst [vmem:[#allocation50_spill] sm:$0xff] %v12185_v25  ;;  %v1117_v25 = vadd.f32 %v11789_v54, %v763_v19  ;;  %v1742_v45 = vadd.f32 %v11845_v42, %v1420_v33  ;;  %v12218_v10 = vpop.f32.mrf.mxu1  ;;  %v2065_v19 = vadd.f32 %v15100_v61, %v15099_v46  ;;  %v15104_v23 = vld [vmem:[#allocation8_spill] sm:$0xff]  ;;  %v15107_v33 = vld [vmem:[#allocation11_spill] sm:$0xff]  ;;  %v15110_v17 = vld [vmem:[#allocation14_spill] sm:$0xff] }
 0x1d4   : > { %v10371_v16 = vpop.f32.mrf.mxu0  ;;  %v1750_v43 = vadd.f32 %v15101_v34, %v1428_v12  ;;  %v15112_v46 = vld [vmem:[#allocation20_spill] sm:$0xff]  ;;  %v15113_v34 = vld [vmem:[#allocation22_spill] sm:$0xff] }
 0x1d5   : > { %v12206_v40 = vadd.f32 %v10371_v16, %v12047_v36  ;;  %v1440_v52 = vadd.f32 %v11793_v49, %v1117_v25  ;;  %v12230_v42 = vpop.f32.mrf.mxu1  ;;  %v1444_v36 = vadd.f32 %v11811_v32, %v1121_v59  ;;  %v15103_v49 = vld [vmem:[#allocation7_spill] sm:$0xff]  ;;  %v15105_v25 = vld [vmem:[#allocation9_spill] sm:$0xff]  ;;  %v2064_v16 = vadd.f32 %v15106_v24, %v1742_v45 }
 0x1d6   : > { %v2355_v55 = vpop.f32.mrf.mxu0  ;;  %15097 = vst [vmem:[#allocation53_spill] sm:$0xff] %v12230_v42  ;;  %v2063_v53 = vadd.f32 %v15103_v49, %v15102_v22  ;;  %v1758_v61 = vadd.f32 %v15112_v46, %v1436_v5  ;;  %v15114_v49 = vld [vmem:[#allocation15_spill] sm:$0xff] }
 0x1d7   : > { %v12216_v47 = vadd.f32 %v2355_v55, %v12050_v21  ;;  %v15098_v21 = vld [vmem:[#allocation3_spill] sm:$0xff]  ;;  %v15108_v55 = vld [vmem:[#allocation12_spill] sm:$0xff]  ;;  %v12246_v59 = vpop.f32.mrf.mxu1  ;;  %v1762_v42 = vadd.f32 %v15113_v34, %v1440_v52  ;;  %v2387_v52 = vadd.f32 %v12093_v48, %v2064_v16  ;;  %v15123_v34 = vld [vmem:[#allocation29_spill] sm:$0xff] }
 0x1d8   : > { %v10372_v54 = vpop.f32.mrf.mxu0  ;;  %v1448_v56 = vadd.f32 %v15098_v21, %v1125_v60  ;;  %v2069_v32 = vadd.f32 %v15108_v55, %v15107_v33  ;;  %v15109_v60 = vld [vmem:[#allocation13_spill] sm:$0xff]  ;;  %v15111_v21 = vld [vmem:[#allocation18_spill] sm:$0xff] }
 0x1d9   : > { %v12228_v14 = vadd.f32 %v10372_v54, %v12054_v28  ;;  %v2066_v28 = vadd.f32 %v15105_v25, %v15104_v23  ;;  %v2067_v54 = vadd.f32 %v15110_v17, %v15109_v60  ;;  %v1754_v12 = vadd.f32 %v15111_v21, %v1432_v9  ;;  %v15115_v23 = vld [vmem:[#allocation24_spill] sm:$0xff]  ;;  %v15116_v33 = vld [vmem:[#allocation17_spill] sm:$0xff] }
 0x1da   : > { %v12237_v58 = vpop.f32.mrf.mxu0  ;;  %v1766_v25 = vadd.f32 %v15115_v23, %v1444_v36  ;;  %v1770_v45 = vadd.f32 %v12065_v0, %v1448_v56  ;;  %v2072_v55 = vadd.f32 %v15116_v33, %v1750_v43  ;;  %v2388_v60 = vadd.f32 %v12076_v2, %v2065_v19  ;;  %v15117_v56 = vld [vmem:[#allocation19_spill] sm:$0xff]  ;;  %v15118_v21 = vld [vmem:[#allocation21_spill] sm:$0xff] }
 0x1db   : > { %15096 = vst [vmem:[#allocation52_spill] sm:$0xff] %v12228_v14  ;;  %v2068_v14 = vadd.f32 %v15114_v49, %v1746_v13  ;;  %v2386_v9 = vadd.f32 %v12084_v37, %v2063_v53  ;;  %v2389_v5 = vadd.f32 %v12089_v50, %v2066_v28  ;;  %v2392_v13 = vadd.f32 %v12097_v63, %v2069_v32  ;;  %v15119_v19 = vld [vmem:[#allocation23_spill] sm:$0xff]  ;;  %v15120_v28 = vld [vmem:[#allocation25_spill] sm:$0xff] }
 0x1dc   : > { %v10375_v22 = vpop.f32.mrf.mxu0  ;;  %v2390_v36 = vadd.f32 %v12104_v20, %v2067_v54  ;;  %v2076_v43 = vadd.f32 %v15117_v56, %v1754_v12  ;;  %v2080_v2 = vadd.f32 %v15118_v21, %v1758_v61  ;;  %v2084_v37 = vadd.f32 %v15119_v19, %v1762_v42  ;;  %v15121_v32 = vld [vmem:[#allocation27_spill] sm:$0xff]  ;;  %v15122_v12 = vld [vmem:[#allocation28_spill] sm:$0xff]  ;;  %v15136_v19 = vld [vmem:[#allocation42_spill] sm:$0xff] }
 0x1dd   : > { %v12257_v24 = vadd.f32 %v10375_v22, %v12060_v51  ;;  %v12269_v51 = vpop.f32.mrf.mxu1  ;;  %v2391_v50 = vadd.f32 %v12113_v29, %v2068_v14  ;;  %v2088_v48 = vadd.f32 %v15120_v28, %v1766_v25  ;;  %v2092_v63 = vadd.f32 %v12069_v11, %v1770_v45  ;;  %v15124_v14 = vld [vmem:[#allocation30_spill] sm:$0xff]  ;;  %v15125_v49 = vld [vmem:[#allocation31_spill] sm:$0xff]  ;;  %v15126_v11 = vld [vmem:[#allocation32_spill] sm:$0xff] }
 0x1de   : > { %v2371_v17 = vpop.f32.mrf.mxu0  ;;  %v2395_v20 = vadd.f32 %v12132_v31, %v2072_v55  ;;  %v2710_v16 = vadd.f32 %v12082_v26, %v2388_v60  ;;  %v2708_v54 = vadd.f32 %v15121_v32, %v2386_v9  ;;  %v2711_v46 = vadd.f32 %v15122_v12, %v2389_v5  ;;  %v15127_v31 = vld [vmem:[#allocation33_spill] sm:$0xff]  ;;  %v15128_v26 = vld [vmem:[#allocation34_spill] sm:$0xff]  ;;  %v15129_v33 = vld [vmem:[#allocation35_spill] sm:$0xff] }
 0x1df   : > { %v12267_v0 = vadd.f32 %v2371_v17, %v12063_v30  ;;  %v2399_v61 = vadd.f32 %v12151_v57, %v2076_v43  ;;  %v2709_v29 = vadd.f32 %v15123_v34, %v2387_v52  ;;  %v2714_v22 = vadd.f32 %v15124_v14, %v2392_v13  ;;  %v15130_v57 = vld [vmem:[#allocation36_spill] sm:$0xff]  ;;  %v15131_v52 = vld [vmem:[#allocation37_spill] sm:$0xff]  ;;  %v15132_v13 = vld [vmem:[#allocation38_spill] sm:$0xff] }
 0x1e0   : > { %v10376_v53 = vpop.f32.mrf.mxu0  ;;  %v12286_v23 = vadd.f32 %v15125_v49, %v2390_v36  ;;  %v12290_v25 = vadd.f32 %v15127_v31, %v15126_v11  ;;  %v12293_v45 = vadd.f32 %v15128_v26, %v2391_v50  ;;  %v12297_v55 = vadd.f32 %v15129_v33, %v12118_v7  ;;  %v12307_v17 = vld [vmem:[%s15031_s2] ss:$0 sm:$0xff]  ;;  %v15133_v56 = vld [vmem:[#allocation39_spill] sm:$0xff]  ;;  %v15139_v34 = vld [vmem:[#allocation45_spill] sm:$0xff] }
 0x1e1   : > { %v2417_v30 = vadd.f32 %v10376_v53, %v12067_v4  ;;  %v2693_v4 = vpop.f32.mrf.mxu1  ;;  %v12301_v60 = vadd.f32 %v15130_v57, %v12123_v44  ;;  %v2403_v9 = vadd.f32 %v12170_v18, %v2080_v2  ;;  %v12311_v36 = vadd.f32 %v15132_v13, %v15131_v52  ;;  %v15134_v7 = vld [vmem:[#allocation40_spill] sm:$0xff]  ;;  %v15135_v18 = vld [vmem:[#allocation41_spill] sm:$0xff]  ;;  %v15137_v50 = vld [vmem:[#allocation43_spill] sm:$0xff] }
 0x1e2   : > { %v2374_v42 = vpop.f32.mrf.mxu0  ;;  %v12314_v43 = vadd.f32 %v15133_v56, %v2395_v20  ;;  %v12318_v21 = vadd.f32 %v15134_v7, %v12137_v62  ;;  %v12322_v2 = vadd.f32 %v15135_v18, %v12142_v1  ;;  %v12326_v53 = vadd.f32 %v15137_v50, %v15136_v19  ;;  %v15138_v28 = vld [vmem:[#allocation44_spill] sm:$0xff]  ;;  %v15141_v31 = vld [vmem:[#allocation47_spill] sm:$0xff]  ;;  %v15144_v13 = vld [vmem:[#allocation50_spill] sm:$0xff] }
 0x1e3   : > { %v12329_v32 = vadd.f32 %v15138_v28, %v2399_v61  ;;  %v2407_v20 = vadd.f32 %v12189_v15, %v2084_v37  ;;  %v12334_v62 = vadd.f32 %v15139_v34, %v12156_v41  ;;  %v10416_v1 = vpop.f32.mrf.mxu1  ;;  %v15142_v26 = vld [vmem:[#allocation48_spill] sm:$0xff]  ;;  %v12346_v61 = vadd.f32 %v12172_v27, %v2403_v9  ;;  %v15143_v15 = vld [vmem:[#allocation49_spill] sm:$0xff]  ;;  %v15145_v27 = vld [vmem:[#allocation51_spill] sm:$0xff] }
 0x1e4   : > { %v10427_v5 = vpop.f32.mrf.mxu0  ;;  %v12343_v33 = vadd.f32 %v15142_v26, %v15141_v31  ;;  %v12350_v37 = vadd.f32 %v15143_v15, %v12175_v8  ;;  %v2411_v41 = vadd.f32 %v12237_v58, %v2088_v48  ;;  %v12360_v9 = vadd.f32 %v15145_v27, %v15144_v13  ;;  %v15146_v19 = vld [vmem:[#allocation52_spill] sm:$0xff]  ;;  %v15147_v50 = vld [vmem:[#allocation53_spill] sm:$0xff] }
 0x1e5   : > { %v3032_v44 = vadd.f32 %v10427_v5, %v2710_v16  ;;  %v15140_v16 = vld [vmem:[#allocation46_spill] sm:$0xff]  ;;  %v12363_v8 = vadd.f32 %v12195_v6, %v2407_v20  ;;  %v12367_v58 = vadd.f32 %v12208_v3, %v12206_v40  ;;  %v2415_v48 = vadd.f32 %v2374_v42, %v2092_v63  ;;  %v2696_v7 = vpop.f32.mrf.mxu1 }
 0x1e6   : > { %v2903_v12 = vpop.f32.mrf.mxu0  ;;  %v12338_v14 = vadd.f32 %v15140_v16, %v12161_v38  ;;  %v12355_v38 = vadd.f32 %v12182_v39, %v12180_v35  ;;  %v12376_v6 = vadd.f32 %v15147_v50, %v15146_v19  ;;  %v12379_v28 = vadd.f32 %v12246_v59, %v2411_v41 }
 0x1e7   : > { %v3071_v49 = vadd.f32 %v12307_v17, %v3032_v44  ;;  %v3030_v11 = vadd.f32 %v2903_v12, %v2708_v54  ;;  %v12383_v40 = vadd.f32 %v12269_v51, %v12257_v24  ;;  %v12386_v63 = vadd.f32 %v2693_v4, %v12267_v0  ;;  %v3621_v51 = vld [vmem:[#allocation2 + $0x18] sm:$0xf] }
 0x1e8   : > { %v10428_v57 = vpop.f32.mrf.mxu0 }
 0x1e9   : > { %v3103_v54 = vmax.f32 %v3071_v49, 0.0  ;;  %v3069_v5 = vadd.f32 %v12307_v17, %v3030_v11  ;;  %v3033_v52 = vadd.f32 %v10428_v57, %v2711_v46  ;;  %v12372_v46 = vadd.f32 %v12218_v10, %v12216_v47 }
 0x1ea   : > { %v2906_v56 = vpop.f32.mrf.mxu0  ;;  %v12388_v47 = vadd.f32 %v10416_v1, %v2417_v30  ;;  %v12390_v10 = vadd.f32 %v2696_v7, %v2415_v48 }
 0x1eb   : > { %v9707_v39 = vpack.c.bf16 %v3103_v54, %v3103_v54  ;;  %v3101_v35 = vmax.f32 %v3069_v5, 0.0  ;;  %v3072_v44 = vadd.f32 %v12307_v17, %v3033_v52  ;;  %v3031_v18 = vadd.f32 %v2906_v56, %v2709_v29  ;;  %v3612_v54 = vld [vmem:[#allocation2 + $0xc] sm:$0xf] }
 0x1ec   : > { %v10431_v3 = vpop.f32.mrf.mxu0 }
 0x1ed   : > { %v3306_v42 = vshrl.u32 %v9707_v39, 16  ;;  %v9705_v29 = vpack.c.bf16 %v3101_v35, %v3101_v35  ;;  %v3104_v20 = vmax.f32 %v3072_v44, 0.0  ;;  %v3070_v12 = vadd.f32 %v12307_v17, %v3031_v18  ;;  %v3625_v18 = vld [vmem:[#allocation2 + $0x20] sm:$0x1] }
 0x1ee   : > { %v3036_v34 = vadd.f32 %v10431_v3, %v2714_v22  ;;  %v2919_v59 = vpop.f32.mrf.mxu0  ;;  %v3309_v49 = vshll.u32 %v9707_v39, 16 }
 0x1ef   : > { %v3308_v16 = vrot.slane %v3306_v42, 7  ;;  %v3289_v11 = vshrl.u32 %v9705_v29, 16  ;;  %v9708_v24 = vpack.c.bf16 %v3104_v20, %v3104_v20  ;;  %v3292_v4 = vshll.u32 %v9705_v29, 16 }
 0x1f0   : > { %v3102_v30 = vmax.f32 %v3070_v12, 0.0  ;;  %v3075_v1 = vadd.f32 %v12307_v17, %v3036_v34  ;;  %v3034_v31 = vadd.f32 %v2919_v59, %v12286_v23  ;;  %v10432_v26 = vpop.f32.mrf.mxu0 }
 0x1f1   : > { %v3311_v22 = vor.u32 %v3309_v49, %v3308_v16  ;;  %v3312_v15 = vrot.slane %v3308_v16, 4  ;;  %v3291_v41 = vrot.slane %v3289_v11, 7  ;;  %v3314_v57 = vshrl.u32 %v9708_v24, 16 }
 0x1f2   : > { %v3317_v5 = vshll.u32 %v9708_v24, 16  ;;  %v9706_v52 = vpack.c.bf16 %v3102_v30, %v3102_v30  ;;  %v3107_v13 = vmax.f32 %v3075_v1, 0.0  ;;  %v3073_v27 = vadd.f32 %v12307_v17, %v3034_v31  ;;  %v2922_v48 = vpop.f32.mrf.mxu0  ;;  %v3618_v31 = vld [vmem:[#allocation2 + $0x14] sm:$0x1] }
 0x1f3   : > { %v3622_v56 = vsel %vm12395_vm9, %v3311_v22, %v3621_v51  ;;  %v3294_v7 = vor.u32 %v3292_v4, %v3291_v41  ;;  %v3295_v39 = vrot.slane %v3291_v41, 4  ;;  %v3316_v35 = vrot.slane %v3314_v57, 7  ;;  %v12422_v4 = vld [vmem:[%s15032_s3 + $0x78] sm:$0xff]  }
 0x1f4   : > { %3623 = vst [vmem:[#allocation2 + $0x18] sm:$0xf] %v3622_v56  ;;  %v3297_v19 = vshrl.u32 %v9706_v52, 16  ;;  %v3300_v50 = vshll.u32 %v9706_v52, 16  ;;  %v9711_v3 = vpack.c.bf16 %v3107_v13, %v3107_v13  ;;  %v3105_v42 = vmax.f32 %v3073_v27, 0.0  ;;  %v10435_v29 = vpop.f32.mrf.mxu0  ;;  %10577 = vmatprep.subr.bf16.mxu0 %v12422_v4 }
 0x1f5   : > { %v3613_v20 = vsel %vm12395_vm9, %v3294_v7, %v3612_v54  ;;  %v3319_v12 = vor.u32 %v3317_v5, %v3316_v35  ;;  %v3321_v34 = vrot.slane %v3316_v35, 4  ;;  %v3037_v59 = vadd.f32 %v10432_v26, %v12290_v25  ;;  %v3635_v52 = vld [vmem:[#allocation2 + $0x30] sm:$0xf] }
 0x1f6   : > { %3614 = vst [vmem:[#allocation2 + $0xc] sm:$0xf] %v3613_v20  ;;  %v3299_v16 = vrot.slane %v3297_v19, 7  ;;  %v3340_v49 = vshrl.u32 %v9711_v3, 16  ;;  %v3343_v11 = vshll.u32 %v9711_v3, 16  ;;  %v9709_v24 = vpack.c.bf16 %v3105_v42, %v3105_v42  ;;  %v2935_v51 = vpop.f32.mrf.mxu0 }
 0x1f7   : > { %v3320_v30 = vsel %vm12406_vm10, %v3312_v15, %v3319_v12  ;;  %v3626_v1 = vsel %vm12412_vm11, %v3321_v34, %v3625_v18  ;;  %v3076_v25 = vadd.f32 %v12307_v17, %v3037_v59  ;;  %v3035_v26 = vadd.f32 %v2922_v48, %v12293_v45 }
 0x1f8   : > { %3624 = vst.msk [vmem:[#allocation2 + $0x1c] sm:$0xf] %vm3133_vm1, %v3320_v30  ;;  %3627 = vst [vmem:[#allocation2 + $0x20] sm:$0x1] %v3626_v1  ;;  %v3302_v22 = vor.u32 %v3300_v50, %v3299_v16  ;;  %v3304_v41 = vrot.slane %v3299_v16, 4  ;;  %v3342_v57 = vrot.slane %v3340_v49, 7  ;;  %v10436_v5 = vpop.f32.mrf.mxu0  ;;  %v3040_v56 = vadd.f32 %v10435_v29, %v12297_v55 }
 0x1f9   : > { %v3323_v54 = vshrl.u32 %v9709_v24, 16  ;;  %v3326_v15 = vshll.u32 %v9709_v24, 16  ;;  %v3108_v13 = vmax.f32 %v3076_v25, 0.0  ;;  %v3074_v27 = vadd.f32 %v12307_v17, %v3035_v26  ;;  %v3628_v29 = vld [vmem:[#allocation2 + $0x24] sm:$0xf] }
 0x1fa   : > { %v3303_v45 = vsel %vm12406_vm10, %v3295_v39, %v3302_v22  ;;  %v3619_v48 = vsel %vm12412_vm11, %v3304_v41, %v3618_v31  ;;  %v3345_v7 = vor.u32 %v3343_v11, %v3342_v57  ;;  %v3346_v35 = vrot.slane %v3342_v57, 4  ;;  %v2938_v18 = vpop.f32.mrf.mxu0  ;;  %v3639_v26 = vld [vmem:[#allocation2 + $0x38] sm:$0x1] }
 0x1fb   : > { %3615 = vst.msk [vmem:[#allocation2 + $0x10] sm:$0xf] %vm3133_vm1, %v3303_v45  ;;  %3620 = vst [vmem:[#allocation2 + $0x14] sm:$0x1] %v3619_v48  ;;  %v3325_v19 = vrot.slane %v3323_v54, 7  ;;  %v9712_v50 = vpack.c.bf16 %v3108_v13, %v3108_v13  ;;  %v3106_v3 = vmax.f32 %v3074_v27, 0.0  ;;  %v3079_v42 = vadd.f32 %v12307_v17, %v3040_v56 }
 0x1fc   : > { %v3636_v55 = vsel %vm12395_vm9, %v3345_v7, %v3635_v52  ;;  %v3038_v39 = vadd.f32 %v2935_v51, %v12301_v60  ;;  %v3041_v20 = vadd.f32 %v10436_v5, %v12311_v36  ;;  %v3039_v12 = vadd.f32 %v2938_v18, %v12314_v43  ;;  %v10439_v34 = vpop.f32.mrf.mxu0 }
 0x1fd   : > { %3637 = vst [vmem:[#allocation2 + $0x30] sm:$0xf] %v3636_v55  ;;  %v3328_v59 = vor.u32 %v3326_v15, %v3325_v19  ;;  %v3329_v16 = vrot.slane %v3325_v19, 4  ;;  %v3348_v49 = vshrl.u32 %v9712_v50, 16  ;;  %v3351_v11 = vshll.u32 %v9712_v50, 16 }
 0x1fe   : > { %v9710_v24 = vpack.c.bf16 %v3106_v3, %v3106_v3  ;;  %v3111_v30 = vmax.f32 %v3079_v42, 0.0  ;;  %v3077_v1 = vadd.f32 %v12307_v17, %v3038_v39  ;;  %v3080_v31 = vadd.f32 %v12307_v17, %v3041_v20  ;;  %v2951_v25 = vpop.f32.mrf.mxu0  ;;  %v3632_v19 = vld [vmem:[#allocation2 + $0x2c] sm:$0x1]  ;;  %v3649_v39 = vld [vmem:[#allocation2 + $0x48] sm:$0xf] }
 0x1ff   : > { %v3629_v60 = vsel %vm12395_vm9, %v3328_v59, %v3628_v29  ;;  %v3350_v51 = vrot.slane %v3348_v49, 7  ;;  %v3078_v36 = vadd.f32 %v12307_v17, %v3039_v12  ;;  %v3044_v43 = vadd.f32 %v10439_v34, %v12318_v21 }
 0x200   : > { %3630 = vst [vmem:[#allocation2 + $0x24] sm:$0xf] %v3629_v60  ;;  %v3331_v22 = vshrl.u32 %v9710_v24, 16  ;;  %v3334_v41 = vshll.u32 %v9710_v24, 16  ;;  %v9715_v57 = vpack.c.bf16 %v3111_v30, %v3111_v30  ;;  %v3109_v54 = vmax.f32 %v3077_v1, 0.0  ;;  %v10440_v5 = vpop.f32.mrf.mxu0 }
 0x201   : > { %v3353_v52 = vor.u32 %v3351_v11, %v3350_v51  ;;  %v3355_v15 = vrot.slane %v3350_v51, 4  ;;  %v3112_v13 = vmax.f32 %v3080_v31, 0.0  ;;  %v3110_v27 = vmax.f32 %v3078_v36, 0.0  ;;  %v3642_v60 = vld [vmem:[#allocation2 + $0x3c] sm:$0xf] }
 0x202   : > { %v3333_v56 = vrot.slane %v3331_v22, 7  ;;  %v3374_v45 = vshrl.u32 %v9715_v57, 16  ;;  %v3377_v48 = vshll.u32 %v9715_v57, 16  ;;  %v9713_v7 = vpack.c.bf16 %v3109_v54, %v3109_v54  ;;  %v2954_v12 = vpop.f32.mrf.mxu0  ;;  %v3646_v57 = vld [vmem:[#allocation2 + $0x44] sm:$0x1] }
 0x203   : > { %v3354_v18 = vsel %vm12406_vm10, %v3346_v35, %v3353_v52  ;;  %v3640_v21 = vsel %vm12412_vm11, %v3355_v15, %v3639_v26  ;;  %v9716_v50 = vpack.c.bf16 %v3112_v13, %v3112_v13  ;;  %v9714_v3 = vpack.c.bf16 %v3110_v27, %v3110_v27 }
 0x204   : > { %3638 = vst.msk [vmem:[#allocation2 + $0x34] sm:$0xf] %vm3133_vm1, %v3354_v18  ;;  %3641 = vst [vmem:[#allocation2 + $0x38] sm:$0x1] %v3640_v21  ;;  %v3336_v42 = vor.u32 %v3334_v41, %v3333_v56  ;;  %v3338_v55 = vrot.slane %v3333_v56, 4  ;;  %v3376_v29 = vrot.slane %v3374_v45, 7  ;;  %v3042_v54 = vadd.f32 %v2951_v25, %v12322_v2  ;;  %v10443_v15 = vpop.f32.mrf.mxu0 }
 0x205   : > { %v3357_v20 = vshrl.u32 %v9713_v7, 16  ;;  %v3360_v34 = vshll.u32 %v9713_v7, 16  ;;  %v3382_v59 = vshrl.u32 %v9716_v50, 16  ;;  %v3385_v49 = vshll.u32 %v9716_v50, 16  ;;  %v3653_v41 = vld [vmem:[#allocation2 + $0x50] sm:$0x1] }
 0x206   : > { %v3365_v11 = vshrl.u32 %v9714_v3, 16  ;;  %v3337_v35 = vsel %vm12406_vm10, %v3329_v16, %v3336_v42  ;;  %v3633_v24 = vsel %vm12412_vm11, %v3338_v55, %v3632_v19  ;;  %v3379_v30 = vor.u32 %v3377_v48, %v3376_v29  ;;  %v3760_v19 = vld [vmem:[#allocation2 + $0xc] sm:$0xf]  ;;  %v12479_v55 = vpop.f32.mrf.mxu0 }
 0x207   : > { %v3380_v1 = vrot.slane %v3376_v29, 4  ;;  %3631 = vst.msk [vmem:[#allocation2 + $0x28] sm:$0xf] %vm3133_vm1, %v3337_v35  ;;  %3634 = vst [vmem:[#allocation2 + $0x2c] sm:$0x1] %v3633_v24  ;;  %v3359_v31 = vrot.slane %v3357_v20, 7  ;;  %v3083_v16 = vadd.f32 %v12307_v17, %v3044_v43  ;;  %v3045_v52 = vadd.f32 %v10440_v5, %v12326_v53 }
 0x208   : > { %v3384_v51 = vrot.slane %v3382_v59, 7  ;;  %v3367_v36 = vrot.slane %v3365_v11, 7  ;;  %v3368_v26 = vshll.u32 %v9714_v3, 16  ;;  %v3650_v22 = vsel %vm12395_vm9, %v3379_v30, %v3649_v39  ;;  %v3663_v24 = vld [vmem:[#allocation2 + $0x60] sm:$0xf] }
 0x209   : > { %3651 = vst [vmem:[#allocation2 + $0x48] sm:$0xf] %v3650_v22  ;;  %v3362_v13 = vor.u32 %v3360_v34, %v3359_v31  ;;  %v3363_v27 = vrot.slane %v3359_v31, 4  ;;  %v3115_v18 = vmax.f32 %v3083_v16, 0.0  ;;  %v3081_v21 = vadd.f32 %v12307_v17, %v3042_v54  ;;  %v10444_v22 = vpop.f32.mrf.mxu0 }
 0x20a   : > { %v3387_v56 = vor.u32 %v3385_v49, %v3384_v51  ;;  %v3389_v45 = vrot.slane %v3384_v51, 4  ;;  %v3370_v48 = vor.u32 %v3368_v26, %v3367_v36  ;;  %v3372_v7 = vrot.slane %v3367_v36, 4 }
 0x20b   : > { %v3643_v50 = vsel %vm12395_vm9, %v3362_v13, %v3642_v60  ;;  %v3084_v25 = vadd.f32 %v12307_v17, %v3045_v52  ;;  %v9719_v3 = vpack.c.bf16 %v3115_v18, %v3115_v18  ;;  %v3113_v42 = vmax.f32 %v3081_v21, 0.0  ;;  %v12486_v60 = vld [vmem:[#allocation2 + $0x10] sm:$0xf] }
 0x20c   : > { %v3388_v2 = vsel %vm12406_vm10, %v3380_v1, %v3387_v56  ;;  %v3654_v53 = vsel %vm12412_vm11, %v3389_v45, %v3653_v41  ;;  %3644 = vst [vmem:[#allocation2 + $0x3c] sm:$0xf] %v3643_v50  ;;  %v3371_v43 = vsel %vm12406_vm10, %v3363_v27, %v3370_v48  ;;  %v3647_v5 = vsel %vm12412_vm11, %v3372_v7, %v3646_v57  ;;  %v3656_v56 = vld [vmem:[#allocation2 + $0x54] sm:$0xf] }
 0x20d   : > { %3652 = vst.msk [vmem:[#allocation2 + $0x4c] sm:$0xf] %vm3133_vm1, %v3388_v2  ;;  %3655 = vst [vmem:[#allocation2 + $0x50] sm:$0x1] %v3654_v53  ;;  %v3116_v29 = vmax.f32 %v3084_v25, 0.0  ;;  %v3043_v39 = vadd.f32 %v2954_v12, %v12329_v32  ;;  %v3048_v20 = vadd.f32 %v10443_v15, %v12334_v62  ;;  %v3842_v34 = vshrl.u32 %v3760_v19, 16 }
 0x20e   : > { %3645 = vst.msk [vmem:[#allocation2 + $0x40] sm:$0xf] %vm3133_vm1, %v3371_v43  ;;  %3648 = vst [vmem:[#allocation2 + $0x44] sm:$0x1] %v3647_v5  ;;  %v3408_v59 = vshrl.u32 %v9719_v3, 16  ;;  %v3411_v49 = vshll.u32 %v9719_v3, 16  ;;  %v9717_v11 = vpack.c.bf16 %v3113_v42, %v3113_v42  ;;  %v9310_v18 = vcombine.low %v3760_v19, %v12486_v60  ;;  %v2970_v5 = vpop.f32.mrf.mxu0 }
 0x20f   : > { %v3845_v35 = vshll.u32 %v3760_v19, 16  ;;  %v9720_v30 = vpack.c.bf16 %v3116_v29, %v3116_v29  ;;  %v3082_v1 = vadd.f32 %v12307_v17, %v3043_v39  ;;  %v3087_v31 = vadd.f32 %v12307_v17, %v3048_v20  ;;  %v3762_v62 = vld [vmem:[#allocation2 + $0x18] sm:$0xf]  ;;  %v10890_v21 = vld [vmem:[%s15032_s3 + $0x70] sm:$0xff]   ;;  %v3667_v25 = vld [vmem:[#allocation2 + $0x68] sm:$0x1] }
 0x210   : > { %v12488_v51 = vrot.slane %v3842_v34, 4  ;;  %v3410_v36 = vrot.slane %v3408_v59, 7  ;;  %v3391_v26 = vshrl.u32 %v9717_v11, 16  ;;  %v3394_v32 = vshll.u32 %v9717_v11, 16  ;;  %10506 = vmatmul.mubr.msk.bf16.vlgmr.msra.gmra.mxu0 %vm363_vm0, %v9310_v18  ;;  %v12500_v19 = vld [vmem:[#allocation2 + $0x1c] sm:$0xf] }
 0x211   : > { %v12490_v12 = vrot.slane %v3845_v35, 5  ;;  %v3416_v41 = vshrl.u32 %v9720_v30, 16  ;;  %v3419_v57 = vshll.u32 %v9720_v30, 16  ;;  %v3114_v16 = vmax.f32 %v3082_v1, 0.0  ;;  %v3660_v34 = vld [vmem:[#allocation2 + $0x5c] sm:$0x1]  ;;  %10578 = vmatpush3.bf16.msra.mxu0 %v12422_v4 }
 0x212   : > { %v3119_v54 = vmax.f32 %v3087_v31, 0.0  ;;  %v3413_v52 = vor.u32 %v3411_v49, %v3410_v36  ;;  %v3414_v15 = vrot.slane %v3410_v36, 4  ;;  %v3393_v13 = vrot.slane %v3391_v26, 7  ;;  %v10892_v35 = vld [vmem:[%s15032_s3 + $0x68] sm:$0xff]   ;;  %10579 = vmatprep.subr.bf16.mxu0 %v10890_v21  ;;  %v3677_v4 = vld [vmem:[#allocation2 + $0x78] sm:$0xf] }
 0x213   : > { %v3855_v27 = vshrl.u32 %v12486_v60, 16  ;;  %v3418_v45 = vrot.slane %v3416_v41, 7  ;;  %v9718_v48 = vpack.c.bf16 %v3114_v16, %v3114_v16  ;;  %v3866_v43 = vshrl.u32 %v3762_v62, 16  ;;  %v3764_v16 = vld [vmem:[#allocation2 + $0x24] sm:$0xf] }
 0x214   : > { %v9723_v7 = vpack.c.bf16 %v3119_v54, %v3119_v54  ;;  %v3664_v50 = vsel %vm12395_vm9, %v3413_v52, %v3663_v24  ;;  %v3396_v2 = vor.u32 %v3394_v32, %v3393_v13  ;;  %v3397_v53 = vrot.slane %v3393_v13, 4 }
 0x215   : > { %3665 = vst [vmem:[#allocation2 + $0x60] sm:$0xf] %v3664_v50  ;;  %v3421_v3 = vor.u32 %v3419_v57, %v3418_v45  ;;  %v3423_v42 = vrot.slane %v3418_v45, 4  ;;  %v3399_v29 = vshrl.u32 %v9718_v48, 16  ;;  %v3402_v39 = vshll.u32 %v9718_v48, 16  ;;  %v10447_v57 = vpop.f32.mrf.mxu0  ;;  %10580 = vmatpush3.bf16.msra.mxu0 %v10890_v21 }
 0x216   : > { %v3657_v20 = vsel %vm12395_vm9, %v3396_v2, %v3656_v56  ;;  %v3442_v59 = vshrl.u32 %v9723_v7, 16  ;;  %v3445_v49 = vshll.u32 %v9723_v7, 16  ;;  %v12504_v11 = vrot.slane %v3866_v43, 4  ;;  %v12529_v7 = vld [vmem:[#allocation2 + $0x28] sm:$0xf]  ;;  %10581 = vmatprep.subr.bf16.mxu0 %v10892_v35 }
 0x217   : > { %3658 = vst [vmem:[#allocation2 + $0x54] sm:$0xf] %v3657_v20  ;;  %v3422_v24 = vsel %vm12406_vm10, %v3414_v15, %v3421_v3  ;;  %v3668_v30 = vsel %vm12412_vm11, %v3423_v42, %v3667_v25  ;;  %v3401_v1 = vrot.slane %v3399_v29, 7  ;;  %v3869_v31 = vshll.u32 %v3762_v62, 16 }
 0x218   : > { %3666 = vst.msk [vmem:[#allocation2 + $0x64] sm:$0xf] %vm3133_vm1, %v3422_v24  ;;  %3669 = vst [vmem:[#allocation2 + $0x68] sm:$0x1] %v3668_v30  ;;  %v12515_v36 = vrot.slane %v3442_v59, 7  ;;  %v3879_v26 = vshrl.u32 %v12500_v19, 16  ;;  %v9311_v32 = vcombine.low %v3762_v62, %v12500_v19  ;;  %v3046_v41 = vadd.f32 %v12479_v55, %v12338_v14 }
 0x219   : > { %v3404_v54 = vor.u32 %v3402_v39, %v3401_v1  ;;  %v3406_v52 = vrot.slane %v3401_v1, 4  ;;  %v12521_v15 = vrot.slane %v3869_v31, 5  ;;  %v3049_v13 = vadd.f32 %v10444_v22, %v12343_v33  ;;  %v10895_v14 = vld [vmem:[%s15032_s3 + $0x60] sm:$0xff]   ;;  %v12549_v39 = vpop.f32.mrf.mxu0  ;;  %10582 = vmatpush3.bf16.msra.mxu0 %v10892_v35 }
 0x21a   : > { %v3447_v56 = vor.u32 %v3445_v49, %v12515_v36  ;;  %v3448_v45 = vrot.slane %v12515_v36, 4  ;;  %10509 = vmatprep.mubr.msk.bf16.mxu0 %vm363_vm0, %v9311_v32  ;;  %v3085_v48 = vadd.f32 %v12307_v17, %v3046_v41  ;;  %v3047_v62 = vadd.f32 %v2970_v5, %v12346_v61  ;;  %10583 = vmatprep.subr.bf16.mxu0 %v10895_v14 }
 0x21b   : > { %v3405_v33 = vsel %vm12406_vm10, %v3397_v53, %v3404_v54  ;;  %v3661_v55 = vsel %vm12412_vm11, %v3406_v52, %v3660_v34  ;;  %v3088_v22 = vadd.f32 %v12307_v17, %v3049_v13  ;;  %v3052_v18 = vadd.f32 %v10447_v57, %v12350_v37  ;;  %v3681_v54 = vld [vmem:[#allocation2 + $0x80] sm:$0x1] }
 0x21c   : > { %3659 = vst.msk [vmem:[#allocation2 + $0x58] sm:$0xf] %vm3133_vm1, %v3405_v33  ;;  %3662 = vst [vmem:[#allocation2 + $0x5c] sm:$0x1] %v3661_v55  ;;  %v3678_v61 = vsel %vm12395_vm9, %v3447_v56, %v3677_v4  ;;  %v3117_v21 = vmax.f32 %v3085_v48, 0.0  ;;  %v3086_v50 = vadd.f32 %v12307_v17, %v3047_v62  ;;  %v3890_v2 = vshrl.u32 %v3764_v16, 16  ;;  %v10448_v48 = vpop.f32.mrf.mxu0 }
 0x21d   : > { %3679 = vst [vmem:[#allocation2 + $0x78] sm:$0xf] %v3678_v61  ;;  %v3120_v53 = vmax.f32 %v3088_v22, 0.0  ;;  %v3091_v25 = vadd.f32 %v12307_v17, %v3052_v18  ;;  %v3893_v43 = vshll.u32 %v3764_v16, 16  ;;  %v3903_v5 = vshrl.u32 %v12529_v7, 16  ;;  %10584 = vmatpush3.bf16.msra.mxu0 %v10895_v14 }
 0x21e   : > { %v9721_v3 = vpack.c.bf16 %v3117_v21, %v3117_v21  ;;  %v3118_v37 = vmax.f32 %v3086_v50, 0.0  ;;  %v12546_v42 = vrot.slane %v3890_v2, 4  ;;  %v9312_v29 = vcombine.low %v3764_v16, %v12529_v7  ;;  %v3670_v4 = vld [vmem:[#allocation2 + $0x6c] sm:$0xf]  ;;  %v3799_v33 = vld [vmem:[#allocation2 + $0x14] sm:$0x1] }
 0x21f   : > { %v9724_v20 = vpack.c.bf16 %v3120_v53, %v3120_v53  ;;  %v3123_v34 = vmax.f32 %v3091_v25, 0.0  ;;  %v12551_v59 = vrot.slane %v3893_v43, 5  ;;  %v3848_v49 = vor.u32 %v12490_v12, %v12488_v51  ;;  %v3674_v21 = vld [vmem:[#allocation2 + $0x74] sm:$0x1]  ;;  %v3691_v50 = vld [vmem:[#allocation2 + $0x90] sm:$0xf] }
 0x220   : > { %v3425_v24 = vshrl.u32 %v9721_v3, 16  ;;  %v3428_v30 = vshll.u32 %v9721_v3, 16  ;;  %v9722_v1 = vpack.c.bf16 %v3118_v37, %v3118_v37  ;;  %10510 = vmatmul.mubr.msk.bf16.gmra.mxu0 %vm363_vm0, %v9312_v29  ;;  %v3851_v31 = vshll.u32 %v12486_v60, 16  ;;  %v3766_v37 = vld [vmem:[#allocation2 + $0x30] sm:$0xf] }
 0x221   : > { %v3450_v32 = vshrl.u32 %v9724_v20, 16  ;;  %v3453_v41 = vshll.u32 %v9724_v20, 16  ;;  %v9727_v57 = vpack.c.bf16 %v3123_v34, %v3123_v34  ;;  %v3849_v35 = vrot.slane %v3848_v49, 4  ;;  %v12565_v34 = vld [vmem:[#allocation2 + $0x34] sm:$0xf]  ;;  %v2986_v49 = vpop.f32.mrf.mxu0 }
 0x222   : > { %v3427_v16 = vrot.slane %v3425_v24, 7  ;;  %v3433_v52 = vshrl.u32 %v9722_v1, 16  ;;  %v3436_v13 = vshll.u32 %v9722_v1, 16  ;;  %v3853_v56 = vrot.slane %v3851_v31, 5 }
 0x223   : > { %v3452_v51 = vrot.slane %v3450_v32, 7  ;;  %v3476_v12 = vshrl.u32 %v9727_v57, 16  ;;  %v3479_v62 = vshll.u32 %v9727_v57, 16  ;;  %v3857_v55 = vrot.slane %v3855_v27, 4  ;;  %v3800_v57 = vld [vmem:[#allocation2 + $0x20] sm:$0x1] }
 0x224   : > { %v3430_v22 = vor.u32 %v3428_v30, %v3427_v16  ;;  %v3431_v18 = vrot.slane %v3427_v16, 4  ;;  %v3435_v61 = vrot.slane %v3433_v52, 7  ;;  %v3854_v53 = vsel %vm12072_vm5, %v3849_v35, %v3853_v56 }
 0x225   : > { %v3455_v25 = vor.u32 %v3453_v41, %v3452_v51  ;;  %v3457_v43 = vrot.slane %v3452_v51, 4  ;;  %v12561_v3 = vrot.slane %v3476_v12, 7  ;;  %v3858_v14 = vor.u32 %v3857_v55, %v3853_v56  ;;  %v10451_v12 = vpop.f32.mrf.mxu0 }
 0x226   : > { %v3671_v29 = vsel %vm12395_vm9, %v3430_v22, %v3670_v4  ;;  %v3438_v20 = vor.u32 %v3436_v13, %v3435_v61  ;;  %v3440_v60 = vrot.slane %v3435_v61, 4  ;;  %v3861_v27 = vshll.u32 %v3799_v33, 16  ;;  %v10881_v61 = vld [vmem:[%s15032_s3 + $0x50] sm:$0xff]  }
 0x227   : > { %3672 = vst [vmem:[#allocation2 + $0x6c] sm:$0xf] %v3671_v29  ;;  %v3456_v24 = vsel %vm12406_vm10, %v3448_v45, %v3455_v25  ;;  %v3682_v30 = vsel %vm12412_vm11, %v3457_v43, %v3681_v54  ;;  %v3481_v1 = vor.u32 %v3479_v62, %v12561_v3  ;;  %v3482_v31 = vrot.slane %v12561_v3, 4  ;;  %v3768_v62 = vld [vmem:[#allocation2 + $0x3c] sm:$0xf] }
 0x228   : > { %3680 = vst.msk [vmem:[#allocation2 + $0x7c] sm:$0xf] %vm3133_vm1, %v3456_v24  ;;  %3683 = vst [vmem:[#allocation2 + $0x80] sm:$0x1] %v3682_v30  ;;  %v3439_v4 = vsel %vm12406_vm10, %v3431_v18, %v3438_v20  ;;  %v3675_v32 = vsel %vm12412_vm11, %v3440_v60, %v3674_v21  ;;  %v3859_v36 = vrot.slane %v3858_v14, 4  ;;  %v3863_v41 = vrot.slane %v3861_v27, 5 }
 0x229   : > { %3673 = vst.msk [vmem:[#allocation2 + $0x70] sm:$0xf] %vm3133_vm1, %v3439_v4  ;;  %3676 = vst [vmem:[#allocation2 + $0x74] sm:$0x1] %v3675_v32  ;;  %v3692_v45 = vsel %vm12395_vm9, %v3481_v1, %v3691_v50  ;;  %v3914_v35 = vshrl.u32 %v3766_v37, 16  ;;  %v3917_v16 = vshll.u32 %v3766_v37, 16  ;;  %v9313_v13 = vcombine.low %v3766_v37, %v12565_v34 }
 0x22a   : > { %v3927_v54 = vshrl.u32 %v12565_v34, 16  ;;  %3693 = vst [vmem:[#allocation2 + $0x90] sm:$0xf] %v3692_v45  ;;  %v3864_v52 = vsel %vm12072_vm5, %v3859_v36, %v3863_v41  ;;  %v3050_v56 = vadd.f32 %v12549_v39, %v12355_v38  ;;  %v3872_v51 = vor.u32 %v12521_v15, %v12504_v11  ;;  %v10947_v37 = vld [vmem:[%s15032_s3 + $0x58] sm:$0xff]   ;;  %v12610_v29 = vld [vmem:[#allocation2 + $0x40] sm:$0xf] }
 0x22b   : > { %v9274_v33 = vcombine.low %v3854_v53, %v3864_v52  ;;  %v12591_v55 = vrot.slane %v3914_v35, 4  ;;  %v12593_v22 = vrot.slane %v3917_v16, 5  ;;  %v3875_v18 = vshll.u32 %v12500_v19, 16  ;;  %10513 = vmatprep.mubr.msk.bf16.mxu0 %vm363_vm0, %v9313_v13  ;;  %v12626_v35 = vpop.f32.mrf.mxu0 }
 0x22c   : > { %v3089_v38 = vadd.f32 %v12307_v17, %v3050_v56  ;;  %v3873_v39 = vrot.slane %v3872_v51, 4  ;;  %v3881_v11 = vrot.slane %v3879_v26, 4  ;;  %v3885_v15 = vshll.u32 %v3800_v57, 16  ;;  %v10893_v56 = vld [vmem:[%s15032_s3 + $0x40] sm:$0xff]  }
 0x22d   : > { %10466 = vmatmul.mubr.msk.bf16.vlgmr.msra.gmra.mxu1 %vm363_vm0, %v9274_v33  ;;  %v3877_v21 = vrot.slane %v3875_v18, 5  ;;  %v3053_v50 = vadd.f32 %v10448_v48, %v12360_v9  ;;  %v3051_v53 = vadd.f32 %v2986_v49, %v12363_v8  ;;  %v3056_v25 = vadd.f32 %v10451_v12, %v12367_v58  ;;  %v10886_v58 = vld [vmem:[%s15032_s3 + $0x48] sm:$0xff]   ;;  %v3684_v12 = vld [vmem:[#allocation2 + $0x84] sm:$0xf] }
 0x22e   : > { %v3121_v43 = vmax.f32 %v3089_v38, 0.0  ;;  %v3887_v14 = vrot.slane %v3885_v15, 5  ;;  %10538 = vmatpush3.bf16.msra.mxu1 %v10947_v37  ;;  %v3938_v19 = vshrl.u32 %v3768_v62, 16  ;;  %v3941_v26 = vshll.u32 %v3768_v62, 16 }
 0x22f   : > { %v3878_v20 = vsel %vm12072_vm5, %v3873_v39, %v3877_v21  ;;  %v3882_v60 = vor.u32 %v3881_v11, %v3877_v21  ;;  %v3092_v9 = vadd.f32 %v12307_v17, %v3053_v50  ;;  %v3090_v8 = vadd.f32 %v12307_v17, %v3051_v53  ;;  %10539 = vmatprep.subr.bf16.mxu1 %v10881_v61  ;;  %v12642_v11 = vld [vmem:[#allocation2 + $0x2c] sm:$0x1]  ;;  %v3695_v50 = vld [vmem:[#allocation2 + $0x98] sm:$0x1] }
 0x230   : > { %v9725_v48 = vpack.c.bf16 %v3121_v43, %v3121_v43  ;;  %v3095_v27 = vadd.f32 %v12307_v17, %v3056_v25  ;;  %v12620_v49 = vrot.slane %v3938_v19, 4  ;;  %v12622_v24 = vrot.slane %v3941_v26, 5  ;;  %v3688_v53 = vld [vmem:[#allocation2 + $0x8c] sm:$0x1] }
 0x231   : > { %v3883_v30 = vrot.slane %v3882_v60, 4  ;;  %v3124_v1 = vmax.f32 %v3092_v9, 0.0  ;;  %v3122_v4 = vmax.f32 %v3090_v8, 0.0  ;;  %v3951_v32 = vshrl.u32 %v12610_v29, 16  ;;  %v10900_v60 = vld [vmem:[%s15032_s3 + $0x98] sm:$0xff]  }
 0x232   : > { %v3459_v36 = vshrl.u32 %v9725_v48, 16  ;;  %v3462_v41 = vshll.u32 %v9725_v48, 16  ;;  %v3127_v57 = vmax.f32 %v3095_v27, 0.0  ;;  %v9314_v45 = vcombine.low %v3768_v62, %v12610_v29  ;;  %10540 = vmatpush3.bf16.msra.mxu1 %v10881_v61  ;;  %v12640_v61 = vld [vmem:[%s15032_s3 + $0xb8] sm:$0xff]   ;;  %v3705_v48 = vld [vmem:[#allocation2 + $0xa8] sm:$0xf] }
 0x233   : > { %v3888_v17 = vsel %vm12072_vm5, %v3883_v30, %v3887_v14  ;;  %v9728_v16 = vpack.c.bf16 %v3124_v1, %v3124_v1  ;;  %v9726_v52 = vpack.c.bf16 %v3122_v4, %v3122_v4  ;;  %v3896_v13 = vor.u32 %v12551_v59, %v12546_v42  ;;  %10541 = vmatprep.subr.bf16.mxu1 %v10886_v58  ;;  %v10452_v14 = vpop.f32.mrf.mxu0 }
 0x234   : > { %v3461_v51 = vrot.slane %v3459_v36, 7  ;;  %v9275_v33 = vcombine.low %v3878_v20, %v3888_v17  ;;  %v9731_v62 = vpack.c.bf16 %v3127_v57, %v3127_v57  ;;  %10514 = vmatmul.mubr.msk.bf16.gmra.mxu0 %vm363_vm0, %v9314_v45  ;;  %v3899_v18 = vshll.u32 %v12529_v7, 16  ;;  %10657 = vmatprep.subr.bf16.mxu0 %v12640_v61 }
 0x235   : > { %v3484_v38 = vshrl.u32 %v9728_v16, 16  ;;  %v3487_v42 = vshll.u32 %v9728_v16, 16  ;;  %v3467_v59 = vshrl.u32 %v9726_v52, 16  ;;  %v3470_v39 = vshll.u32 %v9726_v52, 16  ;;  %v12660_v52 = vld [vmem:[#allocation2 + $0x4c] sm:$0xf]  ;;  %v3002_v7 = vpop.f32.mrf.mxu0 }
 0x236   : > { %v3464_v15 = vor.u32 %v3462_v41, %v3461_v51  ;;  %v3465_v21 = vrot.slane %v3461_v51, 4  ;;  %10469 = vmatprep.mubr.msk.bf16.mxu1 %vm363_vm0, %v9275_v33  ;;  %v3510_v25 = vshrl.u32 %v9731_v62, 16  ;;  %v3513_v43 = vshll.u32 %v9731_v62, 16  ;;  %10542 = vmatpush3.bf16.msra.mxu1 %v10886_v58  ;;  %v3770_v41 = vld [vmem:[#allocation2 + $0x48] sm:$0xf] }
 0x237   : > { %v3486_v37 = vrot.slane %v3484_v38, 7  ;;  %v3469_v19 = vrot.slane %v3467_v59, 7  ;;  %v3897_v26 = vrot.slane %v3896_v13, 4  ;;  %v3901_v20 = vrot.slane %v3899_v18, 5  ;;  %10543 = vmatprep.subr.bf16.mxu1 %v10893_v56  ;;  %v12680_v59 = vld [vmem:[#allocation2 + $0x38] sm:$0x1] }
 0x238   : > { %v3685_v9 = vsel %vm12395_vm9, %v3464_v15, %v3684_v12  ;;  %v12651_v8 = vrot.slane %v3510_v25, 7  ;;  %v3905_v58 = vrot.slane %v3903_v5, 4  ;;  %v3909_v27 = vshll.u32 %v12642_v11, 16  ;;  %v3772_v25 = vld [vmem:[#allocation2 + $0x54] sm:$0xf] }
 0x239   : > { %3686 = vst [vmem:[#allocation2 + $0x84] sm:$0xf] %v3685_v9  ;;  %v3489_v30 = vor.u32 %v3487_v42, %v3486_v37  ;;  %v3491_v1 = vrot.slane %v3486_v37, 4  ;;  %v3472_v4 = vor.u32 %v3470_v39, %v3469_v19  ;;  %v3474_v36 = vrot.slane %v3469_v19, 4 }
 0x23a   : > { %v3515_v57 = vor.u32 %v3513_v43, %v12651_v8  ;;  %v3516_v45 = vrot.slane %v12651_v8, 4  ;;  %v3902_v17 = vsel %vm12072_vm5, %v3897_v26, %v3901_v20  ;;  %v3906_v16 = vor.u32 %v3905_v58, %v3901_v20  ;;  %10544 = vmatpush3.bf16.msra.mxu1 %v10893_v56  ;;  %v12705_v58 = vld [vmem:[#allocation2 + $0x58] sm:$0xf] }
 0x23b   : > { %v3490_v5 = vsel %vm12406_vm10, %v3482_v31, %v3489_v30  ;;  %v3696_v13 = vsel %vm12412_vm11, %v3491_v1, %v3695_v50  ;;  %v3473_v51 = vsel %vm12406_vm10, %v3465_v21, %v3472_v4  ;;  %v3689_v12 = vsel %vm12412_vm11, %v3474_v36, %v3688_v53  ;;  %10617 = vmatprep.subr.bf16.mxu1 %v10900_v60  ;;  %v10455_v53 = vpop.f32.mrf.mxu0 }
 0x23c   : > { %3694 = vst.msk [vmem:[#allocation2 + $0x94] sm:$0xf] %vm3133_vm1, %v3490_v5  ;;  %3697 = vst [vmem:[#allocation2 + $0x98] sm:$0x1] %v3696_v13  ;;  %v3706_v3 = vsel %vm12395_vm9, %v3515_v57, %v3705_v48  ;;  %v3907_v31 = vrot.slane %v3906_v16, 4  ;;  %v3911_v56 = vrot.slane %v3909_v27, 5  ;;  %v9315_v38 = vcombine.low %v3770_v41, %v12660_v52 }
 0x23d   : > { %3687 = vst.msk [vmem:[#allocation2 + $0x88] sm:$0xf] %vm3133_vm1, %v3473_v51  ;;  %3690 = vst [vmem:[#allocation2 + $0x8c] sm:$0x1] %v3689_v12  ;;  %v3962_v33 = vshrl.u32 %v3770_v41, 16  ;;  %v3965_v62 = vshll.u32 %v3770_v41, 16  ;;  %v3054_v42 = vadd.f32 %v12626_v35, %v12372_v46  ;;  %v3920_v21 = vor.u32 %v12593_v22, %v12591_v55 }
 0x23e   : > { %3707 = vst [vmem:[#allocation2 + $0xa8] sm:$0xf] %v3706_v3  ;;  %v3975_v18 = vshrl.u32 %v12660_v52, 16  ;;  %v3912_v39 = vsel %vm12072_vm5, %v3907_v31, %v3911_v56  ;;  %v3923_v50 = vshll.u32 %v12565_v34, 16  ;;  %10517 = vmatprep.mubr.msk.bf16.mxu0 %vm363_vm0, %v9315_v38  ;;  %v12695_v46 = vld [vmem:[%s15031_s2] ss:$0 sm:$0xff]  ;;  %v3057_v20 = vadd.f32 %v10452_v14, %v12376_v6 }
 0x23f   : > { %v12684_v15 = vrot.slane %v3962_v33, 4  ;;  %v9276_v43 = vcombine.low %v3902_v17, %v3912_v39  ;;  %v12689_v37 = vrot.slane %v3965_v62, 5  ;;  %v3093_v35 = vadd.f32 %v12695_v46, %v3054_v42  ;;  %v3698_v38 = vld [vmem:[#allocation2 + $0x9c] sm:$0xf] }
 0x240   : > { %v3929_v19 = vrot.slane %v3927_v54, 4  ;;  %v3921_v55 = vrot.slane %v3920_v21, 4  ;;  %v3925_v22 = vrot.slane %v3923_v50, 5  ;;  %v3933_v26 = vshll.u32 %v12680_v59, 16 }
 0x241   : > { %10470 = vmatmul.mubr.msk.bf16.gmra.mxu1 %vm363_vm0, %v9276_v43  ;;  %v3125_v60 = vmax.f32 %v3093_v35, 0.0  ;;  %v3055_v9 = vadd.f32 %v3002_v7, %v12379_v28  ;;  %v3060_v48 = vadd.f32 %v10455_v53, %v12383_v40  ;;  %v3986_v27 = vshrl.u32 %v3772_v25, 16 }
 0x242   : > { %v3926_v34 = vsel %vm12072_vm5, %v3921_v55, %v3925_v22  ;;  %v3930_v54 = vor.u32 %v3929_v19, %v3925_v22  ;;  %v3935_v30 = vrot.slane %v3933_v26, 5  ;;  %v3096_v1 = vadd.f32 %v12695_v46, %v3057_v20  ;;  %v12725_v19 = vld [vmem:[#allocation2 + $0x44] sm:$0x1]  ;;  %v3015_v55 = vpop.f32.mrf.mxu0  ;;  %v3709_v26 = vld [vmem:[#allocation2 + $0xb0] sm:$0x1] }
 0x243   : > { %v9729_v4 = vpack.c.bf16 %v3125_v60, %v3125_v60  ;;  %v3094_v6 = vadd.f32 %v12695_v46, %v3055_v9  ;;  %v3099_v14 = vadd.f32 %v12695_v46, %v3060_v48  ;;  %v12712_v36 = vrot.slane %v3986_v27, 4 }
 0x244   : > { %v3931_v28 = vrot.slane %v3930_v54, 4  ;;  %v3128_v41 = vmax.f32 %v3096_v1, 0.0  ;;  %v3989_v40 = vshll.u32 %v3772_v25, 16  ;;  %v3999_v57 = vshrl.u32 %v12705_v58, 16 }
 0x245   : > { %v3493_v17 = vshrl.u32 %v9729_v4, 16  ;;  %v3496_v16 = vshll.u32 %v9729_v4, 16  ;;  %v3126_v7 = vmax.f32 %v3094_v6, 0.0  ;;  %v3131_v5 = vmax.f32 %v3099_v14, 0.0  ;;  %v3719_v4 = vld [vmem:[#allocation2 + $0xc0] sm:$0xf] }
 0x246   : > { %v3936_v13 = vsel %vm12072_vm5, %v3931_v28, %v3935_v30  ;;  %v9732_v51 = vpack.c.bf16 %v3128_v41, %v3128_v41  ;;  %v12717_v12 = vrot.slane %v3989_v40, 5  ;;  %v9316_v3 = vcombine.low %v3772_v25, %v12705_v58 }
 0x247   : > { %v3495_v31 = vrot.slane %v3493_v17, 7  ;;  %v9277_v56 = vcombine.low %v3926_v34, %v3936_v13  ;;  %v9730_v33 = vpack.c.bf16 %v3126_v7, %v3126_v7  ;;  %v9735_v62 = vpack.c.bf16 %v3131_v5, %v3131_v5  ;;  %v3774_v17 = vld [vmem:[#allocation2 + $0x60] sm:$0xf]  ;;  %v10456_v7 = vpop.f32.mrf.mxu0 }
 0x248   : > { %v3518_v42 = vshrl.u32 %v9732_v51, 16  ;;  %v3521_v39 = vshll.u32 %v9732_v51, 16  ;;  %10518 = vmatmul.mubr.msk.bf16.gmra.mxu0 %vm363_vm0, %v9316_v3  ;;  %v3944_v21 = vor.u32 %v12622_v24, %v12620_v49  ;;  %v3947_v50 = vshll.u32 %v12610_v29, 16  ;;  %v3702_v24 = vld [vmem:[#allocation2 + $0xa4] sm:$0x1] }
 0x249   : > { %v3498_v53 = vor.u32 %v3496_v16, %v3495_v31  ;;  %v3499_v43 = vrot.slane %v3495_v31, 4  ;;  %10473 = vmatprep.mubr.msk.bf16.mxu1 %vm363_vm0, %v9277_v56  ;;  %v3501_v35 = vshrl.u32 %v9730_v33, 16  ;;  %v3504_v25 = vshll.u32 %v9730_v33, 16  ;;  %v12736_v16 = vld [vmem:[#allocation2 + $0x64] sm:$0xf] }
 0x24a   : > { %v3520_v22 = vrot.slane %v3518_v42, 7  ;;  %v3544_v20 = vshrl.u32 %v9735_v62, 16  ;;  %v3547_v60 = vshll.u32 %v9735_v62, 16  ;;  %v3945_v9 = vrot.slane %v3944_v21, 4  ;;  %v12751_v56 = vld [vmem:[#allocation2 + $0x50] sm:$0x1] }
 0x24b   : > { %v3699_v48 = vsel %vm12395_vm9, %v3498_v53, %v3698_v38  ;;  %v3503_v49 = vrot.slane %v3501_v35, 7  ;;  %v3949_v27 = vrot.slane %v3947_v50, 5  ;;  %v3953_v34 = vrot.slane %v3951_v32, 4  ;;  %v3776_v42 = vld [vmem:[#allocation2 + $0x6c] sm:$0xf] }
 0x24c   : > { %3700 = vst [vmem:[#allocation2 + $0x9c] sm:$0xf] %v3699_v48  ;;  %v3523_v54 = vor.u32 %v3521_v39, %v3520_v22  ;;  %v3525_v30 = vrot.slane %v3520_v22, 4  ;;  %v12731_v1 = vrot.slane %v3544_v20, 7  ;;  %v3957_v6 = vshll.u32 %v12725_v19, 16 }
 0x24d   : > { %v3506_v14 = vor.u32 %v3504_v25, %v3503_v49  ;;  %v3508_v28 = vrot.slane %v3503_v49, 4  ;;  %v3950_v41 = vsel %vm12072_vm5, %v3945_v9, %v3949_v27  ;;  %v3954_v40 = vor.u32 %v3953_v34, %v3949_v27  ;;  %v12763_v35 = vld [vmem:[#allocation2 + $0x70] sm:$0xf] }
 0x24e   : > { %v3524_v29 = vsel %vm12406_vm10, %v3516_v45, %v3523_v54  ;;  %v3710_v32 = vsel %vm12412_vm11, %v3525_v30, %v3709_v26  ;;  %v3549_v5 = vor.u32 %v3547_v60, %v12731_v1  ;;  %v3550_v13 = vrot.slane %v12731_v1, 4 }
 0x24f   : > { %3708 = vst.msk [vmem:[#allocation2 + $0xac] sm:$0xf] %vm3133_vm1, %v3524_v29  ;;  %3711 = vst [vmem:[#allocation2 + $0xb0] sm:$0x1] %v3710_v32  ;;  %v3507_v51 = vsel %vm12406_vm10, %v3499_v43, %v3506_v14  ;;  %v3703_v3 = vsel %vm12412_vm11, %v3508_v28, %v3702_v24  ;;  %v3955_v8 = vrot.slane %v3954_v40, 4  ;;  %v3959_v31 = vrot.slane %v3957_v6, 5  ;;  %v3018_v43 = vpop.f32.mrf.mxu0 }
 0x250   : > { %3701 = vst.msk [vmem:[#allocation2 + $0xa0] sm:$0xf] %vm3133_vm1, %v3507_v51  ;;  %3704 = vst [vmem:[#allocation2 + $0xa4] sm:$0x1] %v3703_v3  ;;  %v3720_v45 = vsel %vm12395_vm9, %v3549_v5, %v3719_v4  ;;  %v4010_v33 = vshrl.u32 %v3774_v17, 16  ;;  %v4013_v62 = vshll.u32 %v3774_v17, 16  ;;  %v9317_v21 = vcombine.low %v3774_v17, %v12736_v16 }
 0x251   : > { %v4023_v38 = vshrl.u32 %v12736_v16, 16  ;;  %3721 = vst [vmem:[#allocation2 + $0xc0] sm:$0xf] %v3720_v45  ;;  %v3960_v39 = vsel %vm12072_vm5, %v3955_v8, %v3959_v31  ;;  %v3058_v50 = vadd.f32 %v3015_v55, %v12386_v63  ;;  %v3968_v53 = vor.u32 %v12689_v37, %v12684_v15  ;;  %v3712_v3 = vld [vmem:[#allocation2 + $0xb4] sm:$0xf] }
 0x252   : > { %v9278_v25 = vcombine.low %v3950_v41, %v3960_v39  ;;  %v12765_v22 = vrot.slane %v4010_v33, 4  ;;  %v12767_v26 = vrot.slane %v4013_v62, 5  ;;  %v3971_v20 = vshll.u32 %v12660_v52, 16  ;;  %10521 = vmatprep.mubr.msk.bf16.mxu0 %vm363_vm0, %v9317_v21  ;;  %v12788_v41 = vld [vmem:[#allocation2 + $0x5c] sm:$0x1] }
 0x253   : > { %v3097_v60 = vadd.f32 %v12695_v46, %v3058_v50  ;;  %v3969_v9 = vrot.slane %v3968_v53, 4  ;;  %v3977_v63 = vrot.slane %v3975_v18, 4  ;;  %v3981_v15 = vshll.u32 %v12751_v56, 16 }
 0x254   : > { %10474 = vmatmul.mubr.msk.bf16.gmra.mxu1 %vm363_vm0, %v9278_v25  ;;  %v3973_v37 = vrot.slane %v3971_v20, 5  ;;  %v3061_v55 = vadd.f32 %v10456_v7, %v12388_v47  ;;  %v3059_v48 = vadd.f32 %v3018_v43, %v12390_v10  ;;  %v4034_v49 = vshrl.u32 %v3776_v42, 16  ;;  %v12799_v25 = vld [vmem:[#allocation2 + $0x7c] sm:$0xf] }
 0x255   : > { %v3129_v24 = vmax.f32 %v3097_v60, 0.0  ;;  %v3983_v27 = vrot.slane %v3981_v15, 5  ;;  %v4037_v34 = vshll.u32 %v3776_v42, 16  ;;  %v4047_v54 = vshrl.u32 %v12763_v35, 16  ;;  %v3723_v15 = vld [vmem:[#allocation2 + $0xc8] sm:$0x1] }
 0x256   : > { %v3974_v30 = vsel %vm12072_vm5, %v3969_v9, %v3973_v37  ;;  %v3978_v4 = vor.u32 %v3977_v63, %v3973_v37  ;;  %v3100_v18 = vadd.f32 %v12695_v46, %v3061_v55  ;;  %v3098_v6 = vadd.f32 %v12695_v46, %v3059_v48 }
 0x257   : > { %v9733_v14 = vpack.c.bf16 %v3129_v24, %v3129_v24  ;;  %v12783_v28 = vrot.slane %v4034_v49, 4  ;;  %v12785_v47 = vrot.slane %v4037_v34, 5  ;;  %v9318_v10 = vcombine.low %v3776_v42, %v12763_v35  ;;  %v3716_v24 = vld [vmem:[#allocation2 + $0xbc] sm:$0x1] }
 0x258   : > { %v3979_v40 = vrot.slane %v3978_v4, 4  ;;  %v3132_v17 = vmax.f32 %v3100_v18, 0.0  ;;  %v3130_v7 = vmax.f32 %v3098_v6, 0.0  ;;  %v3992_v29 = vor.u32 %v12717_v12, %v12712_v36  ;;  %v3778_v12 = vld [vmem:[#allocation2 + $0x78] sm:$0xf] }
 0x259   : > { %v3527_v32 = vshrl.u32 %v9733_v14, 16  ;;  %v3530_v5 = vshll.u32 %v9733_v14, 16  ;;  %10522 = vmatmul.mubr.msk.bf16.gmra.mxu0 %vm363_vm0, %v9318_v10  ;;  %v3995_v46 = vshll.u32 %v12705_v58, 16  ;;  %v4001_v51 = vrot.slane %v3999_v57, 4  ;;  %v12807_v10 = vld [vmem:[#allocation2 + $0x68] sm:$0x1] }
 0x25a   : > { %v3984_v8 = vsel %vm12072_vm5, %v3979_v40, %v3983_v27  ;;  %v9736_v31 = vpack.c.bf16 %v3132_v17, %v3132_v17  ;;  %v9734_v45 = vpack.c.bf16 %v3130_v7, %v3130_v7  ;;  %v3993_v33 = vrot.slane %v3992_v29, 4  ;;  %v3780_v29 = vld [vmem:[#allocation2 + $0x84] sm:$0xf] }
 0x25b   : > { %v3529_v62 = vrot.slane %v3527_v32, 7  ;;  %v9279_v42 = vcombine.low %v3974_v30, %v3984_v8  ;;  %v3997_v39 = vrot.slane %v3995_v46, 5  ;;  %v4005_v36 = vshll.u32 %v12788_v41, 16  ;;  %v12812_v32 = vld [vmem:[#allocation2 + $0x88] sm:$0xf] }
 0x25c   : > { %v3552_v21 = vshrl.u32 %v9736_v31, 16  ;;  %v3555_v50 = vshll.u32 %v9736_v31, 16  ;;  %v3535_v53 = vshrl.u32 %v9734_v45, 16  ;;  %v3538_v43 = vshll.u32 %v9734_v45, 16  ;;  %v12832_v31 = vld [vmem:[#allocation2 + $0x74] sm:$0x1] }
 0x25d   : > { %v3532_v57 = vor.u32 %v3530_v5, %v3529_v62  ;;  %v3533_v20 = vrot.slane %v3529_v62, 4  ;;  %10477 = vmatprep.mubr.msk.bf16.mxu1 %vm363_vm0, %v9279_v42  ;;  %v3998_v60 = vsel %vm12072_vm5, %v3993_v33, %v3997_v39  ;;  %v4002_v9 = vor.u32 %v4001_v51, %v3997_v39 }
 0x25e   : > { %v3554_v63 = vrot.slane %v3552_v21, 7  ;;  %v3537_v37 = vrot.slane %v3535_v53, 7  ;;  %v4007_v55 = vrot.slane %v4005_v36, 5  ;;  %v4058_v48 = vshrl.u32 %v3778_v12, 16  ;;  %v12841_v53 = vld [vmem:[#allocation2 + $0x94] sm:$0xf] }
 0x25f   : > { %v3713_v49 = vsel %vm12395_vm9, %v3532_v57, %v3712_v3  ;;  %v4003_v27 = vrot.slane %v4002_v9, 4  ;;  %v4061_v34 = vshll.u32 %v3778_v12, 16  ;;  %v4071_v30 = vshrl.u32 %v12799_v25, 16 }
 0x260   : > { %3714 = vst [vmem:[#allocation2 + $0xb4] sm:$0xf] %v3713_v49  ;;  %v3557_v4 = vor.u32 %v3555_v50, %v3554_v63  ;;  %v3559_v18 = vrot.slane %v3554_v63, 4  ;;  %v3540_v6 = vor.u32 %v3538_v43, %v3537_v37  ;;  %v3542_v14 = vrot.slane %v3537_v37, 4 }
 0x261   : > { %v4008_v40 = vsel %vm12072_vm5, %v4003_v27, %v4007_v55  ;;  %v4060_v17 = vrot.slane %v4058_v48, 4  ;;  %v4063_v7 = vrot.slane %v4061_v34, 5  ;;  %v9319_v0 = vcombine.low %v3778_v12, %v12799_v25  ;;  %v12851_v48 = vld [vmem:[#allocation2 + $0x80] sm:$0x1] }
 0x262   : > { %v3558_v5 = vsel %vm12406_vm10, %v3550_v13, %v3557_v4  ;;  %v3724_v46 = vsel %vm12412_vm11, %v3559_v18, %v3723_v15  ;;  %v3541_v51 = vsel %vm12406_vm10, %v3533_v20, %v3540_v6  ;;  %v3717_v3 = vsel %vm12412_vm11, %v3542_v14, %v3716_v24  ;;  %v12855_v18 = vld [vmem:[#allocation2 + $0xa0] sm:$0xf] }
 0x263   : > { %3722 = vst.msk [vmem:[#allocation2 + $0xc4] sm:$0xf] %vm3133_vm1, %v3558_v5  ;;  %3725 = vst [vmem:[#allocation2 + $0xc8] sm:$0x1] %v3724_v46  ;;  %v9280_v8 = vcombine.low %v3998_v60, %v4008_v40  ;;  %10525 = vmatprep.mubr.msk.bf16.mxu0 %vm363_vm0, %v9319_v0  ;;  %v4016_v1 = vor.u32 %v12767_v26, %v12765_v22  ;;  %v4019_v13 = vshll.u32 %v12736_v16, 16  ;;  %v4025_v23 = vrot.slane %v4023_v38, 4 }
 0x264   : > { %3715 = vst.msk [vmem:[#allocation2 + $0xb8] sm:$0xf] %vm3133_vm1, %v3541_v51  ;;  %3718 = vst [vmem:[#allocation2 + $0xbc] sm:$0x1] %v3717_v3  ;;  %v4029_v44 = vshll.u32 %v12807_v10, 16  ;;  %v4082_v45 = vshrl.u32 %v3780_v29, 16  ;;  %v9320_v36 = vcombine.low %v3780_v29, %v12812_v32  ;;  %v4040_v22 = vor.u32 %v12785_v47, %v12783_v28 }
 0x265   : > { %v4085_v33 = vshll.u32 %v3780_v29, 16  ;;  %v4095_v62 = vshrl.u32 %v12812_v32, 16  ;;  %10478 = vmatmul.mubr.msk.bf16.gmra.mxu1 %vm363_vm0, %v9280_v8  ;;  %v4017_v42 = vrot.slane %v4016_v1, 4  ;;  %v4021_v39 = vrot.slane %v4019_v13, 5  ;;  %v3782_v26 = vld [vmem:[#allocation2 + $0x90] sm:$0xf] }
 0x266   : > { %v4031_v12 = vrot.slane %v4029_v44, 5  ;;  %v4084_v38 = vrot.slane %v4082_v45, 4  ;;  %v4043_v50 = vshll.u32 %v12763_v35, 16  ;;  %10526 = vmatmul.mubr.msk.bf16.gmra.mxu0 %vm363_vm0, %v9320_v36  ;;  %v4041_v20 = vrot.slane %v4040_v22, 4  ;;  %v12869_v44 = vld [vmem:[#allocation2 + $0x8c] sm:$0x1] }
 0x267   : > { %v4087_v21 = vrot.slane %v4085_v33, 5  ;;  %v4022_v43 = vsel %vm12072_vm5, %v4017_v42, %v4021_v39  ;;  %v4026_v57 = vor.u32 %v4025_v23, %v4021_v39  ;;  %v4049_v60 = vrot.slane %v4047_v54, 4  ;;  %v3784_v54 = vld [vmem:[#allocation2 + $0x9c] sm:$0xf]  ;;  %v3786_v33 = vld [vmem:[#allocation2 + $0xa8] sm:$0xf] }
 0x268   : > { %v4045_v9 = vrot.slane %v4043_v50, 5  ;;  %v4053_v28 = vshll.u32 %v12832_v31, 16  ;;  %v4106_v47 = vshrl.u32 %v3782_v26, 16  ;;  %v4109_v63 = vshll.u32 %v3782_v26, 16  ;;  %v12873_v22 = vld [vmem:[#allocation2 + $0xac] sm:$0xf] }
 0x269   : > { %v4027_v15 = vrot.slane %v4026_v57, 4  ;;  %v4119_v37 = vshrl.u32 %v12841_v53, 16  ;;  %v9321_v55 = vcombine.low %v3782_v26, %v12841_v53  ;;  %v4064_v49 = vor.u32 %v4063_v7, %v4060_v17  ;;  %v12877_v57 = vld [vmem:[#allocation2 + $0x98] sm:$0x1] }
 0x26a   : > { %v4046_v24 = vsel %vm12072_vm5, %v4041_v20, %v4045_v9  ;;  %v4050_v27 = vor.u32 %v4049_v60, %v4045_v9  ;;  %v4055_v34 = vrot.slane %v4053_v28, 5  ;;  %v4108_v4 = vrot.slane %v4106_v47, 4  ;;  %v3788_v20 = vld [vmem:[#allocation2 + $0xb4] sm:$0xf] }
 0x26b   : > { %v4032_v6 = vsel %vm12072_vm5, %v4027_v15, %v4031_v12  ;;  %v4111_v14 = vrot.slane %v4109_v63, 5  ;;  %10529 = vmatprep.mubr.msk.bf16.mxu0 %vm363_vm0, %v9321_v55  ;;  %v4065_v40 = vrot.slane %v4064_v49, 4  ;;  %v4067_v0 = vshll.u32 %v12799_v25, 16 }
 0x26c   : > { %v9281_v29 = vcombine.low %v4022_v43, %v4032_v6  ;;  %v4051_v17 = vrot.slane %v4050_v27, 4  ;;  %v4073_v7 = vrot.slane %v4071_v30, 4  ;;  %v4077_v5 = vshll.u32 %v12851_v48, 16  ;;  %v12885_v27 = vld [vmem:[#allocation2 + $0xb8] sm:$0xf] }
 0x26d   : > { %v4069_v46 = vrot.slane %v4067_v0, 5  ;;  %v4130_v51 = vshrl.u32 %v3784_v54, 16  ;;  %v4133_v3 = vshll.u32 %v3784_v54, 16  ;;  %v4143_v8 = vshrl.u32 %v12855_v18, 16 }
 0x26e   : > { %10481 = vmatprep.mubr.msk.bf16.mxu1 %vm363_vm0, %v9281_v29  ;;  %v4056_v1 = vsel %vm12072_vm5, %v4051_v17, %v4055_v34  ;;  %v4079_v13 = vrot.slane %v4077_v5, 5  ;;  %v9322_v23 = vcombine.low %v3784_v54, %v12855_v18  ;;  %v4088_v45 = vor.u32 %v4087_v21, %v4084_v38 }
 0x26f   : > { %v9282_v30 = vcombine.low %v4046_v24, %v4056_v1  ;;  %v4070_v42 = vsel %vm12072_vm5, %v4065_v40, %v4069_v46  ;;  %v4074_v39 = vor.u32 %v4073_v7, %v4069_v46  ;;  %v4132_v36 = vrot.slane %v4130_v51, 4 }
 0x270   : > { %v4135_v26 = vrot.slane %v4133_v3, 5  ;;  %10530 = vmatmul.mubr.msk.bf16.gmra.mxu0 %vm363_vm0, %v9322_v23  ;;  %v4089_v12 = vrot.slane %v4088_v45, 4  ;;  %v4091_v50 = vshll.u32 %v12812_v32, 16  ;;  %v4097_v43 = vrot.slane %v4095_v62, 4 }
 0x271   : > { %10482 = vmatmul.mubr.msk.bf16.gmra.mxu1 %vm363_vm0, %v9282_v30  ;;  %v4075_v38 = vrot.slane %v4074_v39, 4  ;;  %v4101_v21 = vshll.u32 %v12869_v44, 16  ;;  %v4154_v60 = vshrl.u32 %v3786_v33, 16  ;;  %v4157_v9 = vshll.u32 %v3786_v33, 16  ;;  %v12901_v39 = vld [vmem:[#allocation2 + $0xb0] sm:$0x1] }
 0x272   : > { %v4093_v28 = vrot.slane %v4091_v50, 5  ;;  %v4167_v47 = vshrl.u32 %v12873_v22, 16  ;;  %v9323_v63 = vcombine.low %v3786_v33, %v12873_v22  ;;  %v4112_v15 = vor.u32 %v4111_v14, %v4108_v4 }
 0x273   : > { %v4080_v55 = vsel %vm12072_vm5, %v4075_v38, %v4079_v13  ;;  %v4103_v62 = vrot.slane %v4101_v21, 5  ;;  %v4156_v49 = vrot.slane %v4154_v60, 4  ;;  %v4159_v24 = vrot.slane %v4157_v9, 5  ;;  %v12895_v13 = vld [vmem:[#allocation2 + $0xa4] sm:$0x1] }
 0x274   : > { %v9283_v34 = vcombine.low %v4070_v42, %v4080_v55  ;;  %v4094_v54 = vsel %vm12072_vm5, %v4089_v12, %v4093_v28  ;;  %v4098_v6 = vor.u32 %v4097_v43, %v4093_v28  ;;  %10533 = vmatprep.mubr.msk.bf16.mxu0 %vm363_vm0, %v9323_v63  ;;  %v4113_v40 = vrot.slane %v4112_v15, 4 }
 0x275   : > { %v4115_v0 = vshll.u32 %v12841_v53, 16  ;;  %v4121_v29 = vrot.slane %v4119_v37, 4  ;;  %v4125_v4 = vshll.u32 %v12877_v57, 16  ;;  %v4178_v14 = vshrl.u32 %v3788_v20, 16  ;;  %v10894_v37 = vld [vmem:[#allocation2 + $0xc] sm:$0xff]  }
 0x276   : > { %10485 = vmatprep.mubr.msk.bf16.mxu1 %vm363_vm0, %v9283_v34  ;;  %v4099_v17 = vrot.slane %v4098_v6, 4  ;;  %v4181_v7 = vshll.u32 %v3788_v20, 16  ;;  %v4191_v5 = vshrl.u32 %v12885_v27, 16  ;;  %v9324_v46 = vcombine.low %v3788_v20, %v12885_v27  ;;  %v12912_v34 = vld [vmem:[#allocation2 + $0xbc] sm:$0x1] }
 0x277   : > { %v4117_v51 = vrot.slane %v4115_v0, 5  ;;  %v4127_v3 = vrot.slane %v4125_v4, 5  ;;  %v4180_v1 = vrot.slane %v4178_v14, 4  ;;  %v4136_v23 = vor.u32 %v4135_v26, %v4132_v36  ;;  %v10896_v4 = vld [vmem:[#allocation2 + $0x18] sm:$0xff]  }
 0x278   : > { %v4104_v45 = vsel %vm12072_vm5, %v4099_v17, %v4103_v62  ;;  %v4183_v33 = vrot.slane %v4181_v7, 5  ;;  %10534 = vmatmul.mubr.msk.bf16.gmra.mxu0 %vm363_vm0, %v9324_v46  ;;  %v4139_v30 = vshll.u32 %v12855_v18, 16  ;;  %v4145_v42 = vrot.slane %v4143_v8, 4  ;;  %v10914_v7 = vld [vmem:[%s15032_s3 + $0xb0] sm:$0xff]  }
 0x279   : > { %v9284_v12 = vcombine.low %v4094_v54, %v4104_v45  ;;  %v4118_v50 = vsel %vm12072_vm5, %v4113_v40, %v4117_v51  ;;  %v4122_v43 = vor.u32 %v4121_v29, %v4117_v51  ;;  %v4137_v20 = vrot.slane %v4136_v23, 4  ;;  %10585 = vmatprep.mubr.msk.bf16.mxu0 %vm363_vm0, %v10894_v37  ;;  %v4804_v54 = vld [vmem:[#allocation2] sm:$0xe]  ;;  %v10949_v45 = vld [vmem:[#allocation2 + $0x4] sm:$0xf] }
 0x27a   : > { %v4141_v36 = vrot.slane %v4139_v30, 5  ;;  %v4149_v26 = vshll.u32 %v12895_v13, 16  ;;  %v4160_v38 = vor.u32 %v4159_v24, %v4156_v49  ;;  %v4163_v21 = vshll.u32 %v12873_v22, 16  ;;  %v10950_v30 = vld [vmem:[#allocation2 + $0x8] sm:$0x1] }
 0x27b   : > { %10486 = vmatmul.mubr.msk.bf16.gmra.mxu1 %vm363_vm0, %v9284_v12  ;;  %v4123_v60 = vrot.slane %v4122_v43, 4  ;;  %v4169_v8 = vrot.slane %v4167_v47, 4  ;;  %v4173_v9 = vshll.u32 %v12901_v39, 16  ;;  %v4184_v28 = vor.u32 %v4183_v33, %v4180_v1  ;;  %v4805_v47 = vld [vmem:[#allocation2 + $0xc] sm:$0xe]  ;;  %v10897_v1 = vld [vmem:[#allocation2 + $0x24] sm:$0xff]  }
 0x27c   : > { %v4142_v63 = vsel %vm12072_vm5, %v4137_v20, %v4141_v36  ;;  %v4146_v15 = vor.u32 %v4145_v42, %v4141_v36  ;;  %v4151_v55 = vrot.slane %v4149_v26, 5  ;;  %v4161_v62 = vrot.slane %v4160_v38, 4  ;;  %v4806_v12 = vld [vmem:[#allocation2 + $0x18] sm:$0xe] }
 0x27d   : > { %v4128_v49 = vsel %vm12072_vm5, %v4123_v60, %v4127_v3  ;;  %v4165_v24 = vrot.slane %v4163_v21, 5  ;;  %v4175_v6 = vrot.slane %v4173_v9, 5  ;;  %v12916_v40 = vrot.slane %v4184_v28, 4  ;;  %v10916_v9 = vld [vmem:[%s15032_s3 + $0xa8] sm:$0xff]   ;;  %v10951_v28 = vld [vmem:[#allocation2 + $0x10] sm:$0xf] }
 0x27e   : > { %v9285_v0 = vcombine.low %v4118_v50, %v4128_v49  ;;  %v4147_v29 = vrot.slane %v4146_v15, 4  ;;  %v4187_v14 = vshll.u32 %v12885_v27, 16  ;;  %v4193_v17 = vrot.slane %v4191_v5, 4  ;;  %v10952_v15 = vld [vmem:[#allocation2 + $0x14] sm:$0x1] }
 0x27f   : > { %v4166_v46 = vsel %vm12072_vm5, %v4161_v62, %v4165_v24  ;;  %v4170_v51 = vor.u32 %v4169_v8, %v4165_v24  ;;  %v4197_v3 = vshll.u32 %v12912_v34, 16  ;;  %v9345_v23 = vrot.slane %v4804_v54, 9  ;;  %v4807_v54 = vld [vmem:[#allocation2 + $0x24] sm:$0xe] }
 0x280   : > { %10489 = vmatprep.mubr.msk.bf16.mxu1 %vm363_vm0, %v9285_v0  ;;  %v4152_v37 = vsel %vm12072_vm5, %v4147_v29, %v4151_v55  ;;  %10586 = vmatmul.mubr.msk.bf16.vlgmr.msra.gmra.mxu0 %vm363_vm0, %v10896_v4  ;;  %v4189_v5 = vrot.slane %v4187_v14, 5  ;;  %v4857_v33 = vrot.slane %v10949_v45, 5  ;;  %v4860_v42 = vrot.slane %v10950_v30, 5  ;;  %v10954_v14 = vld [vmem:[#allocation2 + $0x20] sm:$0x1] }
 0x281   : > { %v9286_v50 = vcombine.low %v4142_v63, %v4152_v37  ;;  %v4171_v43 = vrot.slane %v4170_v51, 4  ;;  %v4199_v20 = vrot.slane %v4197_v3, 5  ;;  %10589 = vmatprep.mubr.msk.bf16.mxu0 %vm363_vm0, %v10897_v1  ;;  %v9346_v26 = vrot.slane %v4805_v47, 9  ;;  %10658 = vmatpush3.bf16.msra.mxu0 %v12640_v61  ;;  %v10953_v47 = vld [vmem:[#allocation2 + $0x1c] sm:$0xf]  ;;  %v10898_v3 = vld [vmem:[#allocation2 + $0x30] sm:$0xff]  }
 0x282   : > { %v4190_v38 = vsel %vm12072_vm5, %v12916_v40, %v4189_v5  ;;  %v4194_v21 = vor.u32 %v4193_v17, %v4189_v5  ;;  %v12942_v60 = vsel %vm12932_vm14, %v9345_v23, %v4857_v33  ;;  %v4859_v8 = vrot.slane %v4857_v33, 4  ;;  %10659 = vmatprep.subr.bf16.mxu0 %v10914_v7  ;;  %v4808_v51 = vld [vmem:[#allocation2 + $0x30] sm:$0xe]  ;;  %v10918_v5 = vld [vmem:[%s15032_s3 + $0xa0] sm:$0xff]   ;;  %v10955_v30 = vld [vmem:[#allocation2 + $0x28] sm:$0xf] }
 0x283   : > { %10490 = vmatmul.mubr.msk.bf16.gmra.mxu1 %vm363_vm0, %v9286_v50  ;;  %v4176_v61 = vsel %vm12072_vm5, %v4171_v43, %v4175_v6  ;;  %v4864_v63 = vrot.slane %v10951_v28, 5  ;;  %v4867_v55 = vrot.slane %v10952_v15, 5  ;;  %v9347_v62 = vrot.slane %v4806_v12, 9  ;;  %v10899_v33 = vld [vmem:[#allocation2 + $0x3c] sm:$0xff]  }
 0x284   : > { %v9287_v49 = vcombine.low %v4166_v46, %v4176_v61  ;;  %v4195_v24 = vrot.slane %v4194_v21, 4  ;;  %v4861_v40 = vsel %vm12932_vm14, %v4859_v8, %v4860_v42  ;;  %v4871_v0 = vrot.slane %v10953_v47, 5  ;;  %v4809_v50 = vld [vmem:[#allocation2 + $0x3c] sm:$0xe]  ;;  %v4811_v47 = vld [vmem:[#allocation2 + $0x54] sm:$0xe] }
 0x285   : > { %v9369_v29 = vcombine.low %v12942_v60, %v4861_v40  ;;  %v12955_v4 = vsel %vm12932_vm14, %v9346_v26, %v4864_v63  ;;  %v4866_v6 = vrot.slane %v4864_v63, 4  ;;  %v4874_v17 = vrot.slane %v10954_v14, 5  ;;  %10660 = vmatpush3.bf16.msra.mxu0 %v10914_v7  ;;  %v4810_v60 = vld [vmem:[#allocation2 + $0x48] sm:$0xe] }
 0x286   : > { %10493 = vmatprep.mubr.msk.bf16.mxu1 %vm363_vm0, %v9287_v49  ;;  %v4200_v46 = vsel %vm12072_vm5, %v4195_v24, %v4199_v20  ;;  %v12962_v1 = vsel %vm12932_vm14, %v9347_v62, %v4871_v0  ;;  %v4873_v23 = vrot.slane %v4871_v0, 4  ;;  %v9348_v37 = vrot.slane %v4807_v54, 9  ;;  %10661 = vmatprep.subr.bf16.mxu0 %v10916_v9  ;;  %v10957_v62 = vld [vmem:[#allocation2 + $0x40] sm:$0xf]  ;;  %v12994_v49 = vld [vmem:[%s15032_s3 + $0xf8] sm:$0xff]  }
 0x287   : > { %v9288_v45 = vcombine.low %v4190_v38, %v4200_v46  ;;  %v12969_v7 = vsel %vm12932_vm14, %v4866_v6, %v4867_v55  ;;  %v4878_v42 = vrot.slane %v10955_v30, 5  ;;  %v4881_v12 = vrot.slane %v12642_v11, 5  ;;  %v10956_v38 = vld [vmem:[#allocation2 + $0x34] sm:$0xf]  ;;  %v4813_v30 = vld [vmem:[#allocation2 + $0x6c] sm:$0xe] }
 0x288   : > { %10590 = vmatmul.mubr.msk.bf16.gmra.mxu0 %vm363_vm0, %v10898_v3  ;;  %v9370_v43 = vcombine.low %v12955_v4, %v12969_v7  ;;  %v12977_v20 = vsel %vm12932_vm14, %v4873_v23, %v4874_v17  ;;  %v9349_v26 = vrot.slane %v4808_v51, 9  ;;  %v4885_v21 = vrot.slane %v10956_v38, 5  ;;  %v4812_v51 = vld [vmem:[#allocation2 + $0x60] sm:$0xe]  ;;  %v10901_v3 = vld [vmem:[#allocation2 + $0x48] sm:$0xff]  }
 0x289   : > { %10593 = vmatprep.mubr.msk.bf16.mxu0 %vm363_vm0, %v10899_v33  ;;  %v9371_v8 = vcombine.low %v12962_v1, %v12977_v20  ;;  %v12984_v11 = vsel %vm12932_vm14, %v9348_v37, %v4878_v42  ;;  %v4880_v61 = vrot.slane %v4878_v42, 4  ;;  %v4888_v28 = vrot.slane %v12680_v59, 5  ;;  %10662 = vmatpush3.bf16.msra.mxu0 %v10916_v9  ;;  %v10902_v42 = vld [vmem:[#allocation2 + $0x54] sm:$0xff]   ;;  %v10910_v20 = vld [vmem:[%s15032_s3 + $0x88] sm:$0xff]  }
 0x28a   : > { %v12989_v63 = vsel %vm12932_vm14, %v9349_v26, %v4885_v21  ;;  %v4887_v15 = vrot.slane %v4885_v21, 4  ;;  %v9350_v55 = vrot.slane %v4809_v50, 9  ;;  %v4892_v54 = vrot.slane %v10957_v62, 5  ;;  %10663 = vmatprep.subr.bf16.mxu0 %v10918_v5  ;;  %v4814_v26 = vld [vmem:[#allocation2 + $0x78] sm:$0xe] }
 0x28b   : > { %10494 = vmatmul.mubr.msk.bf16.gmra.mxu1 %vm363_vm0, %v9288_v45  ;;  %v12999_v59 = vsel %vm12932_vm14, %v4880_v61, %v4881_v12  ;;  %v4895_v9 = vrot.slane %v12725_v19, 5  ;;  %v9351_v24 = vrot.slane %v4810_v60, 9  ;;  %v4899_v40 = vrot.slane %v12660_v52, 5  ;;  %v10905_v60 = vld [vmem:[%s15032_s3 + $0x90] sm:$0xff]  }
 0x28c   : > { %10545 = vmatprep.mubr.msk.bf16.mxu1 %vm363_vm0, %v9369_v29  ;;  %v9372_v0 = vcombine.low %v12984_v11, %v12999_v59  ;;  %v13008_v6 = vsel %vm12932_vm14, %v4887_v15, %v4888_v28  ;;  %v13012_v14 = vsel %vm12932_vm14, %v9350_v55, %v4892_v54  ;;  %v4894_v17 = vrot.slane %v4892_v54, 4 }
 0x28d   : > { %v9373_v19 = vcombine.low %v12989_v63, %v13008_v6  ;;  %v13018_v52 = vsel %vm12932_vm14, %v9351_v24, %v4899_v40  ;;  %v4901_v29 = vrot.slane %v4899_v40, 4  ;;  %v4902_v46 = vrot.slane %v12751_v56, 5  ;;  %10664 = vmatpush3.bf16.msra.mxu0 %v10918_v5 }
 0x28e   : > { %v13023_v23 = vsel %vm12932_vm14, %v4894_v17, %v4895_v9  ;;  %v9352_v37 = vrot.slane %v4811_v47, 9  ;;  %v4906_v45 = vrot.slane %v12705_v58, 5  ;;  %v4909_v33 = vrot.slane %v12788_v41, 5  ;;  %10737 = vmatprep.subr.bf16.mxu0 %v12994_v49  ;;  %v4815_v9 = vld [vmem:[#allocation2 + $0x84] sm:$0xe] }
 0x28f   : > { %v9374_v12 = vcombine.low %v13012_v14, %v13023_v23  ;;  %v13032_v56 = vsel %vm12932_vm14, %v4901_v29, %v4902_v46  ;;  %v9353_v5 = vrot.slane %v4812_v51, 9  ;;  %v4913_v50 = vrot.slane %v12736_v16, 5  ;;  %v4816_v47 = vld [vmem:[#allocation2 + $0x90] sm:$0xe]  ;;  %v6429_v51 = vld [vmem:[#allocation2 + $0xc] sm:$0xe] }
 0x290   : > { %10594 = vmatmul.mubr.msk.bf16.gmra.mxu0 %vm363_vm0, %v10901_v3  ;;  %v9375_v58 = vcombine.low %v13018_v52, %v13032_v56  ;;  %v13040_v41 = vsel %vm12932_vm14, %v9352_v37, %v4906_v45  ;;  %v4908_v38 = vrot.slane %v4906_v45, 4  ;;  %v4916_v21 = vrot.slane %v12807_v10, 5  ;;  %v4817_v3 = vld [vmem:[#allocation2 + $0x9c] sm:$0xe]  ;;  %v10903_v37 = vld [vmem:[#allocation2 + $0x60] sm:$0xff]  }
 0x291   : > { %10597 = vmatprep.mubr.msk.bf16.mxu0 %vm363_vm0, %v10902_v42  ;;  %v13049_v16 = vsel %vm12932_vm14, %v9353_v5, %v4913_v50  ;;  %v4915_v61 = vrot.slane %v4913_v50, 4  ;;  %v9354_v28 = vrot.slane %v4813_v30, 9  ;;  %v4920_v15 = vrot.slane %v12763_v35, 5  ;;  %v13102_v42 = vld [vmem:[#allocation2 + $0x10] sm:$0xf] }
 0x292   : > { %v13054_v55 = vsel %vm12932_vm14, %v4908_v38, %v4909_v33  ;;  %v4923_v10 = vrot.slane %v12832_v31, 5  ;;  %v9355_v62 = vrot.slane %v4814_v26, 9  ;;  %v4927_v54 = vrot.slane %v12799_v25, 5  ;;  %v10958_v25 = vld [vmem:[%s15032_s3 + $0x98] sm:$0xff]   ;;  %v10904_v5 = vld [vmem:[#allocation2 + $0x6c] sm:$0xff]  }
 0x293   : > { %10546 = vmatmul.mubr.msk.bf16.vlgmr.msra.gmra.mxu1 %vm363_vm0, %v9370_v43  ;;  %v9376_v24 = vcombine.low %v13040_v41, %v13054_v55  ;;  %v13066_v35 = vsel %vm12932_vm14, %v4915_v61, %v4916_v21  ;;  %v13070_v40 = vsel %vm12932_vm14, %v9354_v28, %v4920_v15  ;;  %v4922_v31 = vrot.slane %v4920_v15, 4  ;;  %v13117_v28 = vld [vmem:[#allocation2 + $0x14] sm:$0x1] }
 0x294   : > { %10549 = vmatprep.mubr.msk.bf16.mxu1 %vm363_vm0, %v9371_v8  ;;  %10618 = vmatpush3.bf16.msra.mxu1 %v10958_v25  ;;  %v9377_v4 = vcombine.low %v13049_v16, %v13066_v35  ;;  %v13083_v7 = vsel %vm12932_vm14, %v9355_v62, %v4927_v54  ;;  %v4929_v43 = vrot.slane %v4927_v54, 4  ;;  %v4930_v17 = vrot.slane %v12851_v48, 5  ;;  %v4818_v54 = vld [vmem:[#allocation2 + $0xa8] sm:$0xe]  ;;  %v6430_v25 = vld [vmem:[#allocation2 + $0x18] sm:$0xe] }
 0x295   : > { %10619 = vmatprep.subr.bf16.mxu1 %v10905_v60  ;;  %v13088_v1 = vsel %vm12932_vm14, %v4922_v31, %v4923_v10  ;;  %v9356_v8 = vrot.slane %v4815_v9, 9  ;;  %v4934_v29 = vrot.slane %v12812_v32, 5  ;;  %v4937_v46 = vrot.slane %v12869_v44, 5 }
 0x296   : > { %v9378_v48 = vcombine.low %v13070_v40, %v13088_v1  ;;  %v13099_v45 = vsel %vm12932_vm14, %v4929_v43, %v4930_v17  ;;  %v9357_v33 = vrot.slane %v4816_v47, 9  ;;  %v4941_v30 = vrot.slane %v12841_v53, 5  ;;  %v13139_v47 = vld [vmem:[#allocation2 + $0x1c] sm:$0xf]  ;;  %v6435_v40 = vld [vmem:[#allocation2 + $0x54] sm:$0xe] }
 0x297   : > { %v9379_v32 = vcombine.low %v13083_v7, %v13099_v45  ;;  %v13108_v44 = vsel %vm12932_vm14, %v9356_v8, %v4934_v29  ;;  %v4936_v50 = vrot.slane %v4934_v29, 4  ;;  %v4944_v26 = vrot.slane %v12877_v57, 5  ;;  %v13152_v29 = vld [vmem:[#allocation2 + $0x20] sm:$0x1]  ;;  %v5687_v1 = vld [vmem:[#allocation2 + $0x3c] sm:$0xf] }
 0x298   : > { %10598 = vmatmul.mubr.msk.bf16.gmra.mxu0 %vm363_vm0, %v10903_v37  ;;  %10620 = vmatpush3.bf16.msra.mxu1 %v10905_v60  ;;  %v13114_v38 = vsel %vm12932_vm14, %v9357_v33, %v4941_v30  ;;  %v4943_v53 = vrot.slane %v4941_v30, 4  ;;  %v9358_v21 = vrot.slane %v4817_v3, 9  ;;  %v4948_v61 = vrot.slane %v12855_v18, 5  ;;  %v10917_v60 = vld [vmem:[%s15032_s3 + $0x80] sm:$0xff]   ;;  %v4819_v37 = vld [vmem:[#allocation2 + $0xb4] sm:$0xe] }
 0x299   : > { %10601 = vmatprep.mubr.msk.bf16.mxu0 %vm363_vm0, %v10904_v5  ;;  %10621 = vmatprep.subr.bf16.mxu1 %v10910_v20  ;;  %v13122_v15 = vsel %vm12932_vm14, %v4936_v50, %v4937_v46  ;;  %v4951_v57 = vrot.slane %v12895_v13, 5  ;;  %v9493_v10 = vrot.slane %v6429_v51, 9  ;;  %v6495_v62 = vrot.slane %v13102_v42, 5  ;;  %v6431_v46 = vld [vmem:[#allocation2 + $0x24] sm:$0xe] }
 0x29a   : > { %v9380_v18 = vcombine.low %v13108_v44, %v13122_v15  ;;  %v13133_v9 = vsel %vm12932_vm14, %v4943_v53, %v4944_v26  ;;  %v13137_v31 = vsel %vm12932_vm14, %v9358_v21, %v4948_v61  ;;  %v4950_v13 = vrot.slane %v4948_v61, 4  ;;  %v10907_v53 = vld [vmem:[#allocation2 + $0x84] sm:$0xff]  }
 0x29b   : > { %10550 = vmatmul.mubr.msk.bf16.gmra.mxu1 %vm363_vm0, %v9372_v0  ;;  %v9381_v43 = vcombine.low %v13114_v38, %v13133_v9  ;;  %v13149_v17 = vsel %vm12932_vm14, %v9493_v10, %v6495_v62  ;;  %v6497_v51 = vrot.slane %v6495_v62, 4  ;;  %v6498_v8 = vrot.slane %v13117_v28, 5  ;;  %v13190_v62 = vld [vmem:[#allocation2 + $0x2c] sm:$0x1]  ;;  %v10915_v7 = vld [vmem:[#allocation2 + $0xc0] sm:$0xff]  }
 0x29c   : > { %10553 = vmatprep.mubr.msk.bf16.mxu1 %vm363_vm0, %v9373_v19  ;;  %10622 = vmatpush3.bf16.msra.mxu1 %v10910_v20  ;;  %v13160_v11 = vsel %vm12932_vm14, %v4950_v13, %v4951_v57  ;;  %v9359_v59 = vrot.slane %v4818_v54, 9  ;;  %v4955_v0 = vrot.slane %v12873_v22, 5  ;;  %v4958_v3 = vrot.slane %v12901_v39, 5  ;;  %v13171_v20 = vld [vmem:[#allocation2 + $0x28] sm:$0xf]  ;;  %v13176_v22 = vld [vmem:[%s15032_s3 + $0xd8] sm:$0xff]  }
 0x29d   : > { %10623 = vmatprep.subr.bf16.mxu1 %v10917_v60  ;;  %v13168_v63 = vsel %vm12932_vm14, %v6497_v51, %v6498_v8  ;;  %v9494_v6 = vrot.slane %v6430_v25, 9  ;;  %v6502_v19 = vrot.slane %v13139_v47, 5  ;;  %v10906_v39 = vld [vmem:[#allocation2 + $0x78] sm:$0xff]   ;;  %v6505_v26 = vrot.slane %v13152_v29, 5  ;;  %v5675_v8 = vld [vmem:[#allocation2 + $0xc] sm:$0xf] }
 0x29e   : > { %v9517_v30 = vcombine.low %v13149_v17, %v13168_v63  ;;  %v13182_v5 = vsel %vm12932_vm14, %v9359_v59, %v4955_v0  ;;  %v4957_v50 = vrot.slane %v4955_v0, 4  ;;  %v9360_v57 = vrot.slane %v4819_v37, 9 }
 0x29f   : > { %v13187_v21 = vsel %vm12932_vm14, %v9494_v6, %v6502_v19  ;;  %v6504_v61 = vrot.slane %v6502_v19, 4  ;;  %v4962_v10 = vrot.slane %v12885_v27, 5  ;;  %v4965_v13 = vrot.slane %v12912_v34, 5  ;;  %v6432_v6 = vld [vmem:[#allocation2 + $0x30] sm:$0xe] }
 0x2a0   : > { %10602 = vmatmul.mubr.msk.bf16.gmra.mxu0 %vm363_vm0, %v10906_v39  ;;  %v13195_v54 = vsel %vm12932_vm14, %v4957_v50, %v4958_v3  ;;  %10624 = vmatpush3.bf16.msra.mxu1 %v10917_v60  ;;  %v9495_v25 = vrot.slane %v6431_v46, 9  ;;  %v6509_v51 = vrot.slane %v13171_v20, 5  ;;  %v6512_v37 = vrot.slane %v13190_v62, 5 }
 0x2a1   : > { %10605 = vmatprep.mubr.msk.bf16.mxu0 %vm363_vm0, %v10907_v53  ;;  %v13204_v59 = vsel %vm12932_vm14, %v6504_v61, %v6505_v26  ;;  %v13208_v0 = vsel %vm12932_vm14, %v9360_v57, %v4962_v10  ;;  %v4964_v60 = vrot.slane %v4962_v10, 4  ;;  %10697 = vmatprep.subr.bf16.mxu1 %v13176_v22  ;;  %v5724_v39 = vshrl.u32 %v5675_v8, 16  ;;  %v13227_v53 = vld [vmem:[#allocation2 + $0x34] sm:$0xf]  ;;  %v13241_v57 = vld [vmem:[#allocation2 + $0x38] sm:$0x1] }
 0x2a2   : > { %v9518_v34 = vcombine.low %v13187_v21, %v13204_v59  ;;  %v13215_v46 = vsel %vm12932_vm14, %v9495_v25, %v6509_v51  ;;  %v6511_v3 = vrot.slane %v6509_v51, 4  ;;  %v5727_v50 = vshll.u32 %v5675_v8, 16  ;;  %v5678_v10 = vld [vmem:[#allocation2 + $0x18] sm:$0xf]  ;;  %v10908_v25 = vld [vmem:[#allocation2 + $0x90] sm:$0xff]  }
 0x2a3   : > { %10554 = vmatmul.mubr.msk.bf16.gmra.mxu1 %vm363_vm0, %v9374_v12  ;;  %v13224_v19 = vsel %vm12932_vm14, %v4964_v60, %v4965_v13  ;;  %v5733_v26 = vshll.u32 %v13102_v42, 16  ;;  %v5737_v12 = vshrl.u32 %v13102_v42, 16  ;;  %v5743_v61 = vshll.u32 %v13117_v28, 16  ;;  %v13255_v13 = vld [vmem:[#allocation2 + $0x40] sm:$0xf] }
 0x2a4   : > { %10557 = vmatprep.mubr.msk.bf16.mxu1 %vm363_vm0, %v9375_v58  ;;  %v13237_v23 = vsel %vm12932_vm14, %v6511_v3, %v6512_v37  ;;  %v5726_v52 = vrot.slane %v5724_v39, 4  ;;  %v5729_v56 = vrot.slane %v5727_v50, 5  ;;  %v9496_v60 = vrot.slane %v6432_v6, 9  ;;  %v10909_v37 = vld [vmem:[#allocation2 + $0x9c] sm:$0xff]  }
 0x2a5   : > { %v5735_v58 = vrot.slane %v5733_v26, 5  ;;  %v5739_v51 = vrot.slane %v5737_v12, 4  ;;  %v5745_v8 = vrot.slane %v5743_v61, 5  ;;  %v6516_v3 = vrot.slane %v13227_v53, 5  ;;  %v6433_v12 = vld [vmem:[#allocation2 + $0x3c] sm:$0xe] }
 0x2a6   : > { %v5730_v14 = vor.u32 %v5729_v56, %v5726_v52  ;;  %v6519_v42 = vrot.slane %v13241_v57, 5  ;;  %v5748_v28 = vshrl.u32 %v5678_v10, 16  ;;  %v5751_v27 = vshll.u32 %v5678_v10, 16 }
 0x2a7   : > { %v5740_v33 = vor.u32 %v5739_v51, %v5735_v58  ;;  %v13250_v39 = vsel %vm12932_vm14, %v9496_v60, %v6516_v3  ;;  %v6518_v50 = vrot.slane %v6516_v3, 4  ;;  %v5757_v26 = vshll.u32 %v13139_v47, 16  ;;  %v13262_v3 = vld [vmem:[#allocation2 + $0x44] sm:$0x1] }
 0x2a8   : > { %10606 = vmatmul.mubr.msk.bf16.gmra.mxu0 %vm363_vm0, %v10908_v25  ;;  %v5731_v6 = vrot.slane %v5730_v14, 4  ;;  %v5750_v61 = vrot.slane %v5748_v28, 4  ;;  %v5753_v52 = vrot.slane %v5751_v27, 5  ;;  %v5761_v56 = vshrl.u32 %v13139_v47, 16 }
 0x2a9   : > { %10609 = vmatprep.mubr.msk.bf16.mxu0 %vm363_vm0, %v10909_v37  ;;  %v5741_v10 = vrot.slane %v5740_v33, 4  ;;  %v13259_v25 = vsel %vm12932_vm14, %v6518_v50, %v6519_v42  ;;  %v5759_v51 = vrot.slane %v5757_v26, 5  ;;  %v5767_v60 = vshll.u32 %v13152_v29, 16  ;;  %v5681_v37 = vld [vmem:[#allocation2 + $0x24] sm:$0xf] }
 0x2aa   : > { %v5736_v47 = vsel %vm12072_vm5, %v5731_v6, %v5735_v58  ;;  %v9520_v33 = vcombine.low %v13250_v39, %v13259_v25  ;;  %v5754_v27 = vor.u32 %v5753_v52, %v5750_v61  ;;  %v5763_v14 = vrot.slane %v5761_v56, 4  ;;  %v6434_v26 = vld [vmem:[#allocation2 + $0x48] sm:$0xe]  ;;  %v10913_v52 = vld [vmem:[#allocation2 + $0xb4] sm:$0xff]  }
 0x2ab   : > { %10558 = vmatmul.mubr.msk.bf16.gmra.mxu1 %vm363_vm0, %v9376_v24  ;;  %v5746_v29 = vsel %vm12072_vm5, %v5741_v10, %v5745_v8  ;;  %v5769_v41 = vrot.slane %v5767_v60, 5  ;;  %v9497_v55 = vrot.slane %v6433_v12, 9  ;;  %v6523_v24 = vrot.slane %v13255_v13, 5  ;;  %v10911_v6 = vld [vmem:[#allocation2 + $0xa8] sm:$0xff]   ;;  %v5684_v8 = vld [vmem:[#allocation2 + $0x30] sm:$0xf] }
 0x2ac   : > { %10561 = vmatprep.mubr.msk.bf16.mxu1 %vm363_vm0, %v9377_v4  ;;  %v13279_v42 = vcombine.low %v5736_v47, %v5746_v29  ;;  %v5755_v58 = vrot.slane %v5754_v27, 4  ;;  %v5764_v28 = vor.u32 %v5763_v14, %v5759_v51  ;;  %v6526_v50 = vrot.slane %v13262_v3, 5  ;;  %v13290_v47 = vld [vmem:[#allocation2 + $0x4c] sm:$0xf] }
 0x2ad   : > { %v13284_v16 = vsel %vm12932_vm14, %v9497_v55, %v6523_v24  ;;  %v6525_v35 = vrot.slane %v6523_v24, 4  ;;  %v5772_v4 = vshrl.u32 %v5681_v37, 16  ;;  %v5775_v61 = vshll.u32 %v5681_v37, 16  ;;  %v13298_v55 = vld [vmem:[#allocation2 + $0x50] sm:$0x1] }
 0x2ae   : > { %v5760_v12 = vsel %vm12072_vm5, %v5755_v58, %v5759_v51  ;;  %v5765_v56 = vrot.slane %v5764_v28, 4  ;;  %v5781_v10 = vshll.u32 %v13171_v20, 16  ;;  %v5785_v60 = vshrl.u32 %v13171_v20, 16 }
 0x2af   : > { %v13295_v27 = vsel %vm12932_vm14, %v6525_v35, %v6526_v50  ;;  %v5774_v14 = vrot.slane %v5772_v4, 4  ;;  %v5777_v37 = vrot.slane %v5775_v61, 5  ;;  %v5791_v29 = vshll.u32 %v13190_v62, 16 }
 0x2b0   : > { %10610 = vmatmul.mubr.msk.bf16.gmra.mxu0 %vm363_vm0, %v10911_v6  ;;  %v5770_v51 = vsel %vm12072_vm5, %v5765_v56, %v5769_v41  ;;  %v9521_v20 = vcombine.low %v13284_v16, %v13295_v27  ;;  %v5783_v24 = vrot.slane %v5781_v10, 5  ;;  %v5787_v58 = vrot.slane %v5785_v60, 4 }
 0x2b1   : > { %10613 = vmatprep.mubr.msk.bf16.mxu0 %vm363_vm0, %v10913_v52  ;;  %v13305_v28 = vcombine.low %v5760_v12, %v5770_v51  ;;  %v5778_v50 = vor.u32 %v5777_v37, %v5774_v14  ;;  %v5793_v6 = vrot.slane %v5791_v29, 5  ;;  %v9498_v35 = vrot.slane %v6434_v26, 9  ;;  %v13323_v37 = vld [vmem:[#allocation2 + $0x58] sm:$0xf]  ;;  %v13327_v51 = vld [vmem:[#allocation2 + $0x5c] sm:$0x1] }
 0x2b2   : > { %v5788_v62 = vor.u32 %v5787_v58, %v5783_v24  ;;  %v6530_v4 = vrot.slane %v13290_v47, 5  ;;  %v6533_v41 = vrot.slane %v13298_v55, 5  ;;  %v5796_v61 = vshrl.u32 %v5684_v8, 16 }
 0x2b3   : > { %10562 = vmatmul.mubr.msk.bf16.gmra.mxu1 %vm363_vm0, %v9378_v48  ;;  %v5779_v52 = vrot.slane %v5778_v50, 4  ;;  %v5799_v12 = vshll.u32 %v5684_v8, 16  ;;  %v5805_v26 = vshll.u32 %v13227_v53, 16  ;;  %v5809_v56 = vshrl.u32 %v13227_v53, 16 }
 0x2b4   : > { %10565 = vmatprep.mubr.msk.bf16.mxu1 %vm363_vm0, %v9379_v32  ;;  %v5789_v48 = vrot.slane %v5788_v62, 4  ;;  %v13321_v10 = vsel %vm12932_vm14, %v9498_v35, %v6530_v4  ;;  %v6532_v60 = vrot.slane %v6530_v4, 4  ;;  %v5798_v14 = vrot.slane %v5796_v61, 4 }
 0x2b5   : > { %v5784_v45 = vsel %vm12072_vm5, %v5779_v52, %v5783_v24  ;;  %v5801_v32 = vrot.slane %v5799_v12, 5  ;;  %v5807_v8 = vrot.slane %v5805_v26, 5  ;;  %v5811_v29 = vrot.slane %v5809_v56, 4 }
 0x2b6   : > { %v5794_v53 = vsel %vm12072_vm5, %v5789_v48, %v5793_v6  ;;  %v13333_v58 = vsel %vm12932_vm14, %v6532_v60, %v6533_v41  ;;  %v5815_v50 = vshll.u32 %v13241_v57, 16  ;;  %v9499_v35 = vrot.slane %v6435_v40, 9  ;;  %v13348_v48 = vld [vmem:[#allocation2 + $0x64] sm:$0xf] }
 0x2b7   : > { %v13337_v62 = vcombine.low %v5784_v45, %v5794_v53  ;;  %v9522_v24 = vcombine.low %v13321_v10, %v13333_v58  ;;  %v5802_v4 = vor.u32 %v5801_v32, %v5798_v14  ;;  %v5812_v61 = vor.u32 %v5811_v29, %v5807_v8  ;;  %v6436_v14 = vld [vmem:[#allocation2 + $0x60] sm:$0xe]  ;;  %v5690_v45 = vld [vmem:[#allocation2 + $0x48] sm:$0xf] }
 0x2b8   : > { %10614 = vmatmul.mubr.msk.bf16.gmra.mxu0 %vm363_vm0, %v10915_v7  ;;  %v5817_v6 = vrot.slane %v5815_v50, 5  ;;  %v6537_v41 = vrot.slane %v13323_v37, 5  ;;  %v6540_v57 = vrot.slane %v13327_v51, 5  ;;  %v5820_v52 = vshrl.u32 %v5687_v1, 16  ;;  %v13367_v7 = vld [vmem:[#allocation2 + $0x68] sm:$0x1] }
 0x2b9   : > { %10665 = vmatprep.mubr.msk.bf16.mxu0 %vm363_vm0, %v9517_v30  ;;  %v5803_v12 = vrot.slane %v5802_v4, 4  ;;  %v5813_v26 = vrot.slane %v5812_v61, 4  ;;  %v5823_v56 = vshll.u32 %v5687_v1, 16  ;;  %v5829_v40 = vshll.u32 %v13255_v13, 16  ;;  %v10923_v50 = vld [vmem:[%s15032_s3 + $0xf0] sm:$0xff]  }
 0x2ba   : > { %v13356_v17 = vsel %vm12932_vm14, %v9499_v35, %v6537_v41  ;;  %v6539_v63 = vrot.slane %v6537_v41, 4  ;;  %v5822_v30 = vrot.slane %v5820_v52, 4  ;;  %v5833_v60 = vshrl.u32 %v13255_v13, 16 }
 0x2bb   : > { %10566 = vmatmul.mubr.msk.bf16.gmra.mxu1 %vm363_vm0, %v9380_v18  ;;  %v5808_v1 = vsel %vm12072_vm5, %v5803_v12, %v5807_v8  ;;  %v5818_v44 = vsel %vm12072_vm5, %v5813_v26, %v5817_v6  ;;  %v5825_v15 = vrot.slane %v5823_v56, 5  ;;  %v5831_v18 = vrot.slane %v5829_v40, 5  ;;  %v6437_v12 = vld [vmem:[#allocation2 + $0x6c] sm:$0xe]  ;;  %v5693_v26 = vld [vmem:[#allocation2 + $0x54] sm:$0xf] }
 0x2bc   : > { %10569 = vmatprep.mubr.msk.bf16.mxu1 %vm363_vm0, %v9381_v43  ;;  %v13369_v32 = vcombine.low %v5808_v1, %v5818_v44  ;;  %v13373_v13 = vsel %vm12932_vm14, %v6539_v63, %v6540_v57  ;;  %v5835_v38 = vrot.slane %v5833_v60, 4  ;;  %v5839_v9 = vshll.u32 %v13262_v3, 16 }
 0x2bd   : > { %v9523_v43 = vcombine.low %v13356_v17, %v13373_v13  ;;  %v5826_v8 = vor.u32 %v5825_v15, %v5822_v30  ;;  %v9500_v29 = vrot.slane %v6436_v14, 9  ;;  %v6544_v53 = vrot.slane %v13348_v48, 5  ;;  %v13407_v14 = vld [vmem:[#allocation2 + $0x74] sm:$0x1] }
 0x2be   : > { %v5836_v35 = vor.u32 %v5835_v38, %v5831_v18  ;;  %v5841_v4 = vrot.slane %v5839_v9, 5  ;;  %v6547_v61 = vrot.slane %v13367_v7, 5  ;;  %v5844_v6 = vshrl.u32 %v5690_v45, 16 }
 0x2bf   : > { %v5827_v3 = vrot.slane %v5826_v8, 4  ;;  %v13389_v41 = vsel %vm12932_vm14, %v9500_v29, %v6544_v53  ;;  %v6546_v57 = vrot.slane %v6544_v53, 4  ;;  %v5847_v52 = vshll.u32 %v5690_v45, 16 }
 0x2c0   : > { %10666 = vmatmul.mubr.msk.bf16.vlgmr.msra.gmra.mxu0 %vm363_vm0, %v9518_v34  ;;  %v15157_v56 = vcombine.low %v13215_v46, %v13237_v23  ;;  %v5837_v40 = vrot.slane %v5836_v35, 4  ;;  %v5846_v63 = vrot.slane %v5844_v6, 4  ;;  %v5853_v21 = vshll.u32 %v13290_v47, 16  ;;  %v13397_v34 = vld [vmem:[#allocation2 + $0x70] sm:$0xf] }
 0x2c1   : > { %v5857_v59 = vshrl.u32 %v13290_v47, 16  ;;  %10738 = vmatpush3.bf16.msra.mxu0 %v12994_v49  ;;  %v5832_v30 = vsel %vm12072_vm5, %v5827_v3, %v5831_v18  ;;  %v13404_v60 = vsel %vm12932_vm14, %v6546_v57, %v6547_v61  ;;  %v5849_v46 = vrot.slane %v5847_v52, 5  ;;  %v10924_v47 = vld [vmem:[%s15032_s3 + $0xe8] sm:$0xff]   ;;  %v6438_v35 = vld [vmem:[#allocation2 + $0x78] sm:$0xe]  ;;  %v10926_v3 = vld [vmem:[%s15032_s3 + $0xe0] sm:$0xff]  }
 0x2c2   : > { %10669 = vmatprep.mubr.msk.bf16.mxu0 %vm363_vm0, %v15157_v56  ;;  %v5863_v23 = vshll.u32 %v13298_v55, 16  ;;  %10739 = vmatprep.subr.bf16.mxu0 %v10923_v50  ;;  %v15158_v49 = vcombine.low %v13137_v31, %v13160_v11  ;;  %v5842_v1 = vsel %vm12072_vm5, %v5837_v40, %v5841_v4  ;;  %v9524_v44 = vcombine.low %v13389_v41, %v13404_v60 }
 0x2c3   : > { %v5855_v15 = vrot.slane %v5853_v21, 5  ;;  %v5859_v55 = vrot.slane %v5857_v59, 4  ;;  %v15159_v18 = vcombine.low %v13182_v5, %v13195_v54  ;;  %v13424_v45 = vcombine.low %v5832_v30, %v5842_v1  ;;  %v5696_v54 = vld [vmem:[#allocation2 + $0x60] sm:$0xf] }
 0x2c4   : > { %10570 = vmatmul.mubr.msk.bf16.gmra.mxu1 %vm363_vm0, %v15158_v49  ;;  %v5850_v38 = vor.u32 %v5849_v46, %v5846_v63  ;;  %v5865_v9 = vrot.slane %v5863_v23, 5  ;;  %v9501_v31 = vrot.slane %v6437_v12, 9  ;;  %v6551_v8 = vrot.slane %v13397_v34, 5  ;;  %v13445_v21 = vld [vmem:[#allocation2 + $0x80] sm:$0x1] }
 0x2c5   : > { %10573 = vmatprep.mubr.msk.bf16.mxu1 %vm363_vm0, %v15159_v18  ;;  %v5860_v11 = vor.u32 %v5859_v55, %v5855_v15  ;;  %v6554_v29 = vrot.slane %v13407_v14, 5  ;;  %v5868_v53 = vshrl.u32 %v5693_v26, 16  ;;  %10740 = vmatpush3.bf16.msra.mxu0 %v10923_v50  ;;  %v5871_v61 = vshll.u32 %v5693_v26, 16  ;;  %v13437_v50 = vld [vmem:[#allocation2 + $0x7c] sm:$0xf] }
 0x2c6   : > { %v5851_v4 = vrot.slane %v5850_v38, 4  ;;  %v5877_v6 = vshll.u32 %v13323_v37, 16  ;;  %v5881_v5 = vshrl.u32 %v13323_v37, 16  ;;  %10741 = vmatprep.subr.bf16.mxu0 %v10924_v47  ;;  %v13435_v52 = vsel %vm12932_vm14, %v9501_v31, %v6551_v8  ;;  %v6439_v38 = vld [vmem:[#allocation2 + $0x84] sm:$0xe] }
 0x2c7   : > { %v5861_v57 = vrot.slane %v5860_v11, 4  ;;  %v6553_v12 = vrot.slane %v6551_v8, 4  ;;  %v5870_v56 = vrot.slane %v5868_v53, 4  ;;  %v5873_v26 = vrot.slane %v5871_v61, 5  ;;  %v13476_v11 = vld [vmem:[#allocation2 + $0x88] sm:$0xf] }
 0x2c8   : > { %10670 = vmatmul.mubr.msk.bf16.gmra.mxu0 %vm363_vm0, %v9520_v33  ;;  %v5856_v37 = vsel %vm12072_vm5, %v5851_v4, %v5855_v15  ;;  %v5879_v40 = vrot.slane %v5877_v6, 5  ;;  %v5883_v63 = vrot.slane %v5881_v5, 4  ;;  %v5887_v25 = vshll.u32 %v13327_v51, 16  ;;  %v5699_v4 = vld [vmem:[#allocation2 + $0x6c] sm:$0xf] }
 0x2c9   : > { %10673 = vmatprep.mubr.msk.bf16.mxu0 %vm363_vm0, %v9521_v20  ;;  %v5866_v59 = vsel %vm12072_vm5, %v5861_v57, %v5865_v9  ;;  %v13455_v39 = vsel %vm12932_vm14, %v6553_v12, %v6554_v29  ;;  %v9502_v33 = vrot.slane %v6438_v35, 9  ;;  %10742 = vmatpush3.bf16.msra.mxu0 %v10924_v47  ;;  %v5874_v23 = vor.u32 %v5873_v26, %v5870_v56  ;;  %v13482_v35 = vld [vmem:[#allocation2 + $0x8c] sm:$0x1] }
 0x2ca   : > { %v13458_v30 = vcombine.low %v5856_v37, %v5866_v59  ;;  %v9525_v46 = vcombine.low %v13435_v52, %v13455_v39  ;;  %v5884_v16 = vor.u32 %v5883_v63, %v5879_v40  ;;  %10743 = vmatprep.subr.bf16.mxu0 %v10926_v3  ;;  %v15160_v27 = vcombine.low %v13208_v0, %v13224_v19  ;;  %v6440_v59 = vld [vmem:[#allocation2 + $0x90] sm:$0xe]  ;;  %v13559_v39 = vld [vmem:[#allocation2 + $0xa4] sm:$0x1] }
 0x2cb   : > { %v5889_v20 = vrot.slane %v5887_v25, 5  ;;  %v6558_v49 = vrot.slane %v13437_v50, 5  ;;  %v6561_v51 = vrot.slane %v13445_v21, 5  ;;  %v5892_v1 = vshrl.u32 %v5696_v54, 16 }
 0x2cc   : > { %10574 = vmatmul.mubr.msk.bf16.gmra.mxu1 %vm363_vm0, %v15160_v27  ;;  %v5875_v47 = vrot.slane %v5874_v23, 4  ;;  %v5885_v15 = vrot.slane %v5884_v16, 4  ;;  %v5895_v55 = vshll.u32 %v5696_v54, 16  ;;  %v5901_v18 = vshll.u32 %v13348_v48, 16 }
 0x2cd   : > { %10625 = vmatprep.mubr.msk.bf16.mxu1 %vm363_vm0, %v13279_v42  ;;  %v13473_v0 = vsel %vm12932_vm14, %v9502_v33, %v6558_v49  ;;  %v6560_v19 = vrot.slane %v6558_v49, 4  ;;  %v5894_v9 = vrot.slane %v5892_v1, 4  ;;  %v5905_v31 = vshrl.u32 %v13348_v48, 16  ;;  %10744 = vmatpush3.bf16.msra.mxu0 %v10926_v3  ;;  %v13514_v33 = vld [vmem:[#allocation2 + $0x94] sm:$0xf]  ;;  %v10921_v1 = vld [vmem:[%s15032_s3 + $0xc8] sm:$0xff]  }
 0x2ce   : > { %v5880_v42 = vsel %vm12072_vm5, %v5875_v47, %v5879_v40  ;;  %v5890_v8 = vsel %vm12072_vm5, %v5885_v15, %v5889_v20  ;;  %v5897_v29 = vrot.slane %v5895_v55, 5  ;;  %v5903_v53 = vrot.slane %v5901_v18, 5  ;;  %v13526_v20 = vld [vmem:[#allocation2 + $0x98] sm:$0x1] }
 0x2cf   : > { %v13484_v61 = vcombine.low %v5880_v42, %v5890_v8  ;;  %v13488_v6 = vsel %vm12932_vm14, %v6560_v19, %v6561_v51  ;;  %v5907_v48 = vrot.slane %v5905_v31, 4  ;;  %v5911_v5 = vshll.u32 %v13367_v7, 16  ;;  %v10920_v7 = vld [vmem:[%s15032_s3 + $0xd0] sm:$0xff]  }
 0x2d0   : > { %10674 = vmatmul.mubr.msk.bf16.gmra.mxu0 %vm363_vm0, %v9522_v24  ;;  %v9526_v54 = vcombine.low %v13473_v0, %v13488_v6  ;;  %v5898_v3 = vor.u32 %v5897_v29, %v5894_v9  ;;  %v9503_v57 = vrot.slane %v6439_v38, 9  ;;  %v6565_v12 = vrot.slane %v13476_v11, 5 }
 0x2d1   : > { %10677 = vmatprep.mubr.msk.bf16.mxu0 %vm363_vm0, %v9523_v43  ;;  %v5908_v56 = vor.u32 %v5907_v48, %v5903_v53  ;;  %v5913_v10 = vrot.slane %v5911_v5, 5  ;;  %v6568_v58 = vrot.slane %v13482_v35, 5  ;;  %v5916_v24 = vshrl.u32 %v5699_v4, 16  ;;  %v13553_v5 = vld [vmem:[#allocation2 + $0xa0] sm:$0xf] }
 0x2d2   : > { %v5899_v37 = vrot.slane %v5898_v3, 4  ;;  %v13508_v26 = vsel %vm12932_vm14, %v9503_v57, %v6565_v12  ;;  %v6567_v40 = vrot.slane %v6565_v12, 4  ;;  %v5919_v63 = vshll.u32 %v5699_v4, 16  ;;  %v5705_v4 = vld [vmem:[#allocation2 + $0x84] sm:$0xf]  ;;  %v13555_v3 = vpop.f32.mrf.mxu0 }
 0x2d3   : > { %v5909_v17 = vrot.slane %v5908_v56, 4  ;;  %v5918_v13 = vrot.slane %v5916_v24, 4  ;;  %v5925_v43 = vshll.u32 %v13397_v34, 16  ;;  %v5929_v25 = vshrl.u32 %v13397_v34, 16  ;;  %v5702_v34 = vld [vmem:[#allocation2 + $0x78] sm:$0xf] }
 0x2d4   : > { %10626 = vmatmul.mubr.msk.bf16.vlgmr.msra.gmra.mxu1 %vm363_vm0, %v13305_v28  ;;  %v5904_v23 = vsel %vm12072_vm5, %v5899_v37, %v5903_v53  ;;  %v13523_v16 = vsel %vm12932_vm14, %v6567_v40, %v6568_v58  ;;  %v5921_v28 = vrot.slane %v5919_v63, 5  ;;  %v5935_v27 = vshll.u32 %v13407_v14, 16  ;;  %v6441_v53 = vld [vmem:[#allocation2 + $0x9c] sm:$0xe] }
 0x2d5   : > { %10629 = vmatprep.mubr.msk.bf16.mxu1 %vm363_vm0, %v13337_v62  ;;  %10698 = vmatpush3.bf16.msra.mxu1 %v13176_v22  ;;  %v5914_v49 = vsel %vm12072_vm5, %v5909_v17, %v5913_v10  ;;  %v9527_v22 = vcombine.low %v13508_v26, %v13523_v16  ;;  %v5927_v62 = vrot.slane %v5925_v43, 5  ;;  %v5931_v51 = vrot.slane %v5929_v25, 4  ;;  %v6442_v43 = vld [vmem:[#allocation2 + $0xa8] sm:$0xe] }
 0x2d6   : > { %10699 = vmatprep.subr.bf16.mxu1 %v10920_v7  ;;  %v13535_v47 = vcombine.low %v5904_v23, %v5914_v49  ;;  %v5922_v15 = vor.u32 %v5921_v28, %v5918_v13  ;;  %v5937_v14 = vrot.slane %v5935_v27, 5  ;;  %v9504_v55 = vrot.slane %v6440_v59, 9  ;;  %v13587_v27 = vld [vmem:[%s15032_s3 + $0x118] sm:$0xff]  }
 0x2d7   : > { %v5932_v18 = vor.u32 %v5931_v51, %v5927_v62  ;;  %v6572_v38 = vrot.slane %v13514_v33, 5  ;;  %v6575_v19 = vrot.slane %v13526_v20, 5  ;;  %v5940_v9 = vshrl.u32 %v5702_v34, 16 }
 0x2d8   : > { %10678 = vmatmul.mubr.msk.bf16.gmra.mxu0 %vm363_vm0, %v9524_v44  ;;  %v5923_v31 = vrot.slane %v5922_v15, 4  ;;  %v5943_v42 = vshll.u32 %v5702_v34, 16  ;;  %v5949_v8 = vshll.u32 %v13437_v50, 16  ;;  %v5953_v29 = vshrl.u32 %v13437_v50, 16 }
 0x2d9   : > { %10700 = vmatpush3.bf16.msra.mxu1 %v10920_v7  ;;  %10681 = vmatprep.mubr.msk.bf16.mxu0 %vm363_vm0, %v9525_v46  ;;  %v5933_v48 = vrot.slane %v5932_v18, 4  ;;  %v13551_v41 = vsel %vm12932_vm14, %v9504_v55, %v6572_v38  ;;  %v6574_v60 = vrot.slane %v6572_v38, 4  ;;  %v5942_v44 = vrot.slane %v5940_v9, 4  ;;  %v10925_v46 = vld [vmem:[%s15032_s3 + $0xc0] sm:$0xff]   ;;  %v13602_v38 = vld [vmem:[#allocation2 + $0xb0] sm:$0x1] }
 0x2da   : > { %10701 = vmatprep.subr.bf16.mxu1 %v10921_v1  ;;  %v5928_v50 = vsel %vm12072_vm5, %v5923_v31, %v5927_v62  ;;  %v5945_v57 = vrot.slane %v5943_v42, 5  ;;  %v5951_v12 = vrot.slane %v5949_v8, 5  ;;  %v5955_v52 = vrot.slane %v5953_v29, 4 }
 0x2db   : > { %v5938_v7 = vsel %vm12072_vm5, %v5933_v48, %v5937_v14  ;;  %v13570_v56 = vsel %vm12932_vm14, %v6574_v60, %v6575_v19  ;;  %v5959_v10 = vshll.u32 %v13445_v21, 16  ;;  %v9505_v58 = vrot.slane %v6441_v53, 9  ;;  %v13581_v21 = vpop.f32.mrf.mxu0  ;;  %v5708_v19 = vld [vmem:[#allocation2 + $0x90] sm:$0xf] }
 0x2dc   : > { %10630 = vmatmul.mubr.msk.bf16.gmra.mxu1 %vm363_vm0, %v13369_v32  ;;  %v13575_v24 = vcombine.low %v5928_v50, %v5938_v7  ;;  %v9528_v37 = vcombine.low %v13551_v41, %v13570_v56  ;;  %v5946_v40 = vor.u32 %v5945_v57, %v5942_v44  ;;  %v5956_v32 = vor.u32 %v5955_v52, %v5951_v12  ;;  %v5711_v44 = vld [vmem:[#allocation2 + $0x9c] sm:$0xf]  ;;  %v6443_v52 = vld [vmem:[#allocation2 + $0xb4] sm:$0xe] }
 0x2dd   : > { %10633 = vmatprep.mubr.msk.bf16.mxu1 %vm363_vm0, %v13424_v45  ;;  %v5961_v63 = vrot.slane %v5959_v10, 5  ;;  %v6579_v59 = vrot.slane %v13553_v5, 5  ;;  %v6582_v17 = vrot.slane %v13559_v39, 5  ;;  %v5964_v13 = vshrl.u32 %v5705_v4, 16  ;;  %10702 = vmatpush3.bf16.msra.mxu1 %v10921_v1  ;;  %v13592_v1 = vld [vmem:[#allocation2 + $0xac] sm:$0xf]  ;;  %v13613_v9 = vpop.f32.mrf.mxu0 }
 0x2de   : > { %v5947_v25 = vrot.slane %v5946_v40, 4  ;;  %v5957_v23 = vrot.slane %v5956_v32, 4  ;;  %v5967_v45 = vshll.u32 %v5705_v4, 16  ;;  %v5973_v28 = vshll.u32 %v13476_v11, 16  ;;  %10703 = vmatprep.subr.bf16.mxu1 %v10925_v46  ;;  %v13635_v40 = vld [vmem:[#allocation2 + $0xb8] sm:$0xf] }
 0x2df   : > { %v6580_v34 = vsel %vm12932_vm14, %v9505_v58, %v6579_v59  ;;  %v6581_v49 = vrot.slane %v6579_v59, 4  ;;  %v5966_v62 = vrot.slane %v5964_v13, 4  ;;  %v5977_v51 = vshrl.u32 %v13476_v11, 16  ;;  %v13637_v32 = vld [vmem:[#allocation2 + $0xbc] sm:$0x1] }
 0x2e0   : > { %10682 = vmatmul.mubr.msk.bf16.gmra.mxu0 %vm363_vm0, %v9526_v54  ;;  %v5952_v15 = vsel %vm12072_vm5, %v5947_v25, %v5951_v12  ;;  %v5962_v14 = vsel %vm12072_vm5, %v5957_v23, %v5961_v63  ;;  %v5969_v55 = vrot.slane %v5967_v45, 5  ;;  %v5975_v18 = vrot.slane %v5973_v28, 5 }
 0x2e1   : > { %10685 = vmatprep.mubr.msk.bf16.mxu0 %vm363_vm0, %v9527_v22  ;;  %v13608_v11 = vcombine.low %v5952_v15, %v5962_v14  ;;  %v6583_v0 = vsel %vm12932_vm14, %v6581_v49, %v6582_v17  ;;  %v5979_v6 = vrot.slane %v5977_v51, 4  ;;  %v5983_v54 = vshll.u32 %v13482_v35, 16  ;;  %10704 = vmatpush3.bf16.msra.mxu1 %v10925_v46  ;;  %v13628_v46 = vpop.f32.mrf.mxu0  ;;  %v5714_v15 = vld [vmem:[#allocation2 + $0xa8] sm:$0xf] }
 0x2e2   : > { %v9529_v31 = vcombine.low %v6580_v34, %v6583_v0  ;;  %v5970_v42 = vor.u32 %v5969_v55, %v5966_v62  ;;  %v9506_v8 = vrot.slane %v6442_v43, 9  ;;  %v6586_v29 = vrot.slane %v13592_v1, 5  ;;  %10777 = vmatprep.subr.bf16.mxu1 %v13587_v27  ;;  %v13659_v0 = vld [vmem:[#allocation2 + $0xc4] sm:$0xf] }
 0x2e3   : > { %v5980_v26 = vor.u32 %v5979_v6, %v5975_v18  ;;  %v5985_v16 = vrot.slane %v5983_v54, 5  ;;  %v6589_v22 = vrot.slane %v13602_v38, 5  ;;  %v5988_v53 = vshrl.u32 %v5708_v19, 16  ;;  %v13651_v49 = vpop.f32.mrf.mxu0 }
 0x2e4   : > { %10634 = vmatmul.mubr.msk.bf16.gmra.mxu1 %vm363_vm0, %v13458_v30  ;;  %v5971_v35 = vrot.slane %v5970_v42, 4  ;;  %v13624_v4 = vsel %vm12932_vm14, %v9506_v8, %v6586_v29  ;;  %v6588_v48 = vrot.slane %v6586_v29, 4  ;;  %v5991_v60 = vshll.u32 %v5708_v19, 16  ;;  %v13665_v42 = vld [vmem:[#allocation2 + $0xc8] sm:$0x1] }
 0x2e5   : > { %10637 = vmatprep.mubr.msk.bf16.mxu1 %vm363_vm0, %v13484_v61  ;;  %v5981_v50 = vrot.slane %v5980_v26, 4  ;;  %v5990_v57 = vrot.slane %v5988_v53, 4  ;;  %v5997_v30 = vshll.u32 %v13514_v33, 16  ;;  %v6001_v12 = vshrl.u32 %v13514_v33, 16 }
 0x2e6   : > { %v5976_v61 = vsel %vm12072_vm5, %v5971_v35, %v5975_v18  ;;  %v6590_v7 = vsel %vm12932_vm14, %v6588_v48, %v6589_v22  ;;  %v5993_v10 = vrot.slane %v5991_v60, 5  ;;  %v6007_v58 = vshll.u32 %v13526_v20, 16 }
 0x2e7   : > { %v5986_v63 = vsel %vm12072_vm5, %v5981_v50, %v5985_v16  ;;  %v9530_v33 = vcombine.low %v13624_v4, %v6590_v7  ;;  %v5999_v59 = vrot.slane %v5997_v30, 5  ;;  %v6003_v17 = vrot.slane %v6001_v12, 4  ;;  %v13672_v16 = vpop.f32.mrf.mxu0 }
 0x2e8   : > { %10686 = vmatmul.mubr.msk.bf16.gmra.mxu0 %vm363_vm0, %v9528_v37  ;;  %v13646_v13 = vcombine.low %v5976_v61, %v5986_v63  ;;  %v5994_v43 = vor.u32 %v5993_v10, %v5990_v57  ;;  %v6009_v20 = vrot.slane %v6007_v58, 5  ;;  %v9507_v25 = vrot.slane %v6443_v52, 9  ;;  %v6444_v37 = vld [vmem:[#allocation2 + $0xc0] sm:$0xe]  ;;  %v7314_v10 = vld [vmem:[#allocation2 + $0x18] sm:$0xf] }
 0x2e9   : > { %10689 = vmatprep.mubr.msk.bf16.mxu0 %vm363_vm0, %v9529_v31  ;;  %v6004_v23 = vor.u32 %v6003_v17, %v5999_v59  ;;  %v6593_v45 = vrot.slane %v13635_v40, 5  ;;  %v6596_v28 = vrot.slane %v13637_v32, 5  ;;  %v6012_v34 = vshrl.u32 %v5711_v44, 16  ;;  %v13684_v58 = vpop.f32.mrf.mxu0 }
 0x2ea   : > { %v5995_v62 = vrot.slane %v5994_v43, 4  ;;  %v6015_v51 = vshll.u32 %v5711_v44, 16  ;;  %v6021_v41 = vshll.u32 %v13553_v5, 16  ;;  %v6025_v56 = vshrl.u32 %v13553_v5, 16  ;;  %v13690_v43 = vld [vmem:[#allocation2 + $0x1c] sm:$0xf] }
 0x2eb   : > { %v6005_v14 = vrot.slane %v6004_v23, 4  ;;  %v6594_v55 = vsel %vm12932_vm14, %v9507_v25, %v6593_v45  ;;  %v6595_v18 = vrot.slane %v6593_v45, 4  ;;  %v6014_v19 = vrot.slane %v6012_v34, 4  ;;  %v13697_v45 = vld [vmem:[#allocation2 + $0x20] sm:$0x1] }
 0x2ec   : > { %10638 = vmatmul.mubr.msk.bf16.gmra.mxu1 %vm363_vm0, %v13535_v47  ;;  %v6000_v6 = vsel %vm12072_vm5, %v5995_v62, %v5999_v59  ;;  %v6017_v5 = vrot.slane %v6015_v51, 5  ;;  %v6023_v54 = vrot.slane %v6021_v41, 5  ;;  %v6027_v31 = vrot.slane %v6025_v56, 4  ;;  %v5717_v41 = vld [vmem:[#allocation2 + $0xb4] sm:$0xf] }
 0x2ed   : > { %10641 = vmatprep.mubr.msk.bf16.mxu1 %vm363_vm0, %v13575_v24  ;;  %v6010_v47 = vsel %vm12072_vm5, %v6005_v14, %v6009_v20  ;;  %v6597_v8 = vsel %vm12932_vm14, %v6595_v18, %v6596_v28  ;;  %v6031_v29 = vshll.u32 %v13559_v39, 16  ;;  %v9508_v26 = vrot.slane %v6444_v37, 9  ;;  %v13703_v14 = vpop.f32.mrf.mxu1 }
 0x2ee   : > { %v13674_v24 = vcombine.low %v6000_v6, %v6010_v47  ;;  %v9531_v22 = vcombine.low %v6594_v55, %v6597_v8  ;;  %v6018_v53 = vor.u32 %v6017_v5, %v6014_v19  ;;  %v6028_v35 = vor.u32 %v6027_v31, %v6023_v54  ;;  %v13705_v55 = vpop.f32.mrf.mxu0 }
 0x2ef   : > { %v6033_v4 = vrot.slane %v6031_v29, 5  ;;  %v6600_v48 = vrot.slane %v13659_v0, 5  ;;  %v6603_v60 = vrot.slane %v13665_v42, 5  ;;  %v6036_v44 = vshrl.u32 %v5714_v15, 16  ;;  %15161 = vst [vmem:[#allocation3_spill] sm:$0xff] %v13705_v55 }
 0x2f0   : > { %10690 = vmatmul.mubr.msk.bf16.gmra.mxu0 %vm363_vm0, %v9530_v33  ;;  %v6019_v50 = vrot.slane %v6018_v53, 4  ;;  %v6029_v57 = vrot.slane %v6028_v35, 4  ;;  %v6039_v30 = vshll.u32 %v5714_v15, 16  ;;  %v6045_v39 = vshll.u32 %v13592_v1, 16 }
 0x2f1   : > { %10693 = vmatprep.mubr.msk.bf16.mxu0 %vm363_vm0, %v9531_v22  ;;  %v6601_v12 = vsel %vm12932_vm14, %v9508_v26, %v6600_v48  ;;  %v6602_v52 = vrot.slane %v6600_v48, 4  ;;  %v6038_v61 = vrot.slane %v6036_v44, 4  ;;  %v6049_v7 = vshrl.u32 %v13592_v1, 16  ;;  %v7317_v22 = vld [vmem:[#allocation2 + $0x24] sm:$0xf] }
 0x2f2   : > { %v6024_v63 = vsel %vm12072_vm5, %v6019_v50, %v6023_v54  ;;  %v6034_v33 = vsel %vm12072_vm5, %v6029_v57, %v6033_v4  ;;  %v6041_v59 = vrot.slane %v6039_v30, 5  ;;  %v6047_v17 = vrot.slane %v6045_v39, 5 }
 0x2f3   : > { %v9469_v20 = vcombine.low %v6024_v63, %v6034_v33  ;;  %v6604_v1 = vsel %vm12932_vm14, %v6602_v52, %v6603_v60  ;;  %v6051_v25 = vrot.slane %v6049_v7, 4  ;;  %v6055_v23 = vshll.u32 %v13602_v38, 16  ;;  %v13714_v60 = vpop.f32.mrf.mxu1 }
 0x2f4   : > { %10642 = vmatmul.mubr.msk.bf16.gmra.mxu1 %vm363_vm0, %v13608_v11  ;;  %v9532_v28 = vcombine.low %v6601_v12, %v6604_v1  ;;  %v6042_v34 = vor.u32 %v6041_v59, %v6038_v61  ;;  %v7363_v62 = vshrl.u32 %v7314_v10, 16  ;;  %v7366_v51 = vshll.u32 %v7314_v10, 16  ;;  %v13716_v44 = vpop.f32.mrf.mxu0  ;;  %v13719_v12 = vld [vmem:[#allocation2 + $0x28] sm:$0xf]  ;;  %v5720_v1 = vld [vmem:[#allocation2 + $0xc0] sm:$0xf] }
 0x2f5   : > { %10645 = vmatprep.mubr.msk.bf16.mxu1 %vm363_vm0, %v13646_v13  ;;  %v6052_v56 = vor.u32 %v6051_v25, %v6047_v17  ;;  %v6057_v37 = vrot.slane %v6055_v23, 5  ;;  %v7372_v11 = vshll.u32 %v13690_v43, 16  ;;  %v7376_v15 = vshrl.u32 %v13690_v43, 16 }
 0x2f6   : > { %v6043_v38 = vrot.slane %v6042_v34, 4  ;;  %v7365_v18 = vrot.slane %v7363_v62, 4  ;;  %v7368_v19 = vrot.slane %v7366_v51, 5  ;;  %v7382_v13 = vshll.u32 %v13697_v45, 16  ;;  %v13734_v34 = vpop.f32.mrf.mxu0 }
 0x2f7   : > { %v6053_v6 = vrot.slane %v6052_v56, 4  ;;  %v7374_v5 = vrot.slane %v7372_v11, 5  ;;  %v7378_v54 = vrot.slane %v7376_v15, 4  ;;  %v6060_v31 = vshrl.u32 %v5717_v41, 16 }
 0x2f8   : > { %10694 = vmatmul.mubr.msk.bf16.gmra.mxu0 %vm363_vm0, %v9532_v28  ;;  %v6048_v47 = vsel %vm12072_vm5, %v6043_v38, %v6047_v17  ;;  %v7369_v8 = vor.u32 %v7368_v19, %v7365_v18  ;;  %v7384_v29 = vrot.slane %v7382_v13, 5  ;;  %v6063_v26 = vshll.u32 %v5717_v41, 16  ;;  %v13727_v17 = vld [vmem:[#allocation2 + $0x2c] sm:$0x1] }
 0x2f9   : > { %v6058_v53 = vsel %vm12072_vm5, %v6053_v6, %v6057_v37  ;;  %v7379_v35 = vor.u32 %v7378_v54, %v7374_v5  ;;  %v6062_v4 = vrot.slane %v6060_v31, 4  ;;  %v6069_v48 = vshll.u32 %v13635_v40, 16 }
 0x2fa   : > { %v9470_v50 = vcombine.low %v6048_v47, %v6058_v53  ;;  %v7370_v57 = vrot.slane %v7369_v8, 4  ;;  %v6065_v30 = vrot.slane %v6063_v26, 5  ;;  %v6073_v39 = vshrl.u32 %v13635_v40, 16  ;;  %v7320_v47 = vld [vmem:[#allocation2 + $0x30] sm:$0xf] }
 0x2fb   : > { %v7380_v52 = vrot.slane %v7379_v35, 4  ;;  %v6071_v61 = vrot.slane %v6069_v48, 5  ;;  %v6079_v7 = vshll.u32 %v13637_v32, 16  ;;  %v7387_v10 = vshrl.u32 %v7317_v22, 16  ;;  %v13732_v32 = vpop.f32.mrf.mxu1 }
 0x2fc   : > { %10646 = vmatmul.mubr.msk.bf16.gmra.mxu1 %vm363_vm0, %v13674_v24  ;;  %v7375_v63 = vsel %vm12072_vm5, %v7370_v57, %v7374_v5  ;;  %v6066_v33 = vor.u32 %v6065_v30, %v6062_v4  ;;  %v6075_v59 = vrot.slane %v6073_v39, 4  ;;  %v7390_v40 = vshll.u32 %v7317_v22, 16  ;;  %v13749_v4 = vld [vmem:[#allocation2 + $0x34] sm:$0xf] }
 0x2fd   : > { %10649 = vmatprep.mubr.msk.bf16.mxu1 %vm363_vm0, %v9469_v20  ;;  %v7385_v25 = vsel %vm12072_vm5, %v7380_v52, %v7384_v29  ;;  %v6081_v24 = vrot.slane %v6079_v7, 5  ;;  %v7389_v23 = vrot.slane %v7387_v10, 4  ;;  %v7396_v28 = vshll.u32 %v13719_v12, 16  ;;  %v13742_v8 = vpop.f32.mrf.mxu1  ;;  %v13744_v29 = vpop.f32.mrf.mxu0  ;;  %v13755_v10 = vld [vmem:[#allocation2 + $0x38] sm:$0x1] }
 0x2fe   : > { %v9605_v20 = vcombine.low %v7375_v63, %v7385_v25  ;;  %v6067_v62 = vrot.slane %v6066_v33, 4  ;;  %v6076_v51 = vor.u32 %v6075_v59, %v6071_v61  ;;  %v7392_v41 = vrot.slane %v7390_v40, 5 }
 0x2ff   : > { %v7398_v56 = vrot.slane %v7396_v28, 5  ;;  %v7400_v37 = vshrl.u32 %v13719_v12, 16  ;;  %v7406_v11 = vshll.u32 %v13727_v17, 16  ;;  %v6084_v15 = vshrl.u32 %v5720_v1, 16  ;;  %v7323_v28 = vld [vmem:[#allocation2 + $0x3c] sm:$0xf] }
 0x300   : > { %10745 = vmatprep.mubr.msk.bf16.mxu0 %vm363_vm0, %v9605_v20  ;;  %v6072_v38 = vsel %vm12072_vm5, %v6067_v62, %v6071_v61  ;;  %v6077_v18 = vrot.slane %v6076_v51, 4  ;;  %v7393_v19 = vor.u32 %v7392_v41, %v7389_v23  ;;  %v6087_v13 = vshll.u32 %v5720_v1, 16  ;;  %v13761_v1 = vpop.f32.mrf.mxu0 }
 0x301   : > { %v7402_v6 = vrot.slane %v7400_v37, 4  ;;  %v7408_v5 = vrot.slane %v7406_v11, 5  ;;  %v6086_v54 = vrot.slane %v6084_v15, 4  ;;  %v6093_v31 = vshll.u32 %v13659_v0, 16  ;;  %v13759_v40 = vpop.f32.mrf.mxu1 }
 0x302   : > { %v6082_v26 = vsel %vm12072_vm5, %v6077_v18, %v6081_v24  ;;  %v7394_v22 = vrot.slane %v7393_v19, 4  ;;  %v6089_v53 = vrot.slane %v6087_v13, 5  ;;  %v6097_v35 = vshrl.u32 %v13659_v0, 16  ;;  %v13771_v13 = vld [vmem:[#allocation2 + $0x44] sm:$0x1] }
 0x303   : > { %v9471_v48 = vcombine.low %v6072_v38, %v6082_v26  ;;  %v7403_v57 = vor.u32 %v7402_v6, %v7398_v56  ;;  %v6095_v30 = vrot.slane %v6093_v31, 5  ;;  %v6103_v39 = vshll.u32 %v13665_v42, 16  ;;  %v13773_v31 = vpop.f32.mrf.mxu1 }
 0x304   : > { %10650 = vmatmul.mubr.msk.bf16.gmra.mxu1 %vm363_vm0, %v9470_v50  ;;  %v7399_v52 = vsel %vm12072_vm5, %v7394_v22, %v7398_v56  ;;  %v6090_v61 = vor.u32 %v6089_v53, %v6086_v54  ;;  %v6099_v7 = vrot.slane %v6097_v35, 4  ;;  %v7411_v63 = vshrl.u32 %v7320_v47, 16  ;;  %v13767_v56 = vld [vmem:[#allocation2 + $0x40] sm:$0xf]  ;;  %v7326_v35 = vld [vmem:[#allocation2 + $0x48] sm:$0xf] }
 0x305   : > { %10653 = vmatprep.mubr.msk.bf16.mxu1 %vm363_vm0, %v9471_v48  ;;  %v7404_v0 = vrot.slane %v7403_v57, 4  ;;  %v6105_v33 = vrot.slane %v6103_v39, 5  ;;  %v7414_v59 = vshll.u32 %v7320_v47, 16  ;;  %v7420_v50 = vshll.u32 %v13749_v4, 16 }
 0x306   : > { %v6091_v42 = vrot.slane %v6090_v61, 4  ;;  %v6100_v25 = vor.u32 %v6099_v7, %v6095_v30  ;;  %v7413_v24 = vrot.slane %v7411_v63, 4  ;;  %v7424_v23 = vshrl.u32 %v13749_v4, 16 }
 0x307   : > { %v7409_v20 = vsel %vm12072_vm5, %v7404_v0, %v7408_v5  ;;  %v7416_v62 = vrot.slane %v7414_v59, 5  ;;  %v7422_v51 = vrot.slane %v7420_v50, 5  ;;  %v7430_v41 = vshll.u32 %v13755_v10, 16  ;;  %v13783_v59 = vld [vmem:[#allocation2 + $0x4c] sm:$0xf] }
 0x308   : > { %v9606_v37 = vcombine.low %v7399_v52, %v7409_v20  ;;  %v6096_v11 = vsel %vm12072_vm5, %v6091_v42, %v6095_v30  ;;  %v6101_v15 = vrot.slane %v6100_v25, 4  ;;  %v7426_v38 = vrot.slane %v7424_v23, 4  ;;  %v13775_v5 = vpop.f32.mrf.mxu0  ;;  %v10927_v30 = vld [vmem:[#allocation2 + $0x18] sm:$0xff]   ;;  %v13792_v25 = vld [vmem:[#allocation2 + $0x50] sm:$0x1]  ;;  %v13794_v23 = vpop.f32.mrf.mxu1 }
 0x309   : > { %v7417_v18 = vor.u32 %v7416_v62, %v7413_v24  ;;  %v7432_v19 = vrot.slane %v7430_v41, 5  ;;  %v7435_v6 = vshrl.u32 %v7323_v28, 16  ;;  %v7438_v54 = vshll.u32 %v7323_v28, 16 }
 0x30a   : > { %10746 = vmatmul.mubr.msk.bf16.vlgmr.msra.gmra.mxu0 %vm363_vm0, %v9606_v37  ;;  %v6106_v47 = vsel %vm12072_vm5, %v6101_v15, %v6105_v33  ;;  %v7427_v26 = vor.u32 %v7426_v38, %v7422_v51  ;;  %v7444_v22 = vshll.u32 %v13767_v56, 16  ;;  %v7448_v53 = vshrl.u32 %v13767_v56, 16  ;;  %v13796_v28 = vpop.f32.mrf.mxu0 }
 0x30b   : > { %v9472_v48 = vcombine.low %v6096_v11, %v6106_v47  ;;  %v7418_v57 = vrot.slane %v7417_v18, 4  ;;  %v7437_v39 = vrot.slane %v7435_v6, 4  ;;  %v7440_v52 = vrot.slane %v7438_v54, 5  ;;  %v7329_v54 = vld [vmem:[#allocation2 + $0x54] sm:$0xf] }
 0x30c   : > { %v7428_v61 = vrot.slane %v7427_v26, 4  ;;  %v7446_v7 = vrot.slane %v7444_v22, 5  ;;  %v7450_v63 = vrot.slane %v7448_v53, 4  ;;  %v7454_v0 = vshll.u32 %v13771_v13, 16  ;;  %v13813_v22 = vld [vmem:[#allocation2 + $0x58] sm:$0xf]  ;;  %v13815_v53 = vpop.f32.mrf.mxu1 }
 0x30d   : > { %10654 = vmatmul.mubr.msk.bf16.gmra.mxu1 %vm363_vm0, %v9472_v48  ;;  %v7423_v33 = vsel %vm12072_vm5, %v7418_v57, %v7422_v51  ;;  %v7441_v50 = vor.u32 %v7440_v52, %v7437_v39  ;;  %v13790_v42 = vadd.f32 %v13555_v3, %v13703_v14  ;;  %v7459_v24 = vshrl.u32 %v7326_v35, 16  ;;  %15162 = vst [vmem:[#allocation4_spill] sm:$0xff] %v13815_v53  ;;  %v10928_v52 = vld [vmem:[#allocation2 + $0x24] sm:$0xff]  }
 0x30e   : > { %v7433_v20 = vsel %vm12072_vm5, %v7428_v61, %v7432_v19  ;;  %10705 = vmatprep.mubr.msk.bf16.mxu1 %vm363_vm0, %v10927_v30  ;;  %v7451_v62 = vor.u32 %v7450_v63, %v7446_v7  ;;  %v7456_v41 = vrot.slane %v7454_v0, 5  ;;  %v7462_v51 = vshll.u32 %v7326_v35, 16  ;;  %v13817_v35 = vpop.f32.mrf.mxu0  ;;  %v10934_v63 = vld [vmem:[%s15032_s3 + $0x110] sm:$0xff]   ;;  %v13913_v53 = vld [vmem:[#allocation2 + $0x88] sm:$0xf] }
 0x30f   : > { %v9607_v37 = vcombine.low %v7423_v33, %v7433_v20  ;;  %v7442_v11 = vrot.slane %v7441_v50, 4  ;;  %v7461_v15 = vrot.slane %v7459_v24, 4  ;;  %v7468_v3 = vshll.u32 %v13783_v59, 16  ;;  %v10930_v50 = vld [vmem:[#allocation2 + $0x30] sm:$0xff]   ;;  %v7332_v20 = vld [vmem:[#allocation2 + $0x60] sm:$0xf] }
 0x310   : > { %v7452_v14 = vrot.slane %v7451_v62, 4  ;;  %v7464_v38 = vrot.slane %v7462_v51, 5  ;;  %v7472_v18 = vshrl.u32 %v13783_v59, 16  ;;  %v7478_v6 = vshll.u32 %v13792_v25, 16 }
 0x311   : > { %10749 = vmatprep.mubr.msk.bf16.mxu0 %vm363_vm0, %v9607_v37  ;;  %v7470_v19 = vrot.slane %v7468_v3, 5  ;;  %v13807_v47 = vadd.f32 %v13581_v21, %v13714_v60  ;;  %v13811_v26 = vadd.f32 %v13613_v9, %v13732_v32  ;;  %v7447_v48 = vsel %vm12072_vm5, %v7442_v11, %v7446_v7  ;;  %v13823_v21 = vld [vmem:[#allocation2 + $0x5c] sm:$0x1]  ;;  %v13837_v11 = vld [vmem:[#allocation2 + $0x64] sm:$0xf]  ;;  %v13841_v3 = vpop.f32.mrf.mxu0 }
 0x312   : > { %v7457_v57 = vsel %vm12072_vm5, %v7452_v14, %v7456_v41  ;;  %v7465_v30 = vor.u32 %v7464_v38, %v7461_v15  ;;  %v7474_v39 = vrot.slane %v7472_v18, 4  ;;  %v7480_v9 = vrot.slane %v7478_v6, 5 }
 0x313   : > { %v9608_v60 = vcombine.low %v7447_v48, %v7457_v57  ;;  %v7483_v32 = vshrl.u32 %v7329_v54, 16  ;;  %v7486_v61 = vshll.u32 %v7329_v54, 16  ;;  %v7492_v7 = vshll.u32 %v13813_v22, 16 }
 0x314   : > { %v7466_v0 = vrot.slane %v7465_v30, 4  ;;  %v7475_v33 = vor.u32 %v7474_v39, %v7470_v19  ;;  %v7496_v24 = vshrl.u32 %v13813_v22, 16  ;;  %v7502_v51 = vshll.u32 %v13823_v21, 16  ;;  %v13839_v15 = vpop.f32.mrf.mxu1 }
 0x315   : > { %10750 = vmatmul.mubr.msk.bf16.gmra.mxu0 %vm363_vm0, %v9608_v60  ;;  %10706 = vmatmul.mubr.msk.bf16.vlgmr.msra.gmra.mxu1 %vm363_vm0, %v10928_v52  ;;  %v7485_v62 = vrot.slane %v7483_v32, 4  ;;  %v7488_v41 = vrot.slane %v7486_v61, 5  ;;  %v13835_v37 = vadd.f32 %v13651_v49, %v13759_v40  ;;  %v7494_v18 = vrot.slane %v7492_v7, 5  ;;  %v13847_v49 = vld [vmem:[#allocation2 + $0x68] sm:$0x1]  ;;  %v10931_v61 = vld [vmem:[#allocation2 + $0x3c] sm:$0xff]  }
 0x316   : > { %v7471_v14 = vsel %vm12072_vm5, %v7466_v0, %v7470_v19  ;;  %v7476_v38 = vrot.slane %v7475_v33, 4  ;;  %10709 = vmatprep.mubr.msk.bf16.mxu1 %vm363_vm0, %v10930_v50  ;;  %10778 = vmatpush3.bf16.msra.mxu1 %v13587_v27  ;;  %v7498_v6 = vrot.slane %v7496_v24, 4  ;;  %v7504_v48 = vrot.slane %v7502_v51, 5  ;;  %v10939_v27 = vld [vmem:[%s15032_s3 + $0x108] sm:$0xff]   ;;  %v13856_v50 = vpop.f32.mrf.mxu1 }
 0x317   : > { %15163 = vst [vmem:[#allocation5_spill] sm:$0xff] %v13835_v37  ;;  %v7489_v54 = vor.u32 %v7488_v41, %v7485_v62  ;;  %v7507_v40 = vshrl.u32 %v7332_v20, 16  ;;  %v7510_v57 = vshll.u32 %v7332_v20, 16  ;;  %10779 = vmatprep.subr.bf16.mxu1 %v10934_v63  ;;  %v7516_v19 = vshll.u32 %v13837_v11, 16  ;;  %v7335_v41 = vld [vmem:[#allocation2 + $0x6c] sm:$0xf] }
 0x318   : > { %v7481_v30 = vsel %vm12072_vm5, %v7476_v38, %v7480_v9  ;;  %v7499_v39 = vor.u32 %v7498_v6, %v7494_v18  ;;  %v7520_v60 = vshrl.u32 %v13837_v11, 16  ;;  %v7526_v62 = vshll.u32 %v13847_v49, 16  ;;  %v13870_v6 = vld [vmem:[#allocation2 + $0x70] sm:$0xf] }
 0x319   : > { %v9609_v52 = vcombine.low %v7471_v14, %v7481_v30  ;;  %v7490_v32 = vrot.slane %v7489_v54, 4  ;;  %v7509_v0 = vrot.slane %v7507_v40, 4  ;;  %v7512_v33 = vrot.slane %v7510_v57, 5  ;;  %v13858_v7 = vpop.f32.mrf.mxu0  ;;  %v13872_v54 = vld [vmem:[#allocation2 + $0x74] sm:$0x1] }
 0x31a   : > { %v7500_v24 = vrot.slane %v7499_v39, 4  ;;  %v7518_v9 = vrot.slane %v7516_v19, 5  ;;  %v7522_v20 = vrot.slane %v7520_v60, 4  ;;  %10780 = vmatpush3.bf16.msra.mxu1 %v10934_v63  ;;  %v13864_v14 = vadd.f32 %v13672_v16, %v13773_v31  ;;  %v10944_v63 = vld [vmem:[%s15032_s3 + $0x100] sm:$0xff]  }
 0x31b   : > { %10753 = vmatprep.mubr.msk.bf16.mxu0 %vm363_vm0, %v9609_v52  ;;  %v7513_v51 = vor.u32 %v7512_v33, %v7509_v0  ;;  %v13868_v38 = vadd.f32 %v13684_v58, %v13794_v23  ;;  %v13874_v40 = vpop.f32.mrf.mxu0  ;;  %v7495_v57 = vsel %vm12072_vm5, %v7490_v32, %v7494_v18  ;;  %v7528_v30 = vrot.slane %v7526_v62, 5  ;;  %v10932_v58 = vld [vmem:[#allocation2 + $0x48] sm:$0xff]   ;;  %10781 = vmatprep.subr.bf16.mxu1 %v10939_v27  ;;  %v10476_v52 = vpop.f32.mrf.mxu1  ;;  %v7338_v32 = vld [vmem:[#allocation2 + $0x78] sm:$0xf] }
 0x31c   : > { %15164 = vst [vmem:[#allocation16_spill] sm:$0xff] %v13864_v14  ;;  %v7505_v16 = vsel %vm12072_vm5, %v7500_v24, %v7504_v48  ;;  %v7523_v31 = vor.u32 %v7522_v20, %v7518_v9  ;;  %v7531_v19 = vshrl.u32 %v7335_v41, 16  ;;  %v7534_v60 = vshll.u32 %v7335_v41, 16  ;;  %v13895_v41 = vld [vmem:[#allocation2 + $0x7c] sm:$0xf]  ;;  %v10936_v14 = vld [vmem:[#allocation2 + $0x6c] sm:$0xff]  }
 0x31d   : > { %15165 = vst [vmem:[#allocation6_spill] sm:$0xff] %v13868_v38  ;;  %v9610_v23 = vcombine.low %v7495_v57, %v7505_v16  ;;  %10710 = vmatmul.mubr.msk.bf16.gmra.mxu1 %vm363_vm0, %v10931_v61  ;;  %v7514_v39 = vrot.slane %v7513_v51, 4  ;;  %v7540_v33 = vshll.u32 %v13870_v6, 16  ;;  %v7544_v18 = vshrl.u32 %v13870_v6, 16  ;;  %v13897_v51 = vld [vmem:[#allocation2 + $0x80] sm:$0x1]  ;;  %v13899_v57 = vpop.f32.mrf.mxu0 }
 0x31e   : > { %v7524_v0 = vrot.slane %v7523_v31, 4  ;;  %10713 = vmatprep.mubr.msk.bf16.mxu1 %vm363_vm0, %v10932_v58  ;;  %v7550_v48 = vshll.u32 %v13872_v54, 16  ;;  %10782 = vmatpush3.bf16.msra.mxu1 %v10939_v27  ;;  %v7533_v24 = vrot.slane %v7531_v19, 4  ;;  %v7536_v20 = vrot.slane %v7534_v60, 5  ;;  %v4399_v60 = vpop.f32.mrf.mxu1 }
 0x31f   : > { %10754 = vmatmul.mubr.msk.bf16.gmra.mxu0 %vm363_vm0, %v9610_v23  ;;  %v7519_v61 = vsel %vm12072_vm5, %v7514_v39, %v7518_v9  ;;  %v13893_v62 = vadd.f32 %v13716_v44, %v13839_v15  ;;  %10783 = vmatprep.subr.bf16.mxu1 %v10944_v63  ;;  %v7542_v16 = vrot.slane %v7540_v33, 5  ;;  %v7546_v31 = vrot.slane %v7544_v18, 4  ;;  %v10933_v15 = vld [vmem:[#allocation2 + $0x54] sm:$0xff]   ;;  %v10935_v18 = vld [vmem:[#allocation2 + $0x60] sm:$0xff]  }
 0x320   : > { %v7529_v27 = vsel %vm12072_vm5, %v7524_v0, %v7528_v30  ;;  %v7552_v58 = vrot.slane %v7550_v48, 5  ;;  %v7537_v23 = vor.u32 %v7536_v20, %v7533_v24  ;;  %v7555_v39 = vshrl.u32 %v7338_v32, 16 }
 0x321   : > { %15166 = vst [vmem:[#allocation7_spill] sm:$0xff] %v13893_v62  ;;  %v9611_v9 = vcombine.low %v7519_v61, %v7529_v27  ;;  %v7558_v19 = vshll.u32 %v7338_v32, 16  ;;  %v7547_v44 = vor.u32 %v7546_v31, %v7542_v16  ;;  %v7564_v62 = vshll.u32 %v13895_v41, 16  ;;  %v7341_v32 = vld [vmem:[#allocation2 + $0x84] sm:$0xf]  ;;  %v13911_v61 = vpop.f32.mrf.mxu0 }
 0x322   : > { %v7568_v38 = vshrl.u32 %v13895_v41, 16  ;;  %v7574_v55 = vshll.u32 %v13897_v51, 16  ;;  %10784 = vmatpush3.bf16.msra.mxu1 %v10944_v63  ;;  %v7538_v30 = vrot.slane %v7537_v23, 4  ;;  %v7557_v0 = vrot.slane %v7555_v39, 4 }
 0x323   : > { %10757 = vmatprep.mubr.msk.bf16.mxu0 %vm363_vm0, %v9611_v9  ;;  %v7560_v33 = vrot.slane %v7558_v19, 5  ;;  %v13909_v48 = vadd.f32 %v13734_v34, %v13856_v50  ;;  %v7548_v24 = vrot.slane %v7547_v44, 4  ;;  %v7566_v20 = vrot.slane %v7564_v62, 5  ;;  %v13924_v50 = vld [vmem:[#allocation2 + $0x8c] sm:$0x1] }
 0x324   : > { %v7570_v27 = vrot.slane %v7568_v38, 4  ;;  %v7576_v31 = vrot.slane %v7574_v55, 5  ;;  %v7543_v63 = vsel %vm12072_vm5, %v7538_v30, %v7542_v16  ;;  %v13919_v23 = vadd.f32 %v13744_v29, %v10476_v52  ;;  %15170 = vst [vmem:[#allocation11_spill] sm:$0xff] %v13924_v50  ;;  %v7344_v52 = vld [vmem:[#allocation2 + $0x90] sm:$0xf] }
 0x325   : > { %15167 = vst [vmem:[#allocation8_spill] sm:$0xff] %v13909_v48  ;;  %10714 = vmatmul.mubr.msk.bf16.gmra.mxu1 %vm363_vm0, %v10933_v15  ;;  %v7561_v9 = vor.u32 %v7560_v33, %v7557_v0  ;;  %v13922_v34 = vadd.f32 %v13761_v1, %v4399_v60  ;;  %v10479_v39 = vpop.f32.mrf.mxu1  ;;  %v7553_v55 = vsel %vm12072_vm5, %v7548_v24, %v7552_v58  ;;  %v7579_v62 = vshrl.u32 %v7341_v32, 16  ;;  %v13934_v24 = vld [vmem:[#allocation2 + $0x94] sm:$0xf] }
 0x326   : > { %15168 = vst [vmem:[#allocation9_spill] sm:$0xff] %v13919_v23  ;;  %v7571_v38 = vor.u32 %v7570_v27, %v7566_v20  ;;  %10717 = vmatprep.mubr.msk.bf16.mxu1 %vm363_vm0, %v10935_v18  ;;  %v7582_v16 = vshll.u32 %v7341_v32, 16  ;;  %v9612_v19 = vcombine.low %v7543_v63, %v7553_v55  ;;  %v7588_v15 = vshll.u32 %v13913_v53, 16  ;;  %v13931_v60 = vpop.f32.mrf.mxu0 }
 0x327   : > { %15169 = vst [vmem:[#allocation10_spill] sm:$0xff] %v13922_v34  ;;  %v7562_v44 = vrot.slane %v7561_v9, 4  ;;  %v7592_v29 = vshrl.u32 %v13913_v53, 16  ;;  %v4412_v1 = vpop.f32.mrf.mxu1  ;;  %v7581_v0 = vrot.slane %v7579_v62, 4  ;;  %v7598_v58 = vshll.u32 %v13924_v50, 16 }
 0x328   : > { %v7572_v30 = vrot.slane %v7571_v38, 4  ;;  %v7584_v33 = vrot.slane %v7582_v16, 5  ;;  %10758 = vmatmul.mubr.msk.bf16.gmra.mxu0 %vm363_vm0, %v9612_v19  ;;  %v7590_v32 = vrot.slane %v7588_v15, 5  ;;  %v13940_v63 = vadd.f32 %v13775_v5, %v10479_v39  ;;  %v13942_v9 = vld [vmem:[#allocation2 + $0x98] sm:$0x1]  ;;  %v13944_v38 = vpop.f32.mrf.mxu0 }
 0x329   : > { %v7567_v18 = vsel %vm12072_vm5, %v7562_v44, %v7566_v20  ;;  %v7594_v27 = vrot.slane %v7592_v29, 4  ;;  %15172 = vst [vmem:[#allocation13_spill] sm:$0xff] %v13942_v9  ;;  %v10480_v55 = vpop.f32.mrf.mxu1  ;;  %v7600_v34 = vrot.slane %v7598_v58, 5  ;;  %v7603_v23 = vshrl.u32 %v7344_v52, 16  ;;  %v10937_v15 = vld [vmem:[#allocation2 + $0x78] sm:$0xff]  }
 0x32a   : > { %15171 = vst [vmem:[#allocation12_spill] sm:$0xff] %v13940_v63  ;;  %v7577_v62 = vsel %vm12072_vm5, %v7572_v30, %v7576_v31  ;;  %v7585_v16 = vor.u32 %v7584_v33, %v7581_v0  ;;  %v7606_v20 = vshll.u32 %v7344_v52, 16  ;;  %v7612_v44 = vshll.u32 %v13934_v24, 16  ;;  %v13949_v5 = vpop.f32.mrf.mxu0  ;;  %v7347_v31 = vld [vmem:[#allocation2 + $0x9c] sm:$0xf] }
 0x32b   : > { %v9613_v19 = vcombine.low %v7567_v18, %v7577_v62  ;;  %v7595_v48 = vor.u32 %v7594_v27, %v7590_v32  ;;  %v7605_v29 = vrot.slane %v7603_v23, 4  ;;  %v7616_v63 = vshrl.u32 %v13934_v24, 16  ;;  %v4415_v37 = vpop.f32.mrf.mxu1  ;;  %v13958_v58 = vld [vmem:[#allocation2 + $0xa0] sm:$0xf] }
 0x32c   : > { %v7586_v39 = vrot.slane %v7585_v16, 4  ;;  %v7622_v50 = vshll.u32 %v13942_v9, 16  ;;  %v7608_v0 = vrot.slane %v7606_v20, 5  ;;  %v7614_v52 = vrot.slane %v7612_v44, 5  ;;  %15174 = vst [vmem:[#allocation18_spill] sm:$0xff] %v13958_v58  ;;  %v13960_v18 = vpop.f32.mrf.mxu0 }
 0x32d   : > { %10761 = vmatprep.mubr.msk.bf16.mxu0 %vm363_vm0, %v9613_v19  ;;  %v7596_v30 = vrot.slane %v7595_v48, 4  ;;  %10718 = vmatmul.mubr.msk.bf16.gmra.mxu1 %vm363_vm0, %v10936_v14  ;;  %v13956_v33 = vadd.f32 %v13796_v28, %v4412_v1  ;;  %v7618_v27 = vrot.slane %v7616_v63, 4  ;;  %v13966_v48 = vadd.f32 %v13817_v35, %v10480_v55  ;;  %v13968_v14 = vld [vmem:[#allocation2 + $0xa4] sm:$0x1]  ;;  %v7350_v63 = vld [vmem:[#allocation2 + $0xa8] sm:$0xf] }
 0x32e   : > { %v7591_v23 = vsel %vm12072_vm5, %v7586_v39, %v7590_v32  ;;  %v7624_v62 = vrot.slane %v7622_v50, 5  ;;  %10721 = vmatprep.mubr.msk.bf16.mxu1 %vm363_vm0, %v10937_v15  ;;  %15176 = vst [vmem:[#allocation22_spill] sm:$0xff] %v13968_v14  ;;  %v7609_v1 = vor.u32 %v7608_v0, %v7605_v29  ;;  %v13973_v16 = vadd.f32 %v13841_v3, %v4415_v37  ;;  %v13980_v29 = vld [vmem:[#allocation2 + $0xac] sm:$0xf] }
 0x32f   : > { %15173 = vst [vmem:[#allocation14_spill] sm:$0xff] %v13956_v33  ;;  %15175 = vst [vmem:[#allocation20_spill] sm:$0xff] %v13966_v48  ;;  %v7601_v28 = vsel %vm12072_vm5, %v7596_v30, %v7600_v34  ;;  %v7627_v19 = vshrl.u32 %v7347_v31, 16  ;;  %v7619_v44 = vor.u32 %v7618_v27, %v7614_v52  ;;  %v7630_v32 = vshll.u32 %v7347_v31, 16 }
 0x330   : > { %15177 = vst [vmem:[#allocation15_spill] sm:$0xff] %v13973_v16  ;;  %v9614_v20 = vcombine.low %v7591_v23, %v7601_v28  ;;  %v7636_v50 = vshll.u32 %v13958_v58, 16  ;;  %v13976_v15 = vpop.f32.mrf.mxu0  ;;  %v7610_v35 = vrot.slane %v7609_v1, 4  ;;  %v7640_v39 = vshrl.u32 %v13958_v58, 16  ;;  %v10938_v1 = vld [vmem:[#allocation2 + $0x84] sm:$0xff]  }
 0x331   : > { %v7629_v55 = vrot.slane %v7627_v19, 4  ;;  %v7646_v48 = vshll.u32 %v13968_v14, 16  ;;  %v10483_v34 = vpop.f32.mrf.mxu1  ;;  %v7620_v37 = vrot.slane %v7619_v44, 4  ;;  %v7632_v3 = vrot.slane %v7630_v32, 5  ;;  %v13990_v19 = vld [vmem:[#allocation2 + $0xb0] sm:$0x1] }
 0x332   : > { %10762 = vmatmul.mubr.msk.bf16.gmra.mxu0 %vm363_vm0, %v9614_v20  ;;  %v7638_v30 = vrot.slane %v7636_v50, 5  ;;  %v13984_v31 = vadd.f32 %v13858_v7, %v10483_v34  ;;  %v13986_v0 = vpop.f32.mrf.mxu0  ;;  %v7615_v23 = vsel %vm12072_vm5, %v7610_v35, %v7614_v52  ;;  %v7642_v27 = vrot.slane %v7640_v39, 4  ;;  %15179 = vst [vmem:[#allocation17_spill] sm:$0xff] %v13990_v19  ;;  %v10940_v50 = vld [vmem:[#allocation2 + $0x90] sm:$0xff]  }
 0x333   : > { %v7648_v28 = vrot.slane %v7646_v48, 5  ;;  %v7651_v16 = vshrl.u32 %v7350_v63, 16  ;;  %v4428_v33 = vpop.f32.mrf.mxu1  ;;  %v7625_v20 = vsel %vm12072_vm5, %v7620_v37, %v7624_v62  ;;  %v7633_v44 = vor.u32 %v7632_v3, %v7629_v55 }
 0x334   : > { %15178 = vst [vmem:[#allocation24_spill] sm:$0xff] %v13984_v31  ;;  %v7654_v32 = vshll.u32 %v7350_v63, 16  ;;  %v7660_v7 = vshll.u32 %v13980_v29, 16  ;;  %v13995_v34 = vpop.f32.mrf.mxu0  ;;  %v9615_v31 = vcombine.low %v7615_v23, %v7625_v20  ;;  %v7643_v14 = vor.u32 %v7642_v27, %v7638_v30  ;;  %v7353_v63 = vld [vmem:[#allocation2 + $0xb4] sm:$0xf] }
 0x335   : > { %10722 = vmatmul.mubr.msk.bf16.gmra.mxu1 %vm363_vm0, %v10938_v1  ;;  %v7653_v52 = vrot.slane %v7651_v16, 4  ;;  %v7664_v48 = vshrl.u32 %v13980_v29, 16  ;;  %v10484_v35 = vpop.f32.mrf.mxu1  ;;  %v7634_v39 = vrot.slane %v7633_v44, 4  ;;  %v7670_v62 = vshll.u32 %v13990_v19, 16  ;;  %v14010_v1 = vld [vmem:[#allocation2 + $0xb8] sm:$0xf] }
 0x336   : > { %v7656_v9 = vrot.slane %v7654_v32, 5  ;;  %v7662_v58 = vrot.slane %v7660_v7, 5  ;;  %10725 = vmatprep.mubr.msk.bf16.mxu1 %vm363_vm0, %v10940_v50  ;;  %v14001_v55 = vpop.f32.mrf.mxu0  ;;  %10765 = vmatprep.mubr.msk.bf16.mxu0 %vm363_vm0, %v9615_v31  ;;  %v7644_v37 = vrot.slane %v7643_v14, 4  ;;  %v14005_v23 = vadd.f32 %v13874_v40, %v4428_v33  ;;  %15182 = vst [vmem:[#allocation23_spill] sm:$0xff] %v14010_v1  ;;  %v14017_v31 = vld [vmem:[#allocation2 + $0xbc] sm:$0x1] }
 0x337   : > { %v7666_v3 = vrot.slane %v7664_v48, 4  ;;  %v14008_v16 = vadd.f32 %v13899_v57, %v10484_v35  ;;  %v4431_v27 = vpop.f32.mrf.mxu1  ;;  %v7639_v20 = vsel %vm12072_vm5, %v7634_v39, %v7638_v30  ;;  %v7672_v32 = vrot.slane %v7670_v62, 5  ;;  %15184 = vst [vmem:[#allocation27_spill] sm:$0xff] %v14017_v31  ;;  %v10941_v30 = vld [vmem:[#allocation2 + $0x9c] sm:$0xff]  }
 0x338   : > { %15180 = vst [vmem:[#allocation19_spill] sm:$0xff] %v14005_v23  ;;  %v7657_v44 = vor.u32 %v7656_v9, %v7653_v52  ;;  %v14015_v7 = vadd.f32 %v13911_v61, %v4431_v27  ;;  %v14019_v14 = vpop.f32.mrf.mxu0  ;;  %v7649_v40 = vsel %vm12072_vm5, %v7644_v37, %v7648_v28  ;;  %v7675_v33 = vshrl.u32 %v7353_v63, 16  ;;  %v7356_v52 = vld [vmem:[#allocation2 + $0xc0] sm:$0xf]  ;;  %v14028_v28 = vld [vmem:[#allocation2 + $0xc4] sm:$0xf] }
 0x339   : > { %15181 = vst [vmem:[#allocation21_spill] sm:$0xff] %v14008_v16  ;;  %v7667_v57 = vor.u32 %v7666_v3, %v7662_v58  ;;  %v7678_v50 = vshll.u32 %v7353_v63, 16  ;;  %v9616_v48 = vcombine.low %v7639_v20, %v7649_v40  ;;  %v7684_v16 = vshll.u32 %v14010_v1, 16  ;;  %v10942_v40 = vld [vmem:[#allocation2 + $0xa8] sm:$0xff]  }
 0x33a   : > { %15183 = vst [vmem:[#allocation25_spill] sm:$0xff] %v14015_v7  ;;  %v7658_v35 = vrot.slane %v7657_v44, 4  ;;  %v7688_v9 = vshrl.u32 %v14010_v1, 16  ;;  %v14025_v61 = vpop.f32.mrf.mxu0  ;;  %v7677_v62 = vrot.slane %v7675_v33, 4  ;;  %v7694_v7 = vshll.u32 %v14017_v31, 16 }
 0x33b   : > { %v7668_v39 = vrot.slane %v7667_v57, 4  ;;  %v7680_v27 = vrot.slane %v7678_v50, 5  ;;  %v10487_v23 = vpop.f32.mrf.mxu1  ;;  %10766 = vmatmul.mubr.msk.bf16.gmra.mxu0 %vm363_vm0, %v9616_v48  ;;  %v7686_v37 = vrot.slane %v7684_v16, 5  ;;  %v14036_v44 = vld [vmem:[#allocation2 + $0xc8] sm:$0x1]  ;;  %v7699_v48 = vshrl.u32 %v7356_v52, 16 }
 0x33c   : > { %v7663_v63 = vsel %vm12072_vm5, %v7658_v35, %v7662_v58  ;;  %v7690_v3 = vrot.slane %v7688_v9, 4  ;;  %v14034_v20 = vadd.f32 %v13931_v60, %v10487_v23  ;;  %15186 = vst [vmem:[#allocation29_spill] sm:$0xff] %v14036_v44  ;;  %v14038_v57 = vpop.f32.mrf.mxu0  ;;  %v7696_v31 = vrot.slane %v7694_v7, 5 }
 0x33d   : > { %v7673_v33 = vsel %vm12072_vm5, %v7668_v39, %v7672_v32  ;;  %v7681_v50 = vor.u32 %v7680_v27, %v7677_v62  ;;  %10726 = vmatmul.mubr.msk.bf16.gmra.mxu1 %vm363_vm0, %v10941_v30  ;;  %v4444_v19 = vpop.f32.mrf.mxu1  ;;  %v7702_v35 = vshll.u32 %v7356_v52, 16  ;;  %v7708_v60 = vshll.u32 %v14028_v28, 16 }
 0x33e   : > { %15185 = vst [vmem:[#allocation28_spill] sm:$0xff] %v14034_v20  ;;  %v9617_v58 = vcombine.low %v7663_v63, %v7673_v33  ;;  %v7691_v16 = vor.u32 %v7690_v3, %v7686_v37  ;;  %10729 = vmatprep.mubr.msk.bf16.mxu1 %vm363_vm0, %v10942_v40  ;;  %v14045_v23 = vpop.f32.mrf.mxu0  ;;  %v7701_v20 = vrot.slane %v7699_v48, 4  ;;  %v7712_v1 = vshrl.u32 %v14028_v28, 16  ;;  %v8068_v63 = vld [vmem:[#allocation2 + $0x18] sm:$0xe] }
 0x33f   : > { %v7682_v9 = vrot.slane %v7681_v50, 4  ;;  %v7718_v32 = vshll.u32 %v14036_v44, 16  ;;  %v10488_v7 = vpop.f32.mrf.mxu1  ;;  %v7704_v39 = vrot.slane %v7702_v35, 5  ;;  %v7710_v62 = vrot.slane %v7708_v60, 5  ;;  %v7359_v48 = vld [vmem:[#allocation2 + $0xcc] sm:$0xf] }
 0x340   : > { %10769 = vmatprep.mubr.msk.bf16.mxu0 %vm363_vm0, %v9617_v58  ;;  %v7692_v30 = vrot.slane %v7691_v16, 4  ;;  %v14051_v52 = vadd.f32 %v13944_v38, %v4444_v19  ;;  %v14053_v27 = vpop.f32.mrf.mxu0  ;;  %v7714_v40 = vrot.slane %v7712_v1, 4  ;;  %v14058_v33 = vadd.f32 %v13949_v5, %v10488_v7  ;;  %v14067_v60 = vld [vmem:[#allocation2 + $0xd0] sm:$0xf] }
 0x341   : > { %v7687_v3 = vsel %vm12072_vm5, %v7682_v9, %v7686_v37  ;;  %v4447_v50 = vpop.f32.mrf.mxu1  ;;  %v7705_v16 = vor.u32 %v7704_v39, %v7701_v20  ;;  %v7720_v35 = vrot.slane %v7718_v32, 5  ;;  %v10943_v9 = vld [vmem:[#allocation2 + $0xb4] sm:$0xff]   ;;  %v9641_v5 = vrot.slane %v8068_v63, 9 }
 0x342   : > { %15187 = vst [vmem:[#allocation30_spill] sm:$0xff] %v14051_v52  ;;  %15188 = vst [vmem:[#allocation31_spill] sm:$0xff] %v14058_v33  ;;  %v7697_v58 = vsel %vm12072_vm5, %v7692_v30, %v7696_v31  ;;  %v14063_v38 = vadd.f32 %v13960_v18, %v4447_v50  ;;  %v14065_v19 = vpop.f32.mrf.mxu0  ;;  %v7715_v37 = vor.u32 %v7714_v40, %v7710_v62  ;;  %v8134_v7 = vrot.slane %v13690_v43, 5  ;;  %v10945_v31 = vld [vmem:[#allocation2 + $0xc0] sm:$0xff]   ;;  %v14085_v50 = vld [vmem:[#allocation2 + $0xd4] sm:$0x1] }
 0x343   : > { %v9618_v44 = vcombine.low %v7687_v3, %v7697_v58  ;;  %v10491_v1 = vpop.f32.mrf.mxu1  ;;  %v7706_v33 = vrot.slane %v7705_v16, 4  ;;  %v7723_v20 = vshrl.u32 %v7359_v48, 16  ;;  %v7726_v32 = vshll.u32 %v7359_v48, 16 }
 0x344   : > { %v14071_v52 = vadd.f32 %v13976_v15, %v10491_v1  ;;  %v14073_v18 = vpop.f32.mrf.mxu0  ;;  %v7716_v30 = vrot.slane %v7715_v37, 4  ;;  %v8136_v3 = vrot.slane %v8134_v7, 4  ;;  %v8137_v63 = vrot.slane %v13697_v45, 5 }
 0x345   : > { %10770 = vmatmul.mubr.msk.bf16.gmra.mxu0 %vm363_vm0, %v9618_v44  ;;  %10730 = vmatmul.mubr.msk.bf16.gmra.mxu1 %vm363_vm0, %v10943_v9  ;;  %v4460_v39 = vpop.f32.mrf.mxu1  ;;  %v7732_v43 = vshll.u32 %v14067_v60, 16  ;;  %v7711_v15 = vsel %vm12072_vm5, %v7706_v33, %v7710_v62  ;;  %v7725_v44 = vrot.slane %v7723_v20, 4  ;;  %v7728_v48 = vrot.slane %v7726_v32, 5  ;;  %v8069_v33 = vld [vmem:[#allocation2 + $0x24] sm:$0xe] }
 0x346   : > { %15189 = vst [vmem:[#allocation32_spill] sm:$0xff] %v14071_v52  ;;  %10733 = vmatprep.mubr.msk.bf16.mxu1 %vm363_vm0, %v10945_v31  ;;  %v14083_v40 = vadd.f32 %v13986_v0, %v4460_v39  ;;  %v14087_v58 = vpop.f32.mrf.mxu0  ;;  %v7721_v16 = vsel %vm12072_vm5, %v7716_v30, %v7720_v35  ;;  %v8138_v37 = vsel %vm12932_vm14, %v8136_v3, %v8137_v63  ;;  %v7736_v62 = vshrl.u32 %v14067_v60, 16  ;;  %v10946_v30 = vld [vmem:[#allocation2 + $0xcc] sm:$0xff]   ;;  %v15209_v52 = vld [vmem:[#allocation27_spill] sm:$0xff] }
 0x347   : > { %v10492_v45 = vpop.f32.mrf.mxu1  ;;  %v7734_v1 = vrot.slane %v7732_v43, 5  ;;  %v14096_v0 = vadd.f32 %v13628_v46, %v13742_v8  ;;  %v9619_v9 = vcombine.low %v7711_v15, %v7721_v16  ;;  %v7729_v20 = vor.u32 %v7728_v48, %v7725_v44 }
 0x348   : > { %15190 = vst [vmem:[#allocation33_spill] sm:$0xff] %v14083_v40  ;;  %v14099_v31 = vadd.f32 %v13995_v34, %v10492_v45  ;;  %v14101_v32 = vpop.f32.mrf.mxu0  ;;  %v8135_v39 = vsel %vm12932_vm14, %v9641_v5, %v8134_v7  ;;  %v7738_v3 = vrot.slane %v7736_v62, 4  ;;  %v7742_v63 = vshll.u32 %v14085_v50, 16  ;;  %v8070_v40 = vld [vmem:[#allocation2 + $0x30] sm:$0xe] }
 0x349   : > { %v4463_v35 = vpop.f32.mrf.mxu1  ;;  %v8141_v43 = vrot.slane %v13719_v12, 5  ;;  %10773 = vmatprep.mubr.msk.bf16.mxu0 %vm363_vm0, %v9619_v9  ;;  %v9665_v8 = vcombine.low %v8135_v39, %v8138_v37  ;;  %v7730_v34 = vrot.slane %v7729_v20, 4  ;;  %v9642_v15 = vrot.slane %v8069_v33, 9  ;;  %v8071_v62 = vld [vmem:[#allocation2 + $0x3c] sm:$0xe] }
 0x34a   : > { %15191 = vst [vmem:[#allocation34_spill] sm:$0xff] %v14099_v31  ;;  %v14109_v46 = vadd.f32 %v14001_v55, %v4463_v35  ;;  %v14111_v44 = vpop.f32.mrf.mxu0  ;;  %v7739_v16 = vor.u32 %v7738_v3, %v7734_v1  ;;  %v7744_v45 = vrot.slane %v7742_v63, 5  ;;  %v8144_v7 = vrot.slane %v13727_v17, 5 }
 0x34b   : > { %v10495_v48 = vpop.f32.mrf.mxu1  ;;  %v8143_v5 = vrot.slane %v8141_v43, 4  ;;  %v8142_v9 = vsel %vm12932_vm14, %v9642_v15, %v8141_v43  ;;  %v9643_v55 = vrot.slane %v8070_v40, 9  ;;  %v8148_v37 = vrot.slane %v13749_v4, 5  ;;  %v8072_v43 = vld [vmem:[#allocation2 + $0x48] sm:$0xe] }
 0x34c   : > { %15192 = vst [vmem:[#allocation35_spill] sm:$0xff] %v14109_v46  ;;  %v14115_v12 = vadd.f32 %v14019_v14, %v10495_v48  ;;  %v14120_v20 = vpop.f32.mrf.mxu0  ;;  %v7735_v35 = vsel %vm12072_vm5, %v7730_v34, %v7734_v1  ;;  %v7740_v39 = vrot.slane %v7739_v16, 4  ;;  %v8155_v14 = vrot.slane %v13767_v56, 5 }
 0x34d   : > { %10734 = vmatmul.mubr.msk.bf16.gmra.mxu1 %vm363_vm0, %v10946_v30  ;;  %v4476_v33 = vpop.f32.mrf.mxu1  ;;  %v8145_v17 = vsel %vm12932_vm14, %v8143_v5, %v8144_v7  ;;  %v8150_v4 = vrot.slane %v8148_v37, 4  ;;  %v8151_v3 = vrot.slane %v13755_v10, 5  ;;  %v9644_v30 = vrot.slane %v8071_v62, 9  ;;  %v8073_v7 = vld [vmem:[#allocation2 + $0x54] sm:$0xe] }
 0x34e   : > { %15193 = vst [vmem:[#allocation36_spill] sm:$0xff] %v14115_v12  ;;  %10785 = vmatprep.mubr.msk.bf16.mxu1 %vm363_vm0, %v9665_v8  ;;  %v14130_v40 = vadd.f32 %v14025_v61, %v4476_v33  ;;  %v14133_v63 = vpop.f32.mrf.mxu0  ;;  %v7745_v1 = vsel %vm12072_vm5, %v7740_v39, %v7744_v45  ;;  %v9666_v15 = vcombine.low %v8142_v9, %v8145_v17  ;;  %v8157_v48 = vrot.slane %v8155_v14, 4  ;;  %v8074_v39 = vld [vmem:[#allocation2 + $0x60] sm:$0xe] }
 0x34f   : > { %v10496_v34 = vpop.f32.mrf.mxu1  ;;  %v8158_v56 = vrot.slane %v13771_v13, 5  ;;  %v9620_v16 = vcombine.low %v7735_v35, %v7745_v1  ;;  %v8149_v61 = vsel %vm12932_vm14, %v9643_v55, %v8148_v37  ;;  %v8152_v10 = vsel %vm12932_vm14, %v8150_v4, %v8151_v3 }
 0x350   : > { %15194 = vst [vmem:[#allocation37_spill] sm:$0xff] %v14130_v40  ;;  %v14139_v8 = vadd.f32 %v14038_v57, %v10496_v34  ;;  %v14145_v5 = vpop.f32.mrf.mxu0  ;;  %v14149_v45 = vsel %vm12932_vm14, %v9644_v30, %v8155_v14  ;;  %v9645_v57 = vrot.slane %v8072_v43, 9  ;;  %v8162_v62 = vrot.slane %v13783_v59, 5  ;;  %v8075_v30 = vld [vmem:[#allocation2 + $0x6c] sm:$0xe] }
 0x351   : > { %v4479_v2 = vpop.f32.mrf.mxu1  ;;  %v14153_v13 = vsel %vm12932_vm14, %v8157_v48, %v8158_v56  ;;  %10774 = vmatmul.mubr.msk.bf16.gmra.mxu0 %vm363_vm0, %v9620_v16  ;;  %v9667_v55 = vcombine.low %v8149_v61, %v8152_v10  ;;  %v8165_v33 = vrot.slane %v13792_v25, 5  ;;  %v8169_v35 = vrot.slane %v13813_v22, 5 }
 0x352   : > { %15195 = vst [vmem:[#allocation38_spill] sm:$0xff] %v14139_v8  ;;  %v14158_v9 = vadd.f32 %v14045_v23, %v4479_v2  ;;  %v14160_v37 = vpop.f32.mrf.mxu0  ;;  %v9668_v14 = vcombine.low %v14149_v45, %v14153_v13  ;;  %v8163_v59 = vsel %vm12932_vm14, %v9645_v57, %v8162_v62  ;;  %v8164_v4 = vrot.slane %v8162_v62, 4  ;;  %v15205_v8 = vld [vmem:[#allocation22_spill] sm:$0xff] }
 0x353   : > { %v10547_v17 = vpop.f32.mrf.mxu1  ;;  %v9646_v3 = vrot.slane %v8073_v7, 9  ;;  %v8171_v1 = vrot.slane %v8169_v35, 4  ;;  %v8172_v25 = vrot.slane %v13823_v21, 5  ;;  %v8176_v22 = vrot.slane %v13837_v11, 5  ;;  %v8076_v7 = vld [vmem:[#allocation2 + $0x78] sm:$0xe] }
 0x354   : > { %15196 = vst [vmem:[#allocation39_spill] sm:$0xff] %v14158_v9  ;;  %v14169_v23 = vadd.f32 %v10547_v17, %v13790_v42  ;;  %v14171_v43 = vpop.f32.mrf.mxu0  ;;  %v8166_v48 = vsel %vm12932_vm14, %v8164_v4, %v8165_v33  ;;  %v9647_v16 = vrot.slane %v8074_v39, 9  ;;  %v8183_v42 = vrot.slane %v13870_v6, 5  ;;  %v15204_v6 = vld [vmem:[#allocation6_spill] sm:$0xff] }
 0x355   : > { %10786 = vmatmul.mubr.msk.bf16.vlgmr.msra.gmra.mxu1 %vm363_vm0, %v9666_v15  ;;  %v5130_v34 = vpop.f32.mrf.mxu1  ;;  %v14180_v56 = vsel %vm12932_vm14, %v9646_v3, %v8169_v35  ;;  %v14191_v11 = vsel %vm12932_vm14, %v8171_v1, %v8172_v25  ;;  %v8179_v15 = vrot.slane %v13847_v49, 5  ;;  %v9648_v10 = vrot.slane %v8075_v30, 9  ;;  %v8077_v35 = vld [vmem:[#allocation2 + $0x84] sm:$0xe]  ;;  %v8078_v25 = vld [vmem:[#allocation2 + $0x90] sm:$0xe] }
 0x356   : > { %10789 = vmatprep.mubr.msk.bf16.mxu1 %vm363_vm0, %v9667_v55  ;;  %v14185_v61 = vadd.f32 %v5130_v34, %v13807_v47  ;;  %v14187_v21 = vpop.f32.mrf.mxu0  ;;  %v9669_v45 = vcombine.low %v8163_v59, %v8166_v48  ;;  %v8178_v13 = vrot.slane %v8176_v22, 4  ;;  %v8185_v57 = vrot.slane %v8183_v42, 4  ;;  %v8080_v34 = vld [vmem:[#allocation2 + $0xa8] sm:$0xe] }
 0x357   : > { %v10548_v2 = vpop.f32.mrf.mxu1  ;;  %v14203_v55 = vsel %vm12932_vm14, %v9647_v16, %v8176_v22  ;;  %v8186_v49 = vrot.slane %v13872_v54, 5  ;;  %v8190_v33 = vrot.slane %v13895_v41, 5  ;;  %v9649_v59 = vrot.slane %v8076_v7, 9  ;;  %v15197_v16 = vld [vmem:[#allocation5_spill] sm:$0xff]  ;;  %v15198_v7 = vld [vmem:[#allocation11_spill] sm:$0xff] }
 0x358   : > { %v14197_v47 = vadd.f32 %v10548_v2, %v13811_v26  ;;  %v14199_v62 = vpop.f32.mrf.mxu0  ;;  %v14209_v17 = vsel %vm12932_vm14, %v8178_v13, %v8179_v15  ;;  %v14213_v26 = vsel %vm12932_vm14, %v9648_v10, %v8183_v42  ;;  %v8197_v4 = vrot.slane %v13913_v53, 5  ;;  %v8079_v13 = vld [vmem:[#allocation2 + $0x9c] sm:$0xe] }
 0x359   : > { %v5133_v39 = vpop.f32.mrf.mxu1  ;;  %v14225_v41 = vsel %vm12932_vm14, %v8185_v57, %v8186_v49  ;;  %v8193_v1 = vrot.slane %v13897_v51, 5  ;;  %v8192_v53 = vrot.slane %v8190_v33, 4  ;;  %v9650_v48 = vrot.slane %v8077_v35, 9 }
 0x35a   : > { %v14217_v3 = vadd.f32 %v5133_v39, %v14096_v0  ;;  %v14219_v30 = vpop.f32.mrf.mxu0  ;;  %v8199_v0 = vrot.slane %v8197_v4, 4  ;;  %v14237_v10 = vsel %vm12932_vm14, %v9649_v59, %v8190_v33  ;;  %v8200_v2 = vrot.slane %v15198_v7, 5  ;;  %v15200_v59 = vld [vmem:[#allocation16_spill] sm:$0xff] }
 0x35b   : > { %v10551_v22 = vpop.f32.mrf.mxu1  ;;  %v8204_v51 = vrot.slane %v13934_v24, 5  ;;  %v14244_v49 = vsel %vm12932_vm14, %v8192_v53, %v8193_v1  ;;  %v14248_v35 = vsel %vm12932_vm14, %v9650_v48, %v8197_v4  ;;  %v9651_v39 = vrot.slane %v8078_v25, 9  ;;  %v15201_v53 = vld [vmem:[#allocation13_spill] sm:$0xff] }
 0x35c   : > { %v14231_v42 = vadd.f32 %v10551_v22, %v15197_v16  ;;  %v14233_v15 = vpop.f32.mrf.mxu0  ;;  %v15199_v22 = vld [vmem:[#allocation18_spill] sm:$0xff]  ;;  %v14259_v1 = vsel %vm12932_vm14, %v8199_v0, %v8200_v2  ;;  %v8207_v7 = vrot.slane %v15201_v53, 5  ;;  %v8214_v0 = vrot.slane %v15205_v8, 5 }
 0x35d   : > { %10790 = vmatmul.mubr.msk.bf16.gmra.mxu1 %vm363_vm0, %v9668_v14  ;;  %v5146_v57 = vpop.f32.mrf.mxu1  ;;  %v8211_v33 = vrot.slane %v15199_v22, 5  ;;  %v8206_v48 = vrot.slane %v8204_v51, 4  ;;  %v9652_v22 = vrot.slane %v8079_v13, 9  ;;  %v8218_v2 = vrot.slane %v13980_v29, 5 }
 0x35e   : > { %10793 = vmatprep.mubr.msk.bf16.mxu1 %vm363_vm0, %v9669_v45  ;;  %v5261_v16 = vadd.f32 %v5146_v57, %v15200_v59  ;;  %v14253_v24 = vpop.f32.mrf.mxu0  ;;  %v15202_v57 = vld [vmem:[#allocation4_spill] sm:$0xff]  ;;  %v15203_v59 = vld [vmem:[#allocation3_spill] sm:$0xff]  ;;  %v14273_v40 = vsel %vm12932_vm14, %v9651_v39, %v8204_v51  ;;  %v9653_v39 = vrot.slane %v8080_v34, 9  ;;  %v8228_v29 = vrot.slane %v15209_v52, 5 }
 0x35f   : > { %v10552_v4 = vpop.f32.mrf.mxu1  ;;  %v8213_v45 = vrot.slane %v8211_v33, 4  ;;  %v4697_v54 = vadd.f32 %v15203_v59, %v15202_v57  ;;  %v14277_v13 = vsel %vm12932_vm14, %v8206_v48, %v8207_v7  ;;  %v14281_v57 = vsel %vm12932_vm14, %v9652_v22, %v8211_v33  ;;  %v15207_v22 = vld [vmem:[#allocation17_spill] sm:$0xff]  ;;  %v15212_v52 = vld [vmem:[#allocation8_spill] sm:$0xff] }
 0x360   : > { %v5264_v9 = vadd.f32 %v10552_v4, %v15204_v6  ;;  %v14267_v14 = vpop.f32.mrf.mxu0  ;;  %v8081_v6 = vld [vmem:[#allocation2 + $0xb4] sm:$0xe]  ;;  %v15206_v4 = vld [vmem:[#allocation23_spill] sm:$0xff]  ;;  %v8220_v33 = vrot.slane %v8218_v2, 4  ;;  %v8221_v12 = vrot.slane %v15207_v22, 5 }
 0x361   : > { %v5149_v53 = vpop.f32.mrf.mxu1  ;;  %v8225_v59 = vrot.slane %v15206_v4, 5  ;;  %v14290_v51 = vsel %vm12932_vm14, %v8213_v45, %v8214_v0  ;;  %v15208_v4 = vld [vmem:[#allocation7_spill] sm:$0xff]  ;;  %v9654_v31 = vrot.slane %v8081_v6, 9  ;;  %v15210_v45 = vcombine.low %v14180_v56, %v14191_v11 }
 0x362   : > { %v5262_v25 = vadd.f32 %v5149_v53, %v4697_v54  ;;  %v14284_v8 = vpop.f32.mrf.mxu0  ;;  %v9676_v48 = vcombine.low %v14281_v57, %v14290_v51  ;;  %v14305_v0 = vsel %vm12932_vm14, %v9653_v39, %v8218_v2  ;;  %v14309_v22 = vsel %vm12932_vm14, %v8220_v33, %v8221_v12  ;;  %v15229_v51 = vld [vmem:[#allocation29_spill] sm:$0xff] }
 0x363   : > { %v10555_v7 = vpop.f32.mrf.mxu1  ;;  %v8227_v46 = vrot.slane %v8225_v59, 4  ;;  %v9677_v56 = vcombine.low %v14305_v0, %v14309_v22  ;;  %v14320_v11 = vsel %vm12932_vm14, %v9654_v31, %v8225_v59  ;;  %v14337_v31 = vadd.f32 %v14065_v19, %v14185_v61 }
 0x364   : > { %v5267_v54 = vadd.f32 %v10555_v7, %v15208_v4  ;;  %v14296_v53 = vpop.f32.mrf.mxu0  ;;  %v15211_v7 = vcombine.low %v14203_v55, %v14209_v17  ;;  %v15213_v17 = vld [vmem:[#allocation9_spill] sm:$0xff]  ;;  %v14356_v61 = vadd.f32 %v14120_v20, %v5264_v9  ;;  %v15216_v20 = vcombine.low %v14213_v26, %v14225_v41  ;;  %v15218_v9 = vld [vmem:[#allocation14_spill] sm:$0xff] }
 0x365   : > { %10794 = vmatmul.mubr.msk.bf16.gmra.mxu1 %vm363_vm0, %v15210_v45  ;;  %v5162_v34 = vpop.f32.mrf.mxu1  ;;  %v14324_v2 = vsel %vm12932_vm14, %v8227_v46, %v8228_v29  ;;  %v14333_v45 = vadd.f32 %v14053_v27, %v14169_v23  ;;  %v14341_v46 = vadd.f32 %v14073_v18, %v14197_v47  ;;  %v14345_v29 = vadd.f32 %v14087_v58, %v14217_v3  ;;  %v15215_v47 = vld [vmem:[#allocation12_spill] sm:$0xff] }
 0x366   : > { %10797 = vmatprep.mubr.msk.bf16.mxu1 %vm363_vm0, %v15211_v7  ;;  %v5265_v6 = vadd.f32 %v5162_v34, %v15212_v52  ;;  %v5583_v4 = vpop.f32.mrf.mxu0  ;;  %v9678_v55 = vcombine.low %v14320_v11, %v14324_v2  ;;  %v14349_v34 = vadd.f32 %v14101_v32, %v14231_v42  ;;  %v15214_v7 = vld [vmem:[#allocation10_spill] sm:$0xff]  ;;  %v14353_v52 = vadd.f32 %v14111_v44, %v5261_v16 }
 0x367   : > { %v10556_v12 = vpop.f32.mrf.mxu1  ;;  %v14359_v18 = vadd.f32 %v14133_v63, %v5262_v25  ;;  %v14362_v58 = vadd.f32 %v14145_v5, %v5267_v54  ;;  %v15217_v5 = vcombine.low %v14237_v10, %v14244_v49  ;;  %v15233_v11 = vld [vmem:[#allocation34_spill] sm:$0xff] }
 0x368   : > { %v5268_v39 = vadd.f32 %v10556_v12, %v15213_v17  ;;  %v14329_v33 = vpop.f32.mrf.mxu0  ;;  %v14368_v42 = vadd.f32 %v14160_v37, %v5265_v6  ;;  %v15220_v17 = vld [vmem:[#allocation15_spill] sm:$0xff] }
 0x369   : > { %v5165_v59 = vpop.f32.mrf.mxu1 }
 0x36a   : > { %v5266_v27 = vadd.f32 %v5165_v59, %v15214_v7  ;;  %v5596_v23 = vpop.f32.mrf.mxu0  ;;  %v14371_v44 = vadd.f32 %v14171_v43, %v5268_v39  ;;  %v15221_v7 = vld [vmem:[#allocation24_spill] sm:$0xff] }
 0x36b   : > { %v10559_v19 = vpop.f32.mrf.mxu1 }
 0x36c   : > { %v5271_v3 = vadd.f32 %v10559_v19, %v15215_v47  ;;  %v14365_v32 = vpop.f32.mrf.mxu0  ;;  %v14374_v16 = vadd.f32 %v14187_v21, %v5266_v27  ;;  %v15219_v21 = vld [vmem:[#allocation20_spill] sm:$0xff] }
 0x36d   : > { %10798 = vmatmul.mubr.msk.bf16.gmra.mxu1 %vm363_vm0, %v15216_v20  ;;  %v5178_v63 = vpop.f32.mrf.mxu1 }
 0x36e   : > { %10801 = vmatprep.mubr.msk.bf16.mxu1 %vm363_vm0, %v15217_v5  ;;  %v5269_v37 = vadd.f32 %v5178_v63, %v15218_v9  ;;  %v5599_v25 = vpop.f32.mrf.mxu0  ;;  %v14386_v43 = vadd.f32 %v14199_v62, %v5271_v3  ;;  %v15223_v3 = vcombine.low %v14273_v40, %v14277_v13  ;;  %v15225_v9 = vld [vmem:[#allocation21_spill] sm:$0xff]  ;;  %v8232_v40 = vrot.slane %v14028_v28, 5 }
 0x36f   : > { %v10560_v54 = vpop.f32.mrf.mxu1  ;;  %v15226_v13 = vld [vmem:[#allocation25_spill] sm:$0xff] }
 0x370   : > { %v5272_v6 = vadd.f32 %v10560_v54, %v15219_v21  ;;  %v14389_v12 = vpop.f32.mrf.mxu0  ;;  %v14392_v26 = vadd.f32 %v14219_v30, %v5269_v37  ;;  %v15222_v30 = vcombine.low %v14248_v35, %v14259_v1 }
 0x371   : > { %v5181_v41 = vpop.f32.mrf.mxu1 }
 0x372   : > { %v5270_v39 = vadd.f32 %v5181_v41, %v15220_v17  ;;  %v14395_v10 = vpop.f32.mrf.mxu0  ;;  %v14398_v49 = vadd.f32 %v14233_v15, %v5272_v6  ;;  %v15224_v15 = vld [vmem:[#allocation19_spill] sm:$0xff]  ;;  %v15227_v17 = vld [vmem:[#allocation28_spill] sm:$0xff] }
 0x373   : > { %v10563_v59 = vpop.f32.mrf.mxu1 }
 0x374   : > { %v5275_v62 = vadd.f32 %v10563_v59, %v15221_v7  ;;  %v14401_v27 = vpop.f32.mrf.mxu0  ;;  %v14404_v19 = vadd.f32 %v14253_v24, %v5270_v39 }
 0x375   : > { %10802 = vmatmul.mubr.msk.bf16.gmra.mxu1 %vm363_vm0, %v15222_v30  ;;  %v5194_v47 = vpop.f32.mrf.mxu1  ;;  %v8082_v30 = vld [vmem:[#allocation2 + $0xc0] sm:$0xe] }
 0x376   : > { %10805 = vmatprep.mubr.msk.bf16.mxu1 %vm363_vm0, %v15223_v3  ;;  %v5273_v20 = vadd.f32 %v5194_v47, %v15224_v15  ;;  %v14415_v63 = vpop.f32.mrf.mxu0  ;;  %v14418_v5 = vadd.f32 %v14267_v14, %v5275_v62  ;;  %v8083_v3 = vld [vmem:[#allocation2 + $0xcc] sm:$0xe] }
 0x377   : > { %v10564_v24 = vpop.f32.mrf.mxu1 }
 0x378   : > { %v5276_v37 = vadd.f32 %v10564_v24, %v15225_v9  ;;  %v14421_v54 = vpop.f32.mrf.mxu0  ;;  %v14424_v35 = vadd.f32 %v14284_v8, %v5273_v20  ;;  %v8234_v8 = vrot.slane %v8232_v40, 4  ;;  %v15230_v20 = vld [vmem:[#allocation31_spill] sm:$0xff] }
 0x379   : > { %v5197_v1 = vpop.f32.mrf.mxu1 }
 0x37a   : > { %v5274_v21 = vadd.f32 %v5197_v1, %v15226_v13  ;;  %v14428_v6 = vpop.f32.mrf.mxu0  ;;  %v14431_v41 = vadd.f32 %v14296_v53, %v5276_v37  ;;  %v15228_v53 = vld [vmem:[#allocation30_spill] sm:$0xff]  ;;  %v9656_v1 = vrot.slane %v8083_v3, 9 }
 0x37b   : > { %v10567_v14 = vpop.f32.mrf.mxu1 }
 0x37c   : > { %v5279_v39 = vadd.f32 %v10567_v14, %v15227_v17  ;;  %v14434_v59 = vpop.f32.mrf.mxu0  ;;  %v14436_v7 = vadd.f32 %v5583_v4, %v5274_v21  ;;  %v8239_v4 = vrot.slane %v14067_v60, 5 }
 0x37d   : > { %10806 = vmatmul.mubr.msk.bf16.gmra.mxu1 %vm363_vm0, %v9676_v48  ;;  %v5210_v28 = vpop.f32.mrf.mxu1  ;;  %v8235_v48 = vrot.slane %v15229_v51, 5 }
 0x37e   : > { %10809 = vmatprep.mubr.msk.bf16.mxu1 %vm363_vm0, %v9677_v56  ;;  %v5277_v62 = vadd.f32 %v5210_v28, %v15228_v53  ;;  %v5631_v47 = vpop.f32.mrf.mxu0  ;;  %v14449_v15 = vadd.f32 %v14329_v33, %v5279_v39  ;;  %v9655_v56 = vrot.slane %v8082_v30, 9  ;;  %v8241_v13 = vrot.slane %v8239_v4, 4  ;;  %v15231_v39 = vld [vmem:[#allocation32_spill] sm:$0xff] }
 0x37f   : > { %v10568_v57 = vpop.f32.mrf.mxu1  ;;  %v8236_v37 = vsel %vm12932_vm14, %v8234_v8, %v8235_v48  ;;  %v8242_v33 = vrot.slane %v14085_v50, 5  ;;  %v15232_v50 = vld [vmem:[#allocation33_spill] sm:$0xff] }
 0x380   : > { %v5280_v24 = vadd.f32 %v10568_v57, %v15230_v20  ;;  %v14453_v9 = vpop.f32.mrf.mxu0  ;;  %v14455_v0 = vadd.f32 %v5596_v23, %v5277_v62  ;;  %v8233_v23 = vsel %vm12932_vm14, %v9655_v56, %v8232_v40  ;;  %v8240_v40 = vsel %vm12932_vm14, %v9656_v1, %v8239_v4 }
 0x381   : > { %v5213_v22 = vpop.f32.mrf.mxu1  ;;  %v9679_v53 = vcombine.low %v8233_v23, %v8236_v37  ;;  %v8243_v30 = vsel %vm12932_vm14, %v8241_v13, %v8242_v33  ;;  %v15236_v13 = vld [vmem:[#allocation37_spill] sm:$0xff] }
 0x382   : > { %v5278_v60 = vadd.f32 %v5213_v22, %v14063_v38  ;;  %v14461_v21 = vpop.f32.mrf.mxu0  ;;  %v14464_v14 = vadd.f32 %v14365_v32, %v5280_v24  ;;  %v9680_v20 = vcombine.low %v8240_v40, %v8243_v30  ;;  %v15234_v24 = vld [vmem:[#allocation35_spill] sm:$0xff] }
 0x384   : > { %v10571_v17 = vpop.f32.mrf.mxu1  ;;  %v14469_v62 = vpop.f32.mrf.mxu0  ;;  %v14471_v8 = vadd.f32 %v5599_v25, %v5278_v60 }
 0x385   : > { %v5283_v28 = vadd.f32 %v10571_v17, %v15231_v39  ;;  %10810 = vmatmul.mubr.msk.bf16.gmra.mxu1 %vm363_vm0, %v9678_v55  ;;  %v15237_v39 = vld [vmem:[#allocation38_spill] sm:$0xff] }
 0x386   : > { %v5226_v38 = vpop.f32.mrf.mxu1  ;;  %10813 = vmatprep.mubr.msk.bf16.mxu1 %vm363_vm0, %v9679_v53  ;;  %v14483_v3 = vpop.f32.mrf.mxu0 }
 0x387   : > { %v5281_v32 = vadd.f32 %v5226_v38, %v15232_v50  ;;  %v14486_v25 = vadd.f32 %v14389_v12, %v5283_v28  ;;  %v15235_v12 = vld [vmem:[#allocation36_spill] sm:$0xff]  ;;  %v15238_v50 = vld [vmem:[#allocation39_spill] sm:$0xff] }
 0x388   : > { %v10572_v57 = vpop.f32.mrf.mxu1  ;;  %v14489_v55 = vpop.f32.mrf.mxu0 }
 0x389   : > { %v5284_v2 = vadd.f32 %v10572_v57, %v15233_v11  ;;  %v14492_v51 = vadd.f32 %v14395_v10, %v5281_v32 }
 0x38a   : > { %v5229_v48 = vpop.f32.mrf.mxu1  ;;  %v14495_v22 = vpop.f32.mrf.mxu0 }
 0x38b   : > { %v5282_v4 = vadd.f32 %v5229_v48, %v15234_v24  ;;  %v14498_v36 = vadd.f32 %v14401_v27, %v5284_v2 }
 0x38c   : > { %v10575_v56 = vpop.f32.mrf.mxu1  ;;  %v14501_v1 = vpop.f32.mrf.mxu0 }
 0x38d   : > { %v5287_v37 = vadd.f32 %v10575_v56, %v15235_v12  ;;  %v14504_v60 = vadd.f32 %v14415_v63, %v5282_v4  ;;  %10814 = vmatmul.mubr.msk.bf16.gmra.mxu1 %vm363_vm0, %v9680_v20 }
 0x38e   : > { %v5242_v10 = vpop.f32.mrf.mxu1  ;;  %v14508_v17 = vpop.f32.mrf.mxu0 }
 0x38f   : > { %v5285_v33 = vadd.f32 %v5242_v10, %v15236_v13  ;;  %v14511_v23 = vadd.f32 %v14421_v54, %v5287_v37 }
 0x390   : > { %v10576_v27 = vpop.f32.mrf.mxu1  ;;  %v14514_v53 = vpop.f32.mrf.mxu0 }
 0x391   : > { %v5288_v28 = vadd.f32 %v10576_v27, %v15237_v39  ;;  %v14517_v38 = vadd.f32 %v14428_v6, %v5285_v33 }
 0x392   : > { %v5245_v63 = vpop.f32.mrf.mxu1  ;;  %v14520_v40 = vpop.f32.mrf.mxu0 }
 0x393   : > { %v5286_v32 = vadd.f32 %v5245_v63, %v15238_v50  ;;  %v14523_v30 = vadd.f32 %v14434_v59, %v5288_v28 }
 0x394   : > { %v10627_v57 = vpop.f32.mrf.mxu1  ;;  %v14528_v11 = vpop.f32.mrf.mxu0 }
 0x395   : > { %v14526_v54 = vadd.f32 %v10627_v57, %v14333_v45  ;;  %v14530_v2 = vadd.f32 %v5631_v47, %v5286_v32 }
 0x396   : > { %v6270_v48 = vpop.f32.mrf.mxu1  ;;  %v14535_v20 = vpop.f32.mrf.mxu0 }
 0x397   : > { %v14533_v6 = vadd.f32 %v6270_v48, %v14337_v31 }
 0x398   : > { %v10628_v24 = vpop.f32.mrf.mxu1  ;;  %v14540_v59 = vpop.f32.mrf.mxu0 }
 0x399   : > { %v14538_v4 = vadd.f32 %v10628_v24, %v14341_v46 }
 0x39a   : > { %v6273_v56 = vpop.f32.mrf.mxu1  ;;  %v14545_v12 = vpop.f32.mrf.mxu0 }
 0x39b   : > { %v14543_v45 = vadd.f32 %v6273_v56, %v14345_v29 }
 0x39c   : > { %v10631_v47 = vpop.f32.mrf.mxu1  ;;  %v14550_v31 = vpop.f32.mrf.mxu0 }
 0x39d   : > { %v14548_v37 = vadd.f32 %v10631_v47, %v14349_v34  ;;  %15239 = vst [vmem:[#allocation40_spill] sm:$0xff] %v14550_v31 }
 0x39e   : > { %v6286_v10 = vpop.f32.mrf.mxu1  ;;  %v14555_v46 = vpop.f32.mrf.mxu0 }
 0x39f   : > { %v14553_v13 = vadd.f32 %v6286_v10, %v14353_v52  ;;  %15240 = vst [vmem:[#allocation41_spill] sm:$0xff] %v14555_v46 }
 0x3a0   : > { %v10632_v33 = vpop.f32.mrf.mxu1  ;;  %v14560_v29 = vpop.f32.mrf.mxu0 }
 0x3a1   : > { %v14558_v27 = vadd.f32 %v10632_v33, %v14356_v61  ;;  %15241 = vst [vmem:[#allocation42_spill] sm:$0xff] %v14560_v29 }
 0x3a2   : > { %v6289_v39 = vpop.f32.mrf.mxu1  ;;  %v14565_v34 = vpop.f32.mrf.mxu0 }
 0x3a3   : > { %v14563_v28 = vadd.f32 %v6289_v39, %v14359_v18  ;;  %15242 = vst [vmem:[#allocation43_spill] sm:$0xff] %v14565_v34 }
 0x3a4   : > { %v10635_v63 = vpop.f32.mrf.mxu1  ;;  %v14570_v52 = vpop.f32.mrf.mxu0 }
 0x3a5   : > { %v14568_v50 = vadd.f32 %v10635_v63, %v14362_v58  ;;  %15243 = vst [vmem:[#allocation44_spill] sm:$0xff] %v14570_v52 }
 0x3a6   : > { %v6302_v32 = vpop.f32.mrf.mxu1  ;;  %v14575_v61 = vpop.f32.mrf.mxu0 }
 0x3a7   : > { %v14573_v57 = vadd.f32 %v6302_v32, %v14368_v42  ;;  %15244 = vst [vmem:[#allocation45_spill] sm:$0xff] %v14575_v61 }
 0x3a8   : > { %v10636_v48 = vpop.f32.mrf.mxu1  ;;  %v14580_v18 = vpop.f32.mrf.mxu0 }
 0x3a9   : > { %v14578_v24 = vadd.f32 %v10636_v48, %v14371_v44  ;;  %15245 = vst [vmem:[#allocation46_spill] sm:$0xff] %v14580_v18 }
 0x3aa   : > { %v6305_v56 = vpop.f32.mrf.mxu1  ;;  %v14585_v58 = vpop.f32.mrf.mxu0 }
 0x3ab   : > { %v14583_v47 = vadd.f32 %v6305_v56, %v14374_v16  ;;  %15246 = vst [vmem:[#allocation47_spill] sm:$0xff] %v14585_v58 }
 0x3ac   : > { %v10639_v10 = vpop.f32.mrf.mxu1  ;;  %v14590_v42 = vpop.f32.mrf.mxu0 }
 0x3ad   : > { %v14588_v33 = vadd.f32 %v10639_v10, %v14386_v43  ;;  %15247 = vst [vmem:[#allocation48_spill] sm:$0xff] %v14590_v42 }
 0x3ae   : > { %v6318_v39 = vpop.f32.mrf.mxu1  ;;  %v14598_v48 = vpop.f32.mrf.mxu0 }
 0x3af   : > { %v14593_v63 = vadd.f32 %v6318_v39, %v14392_v26  ;;  %15249 = vst [vmem:[#allocation50_spill] sm:$0xff] %v14598_v48 }
 0x3b0   : > { %v10640_v44 = vpop.f32.mrf.mxu1  ;;  %v14606_v10 = vpop.f32.mrf.mxu0 }
 0x3b1   : > { %v14596_v32 = vadd.f32 %v10640_v44, %v14398_v49  ;;  %15252 = vst [vmem:[#allocation53_spill] sm:$0xff] %v14606_v10 }
 0x3b2   : > { %v6321_v16 = vpop.f32.mrf.mxu1  ;;  %v14614_v44 = vpop.f32.mrf.mxu0 }
 0x3b3   : > { %15248 = vst [vmem:[#allocation49_spill] sm:$0xff] %v14596_v32  ;;  %v14601_v56 = vadd.f32 %v6321_v16, %v14404_v19  ;;  %15255 = vst [vmem:[#allocation11_spill] sm:$0xff] %v14614_v44 }
 0x3b4   : > { %v10643_v58 = vpop.f32.mrf.mxu1 }
 0x3b5   : > { %15250 = vst [vmem:[#allocation51_spill] sm:$0xff] %v14601_v56  ;;  %v14604_v43 = vadd.f32 %v10643_v58, %v14418_v5  ;;  %v14622_v58 = vpop.f32.mrf.mxu0 }
 0x3b6   : > { %v6334_v42 = vpop.f32.mrf.mxu1  ;;  %15258 = vst [vmem:[#allocation13_spill] sm:$0xff] %v14622_v58 }
 0x3b7   : > { %15251 = vst [vmem:[#allocation52_spill] sm:$0xff] %v14604_v43  ;;  %v14609_v26 = vadd.f32 %v6334_v42, %v14424_v35 }
 0x3b8   : > { %v10644_v39 = vpop.f32.mrf.mxu1 }
 0x3b9   : > { %15253 = vst [vmem:[#allocation26_spill] sm:$0xff] %v14609_v26  ;;  %v14612_v49 = vadd.f32 %v10644_v39, %v14431_v41  ;;  %v14630_v39 = vpop.f32.mrf.mxu0 }
 0x3ba   : > { %v6337_v48 = vpop.f32.mrf.mxu1  ;;  %15261 = vst [vmem:[#allocation6_spill] sm:$0xff] %v14630_v39 }
 0x3bb   : > { %15254 = vst [vmem:[#allocation5_spill] sm:$0xff] %v14612_v49  ;;  %v14617_v19 = vadd.f32 %v6337_v48, %v14436_v7  ;;  %v14635_v18 = vpop.f32.mrf.mxu0 }
 0x3bc   : > { %v10647_v16 = vpop.f32.mrf.mxu1  ;;  %15263 = vst [vmem:[#allocation23_spill] sm:$0xff] %v14635_v18 }
 0x3bd   : > { %15256 = vst [vmem:[#allocation18_spill] sm:$0xff] %v14617_v19  ;;  %v14620_v5 = vadd.f32 %v10647_v16, %v14449_v15  ;;  %v14643_v58 = vpop.f32.mrf.mxu0 }
 0x3be   : > { %v6350_v10 = vpop.f32.mrf.mxu1  ;;  %15266 = vst [vmem:[#allocation27_spill] sm:$0xff] %v14643_v58 }
 0x3bf   : > { %15257 = vst [vmem:[#allocation16_spill] sm:$0xff] %v14620_v5  ;;  %v14625_v35 = vadd.f32 %v6350_v10, %v14455_v0 }
 0x3c0   : > { %v10648_v42 = vpop.f32.mrf.mxu1 }
 0x3c1   : > { %15259 = vst [vmem:[#allocation4_spill] sm:$0xff] %v14625_v35  ;;  %v14628_v41 = vadd.f32 %v10648_v42, %v14464_v14 }
 0x3c2   : > { %v6353_v44 = vpop.f32.mrf.mxu1 }
 0x3c3   : > { %15260 = vst [vmem:[#allocation3_spill] sm:$0xff] %v14628_v41  ;;  %v14633_v7 = vadd.f32 %v6353_v44, %v14471_v8  ;;  %v14651_v44 = vpop.f32.mrf.mxu0 }
 0x3c4   : > { %v10651_v48 = vpop.f32.mrf.mxu1  ;;  %15269 = vst [vmem:[#allocation10_spill] sm:$0xff] %v14651_v44 }
 0x3c5   : > { %15262 = vst [vmem:[#allocation22_spill] sm:$0xff] %v14633_v7  ;;  %v14638_v15 = vadd.f32 %v10651_v48, %v14486_v25  ;;  %v14656_v39 = vpop.f32.mrf.mxu0 }
 0x3c6   : > { %v6366_v16 = vpop.f32.mrf.mxu1  ;;  %15271 = vst [vmem:[#allocation14_spill] sm:$0xff] %v14656_v39 }
 0x3c7   : > { %15264 = vst [vmem:[#allocation17_spill] sm:$0xff] %v14638_v15  ;;  %v14641_v0 = vadd.f32 %v6366_v16, %v14492_v51 }
 0x3c8   : > { %v10652_v10 = vpop.f32.mrf.mxu1 }
 0x3c9   : > { %15265 = vst [vmem:[#allocation7_spill] sm:$0xff] %v14641_v0  ;;  %v14646_v14 = vadd.f32 %v10652_v10, %v14498_v36 }
 0x3ca   : > { %v6369_v42 = vpop.f32.mrf.mxu1  ;;  %v10747_v58 = vpop.f32.mrf.mxu0 }
 0x3cb   : > { %15267 = vst [vmem:[#allocation8_spill] sm:$0xff] %v14646_v14  ;;  %v14649_v8 = vadd.f32 %v6369_v42, %v14504_v60 }
 0x3cd   : > { %15268 = vst [vmem:[#allocation9_spill] sm:$0xff] %v14649_v8  ;;  %v10655_v18 = vpop.f32.mrf.mxu1  ;;  %v7909_v8 = vpop.f32.mrf.mxu0 }
 0x3ce   : > { %v14654_v25 = vadd.f32 %v10655_v18, %v14511_v23 }
 0x3cf   : > { %v6382_v48 = vpop.f32.mrf.mxu1 }
 0x3d0   : > { %15270 = vst [vmem:[#allocation12_spill] sm:$0xff] %v14654_v25  ;;  %v14659_v51 = vadd.f32 %v6382_v48, %v14517_v38  ;;  %v14667_v25 = vpop.f32.mrf.mxu0 }
 0x3d1   : > { %v10656_v16 = vpop.f32.mrf.mxu1 }
 0x3d2   : > { %15272 = vst [vmem:[#allocation20_spill] sm:$0xff] %v14659_v51  ;;  %v14662_v36 = vadd.f32 %v10656_v16, %v14523_v30  ;;  %v14671_v38 = vpop.f32.mrf.mxu0 }
 0x3d3   : > { %v6385_v10 = vpop.f32.mrf.mxu1 }
 0x3d4   : > { %15273 = vst [vmem:[#allocation15_spill] sm:$0xff] %v14662_v36  ;;  %v14665_v60 = vadd.f32 %v6385_v10, %v14530_v2 }
 0x3d5   : > { %v10707_v42 = vpop.f32.mrf.mxu1  ;;  %v14677_v16 = vpop.f32.mrf.mxu0 }
 0x3d6   : > { %15274 = vst [vmem:[#allocation24_spill] sm:$0xff] %v14665_v60 }
 0x3d7   : > { %v7155_v44 = vpop.f32.mrf.mxu1  ;;  %v14683_v60 = vpop.f32.mrf.mxu0 }
 0x3d9   : > { %v10708_v23 = vpop.f32.mrf.mxu1  ;;  %v14689_v0 = vpop.f32.mrf.mxu0 }
 0x3db   : > { %v7158_v18 = vpop.f32.mrf.mxu1  ;;  %v14695_v41 = vpop.f32.mrf.mxu0 }
 0x3dd   : > { %v10711_v39 = vpop.f32.mrf.mxu1 }
 0x3df   : > { %v14669_v14 = vpop.f32.mrf.mxu1  ;;  %v14701_v61 = vpop.f32.mrf.mxu0 }
 0x3e1   : > { %v14673_v48 = vpop.f32.mrf.mxu1  ;;  %v14707_v49 = vpop.f32.mrf.mxu0 }
 0x3e3   : > { %v14675_v30 = vpop.f32.mrf.mxu1  ;;  %v14713_v29 = vpop.f32.mrf.mxu0 }
 0x3e5   : > { %v14679_v2 = vpop.f32.mrf.mxu1  ;;  %v14719_v56 = vpop.f32.mrf.mxu0 }
 0x3e7   : > { %v14681_v10 = vpop.f32.mrf.mxu1 }
 0x3e9   : > { %v14685_v36 = vpop.f32.mrf.mxu1 }
 0x3eb   : > { %v14687_v51 = vpop.f32.mrf.mxu1 }
 0x3ed   : > { %v14691_v15 = vpop.f32.mrf.mxu1 }
 0x3ef   : > { %v14693_v7 = vpop.f32.mrf.mxu1 }
 0x3f1   : > { %v14697_v35 = vpop.f32.mrf.mxu1 }
 0x3f2   : > { %15275 = vst [vmem:[#allocation19_spill] sm:$0xff] %v14697_v35 }
 0x3f3   : > { %v14699_v5 = vpop.f32.mrf.mxu1 }
 0x3f4   : > { %15276 = vst [vmem:[#allocation21_spill] sm:$0xff] %v14699_v5 }
 0x3f5   : > { %v14703_v19 = vpop.f32.mrf.mxu1 }
 0x3f6   : > { %15277 = vst [vmem:[#allocation25_spill] sm:$0xff] %v14703_v19  ;;  %v14725_v19 = vpop.f32.mrf.mxu0 }
 0x3f7   : > { %v14705_v52 = vpop.f32.mrf.mxu1  ;;  %15285 = vst [vmem:[#allocation35_spill] sm:$0xff] %v14725_v19 }
 0x3f8   : > { %15278 = vst [vmem:[#allocation28_spill] sm:$0xff] %v14705_v52 }
 0x3f9   : > { %v14709_v34 = vpop.f32.mrf.mxu1 }
 0x3fa   : > { %15279 = vst [vmem:[#allocation30_spill] sm:$0xff] %v14709_v34  ;;  %v14731_v34 = vpop.f32.mrf.mxu0 }
 0x3fb   : > { %v14711_v26 = vpop.f32.mrf.mxu1  ;;  %15288 = vst [vmem:[#allocation38_spill] sm:$0xff] %v14731_v34 }
 0x3fc   : > { %15280 = vst [vmem:[#allocation29_spill] sm:$0xff] %v14711_v26 }
 0x3fd   : > { %v14715_v43 = vpop.f32.mrf.mxu1 }
 0x3fe   : > { %15281 = vst [vmem:[#allocation31_spill] sm:$0xff] %v14715_v43  ;;  %v14737_v43 = vpop.f32.mrf.mxu0 }
 0x3ff   : > { %v14717_v46 = vpop.f32.mrf.mxu1  ;;  %15291 = vst [vmem:[#allocation55_spill] sm:$0xff] %v14737_v43 }
 0x400   : > { %15282 = vst [vmem:[#allocation32_spill] sm:$0xff] %v14717_v46 }
 0x401   : > { %v14721_v5 = vpop.f32.mrf.mxu1 }
 0x402   : > { %15283 = vst [vmem:[#allocation33_spill] sm:$0xff] %v14721_v5  ;;  %v6897_v5 = vadd.f32 %v14453_v9, %v14526_v54  ;;  %v6896_v9 = vadd.f32 %v14483_v3, %v14543_v45  ;;  %v6899_v3 = vadd.f32 %v14495_v22, %v14553_v13  ;;  %v9235_v45 = vld [vmem:[%s11030_s10 + $0x31] sm:$0xff] }
 0x403   : > { %v14723_v35 = vpop.f32.mrf.mxu1 }
 0x404   : > { %15284 = vst [vmem:[#allocation34_spill] sm:$0xff] %v14723_v35  ;;  %v7284_v19 = vadd.f32 %v10707_v42, %v6897_v5 }
 0x405   : > { %v14727_v52 = vpop.f32.mrf.mxu1 }
 0x406   : > { %15286 = vst [vmem:[#allocation36_spill] sm:$0xff] %v14727_v52  ;;  %v6895_v52 = vadd.f32 %v14461_v21, %v14533_v6  ;;  %v8038_v5 = vadd.f32 %v10747_v58, %v7284_v19  ;;  %v6901_v21 = vadd.f32 %v14489_v55, %v14548_v37 }
 0x407   : > { %v14729_v31 = vpop.f32.mrf.mxu1 }
 0x408   : > { %15287 = vst [vmem:[#allocation37_spill] sm:$0xff] %v14729_v31  ;;  %v14747_v31 = vpop.f32.mrf.mxu0 }
 0x409   : > { %v14733_v26 = vpop.f32.mrf.mxu1 }
 0x40a   : > { %15289 = vst [vmem:[#allocation39_spill] sm:$0xff] %v14733_v26  ;;  %v7282_v26 = vadd.f32 %v7155_v44, %v6895_v52  ;;  %v14757_v54 = vpop.f32.mrf.mxu0  ;;  %v14764_v52 = vld [vmem:[%s15033_s4] ss:$0 sm:$0xff] }
 0x40b   : > { %v14735_v32 = vpop.f32.mrf.mxu1 }
 0x40c   : > { %15290 = vst [vmem:[#allocation54_spill] sm:$0xff] %v14735_v32  ;;  %v6898_v32 = vadd.f32 %v14469_v62, %v14538_v4  ;;  %v7283_v62 = vadd.f32 %v7158_v18, %v6896_v9  ;;  %v8036_v44 = vadd.f32 %v7909_v8, %v7282_v26  ;;  %v14769_v19 = vpop.f32.mrf.mxu0  ;;  %v6902_v26 = vadd.f32 %v14501_v1, %v14558_v27  ;;  %v9236_v1 = vld [vmem:[%s11030_s10 + $0x39] sm:$0xff] }
 0x40d   : > { %v14739_v46 = vpop.f32.mrf.mxu1 }
 0x40e   : > { %15292 = vst [vmem:[#allocation56_spill] sm:$0xff] %v14739_v46  ;;  %v7285_v46 = vadd.f32 %v10708_v23, %v6898_v32  ;;  %v7288_v32 = vadd.f32 %v10711_v39, %v6901_v21  ;;  %v7286_v23 = vadd.f32 %v14669_v14, %v6899_v3  ;;  %v9233_v39 = vld [vmem:[%s11030_s10 + $0x19] sm:$0xff]  ;;  %v8037_v9 = vadd.f32 %v14671_v38, %v7283_v62  ;;  %v14790_v14 = vpop.f32.mrf.mxu0  ;;  %v9234_v62 = vld [vmem:[%s11030_s10 + $0x21] sm:$0xff] }
 0x40f   : > { %v14743_v35 = vpop.f32.mrf.mxu1  ;;  %v6900_v21 = vadd.f32 %v14508_v17, %v14563_v28  ;;  %v6905_v28 = vadd.f32 %v14514_v53, %v14568_v50 }
 0x410   : > { %v8039_v58 = vadd.f32 %v14667_v25, %v7285_v46  ;;  %v8042_v27 = vadd.f32 %v14677_v16, %v7288_v32 }
 0x411   : > { %v14749_v34 = vpop.f32.mrf.mxu1  ;;  %v7287_v17 = vadd.f32 %v14675_v30, %v6900_v21  ;;  %v6903_v30 = vadd.f32 %v14520_v40, %v14573_v57  ;;  %v6906_v40 = vadd.f32 %v14528_v11, %v14578_v24  ;;  %v9237_v57 = vld [vmem:[%s11030_s10 + $0x49] sm:$0xff] }
 0x413   : > { %v14753_v43 = vpop.f32.mrf.mxu1 }
 0x415   : > { %v10787_v6 = vpop.f32.mrf.mxu1 }
 0x416   : > { %v8536_v4 = vadd.f32 %v10787_v6, %v8038_v5  ;;  %v7289_v5 = vadd.f32 %v14673_v48, %v6902_v26 }
 0x417   : > { %v8407_v42 = vpop.f32.mrf.mxu1 }
 0x418   : > { %v8575_v55 = vadd.f32 %v14764_v52, %v8536_v4  ;;  %v8534_v37 = vadd.f32 %v8407_v42, %v8036_v44  ;;  %v8040_v44 = vadd.f32 %v14683_v60, %v7286_v23  ;;  %v7292_v42 = vadd.f32 %v14679_v2, %v6905_v28 }
 0x419   : > { %v10788_v8 = vpop.f32.mrf.mxu1  ;;  %v8043_v50 = vadd.f32 %v14689_v0, %v7289_v5  ;;  %v7290_v2 = vadd.f32 %v14681_v10, %v6903_v30  ;;  %v8041_v0 = vadd.f32 %v14695_v41, %v7287_v17  ;;  %v6904_v10 = vadd.f32 %v14535_v20, %v14583_v47  ;;  %v9240_v5 = vld [vmem:[%s11030_s10 + $0x69] sm:$0xff]  ;;  %v9238_v47 = vld [vmem:[%s11030_s10 + $0x51] sm:$0xff] }
 0x41a   : > { %v8607_v18 = vadd.f32 %v9235_v45, %v8575_v55  ;;  %v8573_v22 = vadd.f32 %v14764_v52, %v8534_v37  ;;  %v8537_v13 = vadd.f32 %v10788_v8, %v8039_v58  ;;  %v9239_v55 = vld [vmem:[%s11030_s10 + $0x61] sm:$0xff]  ;;  %v14806_v37 = vpop.f32.mrf.mxu0  ;;  %v8046_v24 = vadd.f32 %v14701_v61, %v7292_v42 }
 0x41b   : > { %v8410_v46 = vpop.f32.mrf.mxu1  ;;  %v6909_v20 = vadd.f32 %v14540_v59, %v14588_v33  ;;  %v8044_v61 = vadd.f32 %v14707_v49, %v7290_v2  ;;  %v9244_v2 = vld [vmem:[%s11030_s10 + $0x99] sm:$0xff] }
 0x41c   : > { %v8639_v25 = vmax.f32 %v8607_v18, 0.0  ;;  %v8605_v38 = vadd.f32 %v9233_v39, %v8573_v22  ;;  %v8576_v48 = vadd.f32 %v14764_v52, %v8537_v13  ;;  %v8535_v6 = vadd.f32 %v8410_v46, %v8037_v9  ;;  %v14824_v21 = vpop.f32.mrf.mxu0 }
 0x41d   : > { %v10791_v4 = vpop.f32.mrf.mxu1  ;;  %v7293_v9 = vadd.f32 %v14685_v36, %v6906_v40  ;;  %v7291_v36 = vadd.f32 %v14687_v51, %v6904_v10  ;;  %v7296_v28 = vadd.f32 %v14691_v15, %v6909_v20  ;;  %v6907_v51 = vadd.f32 %v14545_v12, %v14593_v63  ;;  %v9241_v63 = vld [vmem:[%s11030_s10 + $0x79] sm:$0xff] }
 0x41e   : > { %8671 = vst.msk [vmem:[%s14786_s25 + $0x10] sm:$0xff] %vm363_vm0, %v8639_v25  ;;  %v8637_v16 = vmax.f32 %v8605_v38, 0.0  ;;  %v8608_v32 = vadd.f32 %v9236_v1, %v8576_v48  ;;  %v8574_v3 = vadd.f32 %v14764_v52, %v8535_v6  ;;  %v8540_v45 = vadd.f32 %v10791_v4, %v8042_v27  ;;  %v14842_v4 = vpop.f32.mrf.mxu0  ;;  %v15300_v10 = vld [vmem:[#allocation52_spill] sm:$0xff] }
 0x41f   : > { %v8423_v53 = vpop.f32.mrf.mxu1  ;;  %v8047_v33 = vadd.f32 %v14713_v29, %v7293_v9  ;;  %v7294_v15 = vadd.f32 %v14693_v7, %v6907_v51  ;;  %v8045_v29 = vadd.f32 %v14719_v56, %v7291_v36  ;;  %v15297_v7 = vld [vmem:[#allocation41_spill] sm:$0xff]  ;;  %v15306_v51 = vld [vmem:[#allocation55_spill] sm:$0xff] }
 0x420   : > { %8669 = vst.msk [vmem:[%s14786_s25] sm:$0xff] %vm363_vm0, %v8637_v16  ;;  %v8640_v60 = vmax.f32 %v8608_v32, 0.0  ;;  %v8606_v58 = vadd.f32 %v9234_v62, %v8574_v3  ;;  %v8579_v23 = vadd.f32 %v14764_v52, %v8540_v45  ;;  %v8538_v26 = vadd.f32 %v8423_v53, %v8040_v44  ;;  %v9243_v62 = vld [vmem:[%s11030_s10 + $0x91] sm:$0xff]  ;;  %v15293_v3 = vld [vmem:[#allocation49_spill] sm:$0xff]  ;;  %v15294_v45 = vld [vmem:[#allocation40_spill] sm:$0xff] }
 0x421   : > { %v10792_v39 = vpop.f32.mrf.mxu1  ;;  %v6910_v12 = vadd.f32 %v15294_v45, %v15293_v3  ;;  %v15308_v3 = vld [vmem:[#allocation5_spill] sm:$0xff]  ;;  %v15309_v45 = vld [vmem:[#allocation44_spill] sm:$0xff] }
 0x422   : > { %8672 = vst.msk [vmem:[%s14786_s25 + $0x18] sm:$0xff] %vm363_vm0, %v8640_v60  ;;  %v8638_v8 = vmax.f32 %v8606_v58, 0.0  ;;  %v8611_v18 = vadd.f32 %v9239_v55, %v8579_v23  ;;  %v8577_v22 = vadd.f32 %v14764_v52, %v8538_v26  ;;  %v8541_v13 = vadd.f32 %v10792_v39, %v8043_v50  ;;  %v15295_v60 = vld [vmem:[#allocation19_spill] sm:$0xff] }
 0x423   : > { %v8426_v11 = vpop.f32.mrf.mxu1  ;;  %v7297_v58 = vadd.f32 %v15295_v60, %v6910_v12  ;;  %v15296_v23 = vld [vmem:[#allocation51_spill] sm:$0xff]  ;;  %v6914_v12 = vadd.f32 %v15309_v45, %v15308_v3  ;;  %v15310_v60 = vld [vmem:[#allocation30_spill] sm:$0xff] }
 0x424   : > { %8670 = vst.msk [vmem:[%s14786_s25 + $0x8] sm:$0xff] %vm363_vm0, %v8638_v8  ;;  %v8643_v41 = vmax.f32 %v8611_v18, 0.0  ;;  %v8609_v1 = vadd.f32 %v9237_v57, %v8577_v22  ;;  %v8580_v46 = vadd.f32 %v14764_v52, %v8541_v13  ;;  %v8539_v27 = vadd.f32 %v8426_v11, %v8041_v0  ;;  %v15298_v57 = vld [vmem:[#allocation35_spill] sm:$0xff]  ;;  %v14860_v0 = vpop.f32.mrf.mxu0  ;;  %v15299_v13 = vld [vmem:[#allocation21_spill] sm:$0xff] }
 0x425   : > { %v10795_v25 = vpop.f32.mrf.mxu1  ;;  %v6908_v26 = vadd.f32 %v15297_v7, %v15296_v23  ;;  %v8050_v39 = vadd.f32 %v15298_v57, %v7296_v28  ;;  %v15311_v23 = vld [vmem:[#allocation18_spill] sm:$0xff]  ;;  %v15312_v7 = vld [vmem:[#allocation45_spill] sm:$0xff] }
 0x426   : > { %8675 = vst.msk [vmem:[%s14786_s25 + $0x30] sm:$0xff] %vm363_vm0, %v8643_v41  ;;  %v8641_v38 = vmax.f32 %v8609_v1, 0.0  ;;  %v8612_v48 = vadd.f32 %v9240_v5, %v8580_v46  ;;  %v8578_v6 = vadd.f32 %v14764_v52, %v8539_v27  ;;  %v8544_v17 = vadd.f32 %v10795_v25, %v8046_v24  ;;  %v15301_v5 = vld [vmem:[#allocation42_spill] sm:$0xff]  ;;  %v9242_v24 = vld [vmem:[%s11030_s10 + $0x81] sm:$0xff] }
 0x427   : > { %v8439_v59 = vpop.f32.mrf.mxu1  ;;  %v7295_v9 = vadd.f32 %v15299_v13, %v6908_v26  ;;  %v6913_v11 = vadd.f32 %v15301_v5, %v15300_v10  ;;  %v15302_v1 = vld [vmem:[#allocation38_spill] sm:$0xff]  ;;  %v15303_v25 = vld [vmem:[#allocation25_spill] sm:$0xff]  ;;  %v6912_v26 = vadd.f32 %v15312_v7, %v15311_v23 }
 0x428   : > { %8673 = vst.msk [vmem:[%s14786_s25 + $0x20] sm:$0xff] %vm363_vm0, %v8641_v38  ;;  %v8644_v49 = vmax.f32 %v8612_v48, 0.0  ;;  %v8610_v44 = vadd.f32 %v9238_v47, %v8578_v6  ;;  %v8583_v16 = vadd.f32 %v14764_v52, %v8544_v17  ;;  %v8542_v32 = vadd.f32 %v8439_v59, %v8044_v61  ;;  %v15304_v38 = vld [vmem:[#allocation26_spill] sm:$0xff]  ;;  %v15305_v48 = vld [vmem:[#allocation43_spill] sm:$0xff]  ;;  %v9247_v17 = vld [vmem:[%s11030_s10 + $0xc1] sm:$0xff]  ;;  %v14878_v59 = vpop.f32.mrf.mxu0 }
 0x429   : > { %v10796_v42 = vpop.f32.mrf.mxu1  ;;  %v8048_v46 = vadd.f32 %v15302_v1, %v7294_v15  ;;  %v7300_v61 = vadd.f32 %v15303_v25, %v6913_v11  ;;  %v6911_v6 = vadd.f32 %v15305_v48, %v15304_v38  ;;  %v15315_v10 = vld [vmem:[#allocation46_spill] sm:$0xff]  ;;  %v15318_v25 = vld [vmem:[#allocation47_spill] sm:$0xff] }
 0x42a   : > { %8676 = vst.msk [vmem:[%s14786_s25 + $0x38] sm:$0xff] %vm363_vm0, %v8644_v49  ;;  %v8642_v30 = vmax.f32 %v8610_v44, 0.0  ;;  %v8615_v55 = vadd.f32 %v9243_v62, %v8583_v16  ;;  %v8581_v53 = vadd.f32 %v14764_v52, %v8542_v32  ;;  %v8545_v50 = vadd.f32 %v10796_v42, %v8047_v33  ;;  %v15307_v32 = vld [vmem:[#allocation28_spill] sm:$0xff]  ;;  %v9246_v11 = vld [vmem:[%s11030_s10 + $0xb1] sm:$0xff] }
 0x42b   : > { %v8442_v40 = vpop.f32.mrf.mxu1  ;;  %v8051_v62 = vadd.f32 %v15306_v51, %v7297_v58  ;;  %v7298_v15 = vadd.f32 %v15307_v32, %v6911_v6  ;;  %v7301_v58 = vadd.f32 %v15310_v60, %v6914_v12  ;;  %v8054_v57 = vadd.f32 %v14757_v54, %v7300_v61  ;;  %v9251_v38 = vld [vmem:[%s11030_s10 + $0xf1] sm:$0xff]  ;;  %v9252_v60 = vld [vmem:[%s11030_s10 + $0xf9] sm:$0xff] }
 0x42c   : > { %8674 = vst.msk [vmem:[%s14786_s25 + $0x28] sm:$0xff] %vm363_vm0, %v8642_v30  ;;  %v8647_v56 = vmax.f32 %v8615_v55, 0.0  ;;  %v8613_v8 = vadd.f32 %v9241_v63, %v8581_v53  ;;  %v8584_v18 = vadd.f32 %v14764_v52, %v8545_v50  ;;  %v8543_v22 = vadd.f32 %v8442_v40, %v8045_v29  ;;  %v9245_v63 = vld [vmem:[%s11030_s10 + $0xa9] sm:$0xff] }
 0x42d   : > { %v10799_v41 = vpop.f32.mrf.mxu1  ;;  %v8049_v29 = vadd.f32 %v14747_v31, %v7295_v9  ;;  %v15314_v9 = vld [vmem:[#allocation16_spill] sm:$0xff]  ;;  %v8052_v54 = vadd.f32 %v14769_v19, %v7298_v15  ;;  %v8055_v6 = vadd.f32 %v14790_v14, %v7301_v58 }
 0x42e   : > { %8679 = vst.msk [vmem:[%s14786_s25 + $0x50] sm:$0xff] %vm363_vm0, %v8647_v56  ;;  %v8645_v27 = vmax.f32 %v8613_v8, 0.0  ;;  %v8616_v36 = vadd.f32 %v9244_v2, %v8584_v18  ;;  %v8582_v20 = vadd.f32 %v14764_v52, %v8543_v22  ;;  %v8548_v47 = vadd.f32 %v10799_v41, %v8050_v39  ;;  %v9248_v2 = vld [vmem:[%s11030_s10 + $0xc9] sm:$0xff]  ;;  %v14896_v39 = vpop.f32.mrf.mxu0  ;;  %v9249_v15 = vld [vmem:[%s11030_s10 + $0xd9] sm:$0xff] }
 0x42f   : > { %v8455_v28 = vpop.f32.mrf.mxu1  ;;  %v15313_v22 = vld [vmem:[#allocation29_spill] sm:$0xff]  ;;  %v6917_v5 = vadd.f32 %v15315_v10, %v15314_v9 }
 0x430   : > { %8677 = vst.msk [vmem:[%s14786_s25 + $0x40] sm:$0xff] %vm363_vm0, %v8645_v27  ;;  %v8648_v33 = vmax.f32 %v8616_v36, 0.0  ;;  %v8614_v49 = vadd.f32 %v9242_v24, %v8582_v20  ;;  %v8587_v44 = vadd.f32 %v14764_v52, %v8548_v47  ;;  %v8546_v16 = vadd.f32 %v8455_v28, %v8048_v46  ;;  %v15316_v36 = vld [vmem:[#allocation31_spill] sm:$0xff]  ;;  %v15317_v47 = vld [vmem:[#allocation4_spill] sm:$0xff] }
 0x431   : > { %v10800_v42 = vpop.f32.mrf.mxu1  ;;  %v7299_v13 = vadd.f32 %v15313_v22, %v6912_v26  ;;  %v7304_v20 = vadd.f32 %v15316_v36, %v6917_v5  ;;  %v6915_v61 = vadd.f32 %v15318_v25, %v15317_v47  ;;  %v9250_v22 = vld [vmem:[%s11030_s10 + $0xe1] sm:$0xff] }
 0x432   : > { %8680 = vst.msk [vmem:[%s14786_s25 + $0x58] sm:$0xff] %vm363_vm0, %v8648_v33  ;;  %v8646_v30 = vmax.f32 %v8614_v49, 0.0  ;;  %v8619_v55 = vadd.f32 %v9247_v17, %v8587_v44  ;;  %v8585_v53 = vadd.f32 %v14764_v52, %v8546_v16  ;;  %v8549_v50 = vadd.f32 %v10800_v42, %v8051_v62  ;;  %v14914_v17 = vpop.f32.mrf.mxu0  ;;  %v15319_v33 = vld [vmem:[#allocation32_spill] sm:$0xff]  ;;  %v15320_v44 = vld [vmem:[#allocation3_spill] sm:$0xff] }
 0x433   : > { %v8458_v40 = vpop.f32.mrf.mxu1  ;;  %v7302_v49 = vadd.f32 %v15319_v33, %v6915_v61  ;;  %v15321_v16 = vld [vmem:[#allocation48_spill] sm:$0xff]  ;;  %v8053_v14 = vadd.f32 %v14806_v37, %v7299_v13  ;;  %v8058_v23 = vadd.f32 %v14824_v21, %v7304_v20 }
 0x434   : > { %8678 = vst.msk [vmem:[%s14786_s25 + $0x48] sm:$0xff] %vm363_vm0, %v8646_v30  ;;  %v8651_v31 = vmax.f32 %v8619_v55, 0.0  ;;  %v8617_v56 = vadd.f32 %v9245_v63, %v8585_v53  ;;  %v8588_v8 = vadd.f32 %v14764_v52, %v8549_v50  ;;  %v8547_v18 = vadd.f32 %v8458_v40, %v8049_v29  ;;  %v15322_v29 = vld [vmem:[#allocation33_spill] sm:$0xff]  ;;  %v15323_v55 = vld [vmem:[#allocation22_spill] sm:$0xff]  ;;  %v14932_v7 = vpop.f32.mrf.mxu0 }
 0x435   : > { %v10803_v24 = vpop.f32.mrf.mxu1  ;;  %v6918_v32 = vadd.f32 %v15321_v16, %v15320_v44  ;;  %v15324_v53 = vld [vmem:[#allocation50_spill] sm:$0xff]  ;;  %v8056_v21 = vadd.f32 %v14842_v4, %v7302_v49 }
 0x436   : > { %8683 = vst.msk [vmem:[%s14786_s25 + $0x70] sm:$0xff] %vm363_vm0, %v8651_v31  ;;  %v8649_v41 = vmax.f32 %v8617_v56, 0.0  ;;  %v8620_v1 = vadd.f32 %v9248_v2, %v8588_v8  ;;  %v8586_v46 = vadd.f32 %v14764_v52, %v8547_v18  ;;  %v8552_v27 = vadd.f32 %v10803_v24, %v8054_v57  ;;  %v15325_v57 = vld [vmem:[#allocation34_spill] sm:$0xff]  ;;  %v15326_v56 = vld [vmem:[#allocation17_spill] sm:$0xff]  ;;  %v15328_v24 = vld [vmem:[#allocation36_spill] sm:$0xff]  ;;  %v8008_v47 = vpop.f32.mrf.mxu0 }
 0x437   : > { %v8471_v48 = vpop.f32.mrf.mxu1  ;;  %v7305_v30 = vadd.f32 %v15322_v29, %v6918_v32  ;;  %v6916_v50 = vadd.f32 %v15324_v53, %v15323_v55  ;;  %v15327_v8 = vld [vmem:[#allocation53_spill] sm:$0xff] }
 0x438   : > { %8681 = vst.msk [vmem:[%s14786_s25 + $0x60] sm:$0xff] %vm363_vm0, %v8649_v41  ;;  %v8652_v19 = vmax.f32 %v8620_v1, 0.0  ;;  %v8618_v28 = vadd.f32 %v9246_v11, %v8586_v46  ;;  %v8591_v51 = vadd.f32 %v14764_v52, %v8552_v27  ;;  %v8550_v62 = vadd.f32 %v8471_v48, %v8052_v54  ;;  %v15329_v41 = vld [vmem:[#allocation7_spill] sm:$0xff]  ;;  %v9255_v27 = vld [vmem:[%s11030_s10 + $0x121] sm:$0xff] }
 0x439   : > { %v10804_v3 = vpop.f32.mrf.mxu1  ;;  %v7303_v31 = vadd.f32 %v15325_v57, %v6916_v50  ;;  %v6921_v18 = vadd.f32 %v15327_v8, %v15326_v56  ;;  %v15330_v1 = vld [vmem:[#allocation11_spill] sm:$0xff]  ;;  %v8059_v20 = vadd.f32 %v14860_v0, %v7305_v30  ;;  %v15331_v48 = vld [vmem:[#allocation37_spill] sm:$0xff]  ;;  %v10775_v0 = vpop.f32.mrf.mxu0 }
 0x43a   : > { %8684 = vst.msk [vmem:[%s14786_s25 + $0x78] sm:$0xff] %vm363_vm0, %v8652_v19  ;;  %v8650_v45 = vmax.f32 %v8618_v28, 0.0  ;;  %v8623_v12 = vadd.f32 %v9251_v38, %v8591_v51  ;;  %v8589_v63 = vadd.f32 %v14764_v52, %v8550_v62  ;;  %v8553_v42 = vadd.f32 %v10804_v3, %v8055_v6  ;;  %v15332_v19 = vld [vmem:[#allocation8_spill] sm:$0xff]  ;;  %v15333_v28 = vld [vmem:[#allocation13_spill] sm:$0xff]  ;;  %v15334_v3 = vld [vmem:[#allocation39_spill] sm:$0xff] }
 0x43b   : > { %v8474_v58 = vpop.f32.mrf.mxu1  ;;  %v7308_v54 = vadd.f32 %v15328_v24, %v6921_v18  ;;  %v6919_v46 = vadd.f32 %v15330_v1, %v15329_v41  ;;  %v6922_v51 = vadd.f32 %v15333_v28, %v15332_v19  ;;  %v9253_v62 = vld [vmem:[%s11030_s10 + $0x109] sm:$0xff]  ;;  %v8057_v49 = vadd.f32 %v14878_v59, %v7303_v31  ;;  %v8021_v31 = vpop.f32.mrf.mxu0 }
 0x43c   : > { %8682 = vst.msk [vmem:[%s14786_s25 + $0x68] sm:$0xff] %vm363_vm0, %v8650_v45  ;;  %v8655_v37 = vmax.f32 %v8623_v12, 0.0  ;;  %v8621_v26 = vadd.f32 %v9249_v15, %v8589_v63  ;;  %v8592_v2 = vadd.f32 %v14764_v52, %v8553_v42  ;;  %v8551_v40 = vadd.f32 %v8474_v58, %v8053_v14  ;;  %v15335_v45 = vld [vmem:[#allocation9_spill] sm:$0xff]  ;;  %v15336_v12 = vld [vmem:[#allocation6_spill] sm:$0xff] }
 0x43d   : > { %v10807_v13 = vpop.f32.mrf.mxu1  ;;  %v7306_v6 = vadd.f32 %v15331_v48, %v6919_v46  ;;  %v7309_v14 = vadd.f32 %v15334_v3, %v6922_v51  ;;  %v6920_v63 = vadd.f32 %v15336_v12, %v15335_v45  ;;  %v9256_v42 = vld [vmem:[%s11030_s10 + $0x129] sm:$0xff]  ;;  %v8062_v30 = vadd.f32 %v14896_v39, %v7308_v54  ;;  %v15345_v51 = vld [vmem:[#allocation24_spill] sm:$0xff] }
 0x43e   : > { %8687 = vst.msk [vmem:[%s14786_s25 + $0x90] sm:$0xff] %vm363_vm0, %v8655_v37  ;;  %v8653_v9 = vmax.f32 %v8621_v26, 0.0  ;;  %v8624_v10 = vadd.f32 %v9252_v60, %v8592_v2  ;;  %v8590_v5 = vadd.f32 %v14764_v52, %v8551_v40  ;;  %v8556_v11 = vadd.f32 %v10807_v13, %v8058_v23  ;;  %v15337_v60 = vld [vmem:[#allocation54_spill] sm:$0xff]  ;;  %v15338_v23 = vld [vmem:[#allocation12_spill] sm:$0xff]  ;;  %v15339_v37 = vld [vmem:[#allocation23_spill] sm:$0xff] }
 0x43f   : > { %v8487_v36 = vpop.f32.mrf.mxu1  ;;  %v7307_v58 = vadd.f32 %v15337_v60, %v6920_v63  ;;  %v6925_v26 = vadd.f32 %v15339_v37, %v15338_v23  ;;  %v9254_v2 = vld [vmem:[%s11030_s10 + $0x111] sm:$0xff]  ;;  %v8060_v57 = vadd.f32 %v14914_v17, %v7306_v6  ;;  %v8063_v24 = vadd.f32 %v14932_v7, %v7309_v14  ;;  %v9261_v23 = vld [vmem:[%s11030_s10 + $0x169] sm:$0xff] }
 0x440   : > { %8685 = vst.msk [vmem:[%s14786_s25 + $0x80] sm:$0xff] %vm363_vm0, %v8653_v9  ;;  %v8656_v4 = vmax.f32 %v8624_v10, 0.0  ;;  %v8622_v25 = vadd.f32 %v9250_v22, %v8590_v5  ;;  %v8595_v61 = vadd.f32 %v14764_v52, %v8556_v11  ;;  %v8554_v38 = vadd.f32 %v8487_v36, %v8056_v21  ;;  %v15340_v22 = vld [vmem:[#allocation56_spill] sm:$0xff]  ;;  %v15342_v9 = vld [vmem:[#allocation27_spill] sm:$0xff]  ;;  %v15344_v36 = vld [vmem:[#allocation10_spill] sm:$0xff] }
 0x441   : > { %v10808_v33 = vpop.f32.mrf.mxu1  ;;  %v7312_v13 = vadd.f32 %v15340_v22, %v6925_v26  ;;  %v15341_v21 = vld [vmem:[#allocation20_spill] sm:$0xff]  ;;  %v9259_v5 = vld [vmem:[%s11030_s10 + $0x151] sm:$0xff] }
 0x442   : > { %8688 = vst.msk [vmem:[%s14786_s25 + $0x98] sm:$0xff] %vm363_vm0, %v8656_v4  ;;  %v8654_v44 = vmax.f32 %v8622_v25, 0.0  ;;  %v8627_v16 = vadd.f32 %v9255_v27, %v8595_v61  ;;  %v8593_v32 = vadd.f32 %v14764_v52, %v8554_v38  ;;  %v8557_v15 = vadd.f32 %v10808_v33, %v8059_v20  ;;  %v15343_v27 = vld [vmem:[#allocation15_spill] sm:$0xff]  ;;  %v10776_v38 = vpop.f32.mrf.mxu0 }
 0x443   : > { %v8490_v29 = vpop.f32.mrf.mxu1  ;;  %v6923_v10 = vadd.f32 %v15342_v9, %v15341_v21  ;;  %v6926_v20 = vadd.f32 %v15344_v36, %v15343_v27  ;;  %v9257_v4 = vld [vmem:[%s11030_s10 + $0x139] sm:$0xff]  ;;  %v8061_v61 = vadd.f32 %v8008_v47, %v7307_v58  ;;  %v8066_v28 = vadd.f32 %v10775_v0, %v7312_v13  ;;  %v9258_v0 = vld [vmem:[%s11030_s10 + $0x141] sm:$0xff]  ;;  %v9262_v13 = vld [vmem:[%s11030_s10 + $0x171] sm:$0xff] }
 0x444   : > { %8686 = vst.msk [vmem:[%s14786_s25 + $0x88] sm:$0xff] %vm363_vm0, %v8654_v44  ;;  %v8659_v59 = vmax.f32 %v8627_v16, 0.0  ;;  %v8625_v55 = vadd.f32 %v9253_v62, %v8593_v32  ;;  %v8596_v53 = vadd.f32 %v14764_v52, %v8557_v15  ;;  %v8555_v50 = vadd.f32 %v8490_v29, %v8057_v49  ;;  %v15346_v62 = vld [vmem:[#allocation14_spill] sm:$0xff]  ;;  %v9260_v49 = vld [vmem:[%s11030_s10 + $0x159] sm:$0xff] }
 0x445   : > { %v10811_v40 = vpop.f32.mrf.mxu1  ;;  %v7310_v46 = vadd.f32 %v14743_v35, %v6923_v10  ;;  %v7313_v35 = vadd.f32 %v14749_v34, %v6926_v20  ;;  %v6924_v33 = vadd.f32 %v15346_v62, %v15345_v51  ;;  %v8024_v34 = vpop.f32.mrf.mxu0 }
 0x446   : > { %8691 = vst.msk [vmem:[%s14786_s25 + $0xb0] sm:$0xff] %vm363_vm0, %v8659_v59  ;;  %v8657_v39 = vmax.f32 %v8625_v55, 0.0  ;;  %v8628_v56 = vadd.f32 %v9256_v42, %v8596_v53  ;;  %v8594_v8 = vadd.f32 %v14764_v52, %v8555_v50  ;;  %v8560_v18 = vadd.f32 %v10811_v40, %v8062_v30  ;;  %v9263_v59 = vld [vmem:[%s11030_s10 + $0x181] sm:$0xff] }
 0x447   : > { %v8503_v11 = vpop.f32.mrf.mxu1  ;;  %v8064_v3 = vadd.f32 %v8021_v31, %v7310_v46  ;;  %v7311_v14 = vadd.f32 %v14753_v43, %v6924_v33  ;;  %v8067_v30 = vadd.f32 %v10776_v38, %v7313_v35  ;;  %v9264_v31 = vld [vmem:[%s11030_s10 + $0x189] sm:$0xff] }
 0x448   : > { %8689 = vst.msk [vmem:[%s14786_s25 + $0xa0] sm:$0xff] %vm363_vm0, %v8657_v39  ;;  %v8660_v17 = vmax.f32 %v8628_v56, 0.0  ;;  %v8626_v54 = vadd.f32 %v9254_v2, %v8594_v8  ;;  %v8599_v41 = vadd.f32 %v14764_v52, %v8560_v18  ;;  %v8558_v1 = vadd.f32 %v8503_v11, %v8060_v57 }
 0x449   : > { %v10812_v25 = vpop.f32.mrf.mxu1  ;;  %v8065_v58 = vadd.f32 %v8024_v34, %v7311_v14 }
 0x44a   : > { %8692 = vst.msk [vmem:[%s14786_s25 + $0xb8] sm:$0xff] %vm363_vm0, %v8660_v17  ;;  %v8658_v7 = vmax.f32 %v8626_v54, 0.0  ;;  %v8631_v48 = vadd.f32 %v9259_v5, %v8599_v41  ;;  %v8597_v6 = vadd.f32 %v14764_v52, %v8558_v1  ;;  %v8561_v19 = vadd.f32 %v10812_v25, %v8063_v24 }
 0x44b   : > { %v8506_v44 = vpop.f32.mrf.mxu1 }
 0x44c   : > { %8690 = vst.msk [vmem:[%s14786_s25 + $0xa8] sm:$0xff] %vm363_vm0, %v8658_v7  ;;  %v8663_v47 = vmax.f32 %v8631_v48, 0.0  ;;  %v8629_v16 = vadd.f32 %v9257_v4, %v8597_v6  ;;  %v8600_v32 = vadd.f32 %v14764_v52, %v8561_v19  ;;  %v8559_v15 = vadd.f32 %v8506_v44, %v8061_v61 }
 0x44d   : > { %v10815_v45 = vpop.f32.mrf.mxu1 }
 0x44e   : > { %8695 = vst.msk [vmem:[%s14786_s25 + $0xd0] sm:$0xff] %vm363_vm0, %v8663_v47  ;;  %v8661_v12 = vmax.f32 %v8629_v16, 0.0  ;;  %v8632_v63 = vadd.f32 %v9260_v49, %v8600_v32  ;;  %v8598_v42 = vadd.f32 %v14764_v52, %v8559_v15  ;;  %v8564_v29 = vadd.f32 %v10815_v45, %v8066_v28 }
 0x44f   : > { %v8519_v55 = vpop.f32.mrf.mxu1 }
 0x450   : > { %8693 = vst.msk [vmem:[%s14786_s25 + $0xc0] sm:$0xff] %vm363_vm0, %v8661_v12  ;;  %v8664_v43 = vmax.f32 %v8632_v63, 0.0  ;;  %v8630_v53 = vadd.f32 %v9258_v0, %v8598_v42  ;;  %v8603_v50 = vadd.f32 %v14764_v52, %v8564_v29  ;;  %v8562_v60 = vadd.f32 %v8519_v55, %v8064_v3 }
 0x451   : > { %v10816_v37 = vpop.f32.mrf.mxu1 }
 0x452   : > { %8696 = vst.msk [vmem:[%s14786_s25 + $0xd8] sm:$0xff] %vm363_vm0, %v8664_v43  ;;  %v8662_v26 = vmax.f32 %v8630_v53, 0.0  ;;  %v8635_v2 = vadd.f32 %v9263_v59, %v8603_v50  ;;  %v8601_v40 = vadd.f32 %v14764_v52, %v8562_v60  ;;  %v8565_v57 = vadd.f32 %v10816_v37, %v8067_v30 }
 0x453   : > { %v8522_v39 = vpop.f32.mrf.mxu1 }
 0x454   : > { %8694 = vst.msk [vmem:[%s14786_s25 + $0xc8] sm:$0xff] %vm363_vm0, %v8662_v26  ;;  %v8667_v56 = vmax.f32 %v8635_v2, 0.0  ;;  %v8633_v8 = vadd.f32 %v9261_v23, %v8601_v40  ;;  %v8604_v18 = vadd.f32 %v14764_v52, %v8565_v57  ;;  %v8563_v22 = vadd.f32 %v8522_v39, %v8065_v58 }
 0x456   : > { %8699 = vst.msk [vmem:[%s14786_s25 + $0xf0] sm:$0xff] %vm363_vm0, %v8667_v56  ;;  %v8665_v21 = vmax.f32 %v8633_v8, 0.0  ;;  %v8636_v9 = vadd.f32 %v9264_v31, %v8604_v18  ;;  %v8602_v10 = vadd.f32 %v14764_v52, %v8563_v22 }
 0x458   : > { %8697 = vst.msk [vmem:[%s14786_s25 + $0xe0] sm:$0xff] %vm363_vm0, %v8665_v21  ;;  %v8668_v5 = vmax.f32 %v8636_v9, 0.0  ;;  %v8634_v11 = vadd.f32 %v9262_v13, %v8602_v10 }
 0x45a   : > { %8700 = vst.msk [vmem:[%s14786_s25 + $0xf8] sm:$0xff] %vm363_vm0, %v8668_v5  ;;  %v8666_v24 = vmax.f32 %v8634_v11, 0.0 }
 0x45c   : > { %8698 = vst.msk [vmem:[%s14786_s25 + $0xe8] sm:$0xff] %vm363_vm0, %v8666_v24 }
 0x45d PF: > { %s15_s18 = sadd.s32 1, %s10965_s18  }
 0x45e   : > { %p12_p4 = scmp.ge.s32.totalorder %s15_s18, 4  }
 0x460   :  { %14 = sbr.rel (!%p12_p4) target bundleno = 1 (0x1), region = 90 }

</bundles_post_ra>
